<compile_context>
chip_gen: v7x
topology: tpu7x:2x2x1
jax: 0.10.0
libtpu: 0.0.40
codegen_flags: <defaults>
</compile_context>

<pallas_src>
import functools

import jax
import jax.numpy as jnp
from jax import lax
from jax.experimental import pallas as pl
from jax.experimental.pallas import tpu as pltpu


# ----------------------------------------------------------------------------
# Fused whole-DenseBlock kernel (one batch image per grid step)
# ----------------------------------------------------------------------------
def _dense_block_kernel(num_layers, *refs):
    """refs = (x0,                              # (1, H, W, C0) f32
               [s1, b1, w1, s2, b2, w2] * L,    # per-layer params
               o,                               # (1, H*W, C_total) f32 output
               feat,                            # (H*W, C_total) f32 VMEM scratch
               zpad)                            # (H+2, W+2, Cb) bf16 VMEM scratch
    """
    x0_ref = refs[0]
    layer_refs = refs[1:1 + 6 * num_layers]
    o_ref = refs[1 + 6 * num_layers]
    feat_ref, zpad_ref = refs[2 + 6 * num_layers:]

    H, W, c0 = x0_ref.shape[1], x0_ref.shape[2], x0_ref.shape[3]
    cb = zpad_ref.shape[2]

    # Zero the 3x3-conv halo once per grid step: the interior is fully
    # rewritten by every layer before the taps read it, so only the border
    # needs zeros and they persist across the layer loop.  Not gated on
    # program_id (each megacore core has its own uninitialized scratch).
    zpad_ref[...] = jnp.zeros_like(zpad_ref)

    # Seed the resident feature map with the initial features.
    feat_ref[:, :c0] = x0_ref[0].reshape(H * W, c0)

    cin = c0
    for li in range(num_layers):
        s1_ref, b1_ref, w1_ref, s2_ref, b2_ref, w2_ref = (
            layer_refs[6 * li:6 * li + 6])
        g = w2_ref.shape[2]

        # ---- BN1 + ReLU + 1x1 conv (bf16 operands, f32 MXU accumulation) ----
        x = feat_ref[:, :cin]                                     # (H*W, cin) f32
        z1 = jnp.maximum(x * s1_ref[...] + b1_ref[...], 0.0).astype(jnp.bfloat16)
        y = jnp.dot(z1, w1_ref[...], preferred_element_type=jnp.float32)

        # ---- BN2 + ReLU into the zero-padded halo buffer ----
        z2 = jnp.maximum(y * s2_ref[...] + b2_ref[...], 0.0).astype(jnp.bfloat16)
        zpad_ref[1:H + 1, 1:W + 1, :] = z2.reshape(H, W, cb)

        # ---- 3x3 conv (pad=1) as 9 accumulating dots (no 9*Cb lane concat) ----
        acc = None
        for kh in range(3):
            for kw in range(3):
                tap = zpad_ref[kh:kh + H, kw:kw + W, :].reshape(H * W, cb)
                d = jnp.dot(tap, w2_ref[3 * kh + kw],
                            preferred_element_type=jnp.float32)
                acc = d if acc is None else acc + d

        # Dropout: identity in eval mode.  Append new features in place.
        feat_ref[:, cin:cin + g] = acc
        cin += g

    # Single contiguous writeback of the whole concatenated block.
    o_ref[0] = feat_ref[...]


# ----------------------------------------------------------------------------
# Wrappers
# ----------------------------------------------------------------------------
def _bn_scale_shift(gamma, beta, mean, var, eps=1e-5):
    scale = gamma / jnp.sqrt(var + eps)
    shift = beta - mean * scale
    return scale[None, :], shift[None, :]


def dense_block_forward(init_features, layers_params):
    """init_features: (N, C0, H, W) NCHW f32. Returns (N, C0 + L*G, H, W)."""
    N, c0, H, W = init_features.shape
    num_layers = len(layers_params)

    # NCHW -> NHWC exactly once at block entry.
    x0 = jnp.transpose(init_features, (0, 2, 3, 1)).astype(jnp.float32)

    g = int(layers_params[0]["conv2_w"].shape[0])
    cb = int(layers_params[0]["conv2_w"].shape[1])
    c_total = c0 + num_layers * g

    args = [x0]
    in_specs = [pl.BlockSpec((1, H, W, c0), lambda n: (n, 0, 0, 0))]
    cin = c0
    for p in layers_params:
        s1, b1 = _bn_scale_shift(p["bn1_gamma"], p["bn1_beta"],
                                 p["bn1_mean"], p["bn1_var"])
        w1 = jnp.transpose(p["conv1_w"][:, :, 0, 0], (1, 0)).astype(jnp.bfloat16)
        s2, b2 = _bn_scale_shift(p["bn2_gamma"], p["bn2_beta"],
                                 p["bn2_mean"], p["bn2_var"])
        # (G, Cb, 3, 3) -> (kh, kw, Cb, G) -> (9, Cb, G): tap k = 3*kh + kw
        # matches the kernel's shifted-slice order (cross-correlation, pad=1).
        w2 = jnp.transpose(p["conv2_w"], (2, 3, 1, 0)).reshape(
            9, cb, g).astype(jnp.bfloat16)
        args += [s1, b1, w1, s2, b2, w2]
        in_specs += [
            pl.BlockSpec((1, cin), lambda n: (0, 0)),
            pl.BlockSpec((1, cin), lambda n: (0, 0)),
            pl.BlockSpec((cin, cb), lambda n: (0, 0)),
            pl.BlockSpec((1, cb), lambda n: (0, 0)),
            pl.BlockSpec((1, cb), lambda n: (0, 0)),
            pl.BlockSpec((9, cb, g), lambda n: (0, 0, 0)),
        ]
        cin += g

    out = pl.pallas_call(
        functools.partial(_dense_block_kernel, num_layers),
        out_shape=jax.ShapeDtypeStruct((N, H * W, c_total), jnp.float32),
        grid=(N,),
        in_specs=in_specs,
        out_specs=pl.BlockSpec((1, H * W, c_total), lambda n: (n, 0, 0)),
        scratch_shapes=[
            pltpu.VMEM((H * W, c_total), jnp.float32),      # resident features
            pltpu.VMEM((H + 2, W + 2, cb), jnp.bfloat16),   # 3x3 zero-pad halo
        ],
        compiler_params=pltpu.CompilerParams(
            dimension_semantics=("parallel",)),
    )(*args)

    # (N, H*W, C) -> NHWC (free contiguous reshape) -> NCHW (single transpose
    # at block exit).
    return jnp.transpose(out.reshape(N, H, W, c_total), (0, 3, 1, 2))


# ----------------------------------------------------------------------------
# Pure-JAX reference (same bf16 operand rounding, for correctness check)
# ----------------------------------------------------------------------------
def dense_block_reference(init_features, layers_params):
    x0 = jnp.transpose(init_features, (0, 2, 3, 1)).astype(jnp.float32)
    features = [x0]
    for p in layers_params:
        x = jnp.concatenate(features, axis=-1)
        s1, b1 = _bn_scale_shift(p["bn1_gamma"], p["bn1_beta"],
                                 p["bn1_mean"], p["bn1_var"])
        z1 = jnp.maximum(x * s1 + b1, 0.0).astype(jnp.bfloat16)
        w1 = jnp.transpose(p["conv1_w"][:, :, 0, 0], (1, 0)).astype(jnp.bfloat16)
        y = jnp.einsum("nhwc,cd->nhwd", z1, w1,
                       preferred_element_type=jnp.float32)
        s2, b2 = _bn_scale_shift(p["bn2_gamma"], p["bn2_beta"],
                                 p["bn2_mean"], p["bn2_var"])
        z2 = jnp.maximum(y * s2 + b2, 0.0).astype(jnp.bfloat16)
        w2 = jnp.transpose(p["conv2_w"], (2, 3, 1, 0)).astype(jnp.bfloat16)
        out = lax.conv_general_dilated(
            z2, w2, window_strides=(1, 1), padding="SAME",
            dimension_numbers=("NHWC", "HWIO", "NHWC"),
            preferred_element_type=jnp.float32)
        features.append(out)
    return jnp.transpose(jnp.concatenate(features, axis=-1), (0, 3, 1, 2))


# ----------------------------------------------------------------------------
if __name__ == "__main__":
    # DenseBlock(num_layers=2, num_features=8, bottleneck_size=4, growth_rate=8)
    N, H, W = 2, 16, 16
    num_features, num_layers = 8, 2
    growth_rate, bottleneck_size = 8, 4

    key = jax.random.PRNGKey(0)
    keys = jax.random.split(key, num_layers + 1)
    init_features = jax.random.normal(keys[0], (N, num_features, H, W),
                                      jnp.float32)

    def make_layer_params(k, cin):
        cb = growth_rate * bottleneck_size
        ks = jax.random.split(k, 10)
        return {
            "bn1_gamma": jax.random.uniform(ks[0], (cin,), jnp.float32, 0.5, 1.5),
            "bn1_beta":  jax.random.normal(ks[1], (cin,), jnp.float32) * 0.1,
            "bn1_mean":  jax.random.normal(ks[2], (cin,), jnp.float32) * 0.1,
            "bn1_var":   jax.random.uniform(ks[3], (cin,), jnp.float32, 0.5, 1.5),
            "conv1_w":   jax.random.normal(ks[4], (cb, cin, 1, 1), jnp.float32) * 0.1,
            "bn2_gamma": jax.random.uniform(ks[5], (cb,), jnp.float32, 0.5, 1.5),
            "bn2_beta":  jax.random.normal(ks[6], (cb,), jnp.float32) * 0.1,
            "bn2_mean":  jax.random.normal(ks[7], (cb,), jnp.float32) * 0.1,
            "bn2_var":   jax.random.uniform(ks[8], (cb,), jnp.float32, 0.5, 1.5),
            "conv2_w":   jax.random.normal(ks[9], (growth_rate, cb, 3, 3),
                                           jnp.float32) * 0.05,
        }

    layers_params = [
        make_layer_params(keys[i + 1], num_features + i * growth_rate)
        for i in range(num_layers)
    ]

    out = jax.jit(dense_block_forward)(init_features, layers_params)
    out = jax.block_until_ready(out)
    assert out.shape == (N, num_features + num_layers * growth_rate, H, W), out.shape

    ref = dense_block_reference(init_features, layers_params)
    max_err = float(jnp.max(jnp.abs(out - ref)))
    assert jnp.allclose(out, ref, atol=2e-2, rtol=2e-2), max_err

    print("KERNEL_OK")
</pallas_src>

<mosaic_0001>
module attributes {stable_mosaic.version = 11 : i64} {
  func.func @_dense_block_kernel(%arg0: i32, %arg1: memref<1x16x16x8xf32, #tpu.memory_space<vmem>>, %arg2: memref<1x8xf32, #tpu.memory_space<vmem>>, %arg3: memref<1x8xf32, #tpu.memory_space<vmem>>, %arg4: memref<8x32xbf16, #tpu.memory_space<vmem>>, %arg5: memref<1x32xf32, #tpu.memory_space<vmem>>, %arg6: memref<1x32xf32, #tpu.memory_space<vmem>>, %arg7: memref<9x32x8xbf16, #tpu.memory_space<vmem>>, %arg8: memref<1x16xf32, #tpu.memory_space<vmem>>, %arg9: memref<1x16xf32, #tpu.memory_space<vmem>>, %arg10: memref<16x32xbf16, #tpu.memory_space<vmem>>, %arg11: memref<1x32xf32, #tpu.memory_space<vmem>>, %arg12: memref<1x32xf32, #tpu.memory_space<vmem>>, %arg13: memref<9x32x8xbf16, #tpu.memory_space<vmem>>, %arg14: memref<1x256x24xf32, #tpu.memory_space<vmem>>, %arg15: memref<256x24xf32, #tpu.memory_space<vmem>>, %arg16: memref<18x18x32xbf16, #tpu.memory_space<vmem>>) attributes {dimension_semantics = [#tpu.dimension_semantics<parallel>], iteration_bounds = array<i64: 2>, scalar_prefetch = 0 : i64, scratch_operands = 2 : i64, tpu.core_type = #tpu.core_type<tc>, window_params = [{transform_indices = @transform_0, window_bounds = array<i64: 1, 16, 16, 8>}, {pipeline_mode = #tpu.pipeline_mode<synchronous>, transform_indices = @transform_1, window_bounds = array<i64: 1, 8>}, {pipeline_mode = #tpu.pipeline_mode<synchronous>, transform_indices = @transform_2, window_bounds = array<i64: 1, 8>}, {pipeline_mode = #tpu.pipeline_mode<synchronous>, transform_indices = @transform_3, window_bounds = array<i64: 8, 32>}, {pipeline_mode = #tpu.pipeline_mode<synchronous>, transform_indices = @transform_4, window_bounds = array<i64: 1, 32>}, {pipeline_mode = #tpu.pipeline_mode<synchronous>, transform_indices = @transform_5, window_bounds = array<i64: 1, 32>}, {pipeline_mode = #tpu.pipeline_mode<synchronous>, transform_indices = @transform_6, window_bounds = array<i64: 9, 32, 8>}, {pipeline_mode = #tpu.pipeline_mode<synchronous>, transform_indices = @transform_7, window_bounds = array<i64: 1, 16>}, {pipeline_mode = #tpu.pipeline_mode<synchronous>, transform_indices = @transform_8, window_bounds = array<i64: 1, 16>}, {pipeline_mode = #tpu.pipeline_mode<synchronous>, transform_indices = @transform_9, window_bounds = array<i64: 16, 32>}, {pipeline_mode = #tpu.pipeline_mode<synchronous>, transform_indices = @transform_10, window_bounds = array<i64: 1, 32>}, {pipeline_mode = #tpu.pipeline_mode<synchronous>, transform_indices = @transform_11, window_bounds = array<i64: 1, 32>}, {pipeline_mode = #tpu.pipeline_mode<synchronous>, transform_indices = @transform_12, window_bounds = array<i64: 9, 32, 8>}, {transform_indices = @transform_13, window_bounds = array<i64: 1, 256, 24>}]} {
    %cst = arith.constant 0.000000e+00 : bf16
    %0 = vector.broadcast %cst : bf16 to vector<18x18x32xbf16>
    %c0 = arith.constant 0 : index
    %c0_0 = arith.constant 0 : index
    %c0_1 = arith.constant 0 : index
    %1 = vector.load %arg16[%c0, %c0_0, %c0_1] : memref<18x18x32xbf16, #tpu.memory_space<vmem>>, vector<18x18x32xbf16>
    tpu.vector_store %arg16[%c0, %c0_0, %c0_1], %0 {strides = array<i32>} : memref<18x18x32xbf16, #tpu.memory_space<vmem>>, vector<18x18x32xbf16>,
    %c0_2 = arith.constant 0 : index
    %c0_3 = arith.constant 0 : index
    %c0_4 = arith.constant 0 : index
    %c0_5 = arith.constant 0 : index
    %2 = vector.load %arg1[%c0_2, %c0_3, %c0_4, %c0_5] : memref<1x16x16x8xf32, #tpu.memory_space<vmem>>, vector<1x16x16x8xf32>
    %3 = vector.shape_cast %2 : vector<1x16x16x8xf32> to vector<16x16x8xf32>
    %4 = vector.shape_cast %3 : vector<16x16x8xf32> to vector<256x8xf32>
    %c0_6 = arith.constant 0 : index
    %c0_7 = arith.constant 0 : index
    %5 = vector.load %arg15[%c0_6, %c0_7] : memref<256x24xf32, #tpu.memory_space<vmem>>, vector<256x8xf32>
    tpu.vector_store %arg15[%c0_6, %c0_7], %4 {strides = array<i32>} : memref<256x24xf32, #tpu.memory_space<vmem>>, vector<256x8xf32>,
    %c0_8 = arith.constant 0 : index
    %c0_9 = arith.constant 0 : index
    %6 = vector.load %arg15[%c0_8, %c0_9] : memref<256x24xf32, #tpu.memory_space<vmem>>, vector<256x8xf32>
    %c0_10 = arith.constant 0 : index
    %c0_11 = arith.constant 0 : index
    %7 = vector.load %arg2[%c0_10, %c0_11] : memref<1x8xf32, #tpu.memory_space<vmem>>, vector<1x8xf32>
    %8 = vector.broadcast %7 : vector<1x8xf32> to vector<256x8xf32>
    %9 = arith.mulf %6, %8 : vector<256x8xf32>
    %c0_12 = arith.constant 0 : index
    %c0_13 = arith.constant 0 : index
    %10 = vector.load %arg3[%c0_12, %c0_13] : memref<1x8xf32, #tpu.memory_space<vmem>>, vector<1x8xf32>
    %11 = vector.broadcast %10 : vector<1x8xf32> to vector<256x8xf32>
    %12 = arith.addf %9, %11 : vector<256x8xf32>
    %cst_14 = arith.constant 0.000000e+00 : f32
    %13 = vector.broadcast %cst_14 : f32 to vector<256x8xf32>
    %14 = arith.maximumf %12, %13 : vector<256x8xf32>
    %15 = arith.truncf %14 : vector<256x8xf32> to vector<256x8xbf16>
    %c0_15 = arith.constant 0 : index
    %c0_16 = arith.constant 0 : index
    %16 = vector.load %arg4[%c0_15, %c0_16] : memref<8x32xbf16, #tpu.memory_space<vmem>>, vector<8x32xbf16>
    %cst_17 = arith.constant dense<0.000000e+00> : vector<256x32xf32>
    %17 = tpu.matmul %15, %16, %cst_17 {dimension_numbers = #tpu.dot_dimension_numbers<[1], [0], [0], [1], [0, 0, 1, 1], [], []>} : vector<256x8xbf16>, vector<8x32xbf16>, vector<256x32xf32> -> vector<256x32xf32>
    %c0_18 = arith.constant 0 : index
    %c0_19 = arith.constant 0 : index
    %18 = vector.load %arg5[%c0_18, %c0_19] : memref<1x32xf32, #tpu.memory_space<vmem>>, vector<1x32xf32>
    %19 = vector.broadcast %18 : vector<1x32xf32> to vector<256x32xf32>
    %20 = arith.mulf %17, %19 : vector<256x32xf32>
    %c0_20 = arith.constant 0 : index
    %c0_21 = arith.constant 0 : index
    %21 = vector.load %arg6[%c0_20, %c0_21] : memref<1x32xf32, #tpu.memory_space<vmem>>, vector<1x32xf32>
    %22 = vector.broadcast %21 : vector<1x32xf32> to vector<256x32xf32>
    %23 = arith.addf %20, %22 : vector<256x32xf32>
    %cst_22 = arith.constant 0.000000e+00 : f32
    %24 = vector.broadcast %cst_22 : f32 to vector<256x32xf32>
    %25 = arith.maximumf %23, %24 : vector<256x32xf32>
    %26 = arith.truncf %25 : vector<256x32xf32> to vector<256x32xbf16>
    %27 = vector.shape_cast %26 : vector<256x32xbf16> to vector<16x16x32xbf16>
    %c1 = arith.constant 1 : index
    %c1_23 = arith.constant 1 : index
    %c0_24 = arith.constant 0 : index
    %28 = vector.load %arg16[%c1, %c1_23, %c0_24] : memref<18x18x32xbf16, #tpu.memory_space<vmem>>, vector<16x16x32xbf16>
    tpu.vector_store %arg16[%c1, %c1_23, %c0_24], %27 {strides = array<i32>} : memref<18x18x32xbf16, #tpu.memory_space<vmem>>, vector<16x16x32xbf16>,
    %c0_25 = arith.constant 0 : index
    %c0_26 = arith.constant 0 : index
    %c0_27 = arith.constant 0 : index
    %29 = vector.load %arg16[%c0_25, %c0_26, %c0_27] : memref<18x18x32xbf16, #tpu.memory_space<vmem>>, vector<16x16x32xbf16>
    %30 = vector.shape_cast %29 : vector<16x16x32xbf16> to vector<256x32xbf16>
    %c0_28 = arith.constant 0 : index
    %c0_29 = arith.constant 0 : index
    %c0_30 = arith.constant 0 : index
    %31 = vector.load %arg7[%c0_28, %c0_29, %c0_30] : memref<9x32x8xbf16, #tpu.memory_space<vmem>>, vector<1x32x8xbf16>
    %32 = vector.shape_cast %31 : vector<1x32x8xbf16> to vector<32x8xbf16>
    %cst_31 = arith.constant dense<0.000000e+00> : vector<256x8xf32>
    %33 = tpu.matmul %30, %32, %cst_31 {dimension_numbers = #tpu.dot_dimension_numbers<[1], [0], [0], [1], [0, 0, 1, 1], [], []>} : vector<256x32xbf16>, vector<32x8xbf16>, vector<256x8xf32> -> vector<256x8xf32>
    %c0_32 = arith.constant 0 : index
    %c1_33 = arith.constant 1 : index
    %c0_34 = arith.constant 0 : index
    %34 = vector.load %arg16[%c0_32, %c1_33, %c0_34] : memref<18x18x32xbf16, #tpu.memory_space<vmem>>, vector<16x16x32xbf16>
    %35 = vector.shape_cast %34 : vector<16x16x32xbf16> to vector<256x32xbf16>
    %c1_35 = arith.constant 1 : index
    %c0_36 = arith.constant 0 : index
    %c0_37 = arith.constant 0 : index
    %36 = vector.load %arg7[%c1_35, %c0_36, %c0_37] : memref<9x32x8xbf16, #tpu.memory_space<vmem>>, vector<1x32x8xbf16>
    %37 = vector.shape_cast %36 : vector<1x32x8xbf16> to vector<32x8xbf16>
    %cst_38 = arith.constant dense<0.000000e+00> : vector<256x8xf32>
    %38 = tpu.matmul %35, %37, %cst_38 {dimension_numbers = #tpu.dot_dimension_numbers<[1], [0], [0], [1], [0, 0, 1, 1], [], []>} : vector<256x32xbf16>, vector<32x8xbf16>, vector<256x8xf32> -> vector<256x8xf32>
    %39 = arith.addf %33, %38 : vector<256x8xf32>
    %c0_39 = arith.constant 0 : index
    %c2 = arith.constant 2 : index
    %c0_40 = arith.constant 0 : index
    %40 = vector.load %arg16[%c0_39, %c2, %c0_40] : memref<18x18x32xbf16, #tpu.memory_space<vmem>>, vector<16x16x32xbf16>
    %41 = vector.shape_cast %40 : vector<16x16x32xbf16> to vector<256x32xbf16>
    %c2_41 = arith.constant 2 : index
    %c0_42 = arith.constant 0 : index
    %c0_43 = arith.constant 0 : index
    %42 = vector.load %arg7[%c2_41, %c0_42, %c0_43] : memref<9x32x8xbf16, #tpu.memory_space<vmem>>, vector<1x32x8xbf16>
    %43 = vector.shape_cast %42 : vector<1x32x8xbf16> to vector<32x8xbf16>
    %cst_44 = arith.constant dense<0.000000e+00> : vector<256x8xf32>
    %44 = tpu.matmul %41, %43, %cst_44 {dimension_numbers = #tpu.dot_dimension_numbers<[1], [0], [0], [1], [0, 0, 1, 1], [], []>} : vector<256x32xbf16>, vector<32x8xbf16>, vector<256x8xf32> -> vector<256x8xf32>
    %45 = arith.addf %39, %44 : vector<256x8xf32>
    %c1_45 = arith.constant 1 : index
    %c0_46 = arith.constant 0 : index
    %c0_47 = arith.constant 0 : index
    %46 = vector.load %arg16[%c1_45, %c0_46, %c0_47] : memref<18x18x32xbf16, #tpu.memory_space<vmem>>, vector<16x16x32xbf16>
    %47 = vector.shape_cast %46 : vector<16x16x32xbf16> to vector<256x32xbf16>
    %c3 = arith.constant 3 : index
    %c0_48 = arith.constant 0 : index
    %c0_49 = arith.constant 0 : index
    %48 = vector.load %arg7[%c3, %c0_48, %c0_49] : memref<9x32x8xbf16, #tpu.memory_space<vmem>>, vector<1x32x8xbf16>
    %49 = vector.shape_cast %48 : vector<1x32x8xbf16> to vector<32x8xbf16>
    %cst_50 = arith.constant dense<0.000000e+00> : vector<256x8xf32>
    %50 = tpu.matmul %47, %49, %cst_50 {dimension_numbers = #tpu.dot_dimension_numbers<[1], [0], [0], [1], [0, 0, 1, 1], [], []>} : vector<256x32xbf16>, vector<32x8xbf16>, vector<256x8xf32> -> vector<256x8xf32>
    %51 = arith.addf %45, %50 : vector<256x8xf32>
    %c1_51 = arith.constant 1 : index
    %c1_52 = arith.constant 1 : index
    %c0_53 = arith.constant 0 : index
    %52 = vector.load %arg16[%c1_51, %c1_52, %c0_53] : memref<18x18x32xbf16, #tpu.memory_space<vmem>>, vector<16x16x32xbf16>
    %53 = vector.shape_cast %52 : vector<16x16x32xbf16> to vector<256x32xbf16>
    %c4 = arith.constant 4 : index
    %c0_54 = arith.constant 0 : index
    %c0_55 = arith.constant 0 : index
    %54 = vector.load %arg7[%c4, %c0_54, %c0_55] : memref<9x32x8xbf16, #tpu.memory_space<vmem>>, vector<1x32x8xbf16>
    %55 = vector.shape_cast %54 : vector<1x32x8xbf16> to vector<32x8xbf16>
    %cst_56 = arith.constant dense<0.000000e+00> : vector<256x8xf32>
    %56 = tpu.matmul %53, %55, %cst_56 {dimension_numbers = #tpu.dot_dimension_numbers<[1], [0], [0], [1], [0, 0, 1, 1], [], []>} : vector<256x32xbf16>, vector<32x8xbf16>, vector<256x8xf32> -> vector<256x8xf32>
    %57 = arith.addf %51, %56 : vector<256x8xf32>
    %c1_57 = arith.constant 1 : index
    %c2_58 = arith.constant 2 : index
    %c0_59 = arith.constant 0 : index
    %58 = vector.load %arg16[%c1_57, %c2_58, %c0_59] : memref<18x18x32xbf16, #tpu.memory_space<vmem>>, vector<16x16x32xbf16>
    %59 = vector.shape_cast %58 : vector<16x16x32xbf16> to vector<256x32xbf16>
    %c5 = arith.constant 5 : index
    %c0_60 = arith.constant 0 : index
    %c0_61 = arith.constant 0 : index
    %60 = vector.load %arg7[%c5, %c0_60, %c0_61] : memref<9x32x8xbf16, #tpu.memory_space<vmem>>, vector<1x32x8xbf16>
    %61 = vector.shape_cast %60 : vector<1x32x8xbf16> to vector<32x8xbf16>
    %cst_62 = arith.constant dense<0.000000e+00> : vector<256x8xf32>
    %62 = tpu.matmul %59, %61, %cst_62 {dimension_numbers = #tpu.dot_dimension_numbers<[1], [0], [0], [1], [0, 0, 1, 1], [], []>} : vector<256x32xbf16>, vector<32x8xbf16>, vector<256x8xf32> -> vector<256x8xf32>
    %63 = arith.addf %57, %62 : vector<256x8xf32>
    %c2_63 = arith.constant 2 : index
    %c0_64 = arith.constant 0 : index
    %c0_65 = arith.constant 0 : index
    %64 = vector.load %arg16[%c2_63, %c0_64, %c0_65] : memref<18x18x32xbf16, #tpu.memory_space<vmem>>, vector<16x16x32xbf16>
    %65 = vector.shape_cast %64 : vector<16x16x32xbf16> to vector<256x32xbf16>
    %c6 = arith.constant 6 : index
    %c0_66 = arith.constant 0 : index
    %c0_67 = arith.constant 0 : index
    %66 = vector.load %arg7[%c6, %c0_66, %c0_67] : memref<9x32x8xbf16, #tpu.memory_space<vmem>>, vector<1x32x8xbf16>
    %67 = vector.shape_cast %66 : vector<1x32x8xbf16> to vector<32x8xbf16>
    %cst_68 = arith.constant dense<0.000000e+00> : vector<256x8xf32>
    %68 = tpu.matmul %65, %67, %cst_68 {dimension_numbers = #tpu.dot_dimension_numbers<[1], [0], [0], [1], [0, 0, 1, 1], [], []>} : vector<256x32xbf16>, vector<32x8xbf16>, vector<256x8xf32> -> vector<256x8xf32>
    %69 = arith.addf %63, %68 : vector<256x8xf32>
    %c2_69 = arith.constant 2 : index
    %c1_70 = arith.constant 1 : index
    %c0_71 = arith.constant 0 : index
    %70 = vector.load %arg16[%c2_69, %c1_70, %c0_71] : memref<18x18x32xbf16, #tpu.memory_space<vmem>>, vector<16x16x32xbf16>
    %71 = vector.shape_cast %70 : vector<16x16x32xbf16> to vector<256x32xbf16>
    %c7 = arith.constant 7 : index
    %c0_72 = arith.constant 0 : index
    %c0_73 = arith.constant 0 : index
    %72 = vector.load %arg7[%c7, %c0_72, %c0_73] : memref<9x32x8xbf16, #tpu.memory_space<vmem>>, vector<1x32x8xbf16>
    %73 = vector.shape_cast %72 : vector<1x32x8xbf16> to vector<32x8xbf16>
    %cst_74 = arith.constant dense<0.000000e+00> : vector<256x8xf32>
    %74 = tpu.matmul %71, %73, %cst_74 {dimension_numbers = #tpu.dot_dimension_numbers<[1], [0], [0], [1], [0, 0, 1, 1], [], []>} : vector<256x32xbf16>, vector<32x8xbf16>, vector<256x8xf32> -> vector<256x8xf32>
    %75 = arith.addf %69, %74 : vector<256x8xf32>
    %c2_75 = arith.constant 2 : index
    %c2_76 = arith.constant 2 : index
    %c0_77 = arith.constant 0 : index
    %76 = vector.load %arg16[%c2_75, %c2_76, %c0_77] : memref<18x18x32xbf16, #tpu.memory_space<vmem>>, vector<16x16x32xbf16>
    %77 = vector.shape_cast %76 : vector<16x16x32xbf16> to vector<256x32xbf16>
    %c8 = arith.constant 8 : index
    %c0_78 = arith.constant 0 : index
    %c0_79 = arith.constant 0 : index
    %78 = vector.load %arg7[%c8, %c0_78, %c0_79] : memref<9x32x8xbf16, #tpu.memory_space<vmem>>, vector<1x32x8xbf16>
    %79 = vector.shape_cast %78 : vector<1x32x8xbf16> to vector<32x8xbf16>
    %cst_80 = arith.constant dense<0.000000e+00> : vector<256x8xf32>
    %80 = tpu.matmul %77, %79, %cst_80 {dimension_numbers = #tpu.dot_dimension_numbers<[1], [0], [0], [1], [0, 0, 1, 1], [], []>} : vector<256x32xbf16>, vector<32x8xbf16>, vector<256x8xf32> -> vector<256x8xf32>
    %81 = arith.addf %75, %80 : vector<256x8xf32>
    %c0_81 = arith.constant 0 : index
    %c8_82 = arith.constant 8 : index
    %82 = vector.load %arg15[%c0_81, %c8_82] : memref<256x24xf32, #tpu.memory_space<vmem>>, vector<256x8xf32>
    tpu.vector_store %arg15[%c0_81, %c8_82], %81 {strides = array<i32>} : memref<256x24xf32, #tpu.memory_space<vmem>>, vector<256x8xf32>,
    %c0_83 = arith.constant 0 : index
    %c0_84 = arith.constant 0 : index
    %83 = vector.load %arg15[%c0_83, %c0_84] : memref<256x24xf32, #tpu.memory_space<vmem>>, vector<256x16xf32>
    %c0_85 = arith.constant 0 : index
    %c0_86 = arith.constant 0 : index
    %84 = vector.load %arg8[%c0_85, %c0_86] : memref<1x16xf32, #tpu.memory_space<vmem>>, vector<1x16xf32>
    %85 = vector.broadcast %84 : vector<1x16xf32> to vector<256x16xf32>
    %86 = arith.mulf %83, %85 : vector<256x16xf32>
    %c0_87 = arith.constant 0 : index
    %c0_88 = arith.constant 0 : index
    %87 = vector.load %arg9[%c0_87, %c0_88] : memref<1x16xf32, #tpu.memory_space<vmem>>, vector<1x16xf32>
    %88 = vector.broadcast %87 : vector<1x16xf32> to vector<256x16xf32>
    %89 = arith.addf %86, %88 : vector<256x16xf32>
    %cst_89 = arith.constant 0.000000e+00 : f32
    %90 = vector.broadcast %cst_89 : f32 to vector<256x16xf32>
    %91 = arith.maximumf %89, %90 : vector<256x16xf32>
    %92 = arith.truncf %91 : vector<256x16xf32> to vector<256x16xbf16>
    %c0_90 = arith.constant 0 : index
    %c0_91 = arith.constant 0 : index
    %93 = vector.load %arg10[%c0_90, %c0_91] : memref<16x32xbf16, #tpu.memory_space<vmem>>, vector<16x32xbf16>
    %cst_92 = arith.constant dense<0.000000e+00> : vector<256x32xf32>
    %94 = tpu.matmul %92, %93, %cst_92 {dimension_numbers = #tpu.dot_dimension_numbers<[1], [0], [0], [1], [0, 0, 1, 1], [], []>} : vector<256x16xbf16>, vector<16x32xbf16>, vector<256x32xf32> -> vector<256x32xf32>
    %c0_93 = arith.constant 0 : index
    %c0_94 = arith.constant 0 : index
    %95 = vector.load %arg11[%c0_93, %c0_94] : memref<1x32xf32, #tpu.memory_space<vmem>>, vector<1x32xf32>
    %96 = vector.broadcast %95 : vector<1x32xf32> to vector<256x32xf32>
    %97 = arith.mulf %94, %96 : vector<256x32xf32>
    %c0_95 = arith.constant 0 : index
    %c0_96 = arith.constant 0 : index
    %98 = vector.load %arg12[%c0_95, %c0_96] : memref<1x32xf32, #tpu.memory_space<vmem>>, vector<1x32xf32>
    %99 = vector.broadcast %98 : vector<1x32xf32> to vector<256x32xf32>
    %100 = arith.addf %97, %99 : vector<256x32xf32>
    %cst_97 = arith.constant 0.000000e+00 : f32
    %101 = vector.broadcast %cst_97 : f32 to vector<256x32xf32>
    %102 = arith.maximumf %100, %101 : vector<256x32xf32>
    %103 = arith.truncf %102 : vector<256x32xf32> to vector<256x32xbf16>
    %104 = vector.shape_cast %103 : vector<256x32xbf16> to vector<16x16x32xbf16>
    %c1_98 = arith.constant 1 : index
    %c1_99 = arith.constant 1 : index
    %c0_100 = arith.constant 0 : index
    %105 = vector.load %arg16[%c1_98, %c1_99, %c0_100] : memref<18x18x32xbf16, #tpu.memory_space<vmem>>, vector<16x16x32xbf16>
    tpu.vector_store %arg16[%c1_98, %c1_99, %c0_100], %104 {strides = array<i32>} : memref<18x18x32xbf16, #tpu.memory_space<vmem>>, vector<16x16x32xbf16>,
    %c0_101 = arith.constant 0 : index
    %c0_102 = arith.constant 0 : index
    %c0_103 = arith.constant 0 : index
    %106 = vector.load %arg16[%c0_101, %c0_102, %c0_103] : memref<18x18x32xbf16, #tpu.memory_space<vmem>>, vector<16x16x32xbf16>
    %107 = vector.shape_cast %106 : vector<16x16x32xbf16> to vector<256x32xbf16>
    %c0_104 = arith.constant 0 : index
    %c0_105 = arith.constant 0 : index
    %c0_106 = arith.constant 0 : index
    %108 = vector.load %arg13[%c0_104, %c0_105, %c0_106] : memref<9x32x8xbf16, #tpu.memory_space<vmem>>, vector<1x32x8xbf16>
    %109 = vector.shape_cast %108 : vector<1x32x8xbf16> to vector<32x8xbf16>
    %cst_107 = arith.constant dense<0.000000e+00> : vector<256x8xf32>
    %110 = tpu.matmul %107, %109, %cst_107 {dimension_numbers = #tpu.dot_dimension_numbers<[1], [0], [0], [1], [0, 0, 1, 1], [], []>} : vector<256x32xbf16>, vector<32x8xbf16>, vector<256x8xf32> -> vector<256x8xf32>
    %c0_108 = arith.constant 0 : index
    %c1_109 = arith.constant 1 : index
    %c0_110 = arith.constant 0 : index
    %111 = vector.load %arg16[%c0_108, %c1_109, %c0_110] : memref<18x18x32xbf16, #tpu.memory_space<vmem>>, vector<16x16x32xbf16>
    %112 = vector.shape_cast %111 : vector<16x16x32xbf16> to vector<256x32xbf16>
    %c1_111 = arith.constant 1 : index
    %c0_112 = arith.constant 0 : index
    %c0_113 = arith.constant 0 : index
    %113 = vector.load %arg13[%c1_111, %c0_112, %c0_113] : memref<9x32x8xbf16, #tpu.memory_space<vmem>>, vector<1x32x8xbf16>
    %114 = vector.shape_cast %113 : vector<1x32x8xbf16> to vector<32x8xbf16>
    %cst_114 = arith.constant dense<0.000000e+00> : vector<256x8xf32>
    %115 = tpu.matmul %112, %114, %cst_114 {dimension_numbers = #tpu.dot_dimension_numbers<[1], [0], [0], [1], [0, 0, 1, 1], [], []>} : vector<256x32xbf16>, vector<32x8xbf16>, vector<256x8xf32> -> vector<256x8xf32>
    %116 = arith.addf %110, %115 : vector<256x8xf32>
    %c0_115 = arith.constant 0 : index
    %c2_116 = arith.constant 2 : index
    %c0_117 = arith.constant 0 : index
    %117 = vector.load %arg16[%c0_115, %c2_116, %c0_117] : memref<18x18x32xbf16, #tpu.memory_space<vmem>>, vector<16x16x32xbf16>
    %118 = vector.shape_cast %117 : vector<16x16x32xbf16> to vector<256x32xbf16>
    %c2_118 = arith.constant 2 : index
    %c0_119 = arith.constant 0 : index
    %c0_120 = arith.constant 0 : index
    %119 = vector.load %arg13[%c2_118, %c0_119, %c0_120] : memref<9x32x8xbf16, #tpu.memory_space<vmem>>, vector<1x32x8xbf16>
    %120 = vector.shape_cast %119 : vector<1x32x8xbf16> to vector<32x8xbf16>
    %cst_121 = arith.constant dense<0.000000e+00> : vector<256x8xf32>
    %121 = tpu.matmul %118, %120, %cst_121 {dimension_numbers = #tpu.dot_dimension_numbers<[1], [0], [0], [1], [0, 0, 1, 1], [], []>} : vector<256x32xbf16>, vector<32x8xbf16>, vector<256x8xf32> -> vector<256x8xf32>
    %122 = arith.addf %116, %121 : vector<256x8xf32>
    %c1_122 = arith.constant 1 : index
    %c0_123 = arith.constant 0 : index
    %c0_124 = arith.constant 0 : index
    %123 = vector.load %arg16[%c1_122, %c0_123, %c0_124] : memref<18x18x32xbf16, #tpu.memory_space<vmem>>, vector<16x16x32xbf16>
    %124 = vector.shape_cast %123 : vector<16x16x32xbf16> to vector<256x32xbf16>
    %c3_125 = arith.constant 3 : index
    %c0_126 = arith.constant 0 : index
    %c0_127 = arith.constant 0 : index
    %125 = vector.load %arg13[%c3_125, %c0_126, %c0_127] : memref<9x32x8xbf16, #tpu.memory_space<vmem>>, vector<1x32x8xbf16>
    %126 = vector.shape_cast %125 : vector<1x32x8xbf16> to vector<32x8xbf16>
    %cst_128 = arith.constant dense<0.000000e+00> : vector<256x8xf32>
    %127 = tpu.matmul %124, %126, %cst_128 {dimension_numbers = #tpu.dot_dimension_numbers<[1], [0], [0], [1], [0, 0, 1, 1], [], []>} : vector<256x32xbf16>, vector<32x8xbf16>, vector<256x8xf32> -> vector<256x8xf32>
    %128 = arith.addf %122, %127 : vector<256x8xf32>
    %c1_129 = arith.constant 1 : index
    %c1_130 = arith.constant 1 : index
    %c0_131 = arith.constant 0 : index
    %129 = vector.load %arg16[%c1_129, %c1_130, %c0_131] : memref<18x18x32xbf16, #tpu.memory_space<vmem>>, vector<16x16x32xbf16>
    %130 = vector.shape_cast %129 : vector<16x16x32xbf16> to vector<256x32xbf16>
    %c4_132 = arith.constant 4 : index
    %c0_133 = arith.constant 0 : index
    %c0_134 = arith.constant 0 : index
    %131 = vector.load %arg13[%c4_132, %c0_133, %c0_134] : memref<9x32x8xbf16, #tpu.memory_space<vmem>>, vector<1x32x8xbf16>
    %132 = vector.shape_cast %131 : vector<1x32x8xbf16> to vector<32x8xbf16>
    %cst_135 = arith.constant dense<0.000000e+00> : vector<256x8xf32>
    %133 = tpu.matmul %130, %132, %cst_135 {dimension_numbers = #tpu.dot_dimension_numbers<[1], [0], [0], [1], [0, 0, 1, 1], [], []>} : vector<256x32xbf16>, vector<32x8xbf16>, vector<256x8xf32> -> vector<256x8xf32>
    %134 = arith.addf %128, %133 : vector<256x8xf32>
    %c1_136 = arith.constant 1 : index
    %c2_137 = arith.constant 2 : index
    %c0_138 = arith.constant 0 : index
    %135 = vector.load %arg16[%c1_136, %c2_137, %c0_138] : memref<18x18x32xbf16, #tpu.memory_space<vmem>>, vector<16x16x32xbf16>
    %136 = vector.shape_cast %135 : vector<16x16x32xbf16> to vector<256x32xbf16>
    %c5_139 = arith.constant 5 : index
    %c0_140 = arith.constant 0 : index
    %c0_141 = arith.constant 0 : index
    %137 = vector.load %arg13[%c5_139, %c0_140, %c0_141] : memref<9x32x8xbf16, #tpu.memory_space<vmem>>, vector<1x32x8xbf16>
    %138 = vector.shape_cast %137 : vector<1x32x8xbf16> to vector<32x8xbf16>
    %cst_142 = arith.constant dense<0.000000e+00> : vector<256x8xf32>
    %139 = tpu.matmul %136, %138, %cst_142 {dimension_numbers = #tpu.dot_dimension_numbers<[1], [0], [0], [1], [0, 0, 1, 1], [], []>} : vector<256x32xbf16>, vector<32x8xbf16>, vector<256x8xf32> -> vector<256x8xf32>
    %140 = arith.addf %134, %139 : vector<256x8xf32>
    %c2_143 = arith.constant 2 : index
    %c0_144 = arith.constant 0 : index
    %c0_145 = arith.constant 0 : index
    %141 = vector.load %arg16[%c2_143, %c0_144, %c0_145] : memref<18x18x32xbf16, #tpu.memory_space<vmem>>, vector<16x16x32xbf16>
    %142 = vector.shape_cast %141 : vector<16x16x32xbf16> to vector<256x32xbf16>
    %c6_146 = arith.constant 6 : index
    %c0_147 = arith.constant 0 : index
    %c0_148 = arith.constant 0 : index
    %143 = vector.load %arg13[%c6_146, %c0_147, %c0_148] : memref<9x32x8xbf16, #tpu.memory_space<vmem>>, vector<1x32x8xbf16>
    %144 = vector.shape_cast %143 : vector<1x32x8xbf16> to vector<32x8xbf16>
    %cst_149 = arith.constant dense<0.000000e+00> : vector<256x8xf32>
    %145 = tpu.matmul %142, %144, %cst_149 {dimension_numbers = #tpu.dot_dimension_numbers<[1], [0], [0], [1], [0, 0, 1, 1], [], []>} : vector<256x32xbf16>, vector<32x8xbf16>, vector<256x8xf32> -> vector<256x8xf32>
    %146 = arith.addf %140, %145 : vector<256x8xf32>
    %c2_150 = arith.constant 2 : index
    %c1_151 = arith.constant 1 : index
    %c0_152 = arith.constant 0 : index
    %147 = vector.load %arg16[%c2_150, %c1_151, %c0_152] : memref<18x18x32xbf16, #tpu.memory_space<vmem>>, vector<16x16x32xbf16>
    %148 = vector.shape_cast %147 : vector<16x16x32xbf16> to vector<256x32xbf16>
    %c7_153 = arith.constant 7 : index
    %c0_154 = arith.constant 0 : index
    %c0_155 = arith.constant 0 : index
    %149 = vector.load %arg13[%c7_153, %c0_154, %c0_155] : memref<9x32x8xbf16, #tpu.memory_space<vmem>>, vector<1x32x8xbf16>
    %150 = vector.shape_cast %149 : vector<1x32x8xbf16> to vector<32x8xbf16>
    %cst_156 = arith.constant dense<0.000000e+00> : vector<256x8xf32>
    %151 = tpu.matmul %148, %150, %cst_156 {dimension_numbers = #tpu.dot_dimension_numbers<[1], [0], [0], [1], [0, 0, 1, 1], [], []>} : vector<256x32xbf16>, vector<32x8xbf16>, vector<256x8xf32> -> vector<256x8xf32>
    %152 = arith.addf %146, %151 : vector<256x8xf32>
    %c2_157 = arith.constant 2 : index
    %c2_158 = arith.constant 2 : index
    %c0_159 = arith.constant 0 : index
    %153 = vector.load %arg16[%c2_157, %c2_158, %c0_159] : memref<18x18x32xbf16, #tpu.memory_space<vmem>>, vector<16x16x32xbf16>
    %154 = vector.shape_cast %153 : vector<16x16x32xbf16> to vector<256x32xbf16>
    %c8_160 = arith.constant 8 : index
    %c0_161 = arith.constant 0 : index
    %c0_162 = arith.constant 0 : index
    %155 = vector.load %arg13[%c8_160, %c0_161, %c0_162] : memref<9x32x8xbf16, #tpu.memory_space<vmem>>, vector<1x32x8xbf16>
    %156 = vector.shape_cast %155 : vector<1x32x8xbf16> to vector<32x8xbf16>
    %cst_163 = arith.constant dense<0.000000e+00> : vector<256x8xf32>
    %157 = tpu.matmul %154, %156, %cst_163 {dimension_numbers = #tpu.dot_dimension_numbers<[1], [0], [0], [1], [0, 0, 1, 1], [], []>} : vector<256x32xbf16>, vector<32x8xbf16>, vector<256x8xf32> -> vector<256x8xf32>
    %158 = arith.addf %152, %157 : vector<256x8xf32>
    %c0_164 = arith.constant 0 : index
    %c16 = arith.constant 16 : index
    %159 = vector.load %arg15[%c0_164, %c16] : memref<256x24xf32, #tpu.memory_space<vmem>>, vector<256x8xf32>
    tpu.vector_store %arg15[%c0_164, %c16], %158 {strides = array<i32>} : memref<256x24xf32, #tpu.memory_space<vmem>>, vector<256x8xf32>,
    %c0_165 = arith.constant 0 : index
    %c0_166 = arith.constant 0 : index
    %160 = vector.load %arg15[%c0_165, %c0_166] : memref<256x24xf32, #tpu.memory_space<vmem>>, vector<256x24xf32>
    %c0_167 = arith.constant 0 : index
    %c0_168 = arith.constant 0 : index
    %c0_169 = arith.constant 0 : index
    %161 = vector.load %arg14[%c0_167, %c0_168, %c0_169] : memref<1x256x24xf32, #tpu.memory_space<vmem>>, vector<1x256x24xf32>
    %162 = vector.shape_cast %161 : vector<1x256x24xf32> to vector<256x24xf32>
    %163 = vector.shape_cast %160 : vector<256x24xf32> to vector<1x256x24xf32>
    tpu.vector_store %arg14[%c0_167, %c0_168, %c0_169], %163 {strides = array<i32>} : memref<1x256x24xf32, #tpu.memory_space<vmem>>, vector<1x256x24xf32>,
    return
  }
  func.func @transform_0(%arg0: i32) -> (i32, i32, i32, i32) {
    %c0_i32 = arith.constant 0 : i32
    %c0_i32_0 = arith.constant 0 : i32
    %c0_i32_1 = arith.constant 0 : i32
    %c0_i32_2 = arith.constant 0 : i32
    return %arg0, %c0_i32, %c0_i32_0, %c0_i32_1 : i32, i32, i32, i32
  }
  func.func @transform_1(%arg0: i32) -> (i32, i32) {
    %c0_i32 = arith.constant 0 : i32
    %c0_i32_0 = arith.constant 0 : i32
    %c0_i32_1 = arith.constant 0 : i32
    return %c0_i32, %c0_i32_0 : i32, i32
  }
  func.func @transform_2(%arg0: i32) -> (i32, i32) {
    %c0_i32 = arith.constant 0 : i32
    %c0_i32_0 = arith.constant 0 : i32
    %c0_i32_1 = arith.constant 0 : i32
    return %c0_i32, %c0_i32_0 : i32, i32
  }
  func.func @transform_3(%arg0: i32) -> (i32, i32) {
    %c0_i32 = arith.constant 0 : i32
    %c0_i32_0 = arith.constant 0 : i32
    %c0_i32_1 = arith.constant 0 : i32
    return %c0_i32, %c0_i32_0 : i32, i32
  }
  func.func @transform_4(%arg0: i32) -> (i32, i32) {
    %c0_i32 = arith.constant 0 : i32
    %c0_i32_0 = arith.constant 0 : i32
    %c0_i32_1 = arith.constant 0 : i32
    return %c0_i32, %c0_i32_0 : i32, i32
  }
  func.func @transform_5(%arg0: i32) -> (i32, i32) {
    %c0_i32 = arith.constant 0 : i32
    %c0_i32_0 = arith.constant 0 : i32
    %c0_i32_1 = arith.constant 0 : i32
    return %c0_i32, %c0_i32_0 : i32, i32
  }
  func.func @transform_6(%arg0: i32) -> (i32, i32, i32) {
    %c0_i32 = arith.constant 0 : i32
    %c0_i32_0 = arith.constant 0 : i32
    %c0_i32_1 = arith.constant 0 : i32
    %c0_i32_2 = arith.constant 0 : i32
    return %c0_i32, %c0_i32_0, %c0_i32_1 : i32, i32, i32
  }
  func.func @transform_7(%arg0: i32) -> (i32, i32) {
    %c0_i32 = arith.constant 0 : i32
    %c0_i32_0 = arith.constant 0 : i32
    %c0_i32_1 = arith.constant 0 : i32
    return %c0_i32, %c0_i32_0 : i32, i32
  }
  func.func @transform_8(%arg0: i32) -> (i32, i32) {
    %c0_i32 = arith.constant 0 : i32
    %c0_i32_0 = arith.constant 0 : i32
    %c0_i32_1 = arith.constant 0 : i32
    return %c0_i32, %c0_i32_0 : i32, i32
  }
  func.func @transform_9(%arg0: i32) -> (i32, i32) {
    %c0_i32 = arith.constant 0 : i32
    %c0_i32_0 = arith.constant 0 : i32
    %c0_i32_1 = arith.constant 0 : i32
    return %c0_i32, %c0_i32_0 : i32, i32
  }
  func.func @transform_10(%arg0: i32) -> (i32, i32) {
    %c0_i32 = arith.constant 0 : i32
    %c0_i32_0 = arith.constant 0 : i32
    %c0_i32_1 = arith.constant 0 : i32
    return %c0_i32, %c0_i32_0 : i32, i32
  }
  func.func @transform_11(%arg0: i32) -> (i32, i32) {
    %c0_i32 = arith.constant 0 : i32
    %c0_i32_0 = arith.constant 0 : i32
    %c0_i32_1 = arith.constant 0 : i32
    return %c0_i32, %c0_i32_0 : i32, i32
  }
  func.func @transform_12(%arg0: i32) -> (i32, i32, i32) {
    %c0_i32 = arith.constant 0 : i32
    %c0_i32_0 = arith.constant 0 : i32
    %c0_i32_1 = arith.constant 0 : i32
    %c0_i32_2 = arith.constant 0 : i32
    return %c0_i32, %c0_i32_0, %c0_i32_1 : i32, i32, i32
  }
  func.func @transform_13(%arg0: i32) -> (i32, i32, i32) {
    %c0_i32 = arith.constant 0 : i32
    %c0_i32_0 = arith.constant 0 : i32
    %c0_i32_1 = arith.constant 0 : i32
    return %arg0, %c0_i32, %c0_i32_0 : i32, i32, i32
  }
}

</mosaic_0001>

<bundles_post_ra>
// kernel: dense_block_forward.1
= control target key start
LH: loop header
LB: loop body
LE: loop exit
PB: predicated region body
PF: predicated region fallthrough
CT: control target
= control target key end

     0   :  { %s19256_s0 = inlined_call_operand.vmem [shape: f32[2,16,16,8], index: 0, kind: input, shape index: {}]   ;;  %s19257_s1 = inlined_call_operand.vmem [shape: f32[1,8], index: 1, kind: input, shape index: {}]   ;;  %s19258_s2 = inlined_call_operand.vmem [shape: f32[1,8], index: 2, kind: input, shape index: {}]   ;;  %s19259_s3 = inlined_call_operand.vmem [shape: bf16[8,32], index: 3, kind: input, shape index: {}]   ;;  %s19260_s4 = inlined_call_operand.vmem [shape: f32[1,32], index: 4, kind: input, shape index: {}]   ;;  %s19261_s5 = inlined_call_operand.vmem [shape: f32[1,32], index: 5, kind: input, shape index: {}]   ;;  %s19262_s6 = inlined_call_operand.vmem [shape: bf16[9,32,8], index: 6, kind: input, shape index: {}]   ;;  %s19263_s7 = inlined_call_operand.vmem [shape: f32[1,16], index: 7, kind: input, shape index: {}]   ;;  %s19264_s8 = inlined_call_operand.vmem [shape: f32[1,16], index: 8, kind: input, shape index: {}]   ;;  %s19265_s9 = inlined_call_operand.vmem [shape: bf16[16,32], index: 9, kind: input, shape index: {}]   ;;  %s19266_s10 = inlined_call_operand.vmem [shape: f32[1,32], index: 10, kind: input, shape index: {}]   ;;  %s19267_s11 = inlined_call_operand.vmem [shape: f32[1,32], index: 11, kind: input, shape index: {}]   ;;  %s19268_s12 = inlined_call_operand.vmem [shape: bf16[9,32,8], index: 12, kind: input, shape index: {}]   ;;  %s19269_s13 = inlined_call_operand.hbm [shape: f32[2,256,24], index: 13, kind: output, shape index: {}]  }
   0x1   :  { %19361 = sst [smem:[#allocation76_spill]] %s19256_s0 }
   0x2   :  { %19362 = sst [smem:[#allocation77_spill]] %s19257_s1 }
   0x3   :  { %18 = vsyncpa [#allocation5], 0 }
   0x4   :  { %20 = vsyncpa [#allocation5 + $0x1], 0  ;;  %s15257_s25 = smov 0   ;;  %s15259_s26 = smov 0  }
   0x5   :  { %s15261_s27 = smov 0   ;;  %s15263_s28 = smov 0  }
   0x6 LB: > { %s15278_s29 = sadd.s32 4294967295, %s15180_s28   ;;  %s12379_s30 = sadd.s32 4294967294, %s15180_s28   ;;  %s15180_s28 = sphi %s15263_s28, %s19592_s28   ;;  %s15176_s27 = sphi %s15261_s27, %s19591_s27   ;;  %s15172_s26 = sphi %s15259_s26, %s19590_s26   ;;  %s15168_s25 = sphi %s15257_s25, %s19589_s25  }
   0x7   : > { %s15282_s14 = sadd.s32 1, %s15180_s28   ;;  %s311_s15 = sadd.s32 1, %s15176_s27 }
   0x8   : > { %s308_s16 = ssub.s32 %s15180_s28, %s15282_s14  ;;  %p321_p0 = scmp.ne.s32.totalorder %s15176_s27, %s15172_s26 }
   0x9   : > { %p309_p1 = scmp.eq.s32.totalorder %s308_s16, 0  ;;  %p322_p2 = scmp.eq.s32.totalorder %s15278_s29, 1 }
   0xa   : > { %p327_p3 = scmp.ne.s32.totalorder %s15172_s26, %s15168_s25  ;;  %p328_p4 = scmp.eq.s32.totalorder %s12379_s30, 1 }
   0xb   : > { %s15293_s17 = scalar_select %p309_p1, %s15176_s27, %s311_s15  }
   0xc   : > { %p15295_p5 = por %p322_p2, %p321_p0  ;;  %p15299_p6 = por %p328_p4, %p327_p3 }
   0xd   : > { %p12382_p7 = scmp.ge.s32.totalorder %s15180_s28, 1  ;;  %p390_p8 = scmp.lt.s32.totalorder %s15180_s28, 3 }
   0xf   : > { %p391_p9 = pnand %p12382_p7, %p390_p8 }
  0x11   : > { %394 = sbr.rel (%p391_p9) target bundleno = 2480 (0x9b0), region = 72 }
  0x18   : > { %v719_v0 = vld [vmem:[%s19259_s3] sm:$0xf]  ;;  %vm768_vm0 = vcmask 1043456   ;;  %p434_p10 = scmp.lt.s32.totalorder %s15278_s29, 1  ;;  %v15312_v1 = vld [vmem:[%s19262_s6 + $0x10] sm:$0xff]   ;;  %vm440_vm1 = vcmask 257024  }
  0x19   : > { %14920 = vmatprep.subr.msk.bf16.mxu1 %vm768_vm0, %v719_v0  ;;  %v770_v2 = vsel %vm768_vm0, %v719_v0, 0  ;;  %v15182_v3 = vmov 0   ;;  %vm528_vm2 = vcmask 64512   ;;  %s19365_s0 = sld [smem:[#allocation76_spill]]  ;;  %s19366_s1 = sld [smem:[#allocation77_spill]]  ;;  %vm443_vm3 = vcmask 253952  }
  0x1a   : > { %13693 = vmatpush3.bf16.msra.mxu1 %v770_v2  ;;  %s15315_s24 = scalar_select %p434_p10, %s15278_s29, 1  ;;  %448 = vst.msk [vmem:[#allocation3 + $0x18] sm:$0xf] %vm440_vm1, %v15182_v3  ;;  %441 = vst.msk [vmem:[#allocation3] sm:$0xf] %vm440_vm1, %v15182_v3  ;;  %vm2084_vm7 = vcmask 261120  }
  0x1b   : > { %13726 = vmatprep.subr.bf16.mxu1 %v15312_v1  ;;  %442 = vst.msk [vmem:[#allocation3 + $0x4] sm:$0xf] %vm440_vm1, %v15182_v3  ;;  %445 = vst.msk [vmem:[#allocation3 + $0xc] sm:$0xf] %vm440_vm1, %v15182_v3  ;;  %v15437_v23 = vld [vmem:[%s19258_s2] ss:$0 sm:$0xff] }
  0x1c   : > { %446 = vst.msk [vmem:[#allocation3 + $0x10] sm:$0xf] %vm440_vm1, %v15182_v3  ;;  %449 = vst.msk [vmem:[#allocation3 + $0x1c] sm:$0xf] %vm440_vm1, %v15182_v3  ;;  %s13268_s30 = sshll.u32 %s15315_s24, 8  ;;  %vm2643_vm14 = vcmask 1042432  }
  0x1d   : > { %451 = vst.msk [vmem:[#allocation3 + $0x24] sm:$0xf] %vm440_vm1, %v15182_v3  ;;  %452 = vst.msk [vmem:[#allocation3 + $0x28] sm:$0xf] %vm440_vm1, %v15182_v3  ;;  %vm1632_vm4 = vsmask.f32 3328 }
  0x1e   : > { %454 = vst.msk [vmem:[#allocation3 + $0x30] sm:$0xf] %vm440_vm1, %v15182_v3  ;;  %455 = vst.msk [vmem:[#allocation3 + $0x34] sm:$0xf] %vm440_vm1, %v15182_v3  ;;  %vm1633_vm5 = vsmask.f32 7440 }
  0x1f   : > { %457 = vst.msk [vmem:[#allocation3 + $0x3c] sm:$0xf] %vm440_vm1, %v15182_v3  ;;  %458 = vst.msk [vmem:[#allocation3 + $0x40] sm:$0xf] %vm440_vm1, %v15182_v3  ;;  %s15394_s20 = scalar_lea.vmem %s19365_s0, %s13268_s30  ;;  %v15420_v16 = vld [vmem:[%s19366_s1] ss:$0 sm:$0xff] }
  0x20   : > { %460 = vst.msk [vmem:[#allocation3 + $0x48] sm:$0xf] %vm440_vm1, %v15182_v3  ;;  %461 = vst.msk [vmem:[#allocation3 + $0x4c] sm:$0xf] %vm440_vm1, %v15182_v3  ;;  %v496_v4 = vld [vmem:[%s15394_s20] sm:$0xff]  ;;  %v497_v5 = vld [vmem:[%s15394_s20 + $0x8] sm:$0xff] }
  0x21   : > { %463 = vst.msk [vmem:[#allocation3 + $0x54] sm:$0xf] %vm440_vm1, %v15182_v3  ;;  %464 = vst.msk [vmem:[#allocation3 + $0x58] sm:$0xf] %vm440_vm1, %v15182_v3  ;;  %v498_v6 = vld [vmem:[%s15394_s20 + $0x10] sm:$0xff]  ;;  %v499_v7 = vld [vmem:[%s15394_s20 + $0x18] sm:$0xff] }
  0x22   : > { %466 = vst.msk [vmem:[#allocation3 + $0x60] sm:$0xf] %vm440_vm1, %v15182_v3  ;;  %467 = vst.msk [vmem:[#allocation3 + $0x64] sm:$0xf] %vm440_vm1, %v15182_v3  ;;  %v500_v8 = vld [vmem:[%s15394_s20 + $0x20] sm:$0xff]  ;;  %v501_v9 = vld [vmem:[%s15394_s20 + $0x28] sm:$0xff] }
  0x23   : > { %469 = vst.msk [vmem:[#allocation3 + $0x6c] sm:$0xf] %vm440_vm1, %v15182_v3  ;;  %470 = vst.msk [vmem:[#allocation3 + $0x70] sm:$0xf] %vm440_vm1, %v15182_v3  ;;  %v502_v10 = vld [vmem:[%s15394_s20 + $0x30] sm:$0xff]  ;;  %v503_v11 = vld [vmem:[%s15394_s20 + $0x38] sm:$0xff] }
  0x24   : > { %472 = vst.msk [vmem:[#allocation3 + $0x78] sm:$0xf] %vm440_vm1, %v15182_v3  ;;  %473 = vst.msk [vmem:[#allocation3 + $0x7c] sm:$0xf] %vm440_vm1, %v15182_v3  ;;  %v504_v12 = vld [vmem:[%s15394_s20 + $0x40] sm:$0xff]  ;;  %v505_v13 = vld [vmem:[%s15394_s20 + $0x48] sm:$0xff] }
  0x25   : > { %475 = vst.msk [vmem:[#allocation3 + $0x84] sm:$0xf] %vm440_vm1, %v15182_v3  ;;  %476 = vst.msk [vmem:[#allocation3 + $0x88] sm:$0xf] %vm440_vm1, %v15182_v3  ;;  %v506_v14 = vld [vmem:[%s15394_s20 + $0x50] sm:$0xff]  ;;  %v507_v15 = vld [vmem:[%s15394_s20 + $0x58] sm:$0xff] }
  0x26   : > { %478 = vst.msk [vmem:[#allocation3 + $0x90] sm:$0xf] %vm440_vm1, %v15182_v3  ;;  %479 = vst.msk [vmem:[#allocation3 + $0x94] sm:$0xf] %vm440_vm1, %v15182_v3  ;;  %v508_v17 = vld [vmem:[%s15394_s20 + $0x60] sm:$0xff]  ;;  %v509_v18 = vld [vmem:[%s15394_s20 + $0x68] sm:$0xff] }
  0x27   : > { %481 = vst.msk [vmem:[#allocation3 + $0x9c] sm:$0xf] %vm440_vm1, %v15182_v3  ;;  %482 = vst.msk [vmem:[#allocation3 + $0xa0] sm:$0xf] %vm440_vm1, %v15182_v3  ;;  %v510_v19 = vld [vmem:[%s15394_s20 + $0x70] sm:$0xff]  ;;  %v511_v20 = vld [vmem:[%s15394_s20 + $0x78] sm:$0xff] }
  0x28   : > { %484 = vst.msk [vmem:[#allocation3 + $0xa8] sm:$0xf] %vm440_vm1, %v15182_v3  ;;  %485 = vst.msk [vmem:[#allocation3 + $0xac] sm:$0xf] %vm440_vm1, %v15182_v3  ;;  %v512_v21 = vld [vmem:[%s15394_s20 + $0x80] sm:$0xff]  ;;  %v513_v22 = vld [vmem:[%s15394_s20 + $0x88] sm:$0xff] }
  0x29   : > { %487 = vst.msk [vmem:[#allocation3 + $0xb4] sm:$0xf] %vm440_vm1, %v15182_v3  ;;  %488 = vst.msk [vmem:[#allocation3 + $0xb8] sm:$0xf] %vm440_vm1, %v15182_v3  ;;  %v514_v24 = vld [vmem:[%s15394_s20 + $0x90] sm:$0xff]  ;;  %v515_v25 = vld [vmem:[%s15394_s20 + $0x98] sm:$0xff] }
  0x2a   : > { %490 = vst.msk [vmem:[#allocation3 + $0xc0] sm:$0xf] %vm440_vm1, %v15182_v3  ;;  %491 = vst.msk [vmem:[#allocation3 + $0xc4] sm:$0xf] %vm440_vm1, %v15182_v3  ;;  %v516_v26 = vld [vmem:[%s15394_s20 + $0xa0] sm:$0xff]  ;;  %v517_v27 = vld [vmem:[%s15394_s20 + $0xa8] sm:$0xff] }
  0x2b   : > { %493 = vst.msk [vmem:[#allocation3 + $0xcc] sm:$0xf] %vm440_vm1, %v15182_v3  ;;  %494 = vst.msk [vmem:[#allocation3 + $0xd0] sm:$0xf] %vm440_vm1, %v15182_v3  ;;  %v518_v28 = vld [vmem:[%s15394_s20 + $0xb0] sm:$0xff]  ;;  %v519_v29 = vld [vmem:[%s15394_s20 + $0xb8] sm:$0xff] }
  0x2c   : > { %529 = vst.msk [vmem:[#allocation2] sm:$0xff] %vm528_vm2, %v496_v4  ;;  %530 = vst.msk [vmem:[#allocation2 + $0x8] sm:$0xff] %vm528_vm2, %v497_v5  ;;  %vm1464_vm8 = vsmask.f32 7938  ;;  %vm1139_vm9 = vsmask.f32 256 }
  0x2d   : > { %531 = vst.msk [vmem:[#allocation2 + $0x10] sm:$0xff] %vm528_vm2, %v498_v6  ;;  %532 = vst.msk [vmem:[#allocation2 + $0x18] sm:$0xff] %vm528_vm2, %v499_v7  ;;  %vm1140_vm10 = vsmask.f32 4368  ;;  %vm2644_vm15 = vcmask 1046532   ;;  %s19360_s16 = smov 8  }
  0x2e   : > { %533 = vst.msk [vmem:[#allocation2 + $0x20] sm:$0xff] %vm528_vm2, %v500_v8  ;;  %534 = vst.msk [vmem:[#allocation2 + $0x28] sm:$0xff] %vm528_vm2, %v501_v9  ;;  %v520_v9 = vld [vmem:[%s15394_s20 + $0xc0] sm:$0xff]  ;;  %s15184_s21 = smov 16   ;;  %s431_s22 = sand.u32 1, %s15172_s26  }
  0x2f   : > { %535 = vst.msk [vmem:[#allocation2 + $0x30] sm:$0xff] %vm528_vm2, %v502_v10  ;;  %536 = vst.msk [vmem:[#allocation2 + $0x38] sm:$0xff] %vm528_vm2, %v503_v11  ;;  %v521_v10 = vld [vmem:[%s15394_s20 + $0xc8] sm:$0xff]  ;;  %v522_v11 = vld [vmem:[%s15394_s20 + $0xd0] sm:$0xff]  ;;  %s12383_s23 = sshll.u32 %s431_s22, 8  ;;  %s13333_s30 = sshll.u32 %s15278_s29, 12 }
  0x30   : > { %537 = vst.msk [vmem:[#allocation2 + $0x40] sm:$0xff] %vm528_vm2, %v504_v12  ;;  %538 = vst.msk [vmem:[#allocation2 + $0x48] sm:$0xff] %vm528_vm2, %v505_v13  ;;  %s19109_s24 = scalar_lea.vmem [#allocation4], %s12383_s23  ;;  %s19204_s23 = scalar_lea.hbm %s19269_s13, %s13333_s30 }
  0x31   : > { %539 = vst.msk [vmem:[#allocation2 + $0x50] sm:$0xff] %vm528_vm2, %v506_v14  ;;  %540 = vst.msk [vmem:[#allocation2 + $0x58] sm:$0xff] %vm528_vm2, %v507_v15  ;;  %v523_v14 = vld [vmem:[%s15394_s20 + $0xd8] sm:$0xff]  ;;  %v524_v15 = vld [vmem:[%s15394_s20 + $0xe0] sm:$0xff]  ;;  %s12317_s15 = sshll.u32 %s19109_s24, 4  ;;  %s19214_s29 = scalar_lea.sflag [#allocation5], %s431_s22  ;;  %s19208_s15 = int_to_ptr.vmem [resolvable:$true] %s12317_s15 }
  0x32   : > { %541 = vst.msk [vmem:[#allocation2 + $0x60] sm:$0xff] %vm528_vm2, %v508_v17  ;;  %542 = vst.msk [vmem:[#allocation2 + $0x68] sm:$0xff] %vm528_vm2, %v509_v18  ;;  %v525_v17 = vld [vmem:[%s15394_s20 + $0xe8] sm:$0xff]  ;;  %s15185_s30 = smov [#allocation4]  }
  0x33   : > { %543 = vst.msk [vmem:[#allocation2 + $0x70] sm:$0xff] %vm528_vm2, %v510_v19  ;;  %544 = vst.msk [vmem:[#allocation2 + $0x78] sm:$0xff] %vm528_vm2, %v511_v20  ;;  %v561_v30 = vld [vmem:[#allocation2] sm:$0xff]  ;;  %v562_v31 = vld [vmem:[#allocation2 + $0x8] sm:$0xff] }
  0x34   : > { %545 = vst.msk [vmem:[#allocation2 + $0x80] sm:$0xff] %vm528_vm2, %v512_v21  ;;  %546 = vst.msk [vmem:[#allocation2 + $0x88] sm:$0xff] %vm528_vm2, %v513_v22  ;;  %v563_v32 = vld [vmem:[#allocation2 + $0x10] sm:$0xff]  ;;  %v600_v33 = vmul.f32 %v15420_v16, %v561_v30  ;;  %v601_v34 = vmul.f32 %v15420_v16, %v562_v31  ;;  %v564_v35 = vld [vmem:[#allocation2 + $0x18] sm:$0xff] }
  0x35   : > { %547 = vst.msk [vmem:[#allocation2 + $0x90] sm:$0xff] %vm528_vm2, %v514_v24  ;;  %548 = vst.msk [vmem:[#allocation2 + $0x98] sm:$0xff] %vm528_vm2, %v515_v25  ;;  %v602_v36 = vmul.f32 %v15420_v16, %v563_v32  ;;  %v565_v37 = vld [vmem:[#allocation2 + $0x20] sm:$0xff]  ;;  %v566_v38 = vld [vmem:[#allocation2 + $0x28] sm:$0xff]  ;;  %v603_v39 = vmul.f32 %v15420_v16, %v564_v35 }
  0x36   : > { %549 = vst.msk [vmem:[#allocation2 + $0xa0] sm:$0xff] %vm528_vm2, %v516_v26  ;;  %550 = vst.msk [vmem:[#allocation2 + $0xa8] sm:$0xff] %vm528_vm2, %v517_v27  ;;  %v604_v40 = vmul.f32 %v15420_v16, %v565_v37  ;;  %v605_v41 = vmul.f32 %v15420_v16, %v566_v38  ;;  %v567_v42 = vld [vmem:[#allocation2 + $0x30] sm:$0xff]  ;;  %v568_v43 = vld [vmem:[#allocation2 + $0x38] sm:$0xff]  ;;  %v639_v44 = vadd.f32 %v15437_v23, %v600_v33 }
  0x37   : > { %551 = vst.msk [vmem:[#allocation2 + $0xb0] sm:$0xff] %vm528_vm2, %v518_v28  ;;  %552 = vst.msk [vmem:[#allocation2 + $0xb8] sm:$0xff] %vm528_vm2, %v519_v29  ;;  %v640_v45 = vadd.f32 %v15437_v23, %v601_v34  ;;  %v641_v46 = vadd.f32 %v15437_v23, %v602_v36  ;;  %v606_v47 = vmul.f32 %v15420_v16, %v567_v42  ;;  %v569_v52 = vld [vmem:[#allocation2 + $0x40] sm:$0xff]  ;;  %v570_v53 = vld [vmem:[#allocation2 + $0x48] sm:$0xff] }
  0x38   : > { %v642_v48 = vadd.f32 %v15437_v23, %v603_v39  ;;  %v643_v49 = vadd.f32 %v15437_v23, %v604_v40  ;;  %v644_v50 = vadd.f32 %v15437_v23, %v605_v41  ;;  %v607_v51 = vmul.f32 %v15420_v16, %v568_v43  ;;  %v571_v62 = vld [vmem:[#allocation2 + $0x50] sm:$0xff]  ;;  %v572_v4 = vld [vmem:[#allocation2 + $0x58] sm:$0xff]  ;;  %553 = vst.msk [vmem:[#allocation2 + $0xc0] sm:$0xff] %vm528_vm2, %v520_v9  ;;  %vm15590_vm6 = vmor %vm1632_vm4, %vm1633_vm5 }
  0x39   : > { %v671_v54 = vmax.f32 %v639_v44, 0.0  ;;  %v672_v55 = vmax.f32 %v640_v45, 0.0  ;;  %v673_v56 = vmax.f32 %v641_v46, 0.0  ;;  %v645_v57 = vadd.f32 %v15437_v23, %v606_v47  ;;  %v573_v5 = vld [vmem:[#allocation2 + $0x60] sm:$0xff]  ;;  %v574_v6 = vld [vmem:[#allocation2 + $0x68] sm:$0xff]  ;;  %554 = vst.msk [vmem:[#allocation2 + $0xc8] sm:$0xff] %vm528_vm2, %v521_v10  ;;  %vm15628_vm11 = vmand %vm440_vm1, %vm1464_vm8 }
  0x3a   : > { %v674_v58 = vmax.f32 %v642_v48, 0.0  ;;  %v675_v59 = vmax.f32 %v643_v49, 0.0  ;;  %v676_v60 = vmax.f32 %v644_v50, 0.0  ;;  %v646_v61 = vadd.f32 %v15437_v23, %v607_v51  ;;  %555 = vst.msk [vmem:[#allocation2 + $0xd0] sm:$0xff] %vm528_vm2, %v522_v11  ;;  %556 = vst.msk [vmem:[#allocation2 + $0xd8] sm:$0xff] %vm528_vm2, %v523_v14  ;;  %v526_v22 = vld [vmem:[%s15394_s20 + $0xf0] sm:$0xff] }
  0x3b   : > { %v703_v63 = vpack.c.bf16 %v672_v55, %v671_v54  ;;  %v608_v0 = vmul.f32 %v15420_v16, %v569_v52  ;;  %v609_v2 = vmul.f32 %v15420_v16, %v570_v53  ;;  %v677_v18 = vmax.f32 %v645_v57, 0.0  ;;  %557 = vst.msk [vmem:[#allocation2 + $0xe0] sm:$0xff] %vm528_vm2, %v524_v15  ;;  %558 = vst.msk [vmem:[#allocation2 + $0xe8] sm:$0xff] %vm528_vm2, %v525_v17  ;;  %v527_v24 = vld [vmem:[%s15394_s20 + $0xf8] sm:$0xff]  ;;  %v575_v29 = vld [vmem:[#allocation2 + $0x70] sm:$0xff]  ;;  %s15122_s20 = sshll.u32 %s15185_s30, 4  ;;  %s15123_s20 = int_to_ptr.vmem [resolvable:$false] %s15122_s20 }
  0x3c   : > { %v704_v7 = vpack.c.bf16 %v674_v58, %v673_v56  ;;  %v705_v8 = vpack.c.bf16 %v676_v60, %v675_v59  ;;  %v678_v19 = vmax.f32 %v646_v61, 0.0  ;;  %v610_v20 = vmul.f32 %v15420_v16, %v571_v62  ;;  %559 = vst.msk [vmem:[#allocation2 + $0xf0] sm:$0xff] %vm528_vm2, %v526_v22  ;;  %560 = vst.msk [vmem:[#allocation2 + $0xf8] sm:$0xff] %vm528_vm2, %v527_v24  ;;  %v576_v33 = vld [vmem:[#allocation2 + $0x78] sm:$0xff]  ;;  %v577_v37 = vld [vmem:[#allocation2 + $0x80] sm:$0xff]  ;;  %p15125_p0 = scmp.lt.s32.totalorder %s19208_s15, %s15123_s20 }
  0x3d   : > { %13694 = vmatprep.mubr.msk.bf16.mxu1 %vm528_vm2, %v703_v63  ;;  %v647_v12 = vadd.f32 %v15437_v23, %v608_v0  ;;  %v648_v13 = vadd.f32 %v15437_v23, %v609_v2  ;;  %v611_v21 = vmul.f32 %v15420_v16, %v572_v4  ;;  %v612_v27 = vmul.f32 %v15420_v16, %v573_v5  ;;  %v578_v38 = vld [vmem:[#allocation2 + $0x88] sm:$0xff]  ;;  %v579_v40 = vld [vmem:[#allocation2 + $0x90] sm:$0xff]  ;;  %v580_v41 = vld [vmem:[#allocation2 + $0x98] sm:$0xff] }
  0x3e   : > { %13695 = vmatmul.mubr.msk.bf16.vlgmr.msra.gmra.mrb[0].mxu1 %vm528_vm2, %v704_v7  ;;  %v613_v28 = vmul.f32 %v15420_v16, %v574_v6  ;;  %v706_v30 = vpack.c.bf16 %v678_v19, %v677_v18  ;;  %v649_v31 = vadd.f32 %v15437_v23, %v610_v20  ;;  %v614_v39 = vmul.f32 %v15420_v16, %v575_v29  ;;  %v581_v44 = vld [vmem:[#allocation2 + $0xa0] sm:$0xff]  ;;  %v582_v45 = vld [vmem:[#allocation2 + $0xa8] sm:$0xff]  ;;  %v584_v9 = vld [vmem:[#allocation2 + $0xb8] sm:$0xff] }
  0x3f   : > { %13698 = vmatprep.mubr.msk.bf16.mxu1 %vm528_vm2, %v705_v8  ;;  %v679_v25 = vmax.f32 %v647_v12, 0.0  ;;  %v680_v26 = vmax.f32 %v648_v13, 0.0  ;;  %13727 = vmatpush3.bf16.msra.mxu1 %v15312_v1  ;;  %v650_v32 = vadd.f32 %v15437_v23, %v611_v21  ;;  %v651_v35 = vadd.f32 %v15437_v23, %v612_v27  ;;  %v583_v8 = vld [vmem:[#allocation2 + $0xb0] sm:$0xff]  ;;  %v585_v13 = vld [vmem:[#allocation2 + $0xc0] sm:$0xff]  ;;  %450 = vst.msk [vmem:[#allocation3 + $0x20] sm:$0x1] %vm443_vm3, %v15182_v3  ;;  %vm15635_vm12 = vmor %vm1139_vm9, %vm1140_vm10 }
  0x40   : > { %v652_v36 = vadd.f32 %v15437_v23, %v613_v28  ;;  %v681_v1 = vmax.f32 %v649_v31, 0.0  ;;  %v615_v43 = vmul.f32 %v15420_v16, %v576_v33  ;;  %v616_v48 = vmul.f32 %v15420_v16, %v577_v37  ;;  %v586_v14 = vld [vmem:[#allocation2 + $0xc8] sm:$0xff]  ;;  %444 = vst.msk [vmem:[#allocation3 + $0x8] sm:$0x1] %vm443_vm3, %v15182_v3  ;;  %447 = vst.msk [vmem:[#allocation3 + $0x14] sm:$0x1] %vm443_vm3, %v15182_v3 }
  0x41   : > { %v707_v34 = vpack.c.bf16 %v680_v26, %v679_v25  ;;  %v682_v42 = vmax.f32 %v650_v32, 0.0  ;;  %v683_v46 = vmax.f32 %v651_v35, 0.0  ;;  %v617_v49 = vmul.f32 %v15420_v16, %v578_v38  ;;  %v587_v21 = vld [vmem:[#allocation2 + $0xd0] sm:$0xff]  ;;  %v588_v22 = vld [vmem:[#allocation2 + $0xd8] sm:$0xff]  ;;  %453 = vst.msk [vmem:[#allocation3 + $0x2c] sm:$0x1] %vm443_vm3, %v15182_v3  ;;  %vm15641_vm13 = vmand %vm443_vm3, %vm1139_vm9 }
  0x42   : > { %v684_v47 = vmax.f32 %v652_v36, 0.0  ;;  %v653_v50 = vadd.f32 %v15437_v23, %v614_v39  ;;  %v618_v51 = vmul.f32 %v15420_v16, %v579_v40  ;;  %v619_v52 = vmul.f32 %v15420_v16, %v580_v41  ;;  %v589_v27 = vld [vmem:[#allocation2 + $0xe0] sm:$0xff]  ;;  %v590_v28 = vld [vmem:[#allocation2 + $0xe8] sm:$0xff]  ;;  %456 = vst.msk [vmem:[#allocation3 + $0x38] sm:$0x1] %vm443_vm3, %v15182_v3  ;;  %vm16157_vm0 = vmor %vm2643_vm14, %vm2644_vm15 }
  0x43   : > { %v708_v53 = vpack.c.bf16 %v682_v42, %v681_v1  ;;  %v654_v54 = vadd.f32 %v15437_v23, %v615_v43  ;;  %v620_v55 = vmul.f32 %v15420_v16, %v581_v44  ;;  %v621_v56 = vmul.f32 %v15420_v16, %v582_v45  ;;  %v591_v45 = vld [vmem:[#allocation2 + $0xf0] sm:$0xff]  ;;  %459 = vst.msk [vmem:[#allocation3 + $0x44] sm:$0x1] %vm443_vm3, %v15182_v3 }
  0x44   : > { %v709_v57 = vpack.c.bf16 %v684_v47, %v683_v46  ;;  %v655_v58 = vadd.f32 %v15437_v23, %v616_v48  ;;  %v656_v59 = vadd.f32 %v15437_v23, %v617_v49  ;;  %v657_v60 = vadd.f32 %v15437_v23, %v618_v51  ;;  %v592_v46 = vld [vmem:[#allocation2 + $0xf8] sm:$0xff]  ;;  %462 = vst.msk [vmem:[#allocation3 + $0x50] sm:$0x1] %vm443_vm3, %v15182_v3 }
  0x45   : > { %v658_v61 = vadd.f32 %v15437_v23, %v619_v52  ;;  %v685_v62 = vmax.f32 %v653_v50, 0.0  ;;  %v686_v63 = vmax.f32 %v654_v54, 0.0  ;;  %v659_v0 = vadd.f32 %v15437_v23, %v620_v55  ;;  %465 = vst.msk [vmem:[#allocation3 + $0x5c] sm:$0x1] %vm443_vm3, %v15182_v3  ;;  %468 = vst.msk [vmem:[#allocation3 + $0x68] sm:$0x1] %vm443_vm3, %v15182_v3 }
  0x46   : > { %13699 = vmatmul.mubr.msk.bf16.gmra.mrb[4].mxu1 %vm528_vm2, %v706_v30  ;;  %v660_v2 = vadd.f32 %v15437_v23, %v621_v56  ;;  %v687_v4 = vmax.f32 %v655_v58, 0.0  ;;  %v688_v5 = vmax.f32 %v656_v59, 0.0  ;;  %v689_v6 = vmax.f32 %v657_v60, 0.0  ;;  %471 = vst.msk [vmem:[#allocation3 + $0x74] sm:$0x1] %vm443_vm3, %v15182_v3 }
  0x47   : > { %13702 = vmatprep.mubr.msk.bf16.mxu1 %vm528_vm2, %v707_v34  ;;  %v690_v7 = vmax.f32 %v658_v61, 0.0  ;;  %v710_v10 = vpack.c.bf16 %v686_v63, %v685_v62  ;;  %v691_v11 = vmax.f32 %v659_v0, 0.0  ;;  %v622_v17 = vmul.f32 %v15420_v16, %v583_v8  ;;  %474 = vst.msk [vmem:[#allocation3 + $0x80] sm:$0x1] %vm443_vm3, %v15182_v3  ;;  %477 = vst.msk [vmem:[#allocation3 + $0x8c] sm:$0x1] %vm443_vm3, %v15182_v3 }
  0x48   : > { %v692_v12 = vmax.f32 %v660_v2, 0.0  ;;  %v711_v15 = vpack.c.bf16 %v688_v5, %v687_v4  ;;  %v623_v18 = vmul.f32 %v15420_v16, %v584_v9  ;;  %v624_v19 = vmul.f32 %v15420_v16, %v585_v13  ;;  %480 = vst.msk [vmem:[#allocation3 + $0x98] sm:$0x1] %vm443_vm3, %v15182_v3  ;;  %483 = vst.msk [vmem:[#allocation3 + $0xa4] sm:$0x1] %vm443_vm3, %v15182_v3 }
  0x49   : > { %v625_v20 = vmul.f32 %v15420_v16, %v586_v14  ;;  %v712_v24 = vpack.c.bf16 %v690_v7, %v689_v6  ;;  %v661_v25 = vadd.f32 %v15437_v23, %v622_v17  ;;  %v626_v34 = vmul.f32 %v15420_v16, %v587_v21  ;;  %486 = vst.msk [vmem:[#allocation3 + $0xb0] sm:$0x1] %vm443_vm3, %v15182_v3  ;;  %v1581_v60 = vld [vmem:[#allocation3 + $0x4] sm:$0xf]  ;;  %v1616_v7 = vld [vmem:[#allocation3 + $0x8] sm:$0x1] }
  0x4a   : > { %v662_v26 = vadd.f32 %v15437_v23, %v623_v18  ;;  %v713_v29 = vpack.c.bf16 %v692_v12, %v691_v11  ;;  %v663_v30 = vadd.f32 %v15437_v23, %v624_v19  ;;  %v627_v35 = vmul.f32 %v15420_v16, %v588_v22  ;;  %489 = vst.msk [vmem:[#allocation3 + $0xbc] sm:$0x1] %vm443_vm3, %v15182_v3  ;;  %v15602_v18 = vld [vmem:[%s19262_s6] sm:$0xff]  }
  0x4b   : > { %v664_v31 = vadd.f32 %v15437_v23, %v625_v20  ;;  %v693_v32 = vmax.f32 %v661_v25, 0.0  ;;  %v628_v38 = vmul.f32 %v15420_v16, %v589_v27  ;;  %v629_v39 = vmul.f32 %v15420_v16, %v590_v28  ;;  %492 = vst.msk [vmem:[#allocation3 + $0xc8] sm:$0x1] %vm443_vm3, %v15182_v3  ;;  %495 = vst.msk [vmem:[#allocation3 + $0xd4] sm:$0x1] %vm443_vm3, %v15182_v3 }
  0x4c   : > { %v694_v33 = vmax.f32 %v662_v26, 0.0  ;;  %v695_v36 = vmax.f32 %v663_v30, 0.0  ;;  %v665_v41 = vadd.f32 %v15437_v23, %v626_v34  ;;  %v666_v1 = vadd.f32 %v15437_v23, %v627_v35  ;;  %v15608_v19 = vld [vmem:[%s19260_s4] ss:$0 sm:$0xff] }
  0x4d   : > { %v696_v37 = vmax.f32 %v664_v31, 0.0  ;;  %v667_v43 = vadd.f32 %v15437_v23, %v628_v38  ;;  %v668_v44 = vadd.f32 %v15437_v23, %v629_v39  ;;  %v630_v49 = vmul.f32 %v15420_v16, %v591_v45  ;;  %v15613_v21 = vld [vmem:[%s19261_s5] ss:$0 sm:$0xff] }
  0x4e   : > { %13703 = vmatmul.mubr.msk.bf16.gmra.mrb[8].mxu1 %vm528_vm2, %v708_v53  ;;  %v714_v40 = vpack.c.bf16 %v694_v33, %v693_v32  ;;  %v697_v47 = vmax.f32 %v665_v41, 0.0  ;;  %v698_v48 = vmax.f32 %v666_v1, 0.0  ;;  %v631_v50 = vmul.f32 %v15420_v16, %v592_v46  ;;  %v14965_v16 = vld [vmem:[%s19262_s6 + $0x18] sm:$0xff]  }
  0x4f   : > { %13706 = vmatprep.mubr.msk.bf16.mxu1 %vm528_vm2, %v709_v57  ;;  %v715_v42 = vpack.c.bf16 %v696_v37, %v695_v36  ;;  %v699_v51 = vmax.f32 %v667_v43, 0.0  ;;  %v700_v52 = vmax.f32 %v668_v44, 0.0  ;;  %v669_v54 = vadd.f32 %v15437_v23, %v630_v49  ;;  %13728 = vmatprep.subr.bf16.mxu1 %v14965_v16 }
  0x50   : > { %v716_v53 = vpack.c.bf16 %v698_v48, %v697_v47  ;;  %v670_v55 = vadd.f32 %v15437_v23, %v631_v50  ;;  %13729 = vmatpush3.bf16.msra.mxu1 %v14965_v16  ;;  %v1580_v23 = vld [vmem:[#allocation3] sm:$0xf]  ;;  %v1645_v63 = vshll.u32 %v1581_v60, 16  ;;  %v1649_v0 = vshrl.u32 %v1581_v60, 16 }
  0x51   : > { %v717_v56 = vpack.c.bf16 %v700_v52, %v699_v51  ;;  %v701_v57 = vmax.f32 %v669_v54, 0.0  ;;  %v1636_v61 = vshrl.u32 %v1580_v23, 16  ;;  %v1639_v62 = vshll.u32 %v1580_v23, 16  ;;  %13762 = vmatprep.subr.bf16.mxu1 %v15602_v18 }
  0x52   : > { %v702_v58 = vmax.f32 %v670_v55, 0.0  ;;  %v1647_v5 = vrot.slane %v1645_v63, 5  ;;  %v1651_v6 = vrot.slane %v1649_v0, 4  ;;  %v1655_v9 = vshll.u32 %v1616_v7, 16 }
  0x53   : > { %v1638_v2 = vrot.slane %v1636_v61, 4  ;;  %v1641_v4 = vrot.slane %v1639_v62, 5  ;;  %v19369_v55 = vmov 0  ;;  %v1466_v61 = vld [vmem:[#allocation3 + $0xc] sm:$0xf]  ;;  %v19372_v62 = vmov 0 }
  0x54   : > { %v718_v59 = vpack.c.bf16 %v702_v58, %v701_v57  ;;  %v1652_v8 = vor.u32 %v1651_v6, %v1647_v5  ;;  %v1657_v13 = vrot.slane %v1655_v9, 5  ;;  %v19370_v55 = vsel %vm15628_vm11, 4294967295, %v19369_v55  ;;  %v1479_v6 = vld [vmem:[#allocation3 + $0x20] sm:$0x1] }
  0x55   : > { %v1642_v3 = vor.u32 %v1641_v4, %v1638_v2  ;;  %19371 = vst [vmem:[#allocation7_spill] sm:$0xff] %v19370_v55  ;;  %v19373_v62 = vsel %vm15635_vm12, 4294967295, %v19372_v62  ;;  %vm6572_vm3 = vcmask 130048   ;;  %vm12270_vm4 = vcmask 195584  }
  0x56   : > { %13707 = vmatmul.mubr.msk.bf16.gmra.mrb[12].mxu1 %vm528_vm2, %v710_v10  ;;  %v1653_v11 = vrot.slane %v1652_v8, 4  ;;  %19374 = vst [vmem:[#allocation8_spill] sm:$0xff] %v19373_v62 }
  0x57   : > { %13710 = vmatprep.mubr.msk.bf16.mxu1 %vm528_vm2, %v711_v15  ;;  %v1643_v10 = vrot.slane %v1642_v3, 4 }
  0x58   : > { %v1658_v15 = vsel %vm15590_vm6, %v1653_v11, %v1657_v13  ;;  %v1472_v11 = vld [vmem:[#allocation3 + $0x14] sm:$0x1] }
  0x59   : > { %v1648_v14 = vsel %vm15590_vm6, %v1643_v10, %v1647_v5  ;;  %v19375_v5 = vmov 0 }
  0x5a   : > { %v12442_v17 = vcombine.low %v1648_v14, %v1658_v15  ;;  %v19376_v5 = vsel %vm15641_vm13, 4294967295, %v19375_v5 }
  0x5b   : > { %19377 = vst [vmem:[#allocation9_spill] sm:$0xff] %v19376_v5 }
  0x5e   : > { %13711 = vmatmul.mubr.msk.bf16.gmra.mrb[16].mxu1 %vm528_vm2, %v712_v24 }
  0x5f   : > { %13714 = vmatprep.mubr.msk.bf16.mxu1 %vm528_vm2, %v713_v29 }
  0x66   : > { %13715 = vmatmul.mubr.msk.bf16.gmra.mrb[20].mxu1 %vm528_vm2, %v714_v40 }
  0x67   : > { %13718 = vmatprep.mubr.msk.bf16.mxu1 %vm528_vm2, %v715_v42 }
  0x6e   : > { %13719 = vmatmul.mubr.msk.bf16.gmra.mrb[24].mxu1 %vm528_vm2, %v716_v53 }
  0x6f   : > { %13722 = vmatprep.mubr.msk.bf16.mxu1 %vm528_vm2, %v717_v56  ;;  %v1475_v56 = vld [vmem:[#allocation3 + $0x18] sm:$0xf] }
  0x76   : > { %13723 = vmatmul.mubr.msk.bf16.gmra.mrb[28].mxu1 %vm528_vm2, %v718_v59  ;;  %vm6373_vm2 = vcmask 130112  }
  0x77   : > { %13730 = vmatprep.mubr.msk.bf16.mxu1 %vm2084_vm7, %v12442_v17 }
 0x111   : > { %v13696_v20 = vpop.f32.mrb[0].mxu1 }
 0x112   : > { %v942_v22 = vmul.f32 %v13696_v20, %v15608_v19  ;;  %v806_v24 = vpop.f32.mrb[1].mxu1 }
 0x113   : > { %v940_v25 = vmul.f32 %v15608_v19, %v806_v24  ;;  %v13697_v26 = vpop.f32.mrb[2].mxu1 }
 0x114   : > { %v981_v27 = vadd.f32 %v15613_v21, %v942_v22  ;;  %v943_v28 = vmul.f32 %v13697_v26, %v15608_v19  ;;  %v809_v29 = vpop.f32.mrb[3].mxu1 }
 0x115   : > { %v979_v30 = vadd.f32 %v15613_v21, %v940_v25  ;;  %v941_v31 = vmul.f32 %v15608_v19, %v809_v29 }
 0x116   : > { %v1013_v32 = vmax.f32 %v981_v27, 0.0  ;;  %v982_v33 = vadd.f32 %v15613_v21, %v943_v28 }
 0x117   : > { %v1011_v34 = vmax.f32 %v979_v30, 0.0  ;;  %v980_v35 = vadd.f32 %v15613_v21, %v941_v31 }
 0x118   : > { %v13271_v36 = vpack.c.bf16 %v1013_v32, %v1013_v32  ;;  %v1014_v37 = vmax.f32 %v982_v33, 0.0 }
 0x119   : > { %v13269_v38 = vpack.c.bf16 %v1011_v34, %v1011_v34  ;;  %v1012_v39 = vmax.f32 %v980_v35, 0.0  ;;  %v13700_v40 = vpop.f32.mrb[4].mxu1 }
 0x11a   : > { %v1160_v41 = vshrl.u32 %v13271_v36, 16  ;;  %v1163_v1 = vshll.u32 %v13271_v36, 16  ;;  %v13272_v42 = vpack.c.bf16 %v1014_v37, %v1014_v37  ;;  %v946_v43 = vmul.f32 %v13700_v40, %v15608_v19  ;;  %v822_v44 = vpop.f32.mrb[5].mxu1 }
 0x11b   : > { %v1143_v45 = vshrl.u32 %v13269_v38, 16  ;;  %v1146_v46 = vshll.u32 %v13269_v38, 16  ;;  %v13270_v47 = vpack.c.bf16 %v1012_v39, %v1012_v39  ;;  %v944_v48 = vmul.f32 %v15608_v19, %v822_v44  ;;  %v13701_v49 = vpop.f32.mrb[6].mxu1  ;;  %v1489_v39 = vld [vmem:[#allocation3 + $0x30] sm:$0xf] }
 0x11c   : > { %v1162_v50 = vrot.slane %v1160_v41, 7  ;;  %v1168_v51 = vshrl.u32 %v13272_v42, 16  ;;  %v1171_v52 = vshll.u32 %v13272_v42, 16  ;;  %v985_v53 = vadd.f32 %v15613_v21, %v946_v43  ;;  %v825_v54 = vpop.f32.mrb[7].mxu1 }
 0x11d   : > { %v1145_v57 = vrot.slane %v1143_v45, 7  ;;  %v1151_v58 = vshrl.u32 %v13270_v47, 16  ;;  %v1154_v59 = vshll.u32 %v13270_v47, 16  ;;  %v983_v16 = vadd.f32 %v15613_v21, %v944_v48  ;;  %v1482_v45 = vld [vmem:[#allocation3 + $0x24] sm:$0xf] }
 0x11e   : > { %v1165_v23 = vor.u32 %v1163_v1, %v1162_v50  ;;  %v1166_v60 = vrot.slane %v1162_v50, 4  ;;  %v1170_v63 = vrot.slane %v1168_v51, 7  ;;  %v1017_v0 = vmax.f32 %v985_v53, 0.0 }
 0x11f   : > { %v1148_v2 = vor.u32 %v1146_v46, %v1145_v57  ;;  %v1149_v4 = vrot.slane %v1145_v57, 4  ;;  %v1153_v7 = vrot.slane %v1151_v58, 7  ;;  %v1015_v3 = vmax.f32 %v983_v16, 0.0 }
 0x120   : > { %v1476_v8 = vsel %vm15628_vm11, %v1165_v23, %v1475_v56  ;;  %v1173_v9 = vor.u32 %v1171_v52, %v1170_v63  ;;  %v1175_v10 = vrot.slane %v1170_v63, 4  ;;  %v13275_v13 = vpack.c.bf16 %v1017_v0, %v1017_v0 }
 0x121   : > { %1477 = vst [vmem:[#allocation3 + $0x18] sm:$0xf] %v1476_v8  ;;  %v1467_v14 = vsel %vm15628_vm11, %v1148_v2, %v1466_v61  ;;  %v1156_v15 = vor.u32 %v1154_v59, %v1153_v7  ;;  %v1158_v17 = vrot.slane %v1153_v7, 4  ;;  %v13273_v20 = vpack.c.bf16 %v1015_v3, %v1015_v3  ;;  %v13704_v22 = vpop.f32.mrb[8].mxu1 }
 0x122   : > { %1468 = vst [vmem:[#allocation3 + $0xc] sm:$0xf] %v1467_v14  ;;  %v1174_v24 = vsel %vm15635_vm12, %v1166_v60, %v1173_v9  ;;  %v1480_v25 = vsel %vm15641_vm13, %v1175_v10, %v1479_v6  ;;  %v1194_v26 = vshrl.u32 %v13275_v13, 16  ;;  %v1197_v27 = vshll.u32 %v13275_v13, 16  ;;  %v838_v28 = vpop.f32.mrb[9].mxu1 }
 0x123   : > { %1478 = vst.msk [vmem:[#allocation3 + $0x1c] sm:$0xf] %vm440_vm1, %v1174_v24  ;;  %1481 = vst [vmem:[#allocation3 + $0x20] sm:$0x1] %v1480_v25  ;;  %v1157_v29 = vsel %vm15635_vm12, %v1149_v4, %v1156_v15  ;;  %v1473_v30 = vsel %vm15641_vm13, %v1158_v17, %v1472_v11  ;;  %v1177_v31 = vshrl.u32 %v13273_v20, 16  ;;  %v1180_v32 = vshll.u32 %v13273_v20, 16 }
 0x124   : > { %v13705_v33 = vpop.f32.mrb[10].mxu1  ;;  %1469 = vst.msk [vmem:[#allocation3 + $0x10] sm:$0xf] %vm440_vm1, %v1157_v29  ;;  %1474 = vst [vmem:[#allocation3 + $0x14] sm:$0x1] %v1473_v30  ;;  %v15659_v34 = vrot.slane %v1194_v26, 7  ;;  %v947_v35 = vmul.f32 %v13701_v49, %v15608_v19  ;;  %v945_v36 = vmul.f32 %v15608_v19, %v825_v54  ;;  %v950_v37 = vmul.f32 %v13704_v22, %v15608_v19 }
 0x125   : > { %v841_v38 = vpop.f32.mrb[11].mxu1  ;;  %v15664_v40 = vrot.slane %v1177_v31, 7  ;;  %v948_v41 = vmul.f32 %v15608_v19, %v838_v28  ;;  %v951_v1 = vmul.f32 %v13705_v33, %v15608_v19  ;;  %v1493_v15 = vld [vmem:[#allocation3 + $0x38] sm:$0x1]  ;;  %v1486_v17 = vld [vmem:[#allocation3 + $0x2c] sm:$0x1] }
 0x126   : > { %v949_v42 = vmul.f32 %v15608_v19, %v841_v38  ;;  %v1199_v43 = vor.u32 %v1197_v27, %v15659_v34  ;;  %v1200_v44 = vrot.slane %v15659_v34, 4  ;;  %v986_v46 = vadd.f32 %v15613_v21, %v947_v35  ;;  %v1503_v28 = vld [vmem:[#allocation3 + $0x48] sm:$0xf] }
 0x127   : > { %v984_v47 = vadd.f32 %v15613_v21, %v945_v36  ;;  %v1182_v48 = vor.u32 %v1180_v32, %v15664_v40  ;;  %v1183_v49 = vrot.slane %v15664_v40, 4  ;;  %v989_v50 = vadd.f32 %v15613_v21, %v950_v37 }
 0x128   : > { %v987_v51 = vadd.f32 %v15613_v21, %v948_v41  ;;  %v1490_v52 = vsel %vm15628_vm11, %v1199_v43, %v1489_v39  ;;  %v1018_v53 = vmax.f32 %v986_v46, 0.0  ;;  %v990_v56 = vadd.f32 %v15613_v21, %v951_v1  ;;  %v1496_v39 = vld [vmem:[#allocation3 + $0x3c] sm:$0xf] }
 0x129   : > { %v1016_v54 = vmax.f32 %v984_v47, 0.0  ;;  %1491 = vst [vmem:[#allocation3 + $0x30] sm:$0xf] %v1490_v52  ;;  %v1483_v57 = vsel %vm15628_vm11, %v1182_v48, %v1482_v45  ;;  %v1021_v58 = vmax.f32 %v989_v50, 0.0  ;;  %v988_v16 = vadd.f32 %v15613_v21, %v949_v42  ;;  %v13708_v23 = vpop.f32.mrb[12].mxu1 }
 0x12a   : > { %v1019_v59 = vmax.f32 %v987_v51, 0.0  ;;  %1484 = vst [vmem:[#allocation3 + $0x24] sm:$0xf] %v1483_v57  ;;  %v13276_v60 = vpack.c.bf16 %v1018_v53, %v1018_v53  ;;  %v1022_v63 = vmax.f32 %v990_v56, 0.0  ;;  %v954_v0 = vmul.f32 %v13708_v23, %v15608_v19  ;;  %v854_v2 = vpop.f32.mrb[13].mxu1 }
 0x12b   : > { %v13274_v61 = vpack.c.bf16 %v1016_v54, %v1016_v54  ;;  %v13279_v4 = vpack.c.bf16 %v1021_v58, %v1021_v58  ;;  %v1020_v7 = vmax.f32 %v988_v16, 0.0  ;;  %v952_v3 = vmul.f32 %v15608_v19, %v854_v2  ;;  %v13709_v8 = vpop.f32.mrb[14].mxu1  ;;  %v1507_v23 = vld [vmem:[#allocation3 + $0x50] sm:$0x1] }
 0x12c   : > { %v13277_v6 = vpack.c.bf16 %v1019_v59, %v1019_v59  ;;  %v1202_v9 = vshrl.u32 %v13276_v60, 16  ;;  %v1205_v10 = vshll.u32 %v13276_v60, 16  ;;  %v857_v14 = vpop.f32.mrb[15].mxu1  ;;  %v13280_v29 = vpack.c.bf16 %v1022_v63, %v1022_v63 }
 0x12d   : > { %v1185_v11 = vshrl.u32 %v13274_v61, 16  ;;  %v1188_v13 = vshll.u32 %v13274_v61, 16  ;;  %v1228_v20 = vshrl.u32 %v13279_v4, 16  ;;  %v1231_v22 = vshll.u32 %v13279_v4, 16 }
 0x12e   : > { %v1211_v24 = vshrl.u32 %v13277_v6, 16  ;;  %v1214_v25 = vshll.u32 %v13277_v6, 16  ;;  %v1204_v26 = vrot.slane %v1202_v9, 7  ;;  %v13278_v30 = vpack.c.bf16 %v1020_v7, %v1020_v7  ;;  %v1500_v9 = vld [vmem:[#allocation3 + $0x44] sm:$0x1] }
 0x12f   : > { %v1187_v27 = vrot.slane %v1185_v11, 7  ;;  %v1230_v31 = vrot.slane %v1228_v20, 7  ;;  %v993_v33 = vadd.f32 %v15613_v21, %v954_v0  ;;  %v991_v34 = vadd.f32 %v15613_v21, %v952_v3 }
 0x130   : > { %v1213_v32 = vrot.slane %v1211_v24, 7  ;;  %v1207_v35 = vor.u32 %v1205_v10, %v1204_v26  ;;  %v1209_v36 = vrot.slane %v1204_v26, 4  ;;  %v1236_v52 = vshrl.u32 %v13280_v29, 16 }
 0x131   : > { %v1190_v37 = vor.u32 %v1188_v13, %v1187_v27  ;;  %v1192_v38 = vrot.slane %v1187_v27, 4  ;;  %v1233_v40 = vor.u32 %v1231_v22, %v1230_v31  ;;  %v1234_v41 = vrot.slane %v1230_v31, 4  ;;  %v13712_v43 = vpop.f32.mrb[16].mxu1  ;;  %v1517_v31 = vld [vmem:[#allocation3 + $0x60] sm:$0xf] }
 0x132   : > { %v1216_v1 = vor.u32 %v1214_v25, %v1213_v32  ;;  %v1217_v42 = vrot.slane %v1213_v32, 4  ;;  %v1208_v45 = vsel %vm15635_vm12, %v1200_v44, %v1207_v35  ;;  %v1494_v46 = vsel %vm15641_vm13, %v1209_v36, %v1493_v15  ;;  %v870_v50 = vpop.f32.mrb[17].mxu1 }
 0x133   : > { %v1191_v47 = vsel %vm15635_vm12, %v1183_v49, %v1190_v37  ;;  %v1487_v48 = vsel %vm15641_vm13, %v1192_v38, %v1486_v17  ;;  %1492 = vst.msk [vmem:[#allocation3 + $0x34] sm:$0xf] %vm440_vm1, %v1208_v45  ;;  %1495 = vst [vmem:[#allocation3 + $0x38] sm:$0x1] %v1494_v46  ;;  %v1504_v51 = vsel %vm15628_vm11, %v1233_v40, %v1503_v28  ;;  %v1239_v53 = vshll.u32 %v13280_v29, 16  ;;  %v13713_v54 = vpop.f32.mrb[18].mxu1 }
 0x134   : > { %1485 = vst.msk [vmem:[#allocation3 + $0x28] sm:$0xf] %vm440_vm1, %v1191_v47  ;;  %1488 = vst [vmem:[#allocation3 + $0x2c] sm:$0x1] %v1487_v48  ;;  %v1497_v44 = vsel %vm15628_vm11, %v1216_v1, %v1496_v39  ;;  %v1219_v49 = vshrl.u32 %v13278_v30, 16  ;;  %v1222_v56 = vshll.u32 %v13278_v30, 16  ;;  %v955_v60 = vmul.f32 %v13709_v8, %v15608_v19 }
 0x135   : > { %1505 = vst [vmem:[#allocation3 + $0x48] sm:$0xf] %v1504_v51  ;;  %1498 = vst [vmem:[#allocation3 + $0x3c] sm:$0xf] %v1497_v44  ;;  %v1025_v57 = vmax.f32 %v993_v33, 0.0  ;;  %v1023_v58 = vmax.f32 %v991_v34, 0.0  ;;  %v953_v61 = vmul.f32 %v15608_v19, %v857_v14  ;;  %v958_v63 = vmul.f32 %v13712_v43, %v15608_v19 }
 0x136   : > { %v15701_v59 = vpop.f32.mrb[19].mxu1  ;;  %v1238_v16 = vrot.slane %v1236_v52, 7  ;;  %v1221_v0 = vrot.slane %v1219_v49, 7  ;;  %v956_v6 = vmul.f32 %v15608_v19, %v870_v50  ;;  %v994_v10 = vadd.f32 %v15613_v21, %v955_v60  ;;  %v1510_v39 = vld [vmem:[#allocation3 + $0x54] sm:$0xf] }
 0x137   : > { %v13283_v2 = vpack.c.bf16 %v1025_v57, %v1025_v57  ;;  %v13281_v4 = vpack.c.bf16 %v1023_v58, %v1023_v58  ;;  %v992_v11 = vadd.f32 %v15613_v21, %v953_v61  ;;  %v997_v34 = vadd.f32 %v15613_v21, %v958_v63  ;;  %v15730_v47 = vld [vmem:[#allocation3 + $0xc] sm:$0xf]  ;;  %v1521_v57 = vld [vmem:[#allocation3 + $0x68] sm:$0x1] }
 0x138   : > { %v1241_v7 = vor.u32 %v1239_v53, %v1238_v16  ;;  %v1243_v3 = vrot.slane %v1238_v16, 4  ;;  %v1224_v13 = vor.u32 %v1222_v56, %v1221_v0  ;;  %v1226_v15 = vrot.slane %v1221_v0, 4 }
 0x139   : > { %v1262_v17 = vshrl.u32 %v13283_v2, 16  ;;  %v1265_v8 = vshll.u32 %v13283_v2, 16  ;;  %v1245_v22 = vshrl.u32 %v13281_v4, 16  ;;  %v1248_v24 = vshll.u32 %v13281_v4, 16  ;;  %v15713_v25 = vpop.f32.mrb[20].mxu1 }
 0x13a   : > { %v1242_v14 = vsel %vm15635_vm12, %v1234_v41, %v1241_v7  ;;  %v1508_v20 = vsel %vm15641_vm13, %v1243_v3, %v1507_v23  ;;  %v1225_v26 = vsel %vm15635_vm12, %v1217_v42, %v1224_v13  ;;  %v1501_v27 = vsel %vm15641_vm13, %v1226_v15, %v1500_v9  ;;  %v15720_v30 = vpop.f32.mrb[21].mxu1  ;;  %v1514_v7 = vld [vmem:[#allocation3 + $0x5c] sm:$0x1] }
 0x13b   : > { %1506 = vst.msk [vmem:[#allocation3 + $0x4c] sm:$0xf] %vm440_vm1, %v1242_v14  ;;  %1509 = vst [vmem:[#allocation3 + $0x50] sm:$0x1] %v1508_v20  ;;  %v1264_v28 = vrot.slane %v1262_v17, 7  ;;  %v1026_v29 = vmax.f32 %v994_v10, 0.0  ;;  %v995_v35 = vadd.f32 %v15613_v21, %v956_v6  ;;  %v959_v41 = vmul.f32 %v13713_v54, %v15608_v19 }
 0x13c   : > { %1499 = vst.msk [vmem:[#allocation3 + $0x40] sm:$0xf] %vm440_vm1, %v1225_v26  ;;  %1502 = vst [vmem:[#allocation3 + $0x44] sm:$0x1] %v1501_v27  ;;  %v1247_v32 = vrot.slane %v1245_v22, 7  ;;  %v1024_v33 = vmax.f32 %v992_v11, 0.0  ;;  %v957_v23 = vmul.f32 %v15608_v19, %v15701_v59 }
 0x13d   : > { %v15725_v36 = vpop.f32.mrb[22].mxu1  ;;  %v1267_v37 = vor.u32 %v1265_v8, %v1264_v28  ;;  %v1268_v38 = vrot.slane %v1264_v28, 4  ;;  %v13284_v40 = vpack.c.bf16 %v1026_v29, %v1026_v29  ;;  %v1029_v46 = vmax.f32 %v997_v34, 0.0  ;;  %v1531_v17 = vld [vmem:[#allocation3 + $0x78] sm:$0xf] }
 0x13e   : > { %v15728_v1 = vpop.f32.mrb[23].mxu1  ;;  %v1250_v42 = vor.u32 %v1248_v24, %v1247_v32  ;;  %v1251_v43 = vrot.slane %v1247_v32, 4  ;;  %v13282_v45 = vpack.c.bf16 %v1024_v33, %v1024_v33  ;;  %v1027_v44 = vmax.f32 %v995_v35, 0.0  ;;  %v1524_v24 = vld [vmem:[#allocation3 + $0x6c] sm:$0xf] }
 0x13f   : > { %v1518_v48 = vsel %vm15628_vm11, %v1267_v37, %v1517_v31  ;;  %v1270_v50 = vshrl.u32 %v13284_v40, 16  ;;  %v1273_v51 = vshll.u32 %v13284_v40, 16  ;;  %v13287_v49 = vpack.c.bf16 %v1029_v46, %v1029_v46  ;;  %v1583_v27 = vld [vmem:[#allocation3 + $0x10] sm:$0xf] }
 0x140   : > { %1519 = vst [vmem:[#allocation3 + $0x60] sm:$0xf] %v1518_v48  ;;  %v1511_v52 = vsel %vm15628_vm11, %v1250_v42, %v1510_v39  ;;  %v1253_v53 = vshrl.u32 %v13282_v45, 16  ;;  %v1256_v54 = vshll.u32 %v13282_v45, 16  ;;  %v13285_v58 = vpack.c.bf16 %v1027_v44, %v1027_v44  ;;  %v1617_v39 = vld [vmem:[#allocation3 + $0x14] sm:$0x1] }
 0x141   : > { %1512 = vst [vmem:[#allocation3 + $0x54] sm:$0xf] %v1511_v52  ;;  %v1272_v56 = vrot.slane %v1270_v50, 7  ;;  %v998_v16 = vadd.f32 %v15613_v21, %v959_v41  ;;  %v1296_v61 = vshrl.u32 %v13287_v49, 16  ;;  %v1299_v63 = vshll.u32 %v13287_v49, 16  ;;  %v15740_v2 = vpop.f32.mrb[24].mxu1 }
 0x142   : > { %v1255_v60 = vrot.slane %v1253_v53, 7  ;;  %v1660_v0 = vshrl.u32 %v15730_v47, 16  ;;  %v1279_v3 = vshrl.u32 %v13285_v58, 16  ;;  %v1282_v9 = vshll.u32 %v13285_v58, 16  ;;  %v15742_v10 = vpop.f32.mrb[25].mxu1 }
 0x143   : > { %v1275_v4 = vor.u32 %v1273_v51, %v1272_v56  ;;  %v1277_v6 = vrot.slane %v1272_v56, 4  ;;  %v15744_v15 = vrot.slane %v1296_v61, 7  ;;  %v1030_v59 = vmax.f32 %v998_v16, 0.0  ;;  %v15746_v8 = vpop.f32.mrb[26].mxu1  ;;  %v1584_v45 = vld [vmem:[#allocation3 + $0x18] sm:$0xf] }
 0x144   : > { %v1258_v11 = vor.u32 %v1256_v54, %v1255_v60  ;;  %v1260_v13 = vrot.slane %v1255_v60, 4  ;;  %v15752_v22 = vrot.slane %v1279_v3, 7  ;;  %v996_v26 = vadd.f32 %v15613_v21, %v957_v23  ;;  %v15755_v28 = vpop.f32.mrb[27].mxu1  ;;  %v1585_v44 = vld [vmem:[#allocation3 + $0x1c] sm:$0xf] }
 0x145   : > { %v1276_v14 = vsel %vm15635_vm12, %v1268_v38, %v1275_v4  ;;  %v1522_v20 = vsel %vm15641_vm13, %v1277_v6, %v1521_v57  ;;  %v1301_v32 = vor.u32 %v1299_v63, %v15744_v15  ;;  %v1302_v33 = vrot.slane %v15744_v15, 4  ;;  %v1535_v52 = vld [vmem:[#allocation3 + $0x80] sm:$0x1] }
 0x146   : > { %1520 = vst.msk [vmem:[#allocation3 + $0x64] sm:$0xf] %vm440_vm1, %v1276_v14  ;;  %1523 = vst [vmem:[#allocation3 + $0x68] sm:$0x1] %v1522_v20  ;;  %v1259_v29 = vsel %vm15635_vm12, %v1251_v43, %v1258_v11  ;;  %v1515_v31 = vsel %vm15641_vm13, %v1260_v13, %v1514_v7  ;;  %v1284_v34 = vor.u32 %v1282_v9, %v15752_v22  ;;  %v1285_v35 = vrot.slane %v15752_v22, 4 }
 0x147   : > { %1513 = vst.msk [vmem:[#allocation3 + $0x58] sm:$0xf] %vm440_vm1, %v1259_v29  ;;  %1516 = vst [vmem:[#allocation3 + $0x5c] sm:$0x1] %v1515_v31  ;;  %v13288_v37 = vpack.c.bf16 %v1030_v59, %v1030_v59  ;;  %v1028_v38 = vmax.f32 %v996_v26, 0.0  ;;  %v1532_v40 = vsel %vm15628_vm11, %v1301_v32, %v1531_v17  ;;  %v1662_v41 = vrot.slane %v1660_v0, 4 }
 0x148   : > { %v1663_v42 = vshll.u32 %v15730_v47, 16  ;;  %v1669_v43 = vshll.u32 %v1583_v27, 16  ;;  %1533 = vst [vmem:[#allocation3 + $0x78] sm:$0xf] %v1532_v40  ;;  %v1525_v46 = vsel %vm15628_vm11, %v1284_v34, %v1524_v24  ;;  %v1673_v49 = vshrl.u32 %v1583_v27, 16 }
 0x149   : > { %v1304_v48 = vshrl.u32 %v13288_v37, 16  ;;  %v1307_v50 = vshll.u32 %v13288_v37, 16  ;;  %v13286_v51 = vpack.c.bf16 %v1028_v38, %v1028_v38  ;;  %1526 = vst [vmem:[#allocation3 + $0x6c] sm:$0xf] %v1525_v46  ;;  %v1679_v56 = vshll.u32 %v1617_v39, 16  ;;  %v15772_v57 = vpop.f32.mrb[28].mxu1 }
 0x14a   : > { %v1665_v53 = vrot.slane %v1663_v42, 5  ;;  %v1671_v54 = vrot.slane %v1669_v43, 5  ;;  %v1684_v23 = vshrl.u32 %v1584_v45, 16  ;;  %v15774_v60 = vpop.f32.mrb[29].mxu1  ;;  %v1675_v63 = vrot.slane %v1673_v49, 4  ;;  %v14967_v46 = vld [vmem:[%s19262_s6 + $0x8] sm:$0xff]  }
 0x14b   : > { %v1306_v58 = vrot.slane %v1304_v48, 7  ;;  %v1287_v47 = vshrl.u32 %v13286_v51, 16  ;;  %v1290_v16 = vshll.u32 %v13286_v51, 16  ;;  %v1681_v0 = vrot.slane %v1679_v56, 5  ;;  %v15776_v6 = vpop.f32.mrb[30].mxu1 }
 0x14c   : > { %v1666_v61 = vor.u32 %v1665_v53, %v1662_v41  ;;  %v1687_v4 = vshll.u32 %v1584_v45, 16  ;;  %v1528_v11 = vld [vmem:[#allocation3 + $0x74] sm:$0x1]  ;;  %v1686_v13 = vrot.slane %v1684_v23, 4  ;;  %v15778_v15 = vpop.f32.mrb[31].mxu1  ;;  %v1676_v59 = vor.u32 %v1675_v63, %v1671_v54 }
 0x14d   : > { %v1309_v7 = vor.u32 %v1307_v50, %v1306_v58  ;;  %v1311_v3 = vrot.slane %v1306_v58, 4  ;;  %v1289_v9 = vrot.slane %v1287_v47, 7  ;;  %v1618_v14 = vld [vmem:[#allocation3 + $0x20] sm:$0x1]  ;;  %v1693_v22 = vshll.u32 %v1585_v44, 16 }
 0x14e   : > { %v1667_v17 = vrot.slane %v1666_v61, 4  ;;  %v1689_v20 = vrot.slane %v1687_v4, 5  ;;  %v1677_v32 = vrot.slane %v1676_v59, 4  ;;  %v1697_v39 = vshrl.u32 %v1585_v44, 16  ;;  %v15791_v41 = vld [vmem:[#allocation3 + $0x24] sm:$0xf] }
 0x14f   : > { %v1310_v24 = vsel %vm15635_vm12, %v1302_v33, %v1309_v7  ;;  %v1536_v26 = vsel %vm15641_vm13, %v1311_v3, %v1535_v52  ;;  %v1292_v27 = vor.u32 %v1290_v16, %v1289_v9  ;;  %v1294_v29 = vrot.slane %v1289_v9, 4  ;;  %v15805_v52 = vld [vmem:[#allocation3 + $0x28] sm:$0xf]  ;;  %v15823_v7 = vld [vmem:[%s19262_s6 + $0x20] sm:$0xff]   ;;  %v1619_v59 = vld [vmem:[#allocation3 + $0x2c] sm:$0x1] }
 0x150   : > { %1534 = vst.msk [vmem:[#allocation3 + $0x7c] sm:$0xf] %vm440_vm1, %v1310_v24  ;;  %1537 = vst [vmem:[#allocation3 + $0x80] sm:$0x1] %v1536_v26  ;;  %v1672_v31 = vsel %vm15590_vm6, %v1667_v17, %v1671_v54  ;;  %v1690_v34 = vor.u32 %v1689_v20, %v1686_v13  ;;  %v1695_v37 = vrot.slane %v1693_v22, 5  ;;  %v1703_v40 = vshll.u32 %v1618_v14, 16 }
 0x151   : > { %v1293_v38 = vsel %vm15635_vm12, %v1285_v35, %v1292_v27  ;;  %v1529_v33 = vsel %vm15641_vm13, %v1294_v29, %v1528_v11  ;;  %v1682_v42 = vsel %vm15590_vm6, %v1677_v32, %v1681_v0  ;;  %v962_v45 = vmul.f32 %v15713_v25, %v15608_v19 }
 0x152   : > { %1527 = vst.msk [vmem:[#allocation3 + $0x70] sm:$0xf] %vm440_vm1, %v1293_v38  ;;  %1530 = vst [vmem:[#allocation3 + $0x74] sm:$0x1] %v1529_v33  ;;  %v1691_v43 = vrot.slane %v1690_v34, 4  ;;  %v960_v35 = vmul.f32 %v15608_v19, %v15720_v30  ;;  %v12443_v48 = vcombine.low %v1672_v31, %v1682_v42  ;;  %v1699_v50 = vrot.slane %v1697_v39, 4 }
 0x153   : > { %v1705_v51 = vrot.slane %v1703_v40, 5  ;;  %v963_v44 = vmul.f32 %v15725_v36, %v15608_v19  ;;  %v1001_v25 = vadd.f32 %v15613_v21, %v962_v45  ;;  %v961_v30 = vmul.f32 %v15608_v19, %v15728_v1  ;;  %v1545_v38 = vld [vmem:[#allocation3 + $0x90] sm:$0xf]  ;;  %v1538_v42 = vld [vmem:[#allocation3 + $0x84] sm:$0xf] }
 0x154   : > { %v1696_v53 = vsel %vm15590_vm6, %v1691_v43, %v1695_v37  ;;  %v999_v54 = vadd.f32 %v15613_v21, %v960_v35  ;;  %13731 = vmatmul.mubr.msk.bf16.vlgmr.msra.gmra.mrb[32].mxu1 %vm2084_vm7, %v12443_v48  ;;  %v1700_v49 = vor.u32 %v1699_v50, %v1695_v37  ;;  %v1708_v58 = vshrl.u32 %v15791_v41, 16 }
 0x155   : > { %v1002_v56 = vadd.f32 %v15613_v21, %v963_v44  ;;  %v1711_v36 = vshll.u32 %v15791_v41, 16  ;;  %13763 = vmatpush3.bf16.msra.mxu1 %v15602_v18  ;;  %v1033_v47 = vmax.f32 %v1001_v25, 0.0  ;;  %v1000_v23 = vadd.f32 %v15613_v21, %v961_v30 }
 0x156   : > { %v1031_v16 = vmax.f32 %v999_v54, 0.0  ;;  %v1717_v61 = vshll.u32 %v15805_v52, 16  ;;  %v1701_v63 = vrot.slane %v1700_v49, 4  ;;  %v1710_v1 = vrot.slane %v1708_v58, 4  ;;  %13764 = vmatprep.subr.bf16.mxu1 %v14967_v46  ;;  %v15837_v58 = vld [vmem:[#allocation3 + $0x34] sm:$0xf] }
 0x157   : > { %v1034_v0 = vmax.f32 %v1002_v56, 0.0  ;;  %v1713_v4 = vrot.slane %v1711_v36, 5  ;;  %v13291_v3 = vpack.c.bf16 %v1033_v47, %v1033_v47  ;;  %v1032_v11 = vmax.f32 %v1000_v23, 0.0  ;;  %v15835_v56 = vld [vmem:[#allocation3 + $0x30] sm:$0xf] }
 0x158   : > { %v13289_v9 = vpack.c.bf16 %v1031_v16, %v1031_v16  ;;  %v15825_v18 = vrot.slane %v1717_v61, 5  ;;  %v1706_v13 = vsel %vm15590_vm6, %v1701_v63, %v1705_v51  ;;  %v1721_v20 = vshrl.u32 %v15805_v52, 16  ;;  %v1542_v16 = vld [vmem:[#allocation3 + $0x8c] sm:$0x1]  ;;  %v15844_v63 = vld [vmem:[#allocation3 + $0x38] sm:$0x1] }
 0x159   : > { %v13292_v17 = vpack.c.bf16 %v1034_v0, %v1034_v0  ;;  %v1714_v14 = vor.u32 %v1713_v4, %v1710_v1  ;;  %v12444_v22 = vcombine.low %v1696_v53, %v1706_v13  ;;  %v1330_v24 = vshrl.u32 %v13291_v3, 16  ;;  %13765 = vmatpush3.bf16.msra.mxu1 %v14967_v46  ;;  %v1549_v53 = vld [vmem:[#allocation3 + $0x98] sm:$0x1] }
 0x15a   : > { %v1333_v26 = vshll.u32 %v13291_v3, 16  ;;  %v1313_v27 = vshrl.u32 %v13289_v9, 16  ;;  %v1316_v29 = vshll.u32 %v13289_v9, 16  ;;  %v13290_v34 = vpack.c.bf16 %v1032_v11, %v1032_v11  ;;  %13798 = vmatprep.subr.bf16.mxu1 %v15823_v7 }
 0x15b   : > { %v1338_v31 = vshrl.u32 %v13292_v17, 16  ;;  %v1341_v32 = vshll.u32 %v13292_v17, 16  ;;  %13734 = vmatprep.mubr.msk.bf16.mxu1 %vm2084_vm7, %v12444_v22  ;;  %v1332_v37 = vrot.slane %v1330_v24, 7  ;;  %v1715_v39 = vrot.slane %v1714_v14, 4  ;;  %v15854_v17 = vld [vmem:[#allocation3 + $0x3c] sm:$0xf] }
 0x15c   : > { %v1315_v33 = vrot.slane %v1313_v27, 7  ;;  %v1723_v40 = vrot.slane %v1721_v20, 4  ;;  %v1321_v45 = vshrl.u32 %v13290_v34, 16  ;;  %v1324_v35 = vshll.u32 %v13290_v34, 16 }
 0x15d   : > { %v1340_v43 = vrot.slane %v1338_v31, 7  ;;  %v1727_v48 = vshll.u32 %v1619_v59, 16  ;;  %v1335_v50 = vor.u32 %v1333_v26, %v1332_v37  ;;  %v1336_v46 = vrot.slane %v1332_v37, 4 }
 0x15e   : > { %v1318_v51 = vor.u32 %v1316_v29, %v1315_v33  ;;  %v1319_v44 = vrot.slane %v1315_v33, 4  ;;  %v1323_v30 = vrot.slane %v1321_v45, 7  ;;  %v1720_v49 = vsel %vm15590_vm6, %v1715_v39, %v15825_v18 }
 0x15f   : > { %v1343_v25 = vor.u32 %v1341_v32, %v1340_v43  ;;  %v1345_v54 = vrot.slane %v1340_v43, 4  ;;  %v1546_v36 = vsel %vm15628_vm11, %v1335_v50, %v1545_v38  ;;  %v1724_v23 = vor.u32 %v1723_v40, %v15825_v18 }
 0x160   : > { %v1539_v47 = vsel %vm15628_vm11, %v1318_v51, %v1538_v42  ;;  %v1729_v61 = vrot.slane %v1727_v48, 5  ;;  %1547 = vst [vmem:[#allocation3 + $0x90] sm:$0xf] %v1546_v36  ;;  %v1326_v4 = vor.u32 %v1324_v35, %v1323_v30  ;;  %v1328_v3 = vrot.slane %v1323_v30, 4 }
 0x161   : > { %1540 = vst [vmem:[#allocation3 + $0x84] sm:$0xf] %v1539_v47  ;;  %v1344_v0 = vsel %vm15635_vm12, %v1336_v46, %v1343_v25  ;;  %v1550_v1 = vsel %vm15641_vm13, %v1345_v54, %v1549_v53  ;;  %v1725_v9 = vrot.slane %v1724_v23, 4  ;;  %v1732_v11 = vshrl.u32 %v15835_v56, 16 }
 0x162   : > { %1548 = vst.msk [vmem:[#allocation3 + $0x94] sm:$0xf] %vm440_vm1, %v1344_v0  ;;  %1551 = vst [vmem:[#allocation3 + $0x98] sm:$0x1] %v1550_v1  ;;  %v1735_v18 = vshll.u32 %v15835_v56, 16  ;;  %v1741_v13 = vshll.u32 %v15837_v58, 16  ;;  %v1327_v59 = vsel %vm15635_vm12, %v1319_v44, %v1326_v4  ;;  %v1543_v14 = vsel %vm15641_vm13, %v1328_v3, %v1542_v16 }
 0x163   : > { %v1745_v20 = vshrl.u32 %v15837_v58, 16  ;;  %v1751_v22 = vshll.u32 %v15844_v63, 16  ;;  %1541 = vst.msk [vmem:[#allocation3 + $0x88] sm:$0xf] %vm440_vm1, %v1327_v59  ;;  %1544 = vst [vmem:[#allocation3 + $0x8c] sm:$0x1] %v1543_v14  ;;  %v1730_v24 = vsel %vm15590_vm6, %v1725_v9, %v1729_v61  ;;  %v966_v37 = vmul.f32 %v15740_v2, %v15608_v19 }
 0x164   : > { %v1734_v26 = vrot.slane %v1732_v11, 4  ;;  %v1737_v27 = vrot.slane %v1735_v18, 5  ;;  %v1743_v29 = vrot.slane %v1741_v13, 5  ;;  %v12445_v31 = vcombine.low %v1720_v49, %v1730_v24  ;;  %v15887_v0 = vld [vmem:[#allocation3 + $0x44] sm:$0x1] }
 0x165   : > { %v1747_v32 = vrot.slane %v1745_v20, 4  ;;  %v1753_v34 = vrot.slane %v1751_v22, 5  ;;  %v964_v33 = vmul.f32 %v15608_v19, %v15742_v10  ;;  %v967_v39 = vmul.f32 %v15746_v8, %v15608_v19  ;;  %v15880_v8 = vld [vmem:[#allocation3 + $0x40] sm:$0xf]  ;;  %v15889_v1 = vld [vmem:[#allocation3 + $0x48] sm:$0xf] }
 0x166   : > { %v1738_v38 = vor.u32 %v1737_v27, %v1734_v26  ;;  %v965_v40 = vmul.f32 %v15608_v19, %v15755_v28  ;;  %13735 = vmatmul.mubr.msk.bf16.gmra.mrb[36].mxu1 %vm2084_vm7, %v12445_v31  ;;  %v1005_v43 = vadd.f32 %v15613_v21, %v966_v37  ;;  %v1756_v45 = vshrl.u32 %v15854_v17, 16  ;;  %v1559_v18 = vld [vmem:[#allocation3 + $0xa8] sm:$0xf]  ;;  %v1552_v31 = vld [vmem:[#allocation3 + $0x9c] sm:$0xf] }
 0x167   : > { %v1748_v42 = vor.u32 %v1747_v32, %v1743_v29  ;;  %v1759_v35 = vshll.u32 %v15854_v17, 16  ;;  %v1003_v48 = vadd.f32 %v15613_v21, %v964_v33  ;;  %v1006_v10 = vadd.f32 %v15613_v21, %v967_v39  ;;  %v1563_v39 = vld [vmem:[#allocation3 + $0xb0] sm:$0x1] }
 0x168   : > { %v1739_v2 = vrot.slane %v1738_v38, 4  ;;  %v1004_v50 = vadd.f32 %v15613_v21, %v965_v40  ;;  %v1037_v19 = vmax.f32 %v1005_v43, 0.0  ;;  %v1758_v28 = vrot.slane %v1756_v45, 4 }
 0x169   : > { %v1749_v46 = vrot.slane %v1748_v42, 4  ;;  %v1761_v51 = vrot.slane %v1759_v35, 5  ;;  %v1035_v53 = vmax.f32 %v1003_v48, 0.0  ;;  %v1038_v25 = vmax.f32 %v1006_v10, 0.0  ;;  %v1556_v48 = vld [vmem:[#allocation3 + $0xa4] sm:$0x1] }
 0x16a   : > { %v1744_v44 = vsel %vm15590_vm6, %v1739_v2, %v1743_v29  ;;  %v1036_v54 = vmax.f32 %v1004_v50, 0.0  ;;  %v13295_v49 = vpack.c.bf16 %v1037_v19, %v1037_v19  ;;  %v1765_v47 = vshll.u32 %v15880_v8, 16 }
 0x16b   : > { %v1754_v30 = vsel %vm15590_vm6, %v1749_v46, %v1753_v34  ;;  %v1762_v36 = vor.u32 %v1761_v51, %v1758_v28  ;;  %v13293_v16 = vpack.c.bf16 %v1035_v53, %v1035_v53  ;;  %v13296_v23 = vpack.c.bf16 %v1038_v25, %v1038_v25  ;;  %v15905_v28 = vld [vmem:[#allocation3 + $0x4c] sm:$0xf]  ;;  %v15907_v51 = vld [vmem:[#allocation3 + $0x50] sm:$0x1] }
 0x16c   : > { %v12446_v21 = vcombine.low %v1744_v44, %v1754_v30  ;;  %v13294_v61 = vpack.c.bf16 %v1036_v54, %v1036_v54  ;;  %v1364_v4 = vshrl.u32 %v13295_v49, 16  ;;  %v1367_v3 = vshll.u32 %v13295_v49, 16 }
 0x16d   : > { %v15891_v9 = vrot.slane %v1762_v36, 4  ;;  %v15893_v11 = vrot.slane %v1765_v47, 5  ;;  %v1347_v13 = vshrl.u32 %v13293_v16, 16  ;;  %v1350_v59 = vshll.u32 %v13293_v16, 16 }
 0x16e   : > { %13738 = vmatprep.mubr.msk.bf16.mxu1 %vm2084_vm7, %v12446_v21  ;;  %v1372_v14 = vshrl.u32 %v13296_v23, 16  ;;  %v1375_v20 = vshll.u32 %v13296_v23, 16  ;;  %v1366_v22 = vrot.slane %v1364_v4, 7  ;;  %v1355_v24 = vshrl.u32 %v13294_v61, 16 }
 0x16f   : > { %v1358_v26 = vshll.u32 %v13294_v61, 16  ;;  %v1768_v27 = vsel %vm15590_vm6, %v15891_v9, %v15893_v11  ;;  %v1349_v29 = vrot.slane %v1347_v13, 7  ;;  %v1769_v34 = vshrl.u32 %v15880_v8, 16 }
 0x170   : > { %v1374_v32 = vrot.slane %v1372_v14, 7  ;;  %v1775_v37 = vshll.u32 %v15887_v0, 16  ;;  %v1369_v38 = vor.u32 %v1367_v3, %v1366_v22  ;;  %v1370_v33 = vrot.slane %v1366_v22, 4  ;;  %v15083_v3 = vld [vmem:[%s19260_s4] ss:$0 sm:$0xff] }
 0x171   : > { %v1357_v40 = vrot.slane %v1355_v24, 7  ;;  %v1780_v42 = vshrl.u32 %v15889_v1, 16  ;;  %v1352_v43 = vor.u32 %v1350_v59, %v1349_v29  ;;  %v1353_v45 = vrot.slane %v1349_v29, 4  ;;  %v15932_v22 = vld [vmem:[#allocation3 + $0x54] sm:$0xf] }
 0x172   : > { %v1377_v35 = vor.u32 %v1375_v20, %v1374_v32  ;;  %v1379_v2 = vrot.slane %v1374_v32, 4  ;;  %v1560_v10 = vsel %vm15628_vm11, %v1369_v38, %v1559_v18  ;;  %v1771_v19 = vrot.slane %v1769_v34, 4 }
 0x173   : > { %v1360_v50 = vor.u32 %v1358_v26, %v1357_v40  ;;  %v1362_v46 = vrot.slane %v1357_v40, 4  ;;  %1561 = vst [vmem:[#allocation3 + $0xa8] sm:$0xf] %v1560_v10  ;;  %v1553_v44 = vsel %vm15628_vm11, %v1352_v43, %v1552_v31  ;;  %v1777_v54 = vrot.slane %v1775_v37, 5  ;;  %v15084_v26 = vld [vmem:[%s19261_s5] ss:$0 sm:$0xff] }
 0x174   : > { %v1378_v53 = vsel %vm15635_vm12, %v1370_v33, %v1377_v35  ;;  %v1564_v25 = vsel %vm15641_vm13, %v1379_v2, %v1563_v39  ;;  %1554 = vst [vmem:[#allocation3 + $0x9c] sm:$0xf] %v1553_v44  ;;  %v1772_v36 = vor.u32 %v1771_v19, %v15893_v11  ;;  %v1782_v47 = vrot.slane %v1780_v42, 4 }
 0x175   : > { %1562 = vst.msk [vmem:[#allocation3 + $0xac] sm:$0xf] %vm440_vm1, %v1378_v53  ;;  %1565 = vst [vmem:[#allocation3 + $0xb0] sm:$0x1] %v1564_v25  ;;  %v1361_v30 = vsel %vm15635_vm12, %v1353_v45, %v1360_v50  ;;  %v1557_v49 = vsel %vm15641_vm13, %v1362_v46, %v1556_v48  ;;  %v1783_v21 = vshll.u32 %v15889_v1, 16  ;;  %v1789_v16 = vshll.u32 %v15905_v28, 16 }
 0x176   : > { %1555 = vst.msk [vmem:[#allocation3 + $0xa0] sm:$0xf] %vm440_vm1, %v1361_v30  ;;  %1558 = vst [vmem:[#allocation3 + $0xa4] sm:$0x1] %v1557_v49  ;;  %v1793_v23 = vshrl.u32 %v15905_v28, 16  ;;  %v1799_v61 = vshll.u32 %v15907_v51, 16  ;;  %v970_v9 = vmul.f32 %v15083_v3, %v15772_v57  ;;  %v968_v11 = vmul.f32 %v15083_v3, %v15774_v60 }
 0x177   : > { %v1773_v4 = vrot.slane %v1772_v36, 4  ;;  %v971_v18 = vmul.f32 %v15083_v3, %v15776_v6  ;;  %v1785_v13 = vrot.slane %v1783_v21, 5  ;;  %v1791_v59 = vrot.slane %v1789_v16, 5  ;;  %v15947_v46 = vld [vmem:[#allocation3 + $0x58] sm:$0xf] }
 0x178   : > { %v1795_v14 = vrot.slane %v1793_v23, 4  ;;  %v1801_v20 = vrot.slane %v1799_v61, 5  ;;  %v1009_v29 = vadd.f32 %v15084_v26, %v970_v9  ;;  %v1007_v31 = vadd.f32 %v15084_v26, %v968_v11  ;;  %v1573_v30 = vld [vmem:[#allocation3 + $0xc0] sm:$0xf]  ;;  %v1566_v36 = vld [vmem:[#allocation3 + $0xb4] sm:$0xf] }
 0x179   : > { %v1778_v24 = vsel %vm15590_vm6, %v1773_v4, %v1777_v54  ;;  %v1010_v57 = vadd.f32 %v15084_v26, %v971_v18  ;;  %v1786_v60 = vor.u32 %v1785_v13, %v1782_v47  ;;  %v969_v6 = vmul.f32 %v15083_v3, %v15778_v15  ;;  %v1577_v4 = vld [vmem:[#allocation3 + $0xc8] sm:$0x1] }
 0x17a   : > { %v12447_v32 = vcombine.low %v1768_v27, %v1778_v24  ;;  %v1796_v34 = vor.u32 %v1795_v14, %v1791_v59  ;;  %v1041_v37 = vmax.f32 %v1009_v29, 0.0  ;;  %v1039_v38 = vmax.f32 %v1007_v31, 0.0  ;;  %v15952_v14 = vld [vmem:[#allocation3 + $0x60] sm:$0xf] }
 0x17b   : > { %v1042_v33 = vmax.f32 %v1010_v57, 0.0  ;;  %v1804_v39 = vshrl.u32 %v15932_v22, 16  ;;  %v1787_v40 = vrot.slane %v1786_v60, 4  ;;  %v1008_v43 = vadd.f32 %v15084_v26, %v969_v6  ;;  %v15954_v60 = vld [vmem:[#allocation3 + $0x5c] sm:$0x1] }
 0x17c   : > { %13739 = vmatmul.mubr.msk.bf16.gmra.mrb[40].mxu1 %vm2084_vm7, %v12447_v32  ;;  %v1797_v42 = vrot.slane %v1796_v34, 4  ;;  %v1807_v45 = vshll.u32 %v15932_v22, 16  ;;  %v13299_v35 = vpack.c.bf16 %v1041_v37, %v1041_v37  ;;  %v13297_v2 = vpack.c.bf16 %v1039_v38, %v1039_v38  ;;  %v1570_v38 = vld [vmem:[#allocation3 + $0xbc] sm:$0x1] }
 0x17d   : > { %v13300_v48 = vpack.c.bf16 %v1042_v33, %v1042_v33  ;;  %v1806_v27 = vrot.slane %v1804_v39, 4  ;;  %v1792_v10 = vsel %vm15590_vm6, %v1787_v40, %v1791_v59  ;;  %v1040_v50 = vmax.f32 %v1008_v43, 0.0  ;;  %v15960_v40 = vld [vmem:[#allocation3 + $0x64] sm:$0xf] }
 0x17e   : > { %v1802_v15 = vsel %vm15590_vm6, %v1797_v42, %v1801_v20  ;;  %v1809_v19 = vrot.slane %v1807_v45, 5  ;;  %v1398_v53 = vshrl.u32 %v13299_v35, 16  ;;  %v1401_v25 = vshll.u32 %v13299_v35, 16 }
 0x17f   : > { %v12448_v44 = vcombine.low %v1792_v10, %v1802_v15  ;;  %v1381_v54 = vshrl.u32 %v13297_v2, 16  ;;  %v1384_v49 = vshll.u32 %v13297_v2, 16  ;;  %v1406_v47 = vshrl.u32 %v13300_v48, 16  ;;  %v15966_v2 = vld [vmem:[#allocation3 + $0x68] sm:$0x1] }
 0x180   : > { %v1409_v21 = vshll.u32 %v13300_v48, 16  ;;  %v13298_v16 = vpack.c.bf16 %v1040_v50, %v1040_v50  ;;  %v1400_v23 = vrot.slane %v1398_v53, 7  ;;  %v1810_v3 = vor.u32 %v1809_v19, %v1806_v27  ;;  %v15968_v48 = vld [vmem:[#allocation3 + $0x6c] sm:$0xf]  ;;  %v15975_v19 = vld [vmem:[#allocation3 + $0x70] sm:$0xf] }
 0x181   : > { %13742 = vmatprep.mubr.msk.bf16.mxu1 %vm2084_vm7, %v12448_v44  ;;  %v1383_v61 = vrot.slane %v1381_v54, 7  ;;  %v1813_v9 = vshll.u32 %v15947_v46, 16  ;;  %v1408_v11 = vrot.slane %v1406_v47, 7  ;;  %v1817_v59 = vshrl.u32 %v15947_v46, 16 }
 0x182   : > { %v1389_v18 = vshrl.u32 %v13298_v16, 16  ;;  %v1392_v13 = vshll.u32 %v13298_v16, 16  ;;  %v1403_v20 = vor.u32 %v1401_v25, %v1400_v23  ;;  %v1404_v24 = vrot.slane %v1400_v23, 4 }
 0x183   : > { %v1386_v26 = vor.u32 %v1384_v49, %v1383_v61  ;;  %v1387_v29 = vrot.slane %v1383_v61, 4  ;;  %v1411_v31 = vor.u32 %v1409_v21, %v1408_v11  ;;  %v1413_v57 = vrot.slane %v1408_v11, 4  ;;  %v15985_v21 = vld [vmem:[#allocation3 + $0x78] sm:$0xf] }
 0x184   : > { %v1391_v32 = vrot.slane %v1389_v18, 7  ;;  %v1811_v34 = vrot.slane %v1810_v3, 4  ;;  %v1574_v6 = vsel %vm15628_vm11, %v1403_v20, %v1573_v30  ;;  %v1815_v33 = vrot.slane %v1813_v9, 5  ;;  %v15991_v9 = vld [vmem:[#allocation3 + $0x7c] sm:$0xf] }
 0x185   : > { %v1567_v37 = vsel %vm15628_vm11, %v1386_v26, %v1566_v36  ;;  %v1819_v39 = vrot.slane %v1817_v59, 4  ;;  %1575 = vst [vmem:[#allocation3 + $0xc0] sm:$0xf] %v1574_v6  ;;  %v1412_v42 = vsel %vm15635_vm12, %v1404_v24, %v1411_v31  ;;  %v1578_v43 = vsel %vm15641_vm13, %v1413_v57, %v1577_v4  ;;  %v15988_v4 = vld [vmem:[#allocation3 + $0x74] sm:$0x1] }
 0x186   : > { %1568 = vst [vmem:[#allocation3 + $0xb4] sm:$0xf] %v1567_v37  ;;  %v1394_v45 = vor.u32 %v1392_v13, %v1391_v32  ;;  %v1396_v35 = vrot.slane %v1391_v32, 4  ;;  %1576 = vst.msk [vmem:[#allocation3 + $0xc4] sm:$0xf] %vm440_vm1, %v1412_v42  ;;  %v1816_v27 = vsel %vm15590_vm6, %v1811_v34, %v1815_v33  ;;  %v1823_v15 = vshll.u32 %v15954_v60, 16 }
 0x187   : > { %1579 = vst [vmem:[#allocation3 + $0xc8] sm:$0x1] %v1578_v43  ;;  %v1820_v10 = vor.u32 %v1819_v39, %v1815_v33  ;;  %v1828_v50 = vshrl.u32 %v15952_v14, 16  ;;  %v1831_v25 = vshll.u32 %v15952_v14, 16  ;;  %v1837_v54 = vshll.u32 %v15960_v40, 16 }
 0x188   : > { %v1395_v44 = vsel %vm15635_vm12, %v1387_v29, %v1394_v45  ;;  %v1571_v53 = vsel %vm15641_vm13, %v1396_v35, %v1570_v38  ;;  %v1825_v49 = vrot.slane %v1823_v15, 5  ;;  %v1841_v47 = vshrl.u32 %v15960_v40, 16  ;;  %v16000_v38 = vld [vmem:[#allocation3 + $0x80] sm:$0x1] }
 0x189   : > { %1569 = vst.msk [vmem:[#allocation3 + $0xb8] sm:$0xf] %vm440_vm1, %v1395_v44  ;;  %1572 = vst [vmem:[#allocation3 + $0xbc] sm:$0x1] %v1571_v53  ;;  %v1821_v30 = vrot.slane %v1820_v10, 4  ;;  %v1830_v36 = vrot.slane %v1828_v50, 4 }
 0x18a   : > { %v1833_v16 = vrot.slane %v1831_v25, 5  ;;  %v1839_v23 = vrot.slane %v1837_v54, 5  ;;  %v1847_v61 = vshll.u32 %v15966_v2, 16  ;;  %v1852_v3 = vshrl.u32 %v15968_v48, 16  ;;  %v16007_v44 = vld [vmem:[#allocation3 + $0x84] sm:$0xf] }
 0x18b   : > { %v1826_v11 = vsel %vm15590_vm6, %v1821_v30, %v1825_v49  ;;  %v1843_v18 = vrot.slane %v1841_v47, 4  ;;  %v1855_v13 = vshll.u32 %v15968_v48, 16  ;;  %v1861_v59 = vshll.u32 %v15975_v19, 16  ;;  %v16011_v49 = vld [vmem:[#allocation3 + $0x88] sm:$0xf] }
 0x18c   : > { %v12449_v20 = vcombine.low %v1816_v27, %v1826_v11  ;;  %v1834_v24 = vor.u32 %v1833_v16, %v1830_v36  ;;  %v1849_v26 = vrot.slane %v1847_v61, 5  ;;  %v1854_v29 = vrot.slane %v1852_v3, 4 }
 0x18d   : > { %v1844_v31 = vor.u32 %v1843_v18, %v1839_v23  ;;  %v1857_v57 = vrot.slane %v1855_v13, 5  ;;  %v1863_v32 = vrot.slane %v1861_v59, 5  ;;  %v1865_v34 = vshrl.u32 %v15975_v19, 16  ;;  %v16019_v13 = vld [vmem:[#allocation3 + $0x90] sm:$0xf] }
 0x18e   : > { %13743 = vmatmul.mubr.msk.bf16.gmra.mrb[44].mxu1 %vm2084_vm7, %v12449_v20  ;;  %v1835_v6 = vrot.slane %v1834_v24, 4  ;;  %v1871_v37 = vshll.u32 %v15988_v4, 16  ;;  %v1876_v33 = vshrl.u32 %v15985_v21, 16  ;;  %v1879_v39 = vshll.u32 %v15985_v21, 16 }
 0x18f   : > { %v1845_v42 = vrot.slane %v1844_v31, 4  ;;  %v1858_v43 = vor.u32 %v1857_v57, %v1854_v29  ;;  %v1867_v45 = vrot.slane %v1865_v34, 4  ;;  %v1885_v35 = vshll.u32 %v15991_v9, 16 }
 0x190   : > { %v1840_v27 = vsel %vm15590_vm6, %v1835_v6, %v1839_v23  ;;  %v1873_v10 = vrot.slane %v1871_v37, 5  ;;  %v1878_v15 = vrot.slane %v1876_v33, 4  ;;  %v1881_v50 = vrot.slane %v1879_v39, 5  ;;  %v16028_v6 = vld [vmem:[#allocation3 + $0x94] sm:$0xf] }
 0x191   : > { %v1850_v53 = vsel %vm15590_vm6, %v1845_v42, %v1849_v26  ;;  %v1859_v25 = vrot.slane %v1858_v43, 4  ;;  %v1868_v54 = vor.u32 %v1867_v45, %v1863_v32  ;;  %v1887_v30 = vrot.slane %v1885_v35, 5  ;;  %v16022_v26 = vld [vmem:[#allocation3 + $0x8c] sm:$0x1] }
 0x192   : > { %v12450_v36 = vcombine.low %v1840_v27, %v1850_v53  ;;  %v1882_v47 = vor.u32 %v1881_v50, %v1878_v15  ;;  %v1889_v16 = vshrl.u32 %v15991_v9, 16  ;;  %v1895_v61 = vshll.u32 %v16000_v38, 16  ;;  %v16033_v27 = vld [vmem:[#allocation3 + $0x98] sm:$0x1] }
 0x193   : > { %v1864_v23 = vsel %vm15590_vm6, %v1859_v25, %v1863_v32  ;;  %v1869_v3 = vrot.slane %v1868_v54, 4  ;;  %v1900_v11 = vshrl.u32 %v16007_v44, 16  ;;  %v1903_v18 = vshll.u32 %v16007_v44, 16  ;;  %v16040_v54 = vld [vmem:[#allocation3 + $0x9c] sm:$0xf] }
 0x194   : > { %13746 = vmatprep.mubr.msk.bf16.mxu1 %vm2084_vm7, %v12450_v36  ;;  %v1883_v59 = vrot.slane %v1882_v47, 4  ;;  %v1891_v20 = vrot.slane %v1889_v16, 4  ;;  %v1897_v24 = vrot.slane %v1895_v61, 5  ;;  %v1909_v29 = vshll.u32 %v16011_v49, 16  ;;  %v16042_v61 = vld [vmem:[#allocation3 + $0xa0] sm:$0xf] }
 0x195   : > { %v1874_v31 = vsel %vm15590_vm6, %v1869_v3, %v1873_v10  ;;  %v1902_v57 = vrot.slane %v1900_v11, 4  ;;  %v1905_v32 = vrot.slane %v1903_v18, 5  ;;  %v1913_v34 = vshrl.u32 %v16011_v49, 16 }
 0x196   : > { %v12451_v37 = vcombine.low %v1864_v23, %v1874_v31  ;;  %v1888_v33 = vsel %vm15590_vm6, %v1883_v59, %v1887_v30  ;;  %v1892_v39 = vor.u32 %v1891_v20, %v1887_v30  ;;  %v1911_v42 = vrot.slane %v1909_v29, 5  ;;  %v16046_v59 = vld [vmem:[#allocation3 + $0xa4] sm:$0x1] }
 0x197   : > { %v1906_v43 = vor.u32 %v1905_v32, %v1902_v57  ;;  %v1915_v45 = vrot.slane %v1913_v34, 4  ;;  %v1919_v35 = vshll.u32 %v16022_v26, 16  ;;  %v1924_v10 = vshrl.u32 %v16019_v13, 16 }
 0x198   : > { %13747 = vmatmul.mubr.msk.bf16.gmra.mrb[48].mxu1 %vm2084_vm7, %v12451_v37  ;;  %v1893_v15 = vrot.slane %v1892_v39, 4  ;;  %v1927_v50 = vshll.u32 %v16019_v13, 16  ;;  %v1933_v53 = vshll.u32 %v16028_v6, 16  ;;  %v1937_v25 = vshrl.u32 %v16028_v6, 16 }
 0x199   : > { %v1907_v30 = vrot.slane %v1906_v43, 4  ;;  %v1916_v36 = vor.u32 %v1915_v45, %v1911_v42  ;;  %v1921_v47 = vrot.slane %v1919_v35, 5  ;;  %v1926_v16 = vrot.slane %v1924_v10, 4 }
 0x19a   : > { %v1898_v23 = vsel %vm15590_vm6, %v1893_v15, %v1897_v24  ;;  %v1929_v3 = vrot.slane %v1927_v50, 5  ;;  %v1935_v11 = vrot.slane %v1933_v53, 5  ;;  %v1939_v18 = vrot.slane %v1937_v25, 4  ;;  %v16060_v53 = vld [vmem:[#allocation3 + $0xac] sm:$0xf] }
 0x19b   : > { %v12452_v20 = vcombine.low %v1888_v33, %v1898_v23  ;;  %v1912_v29 = vsel %vm15590_vm6, %v1907_v30, %v1911_v42  ;;  %v1917_v31 = vrot.slane %v1916_v36, 4  ;;  %v1943_v57 = vshll.u32 %v16033_v27, 16  ;;  %v16058_v42 = vld [vmem:[#allocation3 + $0xa8] sm:$0xf]  ;;  %v16063_v23 = vld [vmem:[#allocation3 + $0xb0] sm:$0x1] }
 0x19c   : > { %v1930_v32 = vor.u32 %v1929_v3, %v1926_v16  ;;  %v1940_v34 = vor.u32 %v1939_v18, %v1935_v11  ;;  %v1948_v37 = vshrl.u32 %v16040_v54, 16  ;;  %v1951_v39 = vshll.u32 %v16040_v54, 16 }
 0x19d   : > { %13750 = vmatprep.mubr.msk.bf16.mxu1 %vm2084_vm7, %v12452_v20  ;;  %v1922_v24 = vsel %vm15590_vm6, %v1917_v31, %v1921_v47  ;;  %v1945_v43 = vrot.slane %v1943_v57, 5  ;;  %v1957_v33 = vshll.u32 %v16042_v61, 16  ;;  %v1961_v45 = vshrl.u32 %v16042_v61, 16 }
 0x19e   : > { %v12453_v35 = vcombine.low %v1912_v29, %v1922_v24  ;;  %v1931_v10 = vrot.slane %v1930_v32, 4  ;;  %v1941_v15 = vrot.slane %v1940_v34, 4  ;;  %v1950_v50 = vrot.slane %v1948_v37, 4  ;;  %v16072_v29 = vld [vmem:[#allocation3 + $0xb4] sm:$0xf] }
 0x19f   : > { %v1953_v25 = vrot.slane %v1951_v39, 5  ;;  %v1959_v30 = vrot.slane %v1957_v33, 5  ;;  %v1963_v36 = vrot.slane %v1961_v45, 4  ;;  %v1967_v16 = vshll.u32 %v16046_v59, 16 }
 0x1a0   : > { %13751 = vmatmul.mubr.msk.bf16.gmra.mrb[52].mxu1 %vm2084_vm7, %v12453_v35  ;;  %v1936_v47 = vsel %vm15590_vm6, %v1931_v10, %v1935_v11  ;;  %v1946_v3 = vsel %vm15590_vm6, %v1941_v15, %v1945_v43  ;;  %v1972_v18 = vshrl.u32 %v16058_v42, 16  ;;  %v1975_v20 = vshll.u32 %v16058_v42, 16 }
 0x1a1   : > { %v12454_v31 = vcombine.low %v1936_v47, %v1946_v3  ;;  %v1954_v57 = vor.u32 %v1953_v25, %v1950_v50  ;;  %v1964_v32 = vor.u32 %v1963_v36, %v1959_v30  ;;  %v1969_v34 = vrot.slane %v1967_v16, 5  ;;  %v16079_v50 = vld [vmem:[#allocation3 + $0xb8] sm:$0xf] }
 0x1a2   : > { %v1974_v37 = vrot.slane %v1972_v18, 4  ;;  %v1977_v39 = vrot.slane %v1975_v20, 5  ;;  %v1981_v24 = vshll.u32 %v16060_v53, 16  ;;  %v1985_v33 = vshrl.u32 %v16060_v53, 16 }
 0x1a3   : > { %13754 = vmatprep.mubr.msk.bf16.mxu1 %vm2084_vm7, %v12454_v31  ;;  %v1955_v11 = vrot.slane %v1954_v57, 4  ;;  %v1965_v43 = vrot.slane %v1964_v32, 4  ;;  %v1991_v45 = vshll.u32 %v16063_v23, 16  ;;  %v1996_v35 = vshrl.u32 %v16072_v29, 16  ;;  %v16086_v57 = vld [vmem:[#allocation3 + $0xbc] sm:$0x1] }
 0x1a4   : > { %v1978_v10 = vor.u32 %v1977_v39, %v1974_v37  ;;  %v1983_v15 = vrot.slane %v1981_v24, 5  ;;  %v1987_v47 = vrot.slane %v1985_v33, 4  ;;  %v1999_v25 = vshll.u32 %v16072_v29, 16 }
 0x1a5   : > { %v1960_v36 = vsel %vm15590_vm6, %v1955_v11, %v1959_v30  ;;  %v1970_v16 = vsel %vm15590_vm6, %v1965_v43, %v1969_v34  ;;  %v1998_v3 = vrot.slane %v1996_v35, 4  ;;  %v2005_v37 = vshll.u32 %v16079_v50, 16 }
 0x1a6   : > { %v12455_v18 = vcombine.low %v1960_v36, %v1970_v16  ;;  %v1979_v20 = vrot.slane %v1978_v10, 4  ;;  %v1988_v31 = vor.u32 %v1987_v47, %v1983_v15  ;;  %v2001_v32 = vrot.slane %v1999_v25, 5 }
 0x1a7   : > { %v2009_v39 = vshrl.u32 %v16079_v50, 16  ;;  %v1993_v33 = vrot.slane %v1991_v45, 5  ;;  %v2007_v30 = vrot.slane %v2005_v37, 5  ;;  %v2015_v34 = vshll.u32 %v16086_v57, 16 }
 0x1a8   : > { %13755 = vmatmul.mubr.msk.bf16.gmra.mrb[56].mxu1 %vm2084_vm7, %v12455_v18  ;;  %v1989_v24 = vrot.slane %v1988_v31, 4  ;;  %v2002_v5 = vor.u32 %v2001_v32, %v1998_v3  ;;  %v1984_v43 = vsel %vm15590_vm6, %v1979_v20, %v1983_v15  ;;  %v15085_v18 = vld [vmem:[#allocation3] sm:$0xf]  ;;  %v15086_v31 = vld [vmem:[#allocation3 + $0x4] sm:$0xf] }
 0x1a9   : > { %v2011_v11 = vrot.slane %v2009_v39, 4  ;;  %v2017_v16 = vrot.slane %v2015_v34, 5  ;;  %v12476_v32 = vcombine.low %v15085_v18, %v15086_v31  ;;  %v16103_v20 = vld [vmem:[#allocation3 + $0x10] sm:$0xf]  ;;  %v14971_v39 = vld [vmem:[%s19262_s6 + $0x28] sm:$0xff]   ;;  %v12479_v34 = vcombine.low %v15791_v41, %v15805_v52 }
 0x1aa   : > { %v1994_v35 = vsel %vm15590_vm6, %v1989_v24, %v1993_v33  ;;  %v2003_v47 = vrot.slane %v2002_v5, 4  ;;  %v15087_v5 = vld [vmem:[#allocation3 + $0xc] sm:$0xf]  ;;  %v15089_v24 = vld [vmem:[#allocation3 + $0x18] sm:$0xf]  ;;  %v12483_v41 = vcombine.low %v15932_v22, %v15947_v46  ;;  %v12484_v52 = vcombine.low %v15952_v14, %v15960_v40 }
 0x1ab   : > { %v12456_v10 = vcombine.low %v1984_v43, %v1994_v35  ;;  %v2012_v25 = vor.u32 %v2011_v11, %v2007_v30  ;;  %v12477_v37 = vcombine.low %v15087_v5, %v16103_v20  ;;  %v16109_v33 = vld [vmem:[#allocation3 + $0x1c] sm:$0xf]  ;;  %v16118_v11 = vld [vmem:[%s19262_s6 + $0x30] sm:$0xff]   ;;  %v12480_v43 = vcombine.low %v15835_v56, %v15837_v58 }
 0x1ac   : > { %v2008_v45 = vsel %vm15590_vm6, %v2003_v47, %v2007_v30  ;;  %v12478_v30 = vcombine.low %v15089_v24, %v16109_v33  ;;  %v12482_v35 = vcombine.low %v15889_v1, %v15905_v28  ;;  %v12485_v56 = vcombine.low %v15968_v48, %v15975_v19  ;;  %v15092_v5 = vld [vmem:[#allocation3 + $0x14] sm:$0x1]  ;;  %v15093_v24 = vld [vmem:[#allocation3 + $0x20] sm:$0x1] }
 0x1ad   : > { %13758 = vmatprep.mubr.msk.bf16.mxu1 %vm2084_vm7, %v12456_v10  ;;  %v2013_v36 = vrot.slane %v2012_v25, 4  ;;  %v12487_v1 = vcombine.low %v16007_v44, %v16011_v49  ;;  %v12488_v22 = vcombine.low %v16019_v13, %v16028_v6  ;;  %v2648_v14 = vrot.slane %v15086_v31, 5  ;;  %v2595_v10 = vld [vmem:[#allocation3] sm:$0xe]  ;;  %v15091_v25 = vld [vmem:[#allocation3 + $0x8] sm:$0x1] }
 0x1ae   : > { %v12489_v48 = vcombine.low %v16040_v54, %v16042_v61  ;;  %v12490_v44 = vcombine.low %v16058_v42, %v16060_v53  ;;  %v12491_v42 = vcombine.low %v16072_v29, %v16079_v50 }
 0x1af   : > { %v2018_v3 = vsel %vm15590_vm6, %v2013_v36, %v2017_v16  ;;  %v2650_v47 = vrot.slane %v2648_v14, 4  ;;  %v2651_v36 = vrot.slane %v15091_v25, 5  ;;  %v16190_v25 = vld [vmem:[%s19262_s6 + $0x40] sm:$0xff]  }
 0x1b0   : > { %v12457_v15 = vcombine.low %v2008_v45, %v2018_v3  ;;  %v2655_v45 = vrot.slane %v16103_v20, 5  ;;  %v2662_v3 = vrot.slane %v16109_v33, 5  ;;  %v15094_v33 = vld [vmem:[#allocation3 + $0x28] sm:$0xf] }
 0x1b1   : > { %v2652_v16 = vsel %vm16157_vm0, %v2650_v47, %v2651_v36  ;;  %v2679_v47 = vrot.slane %v15844_v63, 5 }
 0x1b2   : > { %13759 = vmatmul.mubr.msk.bf16.gmra.mrb[60].mxu1 %vm2084_vm7, %v12457_v15  ;;  %v2657_v31 = vrot.slane %v2655_v45, 4  ;;  %v2664_v15 = vrot.slane %v2662_v3, 4 }
 0x1b3   : > { %13766 = vmatprep.mubr.msk.bf16.mxu1 %vm2084_vm7, %v12476_v32  ;;  %v2596_v32 = vld [vmem:[#allocation3 + $0xc] sm:$0xe] }
 0x1ba   : > { %13767 = vmatmul.mubr.msk.bf16.vlgmr.msra.gmra.mrb[32].mxu1 %vm2084_vm7, %v12477_v37  ;;  %v2658_v37 = vrot.slane %v15092_v5, 5  ;;  %v2693_v5 = vrot.slane %v15907_v51, 5 }
 0x1bb   : > { %13799 = vmatpush3.bf16.msra.mxu1 %v15823_v7  ;;  %13770 = vmatprep.mubr.msk.bf16.mxu1 %vm2084_vm7, %v12478_v30  ;;  %v12481_v7 = vcombine.low %v15854_v17, %v15880_v8  ;;  %v12486_v17 = vcombine.low %v15985_v21, %v15991_v9  ;;  %v12510_v21 = vrot.slane %v2595_v10, 9  ;;  %v2665_v30 = vrot.slane %v15093_v24, 5 }
 0x1bc   : > { %13800 = vmatprep.subr.bf16.mxu1 %v14971_v39  ;;  %v2659_v20 = vsel %vm16157_vm0, %v2657_v31, %v2658_v37  ;;  %v2697_v24 = vrot.slane %v15947_v46, 5  ;;  %v2700_v46 = vrot.slane %v15954_v60, 5 }
 0x1bd   : > { %v2649_v54 = vsel %vm16157_vm0, %v12510_v21, %v2648_v14  ;;  %v2666_v29 = vsel %vm16157_vm0, %v2664_v15, %v2665_v30  ;;  %v2598_v14 = vld [vmem:[#allocation3 + $0x24] sm:$0xe]  ;;  %v2599_v21 = vld [vmem:[#allocation3 + $0x30] sm:$0xe]  ;;  %v2601_v15 = vld [vmem:[#allocation3 + $0x48] sm:$0xe] }
 0x1be   : > { %v12530_v18 = vcombine.low %v2649_v54, %v2652_v16  ;;  %v12513_v36 = vrot.slane %v2598_v14, 9  ;;  %v2683_v54 = vrot.slane %v15880_v8, 5  ;;  %v2600_v8 = vld [vmem:[#allocation3 + $0x3c] sm:$0xe]  ;;  %v12516_v30 = vrot.slane %v2601_v15, 9 }
 0x1bf   : > { %13801 = vmatpush3.bf16.msra.mxu1 %v14971_v39  ;;  %v2597_v39 = vld [vmem:[#allocation3 + $0x18] sm:$0xe]  ;;  %v12515_v37 = vrot.slane %v2600_v8, 9  ;;  %v2718_v14 = vrot.slane %v15991_v9, 5  ;;  %v2721_v9 = vrot.slane %v16000_v38, 5 }
 0x1c0   : > { %13834 = vmatprep.subr.bf16.mxu1 %v16118_v11  ;;  %v2685_v31 = vrot.slane %v2683_v54, 4 }
 0x1c2   : > { %13771 = vmatmul.mubr.msk.bf16.gmra.mrb[36].mxu1 %vm2084_vm7, %v12479_v34  ;;  %v12511_v34 = vrot.slane %v2596_v32, 9 }
 0x1c3   : > { %13774 = vmatprep.mubr.msk.bf16.mxu1 %vm2084_vm7, %v12480_v43  ;;  %v2669_v43 = vrot.slane %v15094_v33, 5  ;;  %v2684_v33 = vsel %vm16157_vm0, %v12515_v37, %v2683_v54 }
 0x1c5   : > { %v2670_v63 = vsel %vm16157_vm0, %v12513_v36, %v2669_v43  ;;  %v2605_v36 = vld [vmem:[#allocation3 + $0x78] sm:$0xe] }
 0x1ca   : > { %13775 = vmatmul.mubr.msk.bf16.gmra.mrb[40].mxu1 %vm2084_vm7, %v12481_v7  ;;  %v12512_v7 = vrot.slane %v2597_v39, 9 }
 0x1cb   : > { %13778 = vmatprep.mubr.msk.bf16.mxu1 %vm2084_vm7, %v12482_v35  ;;  %v2676_v35 = vrot.slane %v15837_v58, 5  ;;  %v15095_v58 = vld [vmem:[#allocation3 + $0x2c] sm:$0x1] }
 0x1cd   : > { %v2678_v10 = vrot.slane %v2676_v35, 4 }
 0x1cf   : > { %v2680_v16 = vsel %vm16157_vm0, %v2678_v10, %v2679_v47  ;;  %v2720_v47 = vrot.slane %v2718_v14, 4 }
 0x1d2   : > { %13779 = vmatmul.mubr.msk.bf16.gmra.mrb[44].mxu1 %vm2084_vm7, %v12483_v41  ;;  %v2656_v41 = vsel %vm16157_vm0, %v12511_v34, %v2655_v45  ;;  %v2690_v45 = vrot.slane %v15905_v28, 5  ;;  %v2686_v28 = vrot.slane %v15887_v0, 5 }
 0x1d3   : > { %13782 = vmatprep.mubr.msk.bf16.mxu1 %vm2084_vm7, %v12484_v52  ;;  %v12531_v52 = vcombine.low %v2656_v41, %v2659_v20  ;;  %v2704_v20 = vrot.slane %v15960_v40, 5  ;;  %v2603_v41 = vld [vmem:[#allocation3 + $0x60] sm:$0xe]  ;;  %v2707_v40 = vrot.slane %v15966_v2, 5 }
 0x1d4   : > { %v2692_v32 = vrot.slane %v2690_v45, 4  ;;  %v2687_v39 = vsel %vm16157_vm0, %v2685_v31, %v2686_v28  ;;  %v2691_v0 = vsel %vm16157_vm0, %v12516_v30, %v2690_v45  ;;  %v2722_v45 = vsel %vm16157_vm0, %v2720_v47, %v2721_v9  ;;  %v2606_v31 = vld [vmem:[#allocation3 + $0x84] sm:$0xe]  ;;  %v14987_v47 = vld [vmem:[#allocation3 + $0x48] sm:$0xff]   ;;  %v16299_v9 = vld [vmem:[#allocation3 + $0x10] sm:$0xf] }
 0x1d5   : > { %v12521_v28 = vrot.slane %v2606_v31, 9 }
 0x1d6   : > { %v2694_v34 = vsel %vm16157_vm0, %v2692_v32, %v2693_v5  ;;  %v2607_v32 = vld [vmem:[#allocation3 + $0x90] sm:$0xe]  ;;  %v2739_v5 = vrot.slane %v16042_v61, 5  ;;  %v2742_v61 = vrot.slane %v16046_v59, 5 }
 0x1d7   : > { %v12536_v51 = vcombine.low %v2691_v0, %v2694_v34  ;;  %v12522_v37 = vrot.slane %v2607_v32, 9  ;;  %v2609_v0 = vld [vmem:[#allocation3 + $0xa8] sm:$0xe] }
 0x1d8   : > { %v16311_v32 = vld [vmem:[#allocation3 + $0x28] sm:$0xf] }
 0x1da   : > { %13783 = vmatmul.mubr.msk.bf16.gmra.mrb[48].mxu1 %vm2084_vm7, %v12485_v56  ;;  %v2663_v56 = vsel %vm16157_vm0, %v12512_v7, %v2662_v3  ;;  %v2699_v7 = vrot.slane %v2697_v24, 4 }
 0x1db   : > { %13786 = vmatprep.mubr.msk.bf16.mxu1 %vm2084_vm7, %v12486_v17  ;;  %v14980_v17 = vld [vmem:[%s19262_s6 + $0x38] sm:$0xff]  }
 0x1e2   : > { %13787 = vmatmul.mubr.msk.bf16.gmra.mrb[52].mxu1 %vm2084_vm7, %v12487_v1  ;;  %v12532_v1 = vcombine.low %v2663_v56, %v2666_v29  ;;  %v2602_v29 = vld [vmem:[#allocation3 + $0x54] sm:$0xe]  ;;  %v2701_v56 = vsel %vm16157_vm0, %v2699_v7, %v2700_v46 }
 0x1e3   : > { %13790 = vmatprep.mubr.msk.bf16.mxu1 %vm2084_vm7, %v12488_v22  ;;  %v2671_v22 = vrot.slane %v2669_v43, 4  ;;  %v12535_v43 = vcombine.low %v2684_v33, %v2687_v39  ;;  %v2608_v33 = vld [vmem:[#allocation3 + $0x9c] sm:$0xe] }
 0x1ea   : > { %13791 = vmatmul.mubr.msk.bf16.gmra.mrb[56].mxu1 %vm2084_vm7, %v12489_v48  ;;  %v2672_v48 = vrot.slane %v15095_v58, 5 }
 0x1eb   : > { %13794 = vmatprep.mubr.msk.bf16.mxu1 %vm2084_vm7, %v12490_v44 }
 0x1ec   : > { %v2673_v44 = vsel %vm16157_vm0, %v2671_v22, %v2672_v48 }
 0x1ed   : > { %v12533_v3 = vcombine.low %v2670_v63, %v2673_v44  ;;  %v2732_v63 = vrot.slane %v16028_v6, 5  ;;  %v2735_v6 = vrot.slane %v16033_v27, 5 }
 0x1ef   : > { %v2734_v8 = vrot.slane %v2732_v63, 4 }
 0x1f1   : > { %v2736_v39 = vsel %vm16157_vm0, %v2734_v8, %v2735_v6  ;;  %v14995_v6 = vld [vmem:[#allocation3 + $0x9c] sm:$0xff]  }
 0x1f2   : > { %13795 = vmatmul.mubr.msk.bf16.gmra.mrb[60].mxu1 %vm2084_vm7, %v12491_v42 }
 0x1f3   : > { %13802 = vmatprep.mubr.msk.bf16.mxu1 %vm2084_vm7, %v12530_v18 }
 0x1fa   : > { %13803 = vmatmul.mubr.msk.bf16.vlgmr.msra.gmra.mrb[32].mxu1 %vm2084_vm7, %v12531_v52  ;;  %v12517_v52 = vrot.slane %v2602_v29, 9  ;;  %v2753_v29 = vrot.slane %v16079_v50, 5  ;;  %v2756_v50 = vrot.slane %v16086_v57, 5  ;;  %v16290_v57 = vld [vmem:[%s19262_s6 + $0x50] sm:$0xff]  }
 0x1fb   : > { %13835 = vmatpush3.bf16.msra.mxu1 %v16118_v11  ;;  %13806 = vmatprep.mubr.msk.bf16.mxu1 %vm2084_vm7, %v12532_v1  ;;  %v12514_v11 = vrot.slane %v2599_v21, 9  ;;  %v12518_v1 = vrot.slane %v2603_v41, 9  ;;  %v2604_v21 = vld [vmem:[#allocation3 + $0x6c] sm:$0xe] }
 0x1fc   : > { %13836 = vmatprep.subr.bf16.mxu1 %v14980_v17  ;;  %v2698_v10 = vsel %vm16157_vm0, %v12517_v52, %v2697_v24  ;;  %v12519_v44 = vrot.slane %v2604_v21, 9  ;;  %v2746_v24 = vrot.slane %v16060_v53, 5  ;;  %v2749_v53 = vrot.slane %v16063_v23, 5  ;;  %v2610_v23 = vld [vmem:[#allocation3 + $0xb4] sm:$0xe]  ;;  %v14986_v21 = vld [vmem:[#allocation3 + $0x3c] sm:$0xff]  }
 0x1fd   : > { %v2677_v18 = vsel %vm16157_vm0, %v12514_v11, %v2676_v35  ;;  %v2706_v35 = vrot.slane %v2704_v20, 4  ;;  %v12537_v58 = vcombine.low %v2698_v10, %v2701_v56  ;;  %v2705_v60 = vsel %vm16157_vm0, %v12518_v1, %v2704_v20  ;;  %v14981_v10 = vld [vmem:[#allocation3 + $0xc] sm:$0xff]  }
 0x1fe   : > { %v12534_v42 = vcombine.low %v2677_v18, %v2680_v16  ;;  %v2725_v11 = vrot.slane %v16011_v49, 5  ;;  %v12520_v16 = vrot.slane %v2605_v36, 9  ;;  %v2728_v49 = vrot.slane %v16022_v26, 5  ;;  %v14990_v36 = vld [vmem:[#allocation3 + $0x6c] sm:$0xff]  }
 0x1ff   : > { %13837 = vmatpush3.bf16.msra.mxu1 %v14980_v17  ;;  %v2711_v17 = vrot.slane %v15975_v19, 5  ;;  %v2708_v22 = vsel %vm16157_vm0, %v2706_v35, %v2707_v40  ;;  %v2714_v19 = vrot.slane %v15988_v4, 5  ;;  %v2733_v26 = vsel %vm16157_vm0, %v12522_v37, %v2732_v63  ;;  %v16305_v63 = vld [vmem:[#allocation3 + $0x1c] sm:$0xf] }
 0x200   : > { %13870 = vmatprep.subr.bf16.mxu1 %v16190_v25  ;;  %v12538_v2 = vcombine.low %v2705_v60, %v2708_v22  ;;  %v2719_v4 = vsel %vm16157_vm0, %v12520_v16, %v2718_v14  ;;  %v2726_v30 = vsel %vm16157_vm0, %v12521_v28, %v2725_v11  ;;  %v12542_v27 = vcombine.low %v2733_v26, %v2736_v39  ;;  %v14991_v60 = vld [vmem:[%s19262_s6 + $0x48] sm:$0xff]   ;;  %v16313_v28 = vld [vmem:[#allocation3 + $0x14] sm:$0x1]  ;;  %v3440_v26 = vld [vmem:[#allocation3 + $0x24] sm:$0xf] }
 0x201   : > { %v2713_v48 = vrot.slane %v2711_v17, 4  ;;  %v12540_v38 = vcombine.low %v2719_v4, %v2722_v45  ;;  %v2741_v20 = vrot.slane %v2739_v5, 4  ;;  %v12524_v35 = vrot.slane %v2609_v0, 9 }
 0x202   : > { %13807 = vmatmul.mubr.msk.bf16.gmra.mrb[36].mxu1 %vm2084_vm7, %v12533_v3  ;;  %v2712_v3 = vsel %vm16157_vm0, %v12519_v44, %v2711_v17  ;;  %v2755_v56 = vrot.slane %v2753_v29, 4  ;;  %v12525_v17 = vrot.slane %v2610_v23, 9  ;;  %v14992_v44 = vld [vmem:[#allocation3 + $0x78] sm:$0xff]   ;;  %v3492_v16 = vshll.u32 %v16299_v9, 16  ;;  %v14996_v23 = vld [vmem:[#allocation3 + $0xa8] sm:$0xff]  }
 0x203   : > { %13810 = vmatprep.mubr.msk.bf16.mxu1 %vm2084_vm7, %v12534_v42  ;;  %v2715_v54 = vsel %vm16157_vm0, %v2713_v48, %v2714_v19  ;;  %v2727_v42 = vrot.slane %v2725_v11, 4  ;;  %v2743_v7 = vsel %vm16157_vm0, %v2741_v20, %v2742_v61  ;;  %v2747_v59 = vsel %vm16157_vm0, %v12524_v35, %v2746_v24  ;;  %v14985_v48 = vld [vmem:[#allocation3 + $0x30] sm:$0xff]   ;;  %v3434_v11 = vld [vmem:[#allocation3 + $0xc] sm:$0xf] }
 0x204   : > { %v12539_v18 = vcombine.low %v2712_v3, %v2715_v54  ;;  %v2757_v1 = vsel %vm16157_vm0, %v2755_v56, %v2756_v50  ;;  %v2754_v22 = vsel %vm16157_vm0, %v12525_v17, %v2753_v29  ;;  %v14988_v19 = vld [vmem:[#allocation3 + $0x54] sm:$0xff]   ;;  %v14993_v54 = vld [vmem:[#allocation3 + $0x84] sm:$0xff]   ;;  %v3496_v45 = vshrl.u32 %v16299_v9, 16  ;;  %v16325_v29 = vld [vmem:[#allocation3 + $0x20] sm:$0x1] }
 0x205   : > { %v2729_v15 = vsel %vm16157_vm0, %v2727_v42, %v2728_v49  ;;  %v12545_v14 = vcombine.low %v2754_v22, %v2757_v1  ;;  %v3483_v3 = vshrl.u32 %v3434_v11, 16  ;;  %v16307_v4 = vrot.slane %v3492_v16, 5  ;;  %v3437_v42 = vld [vmem:[#allocation3 + $0x18] sm:$0xf]  ;;  %v14994_v49 = vld [vmem:[#allocation3 + $0x90] sm:$0xff]  }
 0x206   : > { %v12541_v34 = vcombine.low %v2726_v30, %v2729_v15  ;;  %v3516_v31 = vshll.u32 %v16305_v63, 16  ;;  %v3520_v8 = vshrl.u32 %v16305_v63, 16  ;;  %v3507_v37 = vshrl.u32 %v3437_v42, 16  ;;  %v16332_v17 = vld [vmem:[#allocation3 + $0x2c] sm:$0x1] }
 0x207   : > { %v3485_v15 = vrot.slane %v3483_v3, 4  ;;  %v3544_v20 = vshrl.u32 %v16311_v32, 16  ;;  %v3531_v0 = vshrl.u32 %v3440_v26, 16 }
 0x208   : > { %v16317_v30 = vrot.slane %v3516_v31, 5  ;;  %v3509_v35 = vrot.slane %v3507_v37, 4 }
 0x20a   : > { %13811 = vmatmul.mubr.msk.bf16.gmra.mrb[40].mxu1 %vm2084_vm7, %v12535_v43  ;;  %v2748_v43 = vrot.slane %v2746_v24, 4  ;;  %v3510_v24 = vshll.u32 %v3437_v42, 16 }
 0x20b   : > { %13814 = vmatprep.mubr.msk.bf16.mxu1 %vm2084_vm7, %v12536_v51  ;;  %v12523_v51 = vrot.slane %v2608_v33, 9  ;;  %v3502_v33 = vshll.u32 %v16313_v28, 16 }
 0x20c   : > { %v2750_v46 = vsel %vm16157_vm0, %v2748_v43, %v2749_v53  ;;  %v16323_v43 = vld [vmem:[#allocation3 + $0x34] sm:$0xf]  ;;  %v3534_v53 = vshll.u32 %v3440_v26, 16  ;;  %v16355_v26 = vld [vmem:[#allocation3 + $0x4c] sm:$0xf] }
 0x20d   : > { %v2740_v41 = vsel %vm16157_vm0, %v12523_v51, %v2739_v5  ;;  %v12544_v52 = vcombine.low %v2747_v59, %v2750_v46  ;;  %v3443_v51 = vld [vmem:[#allocation3 + $0x30] sm:$0xf]  ;;  %v3512_v46 = vrot.slane %v3510_v24, 5  ;;  %v3546_v59 = vrot.slane %v3544_v20, 4 }
 0x20e   : > { %v12543_v40 = vcombine.low %v2740_v41, %v2743_v7  ;;  %v3568_v56 = vshrl.u32 %v16323_v43, 16  ;;  %v3504_v50 = vrot.slane %v3502_v33, 5  ;;  %v3555_v1 = vshrl.u32 %v3443_v51, 16 }
 0x20f   : > { %v3558_v22 = vshll.u32 %v3443_v51, 16 }
 0x210   : > { %v3557_v16 = vrot.slane %v3555_v1, 4 }
 0x212   : > { %13815 = vmatmul.mubr.msk.bf16.gmra.mrb[44].mxu1 %vm2084_vm7, %v12537_v58  ;;  %v14983_v58 = vld [vmem:[#allocation3 + $0x18] sm:$0xff]  }
 0x213   : > { %13818 = vmatprep.mubr.msk.bf16.mxu1 %vm2084_vm7, %v12538_v2  ;;  %v14984_v2 = vld [vmem:[#allocation3 + $0x24] sm:$0xff]  }
 0x21a   : > { %13819 = vmatmul.mubr.msk.bf16.gmra.mrb[48].mxu1 %vm2084_vm7, %v12539_v18  ;;  %v3486_v18 = vshll.u32 %v3434_v11, 16  ;;  %v3570_v11 = vrot.slane %v3568_v56, 4  ;;  %v3612_v56 = vshll.u32 %v16355_v26, 16 }
 0x21b   : > { %13822 = vmatprep.mubr.msk.bf16.mxu1 %vm2084_vm7, %v12540_v38  ;;  %v3498_v38 = vrot.slane %v3496_v45, 4  ;;  %v3560_v45 = vrot.slane %v3558_v22, 5  ;;  %v3616_v22 = vshrl.u32 %v16355_v26, 16 }
 0x21c   : > { %v3488_v5 = vrot.slane %v3486_v18, 5 }
 0x21d   : > { %v3499_v39 = vor.u32 %v3498_v38, %v16307_v4  ;;  %v3561_v33 = vor.u32 %v3560_v45, %v3557_v16  ;;  %v16382_v16 = vrot.slane %v3612_v56, 5  ;;  %v16384_v45 = vld [vmem:[#allocation3 + $0x64] sm:$0xf] }
 0x21e   : > { %v3489_v61 = vor.u32 %v3488_v5, %v3485_v15  ;;  %v16350_v15 = vld [vmem:[#allocation3 + $0x38] sm:$0x1] }
 0x21f   : > { %v3500_v7 = vrot.slane %v3499_v39, 4 }
 0x222   : > { %13823 = vmatmul.mubr.msk.bf16.gmra.mrb[52].mxu1 %vm2084_vm7, %v12541_v34  ;;  %v3522_v34 = vrot.slane %v3520_v8, 4 }
 0x223   : > { %13826 = vmatprep.mubr.msk.bf16.mxu1 %vm2084_vm7, %v12542_v27  ;;  %v3540_v27 = vshll.u32 %v16311_v32, 16 }
 0x224   : > { %v3523_v41 = vor.u32 %v3522_v34, %v16317_v30  ;;  %v3449_v34 = vld [vmem:[#allocation3 + $0x48] sm:$0xf] }
 0x22a   : > { %13827 = vmatmul.mubr.msk.bf16.gmra.mrb[56].mxu1 %vm2084_vm7, %v12543_v40  ;;  %v16328_v40 = vrot.slane %v3540_v27, 5  ;;  %v14998_v27 = vld [vmem:[#allocation3 + $0xc0] sm:$0xff]  }
 0x22b   : > { %13830 = vmatprep.mubr.msk.bf16.mxu1 %vm2084_vm7, %v12544_v52  ;;  %v3564_v52 = vshll.u32 %v16323_v43, 16 }
 0x232   : > { %13831 = vmatmul.mubr.msk.bf16.gmra.mrb[60].mxu1 %vm2084_vm7, %v12545_v14  ;;  %v14997_v14 = vld [vmem:[#allocation3 + $0xb4] sm:$0xff]  }
 0x233   : > { %13838 = vmatprep.mubr.msk.bf16.mxu1 %vm2084_vm7, %v14981_v10  ;;  %v3526_v10 = vshll.u32 %v16325_v29, 16 }
 0x235   : > { %v3528_v38 = vrot.slane %v3526_v10, 5 }
 0x23a   : > { %13839 = vmatmul.mubr.msk.bf16.vlgmr.msra.gmra.mrb[32].mxu1 %vm2084_vm7, %v14983_v58  ;;  %v3533_v58 = vrot.slane %v3531_v0, 4 }
 0x23b   : > { %13871 = vmatpush3.bf16.msra.mxu1 %v16190_v25  ;;  %13842 = vmatprep.mubr.msk.bf16.mxu1 %vm2084_vm7, %v14984_v2  ;;  %v14989_v25 = vld [vmem:[#allocation3 + $0x60] sm:$0xff]   ;;  %v3446_v2 = vld [vmem:[#allocation3 + $0x3c] sm:$0xf] }
 0x23c   : > { %13872 = vmatprep.subr.bf16.mxu1 %v14991_v60  ;;  %v3579_v3 = vshrl.u32 %v3446_v2, 16  ;;  %v3582_v18 = vshll.u32 %v3446_v2, 16 }
 0x23e   : > { %v3584_v0 = vrot.slane %v3582_v18, 5  ;;  %v3618_v18 = vrot.slane %v3616_v22, 4 }
 0x23f   : > { %13873 = vmatpush3.bf16.msra.mxu1 %v14991_v60  ;;  %v3536_v60 = vrot.slane %v3534_v53, 5 }
 0x240   : > { %13906 = vmatprep.subr.bf16.mxu1 %v16290_v57 }
 0x241   : > { %v3537_v42 = vor.u32 %v3536_v60, %v3533_v58  ;;  %v3452_v58 = vld [vmem:[#allocation3 + $0x54] sm:$0xf] }
 0x242   : > { %13843 = vmatmul.mubr.msk.bf16.gmra.mrb[36].mxu1 %vm2084_vm7, %v14985_v48  ;;  %v3490_v48 = vrot.slane %v3489_v61, 4  ;;  %v3581_v61 = vrot.slane %v3579_v3, 4 }
 0x243   : > { %13846 = vmatprep.mubr.msk.bf16.mxu1 %vm2084_vm7, %v14986_v21  ;;  %v3505_v21 = vsel %vm15590_vm6, %v3500_v7, %v3504_v50  ;;  %v3538_v53 = vrot.slane %v3537_v42, 4  ;;  %v3455_v42 = vld [vmem:[#allocation3 + $0x60] sm:$0xf] }
 0x244   : > { %v3585_v10 = vor.u32 %v3584_v0, %v3581_v61  ;;  %v3651_v61 = vshrl.u32 %v3455_v42, 16  ;;  %v3654_v0 = vshll.u32 %v3455_v42, 16 }
 0x245   : > { %v3543_v2 = vsel %vm15590_vm6, %v3538_v53, %v16328_v40 }
 0x24a   : > { %13847 = vmatmul.mubr.msk.bf16.gmra.mrb[40].mxu1 %vm2084_vm7, %v14987_v47  ;;  %v3513_v47 = vor.u32 %v3512_v46, %v3509_v35  ;;  %v16360_v35 = vld [vmem:[#allocation3 + $0x58] sm:$0xf] }
 0x24b   : > { %13850 = vmatprep.mubr.msk.bf16.mxu1 %vm2084_vm7, %v14988_v19  ;;  %v3524_v19 = vrot.slane %v3523_v41, 4  ;;  %v16366_v41 = vld [vmem:[#allocation3 + $0x44] sm:$0x1]  ;;  %v3640_v60 = vshrl.u32 %v16360_v35, 16 }
 0x24d   : > { %v3529_v37 = vsel %vm15590_vm6, %v3524_v19, %v3528_v38  ;;  %v16380_v19 = vld [vmem:[#allocation3 + $0x50] sm:$0x1]  ;;  %v3627_v38 = vshrl.u32 %v3452_v58, 16 }
 0x252   : > { %13851 = vmatmul.mubr.msk.bf16.gmra.mrb[44].mxu1 %vm2084_vm7, %v14989_v25  ;;  %v16338_v25 = vld [vmem:[#allocation3 + $0x40] sm:$0xf] }
 0x253   : > { %13854 = vmatprep.mubr.msk.bf16.mxu1 %vm2084_vm7, %v14990_v36  ;;  %v3547_v36 = vor.u32 %v3546_v59, %v16328_v40  ;;  %v3588_v31 = vshll.u32 %v16338_v25, 16  ;;  %v3592_v8 = vshrl.u32 %v16338_v25, 16  ;;  %v3603_v59 = vshrl.u32 %v3449_v34, 16 }
 0x254   : > { %v3630_v40 = vshll.u32 %v3452_v58, 16  ;;  %v3653_v58 = vrot.slane %v3651_v61, 4 }
 0x255   : > { %v3548_v39 = vrot.slane %v3547_v36, 4  ;;  %v16358_v51 = vrot.slane %v3588_v31, 5  ;;  %v3594_v7 = vrot.slane %v3592_v8, 4  ;;  %v3586_v8 = vrot.slane %v3585_v10, 4 }
 0x25a   : > { %13855 = vmatmul.mubr.msk.bf16.gmra.mrb[48].mxu1 %vm2084_vm7, %v14992_v44  ;;  %v3550_v44 = vshll.u32 %v16332_v17, 16 }
 0x25b   : > { %13858 = vmatprep.mubr.msk.bf16.mxu1 %vm2084_vm7, %v14993_v54  ;;  %v16343_v54 = vrot.slane %v3564_v52, 5  ;;  %v3606_v52 = vshll.u32 %v3449_v34, 16  ;;  %v3664_v34 = vshrl.u32 %v16384_v45, 16 }
 0x25c   : > { %v3552_v20 = vrot.slane %v3550_v44, 5  ;;  %v3605_v44 = vrot.slane %v3603_v59, 4  ;;  %v3458_v59 = vld [vmem:[#allocation3 + $0x6c] sm:$0xf] }
 0x25d   : > { %v3571_v24 = vor.u32 %v3570_v11, %v16343_v54  ;;  %v3608_v11 = vrot.slane %v3606_v52, 5  ;;  %v3591_v52 = vsel %vm15590_vm6, %v3586_v8, %v16358_v51  ;;  %v3666_v10 = vrot.slane %v3664_v34, 4 }
 0x25e   : > { %v3553_v50 = vsel %vm15590_vm6, %v3548_v39, %v3552_v20 }
 0x25f   : > { %v3572_v1 = vrot.slane %v3571_v24, 4  ;;  %v12608_v36 = vcombine.low %v3543_v2, %v3553_v50  ;;  %v3660_v24 = vshll.u32 %v16384_v45, 16  ;;  %v3609_v53 = vor.u32 %v3608_v11, %v3605_v44 }
 0x260   : > { %v3678_v2 = vshll.u32 %v3458_v59, 16 }
 0x262   : > { %13859 = vmatmul.mubr.msk.bf16.gmra.mrb[52].mxu1 %vm2084_vm7, %v14994_v49  ;;  %v3495_v49 = vsel %vm15590_vm6, %v3490_v48, %v16307_v4  ;;  %v3574_v4 = vshll.u32 %v16350_v15, 16  ;;  %v3680_v34 = vrot.slane %v3678_v2, 5 }
 0x263   : > { %13862 = vmatprep.mubr.msk.bf16.mxu1 %vm2084_vm7, %v14995_v6  ;;  %v3514_v6 = vrot.slane %v3513_v47, 4  ;;  %v12606_v5 = vcombine.low %v3495_v49, %v3505_v21  ;;  %v3595_v21 = vor.u32 %v3594_v7, %v16358_v51  ;;  %v3598_v47 = vshll.u32 %v16366_v41, 16 }
 0x264   : > { %v3576_v48 = vrot.slane %v3574_v4, 5  ;;  %v3619_v4 = vor.u32 %v3618_v18, %v16382_v16  ;;  %v3629_v7 = vrot.slane %v3627_v38, 4  ;;  %v16423_v51 = vrot.slane %v3660_v24, 5 }
 0x265   : > { %v3519_v46 = vsel %vm15590_vm6, %v3514_v6, %v16317_v30  ;;  %v3636_v30 = vshll.u32 %v16360_v35, 16  ;;  %v3642_v6 = vrot.slane %v3640_v60, 4  ;;  %v3600_v39 = vrot.slane %v3598_v47, 5 }
 0x266   : > { %v3577_v3 = vsel %vm15590_vm6, %v3572_v1, %v3576_v48  ;;  %v3675_v60 = vshrl.u32 %v3458_v59, 16  ;;  %v16425_v48 = vld [vmem:[#allocation3 + $0x7c] sm:$0xf]  ;;  %v3620_v47 = vrot.slane %v3619_v4, 4  ;;  %v16443_v4 = vld [vmem:[#allocation3 + $0x88] sm:$0xf] }
 0x267   : > { %v16391_v49 = vrot.slane %v3636_v30, 5  ;;  %v3656_v30 = vrot.slane %v3654_v0, 5  ;;  %v3708_v8 = vshll.u32 %v16425_v48, 16 }
 0x268   : > { %v3677_v24 = vrot.slane %v3675_v60, 4 }
 0x269   : > { %v3643_v56 = vor.u32 %v3642_v6, %v16391_v49  ;;  %v3712_v6 = vshrl.u32 %v16425_v48, 16 }
 0x26a   : > { %13863 = vmatmul.mubr.msk.bf16.gmra.mrb[56].mxu1 %vm2084_vm7, %v14996_v23  ;;  %v12607_v23 = vcombine.low %v3519_v46, %v3529_v37  ;;  %v3596_v37 = vrot.slane %v3595_v21, 4  ;;  %v3632_v46 = vrot.slane %v3630_v40, 5  ;;  %v3610_v21 = vrot.slane %v3609_v53, 4  ;;  %v3461_v40 = vld [vmem:[#allocation3 + $0x78] sm:$0xf] }
 0x26b   : > { %13866 = vmatprep.mubr.msk.bf16.mxu1 %vm2084_vm7, %v14997_v14  ;;  %v3562_v14 = vrot.slane %v3561_v33, 4  ;;  %v16402_v33 = vld [vmem:[#allocation3 + $0x5c] sm:$0x1]  ;;  %v3644_v11 = vrot.slane %v3643_v56, 4  ;;  %v3699_v0 = vshrl.u32 %v3461_v40, 16  ;;  %v3702_v53 = vshll.u32 %v3461_v40, 16 }
 0x26c   : > { %v3601_v1 = vsel %vm15590_vm6, %v3596_v37, %v3600_v39  ;;  %v3646_v22 = vshll.u32 %v16402_v33, 16  ;;  %v3633_v44 = vor.u32 %v3632_v46, %v3629_v7  ;;  %v16435_v39 = vld [vmem:[#allocation3 + $0x74] sm:$0x1] }
 0x26d   : > { %v3567_v31 = vsel %vm15590_vm6, %v3562_v14, %v16343_v54  ;;  %v3622_v54 = vshll.u32 %v16380_v19, 16  ;;  %v16421_v14 = vld [vmem:[#allocation3 + $0x68] sm:$0x1]  ;;  %v12610_v42 = vcombine.low %v3591_v52, %v3601_v1  ;;  %v3464_v52 = vld [vmem:[#allocation3 + $0x84] sm:$0xf]  ;;  %v3704_v60 = vrot.slane %v3702_v53, 5 }
 0x26e   : > { %v12609_v20 = vcombine.low %v3567_v31, %v3577_v3  ;;  %v3670_v3 = vshll.u32 %v16421_v14, 16  ;;  %v3667_v31 = vor.u32 %v3666_v10, %v16423_v51  ;;  %v3648_v37 = vrot.slane %v3646_v22, 5 }
 0x26f   : > { %v3681_v22 = vor.u32 %v3680_v34, %v3677_v24  ;;  %v3732_v10 = vshll.u32 %v16443_v4, 16  ;;  %v3723_v2 = vshrl.u32 %v3464_v52, 16 }
 0x270   : > { %v3649_v7 = vsel %vm15590_vm6, %v3644_v11, %v3648_v37  ;;  %v3672_v46 = vrot.slane %v3670_v3, 5  ;;  %v3668_v56 = vrot.slane %v3667_v31, 4  ;;  %v16456_v11 = vld [vmem:[#allocation3 + $0x80] sm:$0x1]  ;;  %v3467_v31 = vld [vmem:[#allocation3 + $0x90] sm:$0xf] }
 0x271   : > { %v16465_v37 = vrot.slane %v3732_v10, 5  ;;  %v3718_v34 = vshll.u32 %v16456_v11, 16 }
 0x272   : > { %13867 = vmatmul.mubr.msk.bf16.gmra.mrb[60].mxu1 %vm2084_vm7, %v14998_v27  ;;  %v16398_v27 = vld [vmem:[#allocation3 + $0x70] sm:$0xf] }
 0x273   : > { %13874 = vmatprep.mubr.msk.bf16.mxu1 %vm2084_vm7, %v12606_v5  ;;  %v15000_v5 = vld [vmem:[%s19262_s6 + $0x58] sm:$0xff]   ;;  %v3688_v50 = vshrl.u32 %v16398_v27, 16 }
 0x275   : > { %v3690_v38 = vrot.slane %v3688_v50, 4  ;;  %v16449_v50 = vrot.slane %v3708_v8, 5 }
 0x27a   : > { %13875 = vmatmul.mubr.msk.bf16.vlgmr.msra.gmra.mrb[32].mxu1 %vm2084_vm7, %v12607_v23  ;;  %v3684_v23 = vshll.u32 %v16398_v27, 16 }
 0x27b   : > { %13907 = vmatpush3.bf16.msra.mxu1 %v16290_v57  ;;  %13878 = vmatprep.mubr.msk.bf16.mxu1 %vm2084_vm7, %v12608_v36  ;;  %v16416_v57 = vld [vmem:[%s19262_s6 + $0x60] sm:$0xff]   ;;  %v3624_v36 = vrot.slane %v3622_v54, 5  ;;  %v3615_v54 = vsel %vm15590_vm6, %v3610_v21, %v16382_v16  ;;  %v3714_v16 = vrot.slane %v3712_v6, 4  ;;  %v3726_v21 = vshll.u32 %v3464_v52, 16 }
 0x27c   : > { %13908 = vmatprep.subr.bf16.mxu1 %v15000_v5  ;;  %v16428_v18 = vrot.slane %v3684_v23, 5  ;;  %v3694_v23 = vshll.u32 %v16435_v39, 16  ;;  %v3682_v6 = vrot.slane %v3681_v22, 4 }
 0x27d   : > { %v3625_v61 = vsel %vm15590_vm6, %v3620_v47, %v3624_v36 }
 0x27e   : > { %v3691_v59 = vor.u32 %v3690_v38, %v16428_v18  ;;  %v12611_v47 = vcombine.low %v3615_v54, %v3625_v61  ;;  %v3673_v38 = vsel %vm15590_vm6, %v3668_v56, %v3672_v46  ;;  %v3696_v40 = vrot.slane %v3694_v23, 5  ;;  %v3470_v23 = vld [vmem:[#allocation3 + $0x9c] sm:$0xf] }
 0x27f   : > { %13909 = vmatpush3.bf16.msra.mxu1 %v15000_v5  ;;  %v3657_v5 = vor.u32 %v3656_v30, %v3653_v58  ;;  %v3736_v58 = vshrl.u32 %v16443_v4, 16  ;;  %v3701_v30 = vrot.slane %v3699_v0, 4  ;;  %v3725_v54 = vrot.slane %v3723_v2, 4  ;;  %v16471_v0 = vld [vmem:[#allocation3 + $0xa0] sm:$0xf] }
 0x280   : > { %13942 = vmatprep.subr.bf16.mxu1 %v16416_v57  ;;  %v3728_v61 = vrot.slane %v3726_v21, 5  ;;  %v3780_v22 = vshll.u32 %v16471_v0, 16  ;;  %v3784_v10 = vshrl.u32 %v16471_v0, 16 }
 0x281   : > { %v3658_v1 = vrot.slane %v3657_v5, 4  ;;  %v16467_v5 = vld [vmem:[#allocation3 + $0x94] sm:$0xf]  ;;  %v3705_v24 = vor.u32 %v3704_v60, %v3701_v30  ;;  %v3720_v60 = vrot.slane %v3718_v34, 5  ;;  %v16499_v34 = vld [vmem:[#allocation3 + $0x98] sm:$0x1] }
 0x282   : > { %13879 = vmatmul.mubr.msk.bf16.gmra.mrb[36].mxu1 %vm2084_vm7, %v12609_v20  ;;  %v3634_v20 = vrot.slane %v3633_v44, 4  ;;  %v3692_v44 = vrot.slane %v3691_v59, 4  ;;  %v3750_v59 = vshll.u32 %v3467_v31, 16  ;;  %v3756_v52 = vshll.u32 %v16467_v5, 16 }
 0x283   : > { %13882 = vmatprep.mubr.msk.bf16.mxu1 %vm2084_vm7, %v12610_v42  ;;  %v3715_v42 = vor.u32 %v3714_v16, %v16449_v50  ;;  %v3663_v8 = vsel %vm15590_vm6, %v3658_v1, %v16423_v51  ;;  %v16475_v51 = vld [vmem:[#allocation3 + $0x8c] sm:$0x1]  ;;  %v3760_v56 = vshrl.u32 %v16467_v5, 16  ;;  %v3687_v16 = vsel %vm15590_vm6, %v3682_v6, %v16428_v18 }
 0x284   : > { %v3639_v36 = vsel %vm15590_vm6, %v3634_v20, %v16391_v49  ;;  %v3738_v49 = vrot.slane %v3736_v58, 4  ;;  %v12613_v53 = vcombine.low %v3663_v8, %v3673_v38  ;;  %v3697_v20 = vsel %vm15590_vm6, %v3692_v44, %v3696_v40  ;;  %v16493_v6 = vld [vmem:[#allocation3 + $0xac] sm:$0xf] }
 0x285   : > { %v12612_v3 = vcombine.low %v3639_v36, %v3649_v7  ;;  %v3747_v7 = vshrl.u32 %v3467_v31, 16  ;;  %v3716_v46 = vrot.slane %v3715_v42, 4  ;;  %v12614_v58 = vcombine.low %v3687_v16, %v3697_v20 }
 0x286   : > { %v3739_v1 = vor.u32 %v3738_v49, %v16465_v37  ;;  %v3706_v30 = vrot.slane %v3705_v24, 4  ;;  %v3729_v2 = vor.u32 %v3728_v61, %v3725_v54  ;;  %v3742_v21 = vshll.u32 %v16475_v51, 16  ;;  %v16501_v54 = vld [vmem:[#allocation3 + $0xb8] sm:$0xf] }
 0x287   : > { %v3771_v36 = vshrl.u32 %v3470_v23, 16  ;;  %v3774_v44 = vshll.u32 %v3470_v23, 16  ;;  %v3752_v38 = vrot.slane %v3750_v59, 5  ;;  %v16488_v18 = vrot.slane %v3756_v52, 5 }
 0x288   : > { %v3762_v40 = vrot.slane %v3760_v56, 4  ;;  %v3740_v42 = vrot.slane %v3739_v1, 4  ;;  %v16491_v31 = vrot.slane %v3780_v22, 5  ;;  %v3786_v8 = vrot.slane %v3784_v10, 4  ;;  %v16504_v56 = vld [vmem:[#allocation3 + $0xa4] sm:$0x1] }
 0x289   : > { %v3711_v49 = vsel %vm15590_vm6, %v3706_v30, %v16449_v50  ;;  %v3730_v24 = vrot.slane %v3729_v2, 4  ;;  %v3744_v20 = vrot.slane %v3742_v21, 5  ;;  %v3804_v23 = vshll.u32 %v16493_v6, 16  ;;  %v3476_v50 = vld [vmem:[#allocation3 + $0xb4] sm:$0xf] }
 0x28a   : > { %13883 = vmatmul.mubr.msk.bf16.gmra.mrb[40].mxu1 %vm2084_vm7, %v12611_v47  ;;  %v3749_v47 = vrot.slane %v3747_v7, 4  ;;  %v3776_v7 = vrot.slane %v3774_v44, 5  ;;  %v3763_v52 = vor.u32 %v3762_v40, %v16488_v18  ;;  %v3808_v16 = vshrl.u32 %v16493_v6, 16 }
 0x28b   : > { %13886 = vmatprep.mubr.msk.bf16.mxu1 %vm2084_vm7, %v12612_v3  ;;  %v3721_v3 = vsel %vm15590_vm6, %v3716_v46, %v3720_v60  ;;  %v3473_v46 = vld [vmem:[#allocation3 + $0xa8] sm:$0xf]  ;;  %v3745_v1 = vsel %vm15590_vm6, %v3740_v42, %v3744_v20  ;;  %v3787_v22 = vor.u32 %v3786_v8, %v16491_v31  ;;  %v3828_v10 = vshll.u32 %v16501_v54, 16 }
 0x28c   : > { %v12615_v61 = vcombine.low %v3711_v49, %v3721_v3  ;;  %v3753_v59 = vor.u32 %v3752_v38, %v3749_v47  ;;  %v3735_v30 = vsel %vm15590_vm6, %v3730_v24, %v16465_v37  ;;  %v3766_v60 = vshll.u32 %v16499_v34, 16  ;;  %v16519_v37 = vld [vmem:[#allocation3 + $0xc4] sm:$0xf] }
 0x28d   : > { %v3795_v2 = vshrl.u32 %v3473_v46, 16  ;;  %v3798_v21 = vshll.u32 %v3473_v46, 16  ;;  %v3819_v44 = vshrl.u32 %v3476_v50, 16  ;;  %v3822_v3 = vshll.u32 %v3476_v50, 16  ;;  %19380 = vst [vmem:[#allocation10_spill] sm:$0xff] %v16519_v37 }
 0x28e   : > { %v12616_v38 = vcombine.low %v3735_v30, %v3745_v1  ;;  %v3764_v40 = vrot.slane %v3763_v52, 4  ;;  %v3806_v42 = vrot.slane %v3804_v23, 5  ;;  %v3810_v8 = vrot.slane %v3808_v16, 4  ;;  %v3479_v16 = vld [vmem:[#allocation3 + $0xc0] sm:$0xf] }
 0x28f   : > { %v3754_v49 = vrot.slane %v3753_v59, 4  ;;  %v3788_v20 = vrot.slane %v3787_v22, 4  ;;  %v3830_v62 = vrot.slane %v3828_v10, 5  ;;  %v3768_v24 = vrot.slane %v3766_v60, 5  ;;  %v16526_v22 = vld [vmem:[#allocation3 + $0xbc] sm:$0x1] }
 0x290   : > { %v3800_v46 = vrot.slane %v3798_v21, 5  ;;  %v3821_v52 = vrot.slane %v3819_v44, 4  ;;  %v3824_v23 = vrot.slane %v3822_v3, 5  ;;  %v3811_v59 = vor.u32 %v3810_v8, %v3806_v42 }
 0x291   : > { %v3852_v10 = vshll.u32 %v16519_v37, 16  ;;  %v3759_v30 = vsel %vm15590_vm6, %v3754_v49, %v16488_v18  ;;  %v3846_v44 = vshll.u32 %v3479_v16, 16  ;;  %v3838_v8 = vshll.u32 %v16526_v22, 16 }
 0x292   : > { %13887 = vmatmul.mubr.msk.bf16.gmra.mrb[44].mxu1 %vm2084_vm7, %v12613_v53  ;;  %v3773_v53 = vrot.slane %v3771_v36, 4  ;;  %v3790_v36 = vshll.u32 %v16504_v56, 16 }
 0x293   : > { %13890 = vmatprep.mubr.msk.bf16.mxu1 %vm2084_vm7, %v12614_v58  ;;  %v3832_v58 = vshrl.u32 %v16501_v54, 16  ;;  %v3854_v18 = vrot.slane %v3852_v10, 5 }
 0x294   : > { %v3777_v47 = vor.u32 %v3776_v7, %v3773_v53  ;;  %v16522_v53 = vld [vmem:[#allocation3 + $0xb0] sm:$0x1]  ;;  %v3797_v7 = vrot.slane %v3795_v2, 4  ;;  %v3792_v1 = vrot.slane %v3790_v36, 5  ;;  %v3843_v36 = vshrl.u32 %v3479_v16, 16 }
 0x295   : > { %v3834_v55 = vrot.slane %v3832_v58, 4  ;;  %v3856_v58 = vshrl.u32 %v16519_v37, 16  ;;  %v3812_v37 = vrot.slane %v3811_v59, 4 }
 0x296   : > { %v3778_v50 = vrot.slane %v3777_v47, 4  ;;  %v3793_v60 = vsel %vm15590_vm6, %v3788_v20, %v3792_v1  ;;  %v3801_v21 = vor.u32 %v3800_v46, %v3797_v7  ;;  %v3814_v47 = vshll.u32 %v16522_v53, 16 }
 0x297   : > { %v3835_v2 = vor.u32 %v3834_v55, %v3830_v62  ;;  %v3858_v49 = vrot.slane %v3856_v58, 4  ;;  %v3845_v46 = vrot.slane %v3843_v36, 4  ;;  %v3848_v1 = vrot.slane %v3846_v44, 5 }
 0x298   : > { %v3802_v20 = vrot.slane %v3801_v21, 4  ;;  %v3816_v7 = vrot.slane %v3814_v47, 5 }
 0x299   : > { %v3836_v55 = vrot.slane %v3835_v2, 4  ;;  %v3849_v10 = vor.u32 %v3848_v1, %v3845_v46  ;;  %v4174_v1 = vld [vmem:[#allocation3 + $0x24] sm:$0xe] }
 0x29a   : > { %13891 = vmatmul.mubr.msk.bf16.gmra.mrb[48].mxu1 %vm2084_vm7, %v12615_v61  ;;  %v3769_v61 = vsel %vm15590_vm6, %v3764_v40, %v3768_v24  ;;  %v3825_v40 = vor.u32 %v3824_v23, %v3821_v52  ;;  %v4238_v23 = vrot.slane %v16299_v9, 5  ;;  %v3807_v59 = vsel %vm15590_vm6, %v3802_v20, %v3806_v42  ;;  %v4172_v9 = vld [vmem:[#allocation3 + $0xc] sm:$0xe] }
 0x29b   : > { %13894 = vmatprep.mubr.msk.bf16.mxu1 %vm2084_vm7, %v12616_v38  ;;  %v12617_v3 = vcombine.low %v3759_v30, %v3769_v61  ;;  %v3783_v38 = vsel %vm15590_vm6, %v3778_v50, %v16491_v31  ;;  %v3840_v61 = vrot.slane %v3838_v8, 5  ;;  %v16542_v30 = vld [vmem:[#allocation3 + $0xc8] sm:$0x1]  ;;  %v3817_v31 = vsel %vm15590_vm6, %v3812_v37, %v3816_v7  ;;  %v4173_v7 = vld [vmem:[#allocation3 + $0x18] sm:$0xe] }
 0x29c   : > { %v12618_v24 = vcombine.low %v3783_v38, %v3793_v60  ;;  %v3826_v16 = vrot.slane %v3825_v40, 4  ;;  %v3859_v50 = vor.u32 %v3858_v49, %v3854_v18  ;;  %v3862_v58 = vshll.u32 %v16542_v30, 16 }
 0x29d   : > { %v3841_v52 = vsel %vm15590_vm6, %v3836_v55, %v3840_v61  ;;  %v12619_v60 = vcombine.low %v3807_v59, %v3817_v31  ;;  %v4240_v37 = vrot.slane %v4238_v23, 4  ;;  %v3850_v36 = vrot.slane %v3849_v10, 4 }
 0x29e   : > { %v3831_v2 = vsel %vm15590_vm6, %v3826_v16, %v3830_v62  ;;  %v3860_v47 = vrot.slane %v3859_v50, 4  ;;  %v3864_v44 = vrot.slane %v3862_v58, 5  ;;  %v4245_v38 = vrot.slane %v16305_v63, 5 }
 0x29f   : > { %v12620_v21 = vcombine.low %v3831_v2, %v3841_v52  ;;  %v12640_v40 = vrot.slane %v4172_v9, 9  ;;  %v4252_v8 = vrot.slane %v16311_v32, 5  ;;  %v4248_v63 = vrot.slane %v16325_v29, 5  ;;  %v4176_v2 = vld [vmem:[#allocation3 + $0x3c] sm:$0xe] }
 0x2a0   : > { %v3865_v42 = vsel %vm15590_vm6, %v3860_v47, %v3864_v44  ;;  %v4255_v32 = vrot.slane %v16332_v17, 5  ;;  %v12641_v16 = vrot.slane %v4173_v7, 9  ;;  %v4259_v61 = vrot.slane %v16323_v43, 5  ;;  %v15002_v17 = vld [vmem:[%s19262_s6 + $0x68] sm:$0xff]   ;;  %v4175_v43 = vld [vmem:[#allocation3 + $0x30] sm:$0xe] }
 0x2a1   : > { %v4239_v55 = vsel %vm16157_vm0, %v12640_v40, %v4238_v23  ;;  %v4254_v46 = vrot.slane %v4252_v8, 4  ;;  %v12642_v31 = vrot.slane %v4174_v1, 9  ;;  %v4266_v52 = vrot.slane %v16338_v25, 5  ;;  %v16592_v47 = vld [vmem:[%s19262_s6 + $0x70] sm:$0xff]  }
 0x2a2   : > { %13895 = vmatmul.mubr.msk.bf16.gmra.mrb[52].mxu1 %vm2084_vm7, %v12617_v3  ;;  %v4241_v3 = vrot.slane %v16313_v28, 5  ;;  %v4247_v28 = vrot.slane %v4245_v38, 4  ;;  %v4246_v23 = vsel %vm16157_vm0, %v12641_v16, %v4245_v38  ;;  %v4261_v58 = vrot.slane %v4259_v61, 4  ;;  %v4179_v16 = vld [vmem:[#allocation3 + $0x60] sm:$0xe] }
 0x2a3   : > { %13898 = vmatprep.mubr.msk.bf16.mxu1 %vm2084_vm7, %v12618_v24  ;;  %v3855_v24 = vsel %vm15590_vm6, %v3850_v36, %v3854_v18  ;;  %v4256_v50 = vsel %vm16157_vm0, %v4254_v46, %v4255_v32  ;;  %v4253_v29 = vsel %vm16157_vm0, %v12642_v31, %v4252_v8  ;;  %v4262_v25 = vrot.slane %v16350_v15, 5  ;;  %v4178_v8 = vld [vmem:[#allocation3 + $0x54] sm:$0xe] }
 0x2a4   : > { %v4242_v62 = vsel %vm16157_vm0, %v4240_v37, %v4241_v3  ;;  %v12621_v49 = vcombine.low %v3855_v24, %v3865_v42  ;;  %v4249_v18 = vsel %vm16157_vm0, %v4247_v28, %v4248_v63  ;;  %v12662_v10 = vcombine.low %v4253_v29, %v4256_v50 }
 0x2a5   : > { %v12660_v20 = vcombine.low %v4239_v55, %v4242_v62  ;;  %v12661_v59 = vcombine.low %v4246_v23, %v4249_v18  ;;  %v12643_v37 = vrot.slane %v4175_v43, 9  ;;  %v4263_v36 = vsel %vm16157_vm0, %v4261_v58, %v4262_v25  ;;  %v4181_v43 = vld [vmem:[#allocation3 + $0x78] sm:$0xe]  ;;  %v4182_v25 = vld [vmem:[#allocation3 + $0x84] sm:$0xe] }
 0x2a6   : > { %v4273_v44 = vrot.slane %v16355_v26, 5  ;;  %v4280_v15 = vrot.slane %v16360_v35, 5  ;;  %v4177_v26 = vld [vmem:[#allocation3 + $0x48] sm:$0xe]  ;;  %v4276_v35 = vrot.slane %v16380_v19, 5  ;;  %v4283_v24 = vrot.slane %v16402_v33, 5 }
 0x2a7   : > { %v12646_v28 = vrot.slane %v4178_v8, 9  ;;  %v4294_v46 = vrot.slane %v16398_v27, 5  ;;  %v4297_v27 = vrot.slane %v16435_v39, 5  ;;  %v12647_v31 = vrot.slane %v4179_v16, 9 }
 0x2a8   : > { %v4275_v40 = vrot.slane %v4273_v44, 4  ;;  %v4282_v62 = vrot.slane %v4280_v15, 4  ;;  %v4308_v29 = vrot.slane %v16443_v4, 5  ;;  %v4311_v4 = vrot.slane %v16475_v51, 5 }
 0x2a9   : > { %v4281_v19 = vsel %vm16157_vm0, %v12646_v28, %v4280_v15  ;;  %v4296_v18 = vrot.slane %v4294_v46, 4  ;;  %v4185_v28 = vld [vmem:[#allocation3 + $0xa8] sm:$0xe] }
 0x2aa   : > { %13899 = vmatmul.mubr.msk.bf16.gmra.mrb[56].mxu1 %vm2084_vm7, %v12619_v60  ;;  %v4268_v60 = vrot.slane %v4266_v52, 4  ;;  %v4277_v55 = vsel %vm16157_vm0, %v4275_v40, %v4276_v35  ;;  %v4284_v7 = vsel %vm16157_vm0, %v4282_v62, %v4283_v24  ;;  %v4329_v62 = vrot.slane %v16493_v6, 5 }
 0x2ab   : > { %13902 = vmatprep.mubr.msk.bf16.mxu1 %vm2084_vm7, %v12620_v21  ;;  %v4269_v21 = vrot.slane %v16366_v41, 5  ;;  %v4260_v41 = vsel %vm16157_vm0, %v12643_v37, %v4259_v61  ;;  %v12666_v33 = vcombine.low %v4281_v19, %v4284_v7  ;;  %v4180_v61 = vld [vmem:[#allocation3 + $0x6c] sm:$0xe]  ;;  %v4315_v37 = vrot.slane %v16467_v5, 5  ;;  %v19381_v19 = vld [vmem:[#allocation10_spill] sm:$0xff] }
 0x2ac   : > { %v12663_v3 = vcombine.low %v4260_v41, %v4263_v36  ;;  %v12648_v23 = vrot.slane %v4180_v61, 9  ;;  %v12650_v36 = vrot.slane %v4182_v25, 9  ;;  %v4318_v5 = vrot.slane %v16499_v34, 5  ;;  %v16701_v25 = vld [vmem:[#allocation3 + $0x1c] sm:$0xf] }
 0x2ad   : > { %v4270_v9 = vsel %vm16157_vm0, %v4268_v60, %v4269_v21  ;;  %v4310_v60 = vrot.slane %v4308_v29, 4  ;;  %v4317_v41 = vrot.slane %v4315_v37, 4  ;;  %v4336_v24 = vrot.slane %v16501_v54, 5 }
 0x2ae   : > { %v4332_v6 = vrot.slane %v16522_v53, 5  ;;  %v4339_v54 = vrot.slane %v16526_v22, 5  ;;  %v4187_v22 = vld [vmem:[#allocation3 + $0xc0] sm:$0xe] }
 0x2af   : > { %v4338_v7 = vrot.slane %v4336_v24, 4 }
 0x2b1   : > { %v4340_v16 = vsel %vm16157_vm0, %v4338_v7, %v4339_v54 }
 0x2b2   : > { %13903 = vmatmul.mubr.msk.bf16.gmra.mrb[60].mxu1 %vm2084_vm7, %v12621_v49  ;;  %v12645_v49 = vrot.slane %v4177_v26, 9  ;;  %v4319_v26 = vsel %vm16157_vm0, %v4317_v41, %v4318_v5 }
 0x2b3   : > { %13910 = vmatprep.mubr.msk.bf16.mxu1 %vm2084_vm7, %v12660_v20  ;;  %v4287_v20 = vrot.slane %v16384_v45, 5  ;;  %v4290_v45 = vrot.slane %v16421_v14, 5  ;;  %v4295_v14 = vsel %vm16157_vm0, %v12648_v23, %v4294_v46  ;;  %v4186_v46 = vld [vmem:[#allocation3 + $0xb4] sm:$0xe] }
 0x2b4   : > { %v4274_v63 = vsel %vm16157_vm0, %v12645_v49, %v4273_v44  ;;  %v4312_v44 = vsel %vm16157_vm0, %v4310_v60, %v4311_v4  ;;  %v15010_v60 = vld [vmem:[#allocation3 + $0x60] sm:$0xff]   ;;  %v5025_v4 = vld [vmem:[#allocation3 + $0x18] sm:$0xf] }
 0x2b5   : > { %v12665_v1 = vcombine.low %v4274_v63, %v4277_v55  ;;  %v4289_v32 = vrot.slane %v4287_v20, 4  ;;  %v12653_v63 = vrot.slane %v4185_v28, 9 }
 0x2b7   : > { %v4291_v50 = vsel %vm16157_vm0, %v4289_v32, %v4290_v45  ;;  %v12654_v32 = vrot.slane %v4186_v46, 9 }
 0x2b9   : > { %v4337_v53 = vsel %vm16157_vm0, %v12654_v32, %v4336_v24 }
 0x2ba   : > { %13911 = vmatmul.mubr.msk.bf16.vlgmr.msra.gmra.mrb[32].mxu1 %vm2084_vm7, %v12661_v59  ;;  %v4298_v59 = vsel %vm16157_vm0, %v4296_v18, %v4297_v27  ;;  %v4330_v18 = vsel %vm16157_vm0, %v12653_v63, %v4329_v62  ;;  %v12674_v61 = vcombine.low %v4337_v53, %v4340_v16  ;;  %v5034_v16 = vld [vmem:[#allocation3 + $0x3c] sm:$0xf] }
 0x2bb   : > { %13943 = vmatpush3.bf16.msra.mxu1 %v16416_v57  ;;  %13914 = vmatprep.mubr.msk.bf16.mxu1 %vm2084_vm7, %v12662_v10  ;;  %v12644_v57 = vrot.slane %v4176_v2, 9  ;;  %v12668_v39 = vcombine.low %v4295_v14, %v4298_v59  ;;  %v12649_v2 = vrot.slane %v4181_v43, 9  ;;  %v15006_v14 = vld [vmem:[#allocation3 + $0x30] sm:$0xff]  }
 0x2bc   : > { %13944 = vmatprep.subr.bf16.mxu1 %v15002_v17  ;;  %v15009_v43 = vld [vmem:[#allocation3 + $0x54] sm:$0xff]  }
 0x2bd   : > { %v4267_v42 = vsel %vm16157_vm0, %v12644_v57, %v4266_v52  ;;  %v4301_v52 = vrot.slane %v16425_v48, 5  ;;  %v4304_v48 = vrot.slane %v16456_v11, 5  ;;  %v4322_v57 = vrot.slane %v16471_v0, 5 }
 0x2be   : > { %v12664_v38 = vcombine.low %v4267_v42, %v4270_v9  ;;  %v4309_v11 = vsel %vm16157_vm0, %v12650_v36, %v4308_v29  ;;  %v4325_v0 = vrot.slane %v16504_v56, 5  ;;  %v15003_v29 = vld [vmem:[#allocation3 + $0x18] sm:$0xff]   ;;  %v5074_v36 = vshrl.u32 %v5025_v4, 16 }
 0x2bf   : > { %13945 = vmatpush3.bf16.msra.mxu1 %v15002_v17  ;;  %v4288_v17 = vsel %vm16157_vm0, %v12647_v31, %v4287_v20  ;;  %v4303_v58 = vrot.slane %v4301_v52, 4  ;;  %v4302_v9 = vsel %vm16157_vm0, %v12649_v2, %v4301_v52  ;;  %v12670_v51 = vcombine.low %v4309_v11, %v4312_v44 }
 0x2c0   : > { %13978 = vmatprep.subr.bf16.mxu1 %v16592_v47  ;;  %v12667_v10 = vcombine.low %v4288_v17, %v4291_v50  ;;  %v4324_v42 = vrot.slane %v4322_v57, 4  ;;  %v4331_v20 = vrot.slane %v4329_v62, 4  ;;  %v4346_v31 = vrot.slane %v16542_v30, 5  ;;  %v15005_v17 = vld [vmem:[#allocation3 + $0x24] sm:$0xff]  }
 0x2c1   : > { %v4305_v21 = vsel %vm16157_vm0, %v4303_v58, %v4304_v48  ;;  %v12655_v50 = vrot.slane %v4187_v22, 9  ;;  %v16692_v30 = vld [vmem:[%s19262_s6 + $0x80] sm:$0xff]   ;;  %v15008_v58 = vld [vmem:[#allocation3 + $0x48] sm:$0xff]   ;;  %v15012_v48 = vld [vmem:[#allocation3 + $0x78] sm:$0xff]   ;;  %v5083_v2 = vshll.u32 %v16701_v25, 16  ;;  %v5077_v44 = vshll.u32 %v5025_v4, 16 }
 0x2c2   : > { %13915 = vmatmul.mubr.msk.bf16.gmra.mrb[36].mxu1 %vm2084_vm7, %v12663_v3  ;;  %v12669_v15 = vcombine.low %v4302_v9, %v4305_v21  ;;  %v4183_v3 = vld [vmem:[#allocation3 + $0x90] sm:$0xe]  ;;  %v4326_v8 = vsel %vm16157_vm0, %v4324_v42, %v4325_v0  ;;  %v5087_v21 = vshrl.u32 %v16701_v25, 16  ;;  %v5028_v9 = vld [vmem:[#allocation3 + $0x24] sm:$0xf]  ;;  %v5076_v41 = vrot.slane %v5074_v36, 4 }
 0x2c3   : > { %13918 = vmatprep.mubr.msk.bf16.mxu1 %vm2084_vm7, %v12664_v38  ;;  %v4184_v38 = vld [vmem:[#allocation3 + $0x9c] sm:$0xe]  ;;  %v12651_v40 = vrot.slane %v4183_v3, 9  ;;  %v5085_v11 = vrot.slane %v5083_v2, 5  ;;  %v5079_v3 = vrot.slane %v5077_v44, 5  ;;  %v5098_v42 = vshrl.u32 %v5028_v9, 16 }
 0x2c4   : > { %v12652_v35 = vrot.slane %v4184_v38, 9  ;;  %v5101_v5 = vshll.u32 %v5028_v9, 16  ;;  %v16709_v38 = vld [vmem:[#allocation3 + $0x20] sm:$0x1]  ;;  %v16745_v2 = vld [vmem:[#allocation3 + $0x58] sm:$0xf] }
 0x2c5   : > { %v4316_v49 = vsel %vm16157_vm0, %v12651_v40, %v4315_v37  ;;  %v15014_v37 = vld [vmem:[#allocation3 + $0x84] sm:$0xff]   ;;  %v5080_v24 = vor.u32 %v5079_v3, %v5076_v41  ;;  %v16752_v9 = vld [vmem:[#allocation3 + $0xd4] sm:$0x1]  ;;  %v5778_v41 = vld [vmem:[#allocation3 + $0xcc] sm:$0xe] }
 0x2c6   : > { %v12671_v55 = vcombine.low %v4316_v49, %v4319_v26  ;;  %v4323_v34 = vsel %vm16157_vm0, %v12652_v35, %v4322_v57  ;;  %v15015_v57 = vld [vmem:[#allocation3 + $0x90] sm:$0xff]   ;;  %v5093_v49 = vshll.u32 %v16709_v38, 16 }
 0x2c7   : > { %v12672_v56 = vcombine.low %v4323_v34, %v4326_v8  ;;  %v16713_v26 = vld [vmem:[#allocation3 + $0x34] sm:$0xf]  ;;  %v5031_v35 = vld [vmem:[#allocation3 + $0x30] sm:$0xf]  ;;  %v15016_v8 = vld [vmem:[#allocation3 + $0x9c] sm:$0xff]   ;;  %v5100_v34 = vrot.slane %v5098_v42, 4 }
 0x2c8   : > { %v5135_v46 = vshrl.u32 %v16713_v26, 16  ;;  %v5122_v54 = vshrl.u32 %v5031_v35, 16  ;;  %v5125_v63 = vshll.u32 %v5031_v35, 16  ;;  %v5937_v42 = vrot.slane %v16752_v9, 5 }
 0x2c9   : > { %v12785_v35 = vrot.slane %v5778_v41, 9 }
 0x2ca   : > { %13919 = vmatmul.mubr.msk.bf16.gmra.mrb[40].mxu1 %vm2084_vm7, %v12665_v1  ;;  %v4333_v1 = vsel %vm16157_vm0, %v4331_v20, %v4332_v6  ;;  %v15017_v20 = vld [vmem:[#allocation3 + $0xa8] sm:$0xff]   ;;  %v5131_v6 = vshll.u32 %v16713_v26, 16  ;;  %v5124_v22 = vrot.slane %v5122_v54, 4 }
 0x2cb   : > { %13922 = vmatprep.mubr.msk.bf16.mxu1 %vm2084_vm7, %v12666_v33  ;;  %v4343_v33 = vrot.slane %v19381_v19, 5  ;;  %v12673_v45 = vcombine.low %v4330_v18, %v4333_v1  ;;  %v5081_v19 = vrot.slane %v5080_v24, 4  ;;  %v5095_v18 = vrot.slane %v5093_v49, 5 }
 0x2cc   : > { %v16726_v53 = vrot.slane %v5131_v6, 5 }
 0x2cd   : > { %v4345_v27 = vrot.slane %v4343_v33, 4  ;;  %v4344_v23 = vsel %vm16157_vm0, %v12655_v50, %v4343_v33  ;;  %v16730_v50 = vld [vmem:[#allocation3 + $0x40] sm:$0xf] }
 0x2ce   : > { %v5155_v4 = vshll.u32 %v16730_v50, 16  ;;  %v5159_v36 = vshrl.u32 %v16730_v50, 16 }
 0x2cf   : > { %v4347_v52 = vsel %vm16157_vm0, %v4345_v27, %v4346_v31  ;;  %v16728_v27 = vld [vmem:[#allocation3 + $0x38] sm:$0x1]  ;;  %v5127_v31 = vrot.slane %v5125_v63, 5 }
 0x2d0   : > { %v12675_v59 = vcombine.low %v4344_v23, %v4347_v52  ;;  %v5146_v23 = vshrl.u32 %v5034_v16, 16  ;;  %v16760_v24 = vrot.slane %v5155_v4, 5 }
 0x2d2   : > { %13923 = vmatmul.mubr.msk.bf16.gmra.mrb[44].mxu1 %vm2084_vm7, %v12667_v10  ;;  %v15013_v10 = vld [vmem:[%s19262_s6 + $0x78] sm:$0xff]  }
 0x2d3   : > { %13926 = vmatprep.mubr.msk.bf16.mxu1 %vm2084_vm7, %v12668_v39  ;;  %v15007_v39 = vld [vmem:[#allocation3 + $0x3c] sm:$0xff]  }
 0x2da   : > { %13927 = vmatmul.mubr.msk.bf16.gmra.mrb[48].mxu1 %vm2084_vm7, %v12669_v15  ;;  %v16706_v15 = vld [vmem:[#allocation3 + $0x28] sm:$0xf] }
 0x2db   : > { %13930 = vmatprep.mubr.msk.bf16.mxu1 %vm2084_vm7, %v12670_v51  ;;  %v5089_v51 = vrot.slane %v5087_v21, 4  ;;  %v5107_v0 = vshll.u32 %v16706_v15, 16  ;;  %v5111_v40 = vshrl.u32 %v16706_v15, 16 }
 0x2dd   : > { %v5090_v62 = vor.u32 %v5089_v51, %v5085_v11  ;;  %v16718_v28 = vrot.slane %v5107_v0, 5  ;;  %v5113_v7 = vrot.slane %v5111_v40, 4  ;;  %v5040_v0 = vld [vmem:[#allocation3 + $0x54] sm:$0xf]  ;;  %v5203_v40 = vshll.u32 %v16745_v2, 16 }
 0x2df   : > { %v5091_v1 = vrot.slane %v5090_v62, 4  ;;  %v5207_v62 = vshrl.u32 %v16745_v2, 16 }
 0x2e1   : > { %v5096_v52 = vsel %vm15590_vm6, %v5091_v1, %v5095_v18  ;;  %v5194_v1 = vshrl.u32 %v5040_v0, 16  ;;  %v5209_v18 = vrot.slane %v5207_v62, 4 }
 0x2e2   : > { %13931 = vmatmul.mubr.msk.bf16.gmra.mrb[52].mxu1 %vm2084_vm7, %v12671_v55  ;;  %v16716_v55 = vld [vmem:[#allocation3 + $0x2c] sm:$0x1] }
 0x2e3   : > { %13934 = vmatprep.mubr.msk.bf16.mxu1 %vm2084_vm7, %v12672_v56  ;;  %v5103_v56 = vrot.slane %v5101_v5, 5  ;;  %v5117_v32 = vshll.u32 %v16716_v55, 16 }
 0x2e5   : > { %v5104_v33 = vor.u32 %v5103_v56, %v5100_v34  ;;  %v15020_v56 = vld [vmem:[#allocation3 + $0xcc] sm:$0xff]  }
 0x2ea   : > { %13935 = vmatmul.mubr.msk.bf16.gmra.mrb[56].mxu1 %vm2084_vm7, %v12673_v45  ;;  %v5114_v45 = vor.u32 %v5113_v7, %v16718_v28  ;;  %v5161_v7 = vrot.slane %v5159_v36, 4 }
 0x2eb   : > { %13938 = vmatprep.mubr.msk.bf16.mxu1 %vm2084_vm7, %v12674_v61  ;;  %v5137_v61 = vrot.slane %v5135_v46, 4 }
 0x2f2   : > { %13939 = vmatmul.mubr.msk.bf16.gmra.mrb[60].mxu1 %vm2084_vm7, %v12675_v59  ;;  %v16734_v59 = vld [vmem:[#allocation3 + $0x4c] sm:$0xf] }
 0x2f3   : > { %13946 = vmatprep.mubr.msk.bf16.mxu1 %vm2084_vm7, %v15003_v29  ;;  %v15018_v29 = vld [vmem:[#allocation3 + $0xb4] sm:$0xff]   ;;  %v5179_v44 = vshll.u32 %v16734_v59, 16  ;;  %v5183_v51 = vshrl.u32 %v16734_v59, 16 }
 0x2f5   : > { %v16764_v46 = vrot.slane %v5179_v44, 5  ;;  %v5185_v63 = vrot.slane %v5183_v51, 4 }
 0x2fa   : > { %13947 = vmatmul.mubr.msk.bf16.vlgmr.msra.gmra.mrb[32].mxu1 %vm2084_vm7, %v15005_v17  ;;  %v5086_v17 = vsel %vm15590_vm6, %v5081_v19, %v5085_v11  ;;  %v5148_v11 = vrot.slane %v5146_v23, 4  ;;  %v5197_v19 = vshll.u32 %v5040_v0, 16  ;;  %v5043_v23 = vld [vmem:[#allocation3 + $0x60] sm:$0xf] }
 0x2fb   : > { %13979 = vmatpush3.bf16.msra.mxu1 %v16592_v47  ;;  %13950 = vmatprep.mubr.msk.bf16.mxu1 %vm2084_vm7, %v15006_v14  ;;  %v15011_v47 = vld [vmem:[#allocation3 + $0x6c] sm:$0xff]   ;;  %v16740_v14 = vrot.slane %v5117_v32, 5  ;;  %v12736_v21 = vcombine.low %v5086_v17, %v5096_v52  ;;  %v5218_v36 = vshrl.u32 %v5043_v23, 16  ;;  %v5221_v44 = vshll.u32 %v5043_v23, 16 }
 0x2fc   : > { %13980 = vmatprep.subr.bf16.mxu1 %v15013_v10 }
 0x2ff   : > { %13981 = vmatpush3.bf16.msra.mxu1 %v15013_v10  ;;  %v16738_v10 = vrot.slane %v5104_v33, 4 }
 0x300   : > { %14014 = vmatprep.subr.bf16.mxu1 %v16692_v30 }
 0x302   : > { %13951 = vmatmul.mubr.msk.bf16.gmra.mrb[36].mxu1 %vm2084_vm7, %v15007_v39  ;;  %v5149_v39 = vshll.u32 %v5034_v16, 16  ;;  %v16774_v16 = vrot.slane %v5203_v40, 5 }
 0x303   : > { %13954 = vmatprep.mubr.msk.bf16.mxu1 %vm2084_vm7, %v15008_v58  ;;  %v5037_v58 = vld [vmem:[#allocation3 + $0x48] sm:$0xf] }
 0x304   : > { %v5151_v5 = vrot.slane %v5149_v39, 5  ;;  %v5170_v49 = vshrl.u32 %v5037_v58, 16  ;;  %v5173_v6 = vshll.u32 %v5037_v58, 16  ;;  %v5162_v39 = vor.u32 %v5161_v7, %v16760_v24  ;;  %v16790_v58 = vld [vmem:[#allocation3 + $0x50] sm:$0x1] }
 0x305   : > { %v5189_v51 = vshll.u32 %v16790_v58, 16  ;;  %v5223_v7 = vrot.slane %v5221_v44, 5 }
 0x306   : > { %v5152_v17 = vor.u32 %v5151_v5, %v5148_v11  ;;  %v5163_v62 = vrot.slane %v5162_v39, 4 }
 0x308   : > { %v5153_v5 = vrot.slane %v5152_v17, 4 }
 0x30a   : > { %13955 = vmatmul.mubr.msk.bf16.gmra.mrb[40].mxu1 %vm2084_vm7, %v15009_v43  ;;  %v15019_v43 = vld [vmem:[#allocation3 + $0xc0] sm:$0xff]  }
 0x30b   : > { %13958 = vmatprep.mubr.msk.bf16.mxu1 %vm2084_vm7, %v15010_v60  ;;  %v5115_v60 = vrot.slane %v5114_v45, 4 }
 0x312   : > { %13959 = vmatmul.mubr.msk.bf16.gmra.mrb[44].mxu1 %vm2084_vm7, %v15011_v47  ;;  %v5138_v47 = vor.u32 %v5137_v61, %v16726_v53  ;;  %v5110_v61 = vsel %vm15590_vm6, %v16738_v10, %v16718_v28  ;;  %v16792_v28 = vld [vmem:[#allocation3 + $0x64] sm:$0xf]  ;;  %v5175_v10 = vrot.slane %v5173_v6, 5 }
 0x313   : > { %13962 = vmatprep.mubr.msk.bf16.mxu1 %vm2084_vm7, %v15012_v48  ;;  %v5141_v48 = vshll.u32 %v16728_v27, 16  ;;  %v5231_v41 = vshrl.u32 %v16792_v28, 16 }
 0x315   : > { %v5143_v32 = vrot.slane %v5141_v48, 5  ;;  %v5199_v48 = vrot.slane %v5197_v19, 5  ;;  %v16811_v19 = vld [vmem:[#allocation3 + $0x68] sm:$0x1] }
 0x31a   : > { %13963 = vmatmul.mubr.msk.bf16.gmra.mrb[48].mxu1 %vm2084_vm7, %v15014_v37  ;;  %v5128_v37 = vor.u32 %v5127_v31, %v5124_v22  ;;  %v5120_v22 = vsel %vm15590_vm6, %v5115_v60, %v16740_v14  ;;  %v5186_v14 = vor.u32 %v5185_v63, %v16764_v46  ;;  %v16796_v60 = vld [vmem:[#allocation3 + $0x5c] sm:$0x1]  ;;  %v15022_v63 = vld [vmem:[%s19262_s6 + $0x88] sm:$0xff]  }
 0x31b   : > { %13966 = vmatprep.mubr.msk.bf16.mxu1 %vm2084_vm7, %v15015_v57  ;;  %v16750_v57 = vld [vmem:[#allocation3 + $0xd0] sm:$0xf]  ;;  %v12737_v4 = vcombine.low %v5110_v61, %v5120_v22  ;;  %v5213_v40 = vshll.u32 %v16796_v60, 16  ;;  %v5158_v22 = vsel %vm15590_vm6, %v5153_v5, %v16760_v24 }
 0x31c   : > { %v5934_v3 = vrot.slane %v16750_v57, 5  ;;  %v5129_v31 = vrot.slane %v5128_v37, 4  ;;  %v5210_v37 = vor.u32 %v5209_v18, %v16774_v16  ;;  %v5233_v18 = vrot.slane %v5231_v41, 4 }
 0x31e   : > { %v5936_v34 = vrot.slane %v5934_v3, 4  ;;  %v16768_v54 = vsel %vm16157_vm0, %v12785_v35, %v5934_v3  ;;  %v5134_v11 = vsel %vm15590_vm6, %v5129_v31, %v16726_v53  ;;  %v5046_v3 = vld [vmem:[#allocation3 + $0x6c] sm:$0xf]  ;;  %v5220_v53 = vrot.slane %v5218_v36, 4 }
 0x31f   : > { %19382 = vst [vmem:[#allocation10_spill] sm:$0xff] %v16768_v54  ;;  %v5242_v6 = vshrl.u32 %v5046_v3, 16  ;;  %v5245_v61 = vshll.u32 %v5046_v3, 16  ;;  %v5215_v31 = vrot.slane %v5213_v40, 5  ;;  %v5055_v40 = vld [vmem:[#allocation3 + $0x90] sm:$0xf] }
 0x320   : > { %v16772_v33 = vsel %vm16157_vm0, %v5936_v34, %v5937_v42  ;;  %v16806_v34 = vld [vmem:[#allocation3 + $0x70] sm:$0xf] }
 0x321   : > { %19383 = vst [vmem:[#allocation11_spill] sm:$0xff] %v16772_v33  ;;  %v5255_v23 = vshrl.u32 %v16806_v34, 16 }
 0x322   : > { %13967 = vmatmul.mubr.msk.bf16.gmra.mrb[52].mxu1 %vm2084_vm7, %v15016_v8  ;;  %v5139_v8 = vrot.slane %v5138_v47, 4  ;;  %v5196_v47 = vrot.slane %v5194_v1, 4  ;;  %v5191_v1 = vrot.slane %v5189_v51, 5 }
 0x323   : > { %13970 = vmatprep.mubr.msk.bf16.mxu1 %vm2084_vm7, %v15017_v20  ;;  %v16762_v20 = vld [vmem:[#allocation3 + $0x44] sm:$0x1] }
 0x324   : > { %v5165_v52 = vshll.u32 %v16762_v20, 16 }
 0x326   : > { %v5167_v0 = vrot.slane %v5165_v52, 5  ;;  %v5251_v52 = vshll.u32 %v16806_v34, 16 }
 0x328   : > { %v5168_v17 = vsel %vm15590_vm6, %v5163_v62, %v5167_v0  ;;  %v16835_v51 = vrot.slane %v5251_v52, 5 }
 0x32a   : > { %13971 = vmatmul.mubr.msk.bf16.gmra.mrb[56].mxu1 %vm2084_vm7, %v15018_v29  ;;  %v5144_v29 = vsel %vm15590_vm6, %v5139_v8, %v5143_v32  ;;  %v5187_v8 = vrot.slane %v5186_v14, 4  ;;  %v16827_v14 = vld [vmem:[#allocation3 + $0x7c] sm:$0xf] }
 0x32b   : > { %13974 = vmatprep.mubr.msk.bf16.mxu1 %vm2084_vm7, %v15019_v43  ;;  %v5172_v43 = vrot.slane %v5170_v49, 4  ;;  %v12738_v42 = vcombine.low %v5134_v11, %v5144_v29  ;;  %v5200_v49 = vor.u32 %v5199_v48, %v5196_v47  ;;  %v5049_v29 = vld [vmem:[#allocation3 + $0x78] sm:$0xf]  ;;  %v5224_v47 = vor.u32 %v5223_v7, %v5220_v53  ;;  %v16833_v11 = vld [vmem:[#allocation3 + $0x74] sm:$0x1] }
 0x32c   : > { %v5237_v48 = vshll.u32 %v16811_v19, 16  ;;  %v5266_v36 = vshrl.u32 %v5049_v29, 16  ;;  %v5269_v44 = vshll.u32 %v5049_v29, 16  ;;  %v5275_v41 = vshll.u32 %v16827_v14, 16  ;;  %v16845_v53 = vld [vmem:[#allocation3 + $0x88] sm:$0xf] }
 0x32d   : > { %v5176_v35 = vor.u32 %v5175_v10, %v5172_v43  ;;  %v5192_v43 = vsel %vm15590_vm6, %v5187_v8, %v5191_v1  ;;  %v5201_v10 = vrot.slane %v5200_v49, 4  ;;  %v5279_v3 = vshrl.u32 %v16827_v14, 16 }
 0x32e   : > { %v5225_v8 = vrot.slane %v5224_v47, 4  ;;  %v5239_v49 = vrot.slane %v5237_v48, 5  ;;  %v5268_v1 = vrot.slane %v5266_v36, 4  ;;  %v5299_v29 = vshll.u32 %v16845_v53, 16 }
 0x32f   : > { %v5177_v39 = vrot.slane %v5176_v35, 4  ;;  %v5206_v0 = vsel %vm15590_vm6, %v5201_v10, %v16774_v16 }
 0x331   : > { %v5182_v5 = vsel %vm15590_vm6, %v5177_v39, %v16764_v46  ;;  %v5314_v39 = vshrl.u32 %v5055_v40, 16 }
 0x332   : > { %13975 = vmatmul.mubr.msk.bf16.gmra.mrb[60].mxu1 %vm2084_vm7, %v15020_v56  ;;  %v5211_v56 = vrot.slane %v5210_v37, 4  ;;  %v5247_v37 = vrot.slane %v5245_v61, 5  ;;  %v12740_v62 = vcombine.low %v5182_v5, %v5192_v43  ;;  %v16848_v61 = vld [vmem:[#allocation3 + $0x94] sm:$0xf]  ;;  %v5317_v43 = vshll.u32 %v5055_v40, 16 }
 0x333   : > { %13982 = vmatprep.mubr.msk.bf16.mxu1 %vm2084_vm7, %v12736_v21  ;;  %v5227_v21 = vshll.u32 %v16792_v28, 16  ;;  %v5323_v10 = vshll.u32 %v16848_v61, 16 }
 0x334   : > { %v5216_v24 = vsel %vm15590_vm6, %v5211_v56, %v5215_v31  ;;  %v5052_v56 = vld [vmem:[#allocation3 + $0x84] sm:$0xf]  ;;  %v16855_v31 = vld [vmem:[#allocation3 + $0x80] sm:$0x1]  ;;  %v5319_v40 = vrot.slane %v5317_v43, 5 }
 0x335   : > { %v16813_v32 = vrot.slane %v5227_v21, 5  ;;  %v5257_v21 = vrot.slane %v5255_v23, 4  ;;  %v12741_v35 = vcombine.low %v5206_v0, %v5216_v24  ;;  %v5290_v52 = vshrl.u32 %v5052_v56, 16 }
 0x336   : > { %v5293_v23 = vshll.u32 %v5052_v56, 16  ;;  %v5327_v24 = vshrl.u32 %v16848_v61, 16  ;;  %v5316_v0 = vrot.slane %v5314_v39, 4 }
 0x337   : > { %v5258_v16 = vor.u32 %v5257_v21, %v16835_v51  ;;  %v5230_v47 = vsel %vm15590_vm6, %v5225_v8, %v16813_v32  ;;  %v5285_v21 = vshll.u32 %v16855_v31, 16  ;;  %v5058_v8 = vld [vmem:[#allocation3 + $0x9c] sm:$0xf] }
 0x338   : > { %v5320_v39 = vor.u32 %v5319_v40, %v5316_v0  ;;  %v16900_v40 = vld [vmem:[#allocation3 + $0xa4] sm:$0x1] }
 0x339   : > { %v5259_v36 = vrot.slane %v5258_v16, 4  ;;  %19385 = vst [vmem:[#allocation13_spill] sm:$0xff] %v16900_v40 }
 0x33a   : > { %13983 = vmatmul.mubr.msk.bf16.vlgmr.msra.gmra.mrb[32].mxu1 %vm2084_vm7, %v12737_v4  ;;  %v5244_v4 = vrot.slane %v5242_v6, 4  ;;  %v5261_v6 = vshll.u32 %v16833_v11, 16  ;;  %v5321_v0 = vrot.slane %v5320_v39, 4  ;;  %v5357_v39 = vshll.u32 %v16900_v40, 16 }
 0x33b   : > { %14015 = vmatpush3.bf16.msra.mxu1 %v16692_v30  ;;  %13986 = vmatprep.mubr.msk.bf16.mxu1 %vm2084_vm7, %v12738_v42  ;;  %v5234_v30 = vor.u32 %v5233_v18, %v16813_v32  ;;  %v12739_v42 = vcombine.low %v5158_v22, %v5168_v17  ;;  %v5271_v18 = vrot.slane %v5269_v44, 5  ;;  %v5281_v22 = vrot.slane %v5279_v3, 4 }
 0x33c   : > { %14016 = vmatprep.subr.bf16.mxu1 %v15022_v63  ;;  %v5248_v7 = vor.u32 %v5247_v37, %v5244_v4  ;;  %v5303_v17 = vshrl.u32 %v16845_v53, 16  ;;  %v5263_v4 = vrot.slane %v5261_v6, 5  ;;  %v5295_v3 = vrot.slane %v5293_v23, 5  ;;  %v16872_v6 = vld [vmem:[#allocation3 + $0x8c] sm:$0x1] }
 0x33d   : > { %v5235_v46 = vrot.slane %v5234_v30, 4  ;;  %v5272_v30 = vor.u32 %v5271_v18, %v5268_v1  ;;  %v5329_v32 = vrot.slane %v5327_v24, 4  ;;  %v5338_v23 = vshrl.u32 %v5058_v8, 16 }
 0x33e   : > { %v5249_v48 = vrot.slane %v5248_v7, 4  ;;  %v5305_v5 = vrot.slane %v5303_v17, 4  ;;  %v5264_v1 = vsel %vm15590_vm6, %v5259_v36, %v5263_v4  ;;  %v5287_v17 = vrot.slane %v5285_v21, 5  ;;  %v5061_v4 = vld [vmem:[#allocation3 + $0xa8] sm:$0xf] }
 0x33f   : > { %14017 = vmatpush3.bf16.msra.mxu1 %v15022_v63  ;;  %v16852_v63 = vrot.slane %v5275_v41, 5  ;;  %v5240_v37 = vsel %vm15590_vm6, %v5235_v46, %v5239_v49  ;;  %v5292_v41 = vrot.slane %v5290_v52, 4  ;;  %v5273_v7 = vrot.slane %v5272_v30, 4  ;;  %v16880_v46 = vld [vmem:[#allocation3 + $0xa0] sm:$0xf] }
 0x340   : > { %v12742_v56 = vcombine.low %v5230_v47, %v5240_v37  ;;  %v5254_v49 = vsel %vm15590_vm6, %v5249_v48, %v16835_v51  ;;  %v16884_v52 = vld [vmem:[#allocation3 + $0x98] sm:$0x1]  ;;  %v5309_v51 = vshll.u32 %v16872_v6, 16  ;;  %v5347_v47 = vshll.u32 %v16880_v46, 16 }
 0x341   : > { %v5282_v44 = vor.u32 %v5281_v22, %v16852_v63  ;;  %v5296_v16 = vor.u32 %v5295_v3, %v5292_v41  ;;  %v5278_v24 = vsel %vm15590_vm6, %v5273_v7, %v16852_v63  ;;  %v5351_v48 = vshrl.u32 %v16880_v46, 16 }
 0x342   : > { %13987 = vmatmul.mubr.msk.bf16.gmra.mrb[36].mxu1 %vm2084_vm7, %v12739_v42  ;;  %v16868_v42 = vrot.slane %v5299_v29, 5  ;;  %v5341_v29 = vshll.u32 %v5058_v8, 16  ;;  %v5333_v37 = vshll.u32 %v16884_v52, 16  ;;  %v5340_v3 = vrot.slane %v5338_v23, 4 }
 0x343   : > { %13990 = vmatprep.mubr.msk.bf16.mxu1 %vm2084_vm7, %v12740_v62  ;;  %v16870_v62 = vrot.slane %v5323_v10, 5  ;;  %v5283_v18 = vrot.slane %v5282_v44, 4  ;;  %v12743_v10 = vcombine.low %v5254_v49, %v5264_v1  ;;  %v5297_v21 = vrot.slane %v5296_v16, 4 }
 0x344   : > { %v5306_v22 = vor.u32 %v5305_v5, %v16868_v42  ;;  %v5343_v5 = vrot.slane %v5341_v29, 5  ;;  %v5365_v8 = vshll.u32 %v5061_v4, 16  ;;  %v5311_v7 = vrot.slane %v5309_v51, 5 }
 0x345   : > { %v5330_v43 = vor.u32 %v5329_v32, %v16870_v62  ;;  %v5288_v30 = vsel %vm15590_vm6, %v5283_v18, %v5287_v17  ;;  %v5362_v32 = vshrl.u32 %v5061_v4, 16  ;;  %v16902_v49 = vrot.slane %v5347_v47, 5  ;;  %v5064_v18 = vld [vmem:[#allocation3 + $0xb4] sm:$0xf]  ;;  %v16923_v47 = vld [vmem:[#allocation3 + $0xb0] sm:$0x1] }
 0x346   : > { %v5307_v41 = vrot.slane %v5306_v22, 4  ;;  %v5353_v1 = vrot.slane %v5351_v48, 4  ;;  %v5335_v17 = vrot.slane %v5333_v37, 5  ;;  %v16907_v22 = vld [vmem:[#allocation3 + $0xb8] sm:$0xf]  ;;  %v5302_v23 = vsel %vm15590_vm6, %v5297_v21, %v16868_v42 }
 0x347   : > { %v5331_v63 = vrot.slane %v5330_v43, 4  ;;  %19386 = vst [vmem:[#allocation14_spill] sm:$0xff] %v16907_v22  ;;  %v5344_v51 = vor.u32 %v5343_v5, %v5340_v3  ;;  %v16916_v43 = vld [vmem:[#allocation3 + $0xc4] sm:$0xf]  ;;  %v5364_v48 = vrot.slane %v5362_v32, 4  ;;  %v5367_v4 = vrot.slane %v5365_v8, 5 }
 0x348   : > { %v5312_v29 = vsel %vm15590_vm6, %v5307_v41, %v5311_v7  ;;  %19387 = vst [vmem:[#allocation15_spill] sm:$0xff] %v16916_v43  ;;  %v5354_v42 = vor.u32 %v5353_v1, %v16902_v49  ;;  %v5395_v37 = vshll.u32 %v16907_v22, 16  ;;  %v5389_v41 = vshll.u32 %v5064_v18, 16 }
 0x349   : > { %v5423_v3 = vshrl.u32 %v16916_v43, 16  ;;  %v12745_v5 = vcombine.low %v5302_v23, %v5312_v29  ;;  %v5359_v32 = vrot.slane %v5357_v39, 5  ;;  %v5368_v8 = vor.u32 %v5367_v4, %v5364_v48  ;;  %v16934_v23 = vld [vmem:[#allocation3 + $0xbc] sm:$0x1] }
 0x34a   : > { %13991 = vmatmul.mubr.msk.bf16.gmra.mrb[40].mxu1 %vm2084_vm7, %v12741_v35  ;;  %v16886_v35 = vld [vmem:[#allocation3 + $0xac] sm:$0xf]  ;;  %v5355_v33 = vrot.slane %v5354_v42, 4  ;;  %v5443_v39 = vshll.u32 %v16750_v57, 16 }
 0x34b   : > { %13994 = vmatprep.mubr.msk.bf16.mxu1 %vm2084_vm7, %v12742_v56  ;;  %19384 = vst [vmem:[#allocation12_spill] sm:$0xff] %v16886_v35  ;;  %v5371_v36 = vshll.u32 %v16886_v35, 16  ;;  %v5375_v44 = vshrl.u32 %v16886_v35, 16  ;;  %v12744_v56 = vcombine.low %v5278_v24, %v5288_v30  ;;  %v5336_v24 = vsel %vm15590_vm6, %v5331_v63, %v5335_v17  ;;  %v5070_v17 = vld [vmem:[#allocation3 + $0xcc] sm:$0xf] }
 0x34c   : > { %v5386_v30 = vshrl.u32 %v5064_v18, 16  ;;  %v5345_v63 = vrot.slane %v5344_v51, 4  ;;  %v5434_v29 = vshrl.u32 %v5070_v17, 16  ;;  %v5437_v51 = vshll.u32 %v5070_v17, 16 }
 0x34d   : > { %v16905_v45 = vrot.slane %v5371_v36, 5  ;;  %v5377_v16 = vrot.slane %v5375_v44, 4  ;;  %v5399_v36 = vshrl.u32 %v16907_v22, 16  ;;  %v5067_v44 = vld [vmem:[#allocation3 + $0xc0] sm:$0xf]  ;;  %v5397_v22 = vrot.slane %v5395_v37, 5 }
 0x34e   : > { %v5410_v7 = vshrl.u32 %v5067_v44, 16  ;;  %v5413_v1 = vshll.u32 %v5067_v44, 16  ;;  %v5388_v54 = vrot.slane %v5386_v30, 4  ;;  %v5350_v30 = vsel %vm15590_vm6, %v5345_v63, %v16902_v49  ;;  %v16943_v44 = vld [vmem:[#allocation3 + $0xc8] sm:$0x1] }
 0x34f   : > { %v5378_v21 = vor.u32 %v5377_v16, %v16905_v45  ;;  %v5401_v40 = vrot.slane %v5399_v36, 4  ;;  %v5391_v16 = vrot.slane %v5389_v41, 5  ;;  %v5360_v37 = vsel %vm15590_vm6, %v5355_v33, %v5359_v32 }
 0x350   : > { %v5412_v4 = vrot.slane %v5410_v7, 4  ;;  %v5415_v42 = vrot.slane %v5413_v1, 5 }
 0x351   : > { %v5379_v18 = vrot.slane %v5378_v21, 4  ;;  %v5402_v36 = vor.u32 %v5401_v40, %v5397_v22  ;;  %v5392_v41 = vor.u32 %v5391_v16, %v5388_v54  ;;  %v5429_v40 = vshll.u32 %v16943_v44, 16 }
 0x352   : > { %13995 = vmatmul.mubr.msk.bf16.gmra.mrb[44].mxu1 %vm2084_vm7, %v12743_v10  ;;  %v5326_v10 = vsel %vm15590_vm6, %v5321_v0, %v16870_v62  ;;  %v5419_v62 = vshll.u32 %v16916_v43, 16  ;;  %v5425_v43 = vrot.slane %v5423_v3, 4  ;;  %v5436_v3 = vrot.slane %v5434_v29, 4 }
 0x353   : > { %13998 = vmatprep.mubr.msk.bf16.mxu1 %vm2084_vm7, %v12744_v56  ;;  %v12746_v0 = vcombine.low %v5326_v10, %v5336_v24  ;;  %v5381_v56 = vshll.u32 %v16923_v47, 16  ;;  %v5447_v10 = vshrl.u32 %v16750_v57, 16  ;;  %v5369_v24 = vrot.slane %v5368_v8, 4 }
 0x354   : > { %v5421_v35 = vrot.slane %v5419_v62, 5  ;;  %v5405_v57 = vshll.u32 %v16934_v23, 16  ;;  %v5416_v33 = vor.u32 %v5415_v42, %v5412_v4  ;;  %v5403_v32 = vrot.slane %v5402_v36, 4 }
 0x355   : > { %v5383_v48 = vrot.slane %v5381_v56, 5  ;;  %v5449_v8 = vrot.slane %v5447_v10, 4  ;;  %v12747_v56 = vcombine.low %v5350_v30, %v5360_v37  ;;  %v5374_v49 = vsel %vm15590_vm6, %v5369_v24, %v16905_v45 }
 0x356   : > { %v5426_v62 = vor.u32 %v5425_v43, %v5421_v35  ;;  %v5407_v54 = vrot.slane %v5405_v57, 5  ;;  %v5393_v43 = vrot.slane %v5392_v41, 4  ;;  %v5417_v16 = vrot.slane %v5416_v33, 4 }
 0x357   : > { %v5384_v21 = vsel %vm15590_vm6, %v5379_v18, %v5383_v48  ;;  %v5453_v18 = vshll.u32 %v16752_v9, 16  ;;  %v5431_v29 = vrot.slane %v5429_v40, 5  ;;  %v5836_v41 = vrot.slane %v16706_v15, 5 }
 0x358   : > { %v12748_v63 = vcombine.low %v5374_v49, %v5384_v21  ;;  %v5427_v7 = vrot.slane %v5426_v62, 4  ;;  %v5408_v45 = vsel %vm15590_vm6, %v5403_v32, %v5407_v54  ;;  %v5398_v10 = vsel %vm15590_vm6, %v5393_v43, %v5397_v22  ;;  %v5763_v22 = vld [vmem:[#allocation3 + $0x18] sm:$0xe] }
 0x359   : > { %v5455_v4 = vrot.slane %v5453_v18, 5  ;;  %v12749_v42 = vcombine.low %v5398_v10, %v5408_v45  ;;  %v5422_v9 = vsel %vm15590_vm6, %v5417_v16, %v5421_v35  ;;  %v5832_v21 = vrot.slane %v16709_v38, 5  ;;  %v5765_v38 = vld [vmem:[#allocation3 + $0x30] sm:$0xe]  ;;  %v5766_v18 = vld [vmem:[#allocation3 + $0x3c] sm:$0xe] }
 0x35a   : > { %13999 = vmatmul.mubr.msk.bf16.gmra.mrb[48].mxu1 %vm2084_vm7, %v12745_v5  ;;  %v5439_v5 = vrot.slane %v5437_v51, 5  ;;  %v5432_v51 = vsel %vm15590_vm6, %v5427_v7, %v5431_v29  ;;  %v12770_v62 = vrot.slane %v5763_v22, 9  ;;  %v5839_v15 = vrot.slane %v16716_v55, 5  ;;  %v5767_v29 = vld [vmem:[#allocation3 + $0x48] sm:$0xe] }
 0x35b   : > { %14002 = vmatprep.mubr.msk.bf16.mxu1 %vm2084_vm7, %v12746_v0  ;;  %v5445_v0 = vrot.slane %v5443_v39, 5  ;;  %v5829_v39 = vrot.slane %v16701_v25, 5  ;;  %v12750_v30 = vcombine.low %v5422_v9, %v5432_v51  ;;  %v5846_v33 = vrot.slane %v16728_v27, 5 }
 0x35c   : > { %v5440_v1 = vor.u32 %v5439_v5, %v5436_v3  ;;  %v5843_v3 = vrot.slane %v16713_v26, 5  ;;  %v12772_v32 = vrot.slane %v5765_v38, 9  ;;  %v5857_v7 = vrot.slane %v16734_v59, 5 }
 0x35d   : > { %v5450_v17 = vor.u32 %v5449_v8, %v5445_v0  ;;  %v5831_v37 = vrot.slane %v5829_v39, 4  ;;  %v5830_v5 = vsel %vm16157_vm0, %v12770_v62, %v5829_v39  ;;  %v5860_v59 = vrot.slane %v16790_v58, 5 }
 0x35e   : > { %v5441_v24 = vrot.slane %v5440_v1, 4  ;;  %v5845_v49 = vrot.slane %v5843_v3, 4  ;;  %v5844_v55 = vsel %vm16157_vm0, %v12772_v32, %v5843_v3  ;;  %v5859_v16 = vrot.slane %v5857_v7, 4 }
 0x35f   : > { %v5451_v48 = vrot.slane %v5450_v17, 4  ;;  %v5833_v35 = vsel %vm16157_vm0, %v5831_v37, %v5832_v21  ;;  %v12773_v45 = vrot.slane %v5766_v18, 9  ;;  %v5864_v39 = vrot.slane %v16745_v2, 5 }
 0x360   : > { %v5446_v36 = vsel %vm15590_vm6, %v5441_v24, %v5445_v0  ;;  %v12790_v8 = vcombine.low %v5830_v5, %v5833_v35  ;;  %v5838_v0 = vrot.slane %v5836_v41, 4  ;;  %v5847_v54 = vsel %vm16157_vm0, %v5845_v49, %v5846_v33 }
 0x361   : > { %v5456_v25 = vsel %vm15590_vm6, %v5451_v48, %v5455_v4  ;;  %v12792_v27 = vcombine.low %v5844_v55, %v5847_v54  ;;  %v12774_v10 = vrot.slane %v5767_v29, 9  ;;  %v5861_v24 = vsel %vm16157_vm0, %v5859_v16, %v5860_v59 }
 0x362   : > { %14003 = vmatmul.mubr.msk.bf16.gmra.mrb[52].mxu1 %vm2084_vm7, %v12747_v56  ;;  %v12751_v57 = vcombine.low %v5446_v36, %v5456_v25  ;;  %v5764_v56 = vld [vmem:[#allocation3 + $0x24] sm:$0xe]  ;;  %v5840_v26 = vsel %vm16157_vm0, %v5838_v0, %v5839_v15  ;;  %v5871_v48 = vrot.slane %v16792_v28, 5  ;;  %v5866_v9 = vrot.slane %v5864_v39, 4  ;;  %v5769_v36 = vld [vmem:[#allocation3 + $0x60] sm:$0xe] }
 0x363   : > { %14006 = vmatprep.mubr.msk.bf16.mxu1 %vm2084_vm7, %v12748_v63  ;;  %v12771_v40 = vrot.slane %v5764_v56, 9  ;;  %v5850_v63 = vrot.slane %v16730_v50, 5  ;;  %v5853_v50 = vrot.slane %v16762_v20, 5  ;;  %v5858_v20 = vsel %vm16157_vm0, %v12774_v10, %v5857_v7  ;;  %v5771_v56 = vld [vmem:[#allocation3 + $0x78] sm:$0xe] }
 0x364   : > { %v12794_v58 = vcombine.low %v5858_v20, %v5861_v24  ;;  %v5873_v37 = vrot.slane %v5871_v48, 4  ;;  %v5867_v2 = vrot.slane %v16796_v60, 5  ;;  %v5874_v28 = vrot.slane %v16811_v19, 5  ;;  %v5772_v7 = vld [vmem:[#allocation3 + $0x84] sm:$0xe] }
 0x365   : > { %v5837_v43 = vsel %vm16157_vm0, %v12771_v40, %v5836_v41  ;;  %v5852_v17 = vrot.slane %v5850_v63, 4  ;;  %v5851_v4 = vsel %vm16157_vm0, %v12773_v45, %v5850_v63  ;;  %v5878_v21 = vrot.slane %v16806_v34, 5 }
 0x366   : > { %v12791_v1 = vcombine.low %v5837_v43, %v5840_v26  ;;  %v5868_v22 = vsel %vm16157_vm0, %v5866_v9, %v5867_v2  ;;  %v12776_v41 = vrot.slane %v5769_v36, 9  ;;  %v5885_v62 = vrot.slane %v16827_v14, 5  ;;  %v19391_v2 = vld [vmem:[#allocation15_spill] sm:$0xff] }
 0x367   : > { %v5854_v51 = vsel %vm16157_vm0, %v5852_v17, %v5853_v50  ;;  %v5880_v5 = vrot.slane %v5878_v21, 4  ;;  %v5881_v34 = vrot.slane %v16833_v11, 5  ;;  %v5888_v14 = vrot.slane %v16855_v31, 5  ;;  %v19388_v50 = vld [vmem:[#allocation12_spill] sm:$0xff] }
 0x368   : > { %v5872_v60 = vsel %vm16157_vm0, %v12776_v41, %v5871_v48  ;;  %v5887_v0 = vrot.slane %v5885_v62, 4  ;;  %v5892_v38 = vrot.slane %v16845_v53, 5  ;;  %v12778_v33 = vrot.slane %v5771_v56, 9  ;;  %v5775_v48 = vld [vmem:[#allocation3 + $0xa8] sm:$0xe] }
 0x369   : > { %v5882_v15 = vsel %vm16157_vm0, %v5880_v5, %v5881_v34  ;;  %v5899_v26 = vrot.slane %v16848_v61, 5  ;;  %v5895_v53 = vrot.slane %v16872_v6, 5  ;;  %v5902_v61 = vrot.slane %v16884_v52, 5  ;;  %v5776_v41 = vld [vmem:[#allocation3 + $0xb4] sm:$0xe] }
 0x36a   : > { %14007 = vmatmul.mubr.msk.bf16.gmra.mrb[56].mxu1 %vm2084_vm7, %v12749_v42  ;;  %v12793_v42 = vcombine.low %v5851_v4, %v5854_v51  ;;  %v5889_v40 = vsel %vm16157_vm0, %v5887_v0, %v5888_v14  ;;  %v5886_v11 = vsel %vm16157_vm0, %v12778_v33, %v5885_v62  ;;  %v5894_v54 = vrot.slane %v5892_v38, 4 }
 0x36b   : > { %14010 = vmatprep.mubr.msk.bf16.mxu1 %vm2084_vm7, %v12750_v30  ;;  %v5768_v30 = vld [vmem:[#allocation3 + $0x54] sm:$0xe]  ;;  %v12798_v31 = vcombine.low %v5886_v11, %v5889_v40  ;;  %v5901_v43 = vrot.slane %v5899_v26, 4  ;;  %v12779_v55 = vrot.slane %v5772_v7, 9  ;;  %v5906_v17 = vrot.slane %v16880_v46, 5  ;;  %v19389_v46 = vld [vmem:[#allocation13_spill] sm:$0xff] }
 0x36c   : > { %v12775_v25 = vrot.slane %v5768_v30, 9  ;;  %v5913_v29 = vrot.slane %v19388_v50, 5  ;;  %v5909_v24 = vrot.slane %v19389_v46, 5  ;;  %v5916_v4 = vrot.slane %v16923_v47, 5 }
 0x36d   : > { %v5903_v16 = vsel %vm16157_vm0, %v5901_v43, %v5902_v61  ;;  %v5893_v59 = vsel %vm16157_vm0, %v12779_v55, %v5892_v38  ;;  %v5908_v51 = vrot.slane %v5906_v17, 4  ;;  %v12782_v30 = vrot.slane %v5775_v48, 9 }
 0x36e   : > { %v5865_v35 = vsel %vm16157_vm0, %v12775_v25, %v5864_v39  ;;  %v5774_v39 = vld [vmem:[#allocation3 + $0x9c] sm:$0xe]  ;;  %v5915_v10 = vrot.slane %v5913_v29, 4  ;;  %v5927_v36 = vrot.slane %v19391_v2, 5  ;;  %v5923_v62 = vrot.slane %v16934_v23, 5  ;;  %v19392_v23 = vld [vmem:[#allocation10_spill] sm:$0xff] }
 0x36f   : > { %v12795_v3 = vcombine.low %v5865_v35, %v5868_v22  ;;  %v5910_v20 = vsel %vm16157_vm0, %v5908_v51, %v5909_v24  ;;  %v5914_v22 = vsel %vm16157_vm0, %v12782_v30, %v5913_v29  ;;  %v5777_v35 = vld [vmem:[#allocation3 + $0xc0] sm:$0xe] }
 0x370   : > { %v12784_v5 = vrot.slane %v5777_v35, 9 }
 0x372   : > { %14011 = vmatmul.mubr.msk.bf16.gmra.mrb[60].mxu1 %vm2084_vm7, %v12751_v57  ;;  %v5875_v57 = vsel %vm16157_vm0, %v5873_v37, %v5874_v28  ;;  %v5917_v37 = vsel %vm16157_vm0, %v5915_v10, %v5916_v4  ;;  %v5928_v56 = vsel %vm16157_vm0, %v12784_v5, %v5927_v36 }
 0x373   : > { %14018 = vmatprep.mubr.msk.bf16.mxu1 %vm2084_vm7, %v12790_v8  ;;  %v12796_v19 = vcombine.low %v5872_v60, %v5875_v57  ;;  %v5770_v8 = vld [vmem:[#allocation3 + $0x6c] sm:$0xe]  ;;  %v12802_v47 = vcombine.low %v5914_v22, %v5917_v37  ;;  %v5929_v57 = vrot.slane %v5927_v36, 4  ;;  %v12783_v60 = vrot.slane %v5776_v41, 9  ;;  %v17127_v37 = vld [vmem:[%s19263_s7] ss:$0 sm:$0xff] }
 0x374   : > { %v12777_v49 = vrot.slane %v5770_v8, 9 }
 0x376   : > { %v5879_v63 = vsel %vm16157_vm0, %v12777_v49, %v5878_v21 }
 0x377   : > { %v12797_v32 = vcombine.low %v5879_v63, %v5882_v15 }
 0x37a   : > { %14019 = vmatmul.mubr.msk.bf16.vlgmr.msra.gmra.mrb[32].mxu1 %vm2084_vm7, %v12791_v1  ;;  %v5773_v1 = vld [vmem:[#allocation3 + $0x90] sm:$0xe] }
 0x37b   : > { %14022 = vmatprep.mubr.msk.bf16.mxu1 %vm2084_vm7, %v12792_v27  ;;  %v5896_v27 = vsel %vm16157_vm0, %v5894_v54, %v5895_v53  ;;  %v12780_v18 = vrot.slane %v5773_v1, 9 }
 0x37c   : > { %v12799_v45 = vcombine.low %v5893_v59, %v5896_v27 }
 0x37d   : > { %v5900_v6 = vsel %vm16157_vm0, %v12780_v18, %v5899_v26  ;;  %v15023_v26 = vld [vmem:[%s19265_s9] sm:$0xff]  }
 0x37e   : > { %v12800_v52 = vcombine.low %v5900_v6, %v5903_v16  ;;  %14050 = vmatprep.subr.bf16.mxu0 %v15023_v26 }
 0x37f   : > { %14051 = vmatpush3.bf16.msra.mxu0 %v15023_v26 }
 0x382   : > { %14023 = vmatmul.mubr.msk.bf16.gmra.mrb[36].mxu1 %vm2084_vm7, %v12793_v42  ;;  %v12781_v42 = vrot.slane %v5774_v39, 9 }
 0x383   : > { %14026 = vmatprep.mubr.msk.bf16.mxu1 %vm2084_vm7, %v12794_v58  ;;  %v19390_v58 = vld [vmem:[#allocation14_spill] sm:$0xff] }
 0x384   : > { %v5920_v9 = vrot.slane %v19390_v58, 5  ;;  %v5907_v28 = vsel %vm16157_vm0, %v12781_v42, %v5906_v17  ;;  %v17117_v42 = vld [vmem:[%s19268_s12 + $0x10] sm:$0xff]  }
 0x385   : > { %v12801_v25 = vcombine.low %v5907_v28, %v5910_v20  ;;  %14084 = vmatprep.subr.bf16.mxu0 %v17117_v42 }
 0x386   : > { %v5922_v21 = vrot.slane %v5920_v9, 4  ;;  %v5921_v0 = vsel %vm16157_vm0, %v12783_v60, %v5920_v9 }
 0x38a   : > { %14027 = vmatmul.mubr.msk.bf16.gmra.mrb[40].mxu1 %vm2084_vm7, %v12795_v3  ;;  %v5930_v3 = vrot.slane %v16943_v44, 5  ;;  %v19393_v44 = vld [vmem:[#allocation11_spill] sm:$0xff] }
 0x38b   : > { %14030 = vmatprep.mubr.msk.bf16.mxu1 %vm2084_vm7, %v12796_v19  ;;  %v5924_v19 = vsel %vm16157_vm0, %v5922_v21, %v5923_v62  ;;  %v19394_v49 = vcombine.low %v19392_v23, %v19393_v44 }
 0x38c   : > { %v5931_v8 = vsel %vm16157_vm0, %v5929_v57, %v5930_v3  ;;  %v12803_v34 = vcombine.low %v5921_v0, %v5924_v19 }
 0x38d   : > { %v12804_v14 = vcombine.low %v5928_v56, %v5931_v8 }
 0x392   : > { %14031 = vmatmul.mubr.msk.bf16.gmra.mrb[44].mxu1 %vm2084_vm7, %v12797_v32 }
 0x393   : > { %14034 = vmatprep.mubr.msk.bf16.mxu1 %vm2084_vm7, %v12798_v31 }
 0x39a   : > { %14035 = vmatmul.mubr.msk.bf16.gmra.mrb[48].mxu1 %vm2084_vm7, %v12799_v45 }
 0x39b   : > { %14038 = vmatprep.mubr.msk.bf16.mxu1 %vm2084_vm7, %v12800_v52 }
 0x3a2   : > { %14039 = vmatmul.mubr.msk.bf16.gmra.mrb[52].mxu1 %vm2084_vm7, %v12801_v25 }
 0x3a3   : > { %14042 = vmatprep.mubr.msk.bf16.mxu1 %vm2084_vm7, %v12802_v47  ;;  %v17134_v47 = vld [vmem:[%s19264_s8] ss:$0 sm:$0xff] }
 0x3aa   : > { %14043 = vmatmul.mubr.msk.bf16.gmra.mrb[56].mxu1 %vm2084_vm7, %v12803_v34 }
 0x3ab   : > { %14046 = vmatprep.mubr.msk.bf16.mxu1 %vm2084_vm7, %v12804_v14 }
 0x3b2   : > { %14047 = vmatmul.mubr.msk.bf16.gmra.mrb[60].mxu1 %vm2084_vm7, %v19394_v49 }
 0x44d   : > { %v14020_v15 = vpop.f32.mrb[32].mxu1 }
 0x44e   : > { %6281 = vrot.lane.b32.xlu1 %v14020_v15, %s19360_s16  ;;  %v6086_v38 = vpop.f32.mrb[33].mxu1 }
 0x44f   : > { %6277 = vrot.lane.b32.xlu0 %v6086_v38, %s19360_s16  ;;  %v14021_v33 = vpop.f32.mrb[34].mxu1 }
 0x450   : > { %v6089_v40 = vpop.f32.mrb[35].mxu1 }
 0x452   : > { %6283 = vrot.lane.b32.xlu1 %v14021_v33, %s19360_s16 }
 0x453   : > { %6279 = vrot.lane.b32.xlu0 %v6089_v40, %s19360_s16 }
 0x455   : > { %v14024_v63 = vpop.f32.mrb[36].mxu1 }
 0x456   : > { %v6102_v32 = vpop.f32.mrb[37].mxu1 }
 0x457   : > { %6285 = vrot.lane.b32.xlu0 %v6102_v32, %s19360_s16  ;;  %v14025_v11 = vpop.f32.mrb[38].mxu1 }
 0x458   : > { %v6105_v31 = vpop.f32.mrb[39].mxu1 }
 0x459   : > { %6287 = vrot.lane.b32.xlu1 %v6105_v31, %s19360_s16 }
 0x45b   : > { %6289 = vrot.lane.b32.xlu0 %v14024_v63, %s19360_s16 }
 0x45d   : > { %6291 = vrot.lane.b32.xlu1 %v14025_v11, %s19360_s16  ;;  %v14028_v54 = vpop.f32.mrb[40].mxu1 }
 0x45e   : > { %v6118_v7 = vpop.f32.mrb[41].mxu1 }
 0x45f   : > { %6293 = vrot.lane.b32.xlu0 %v6118_v7, %s19360_s16  ;;  %v14029_v43 = vpop.f32.mrb[42].mxu1 }
 0x460   : > { %v6121_v53 = vpop.f32.mrb[43].mxu1 }
 0x461   : > { %6295 = vrot.lane.b32.xlu1 %v6121_v53, %s19360_s16 }
 0x463   : > { %6297 = vrot.lane.b32.xlu0 %v14028_v54, %s19360_s16 }
 0x465   : > { %6299 = vrot.lane.b32.xlu1 %v14029_v43, %s19360_s16  ;;  %v14032_v1 = vpop.f32.mrb[44].mxu1 }
 0x466   : > { %v6134_v61 = vpop.f32.mrb[45].mxu1 }
 0x467   : > { %6301 = vrot.lane.b32.xlu0 %v6134_v61, %s19360_s16  ;;  %v14033_v55 = vpop.f32.mrb[46].mxu1 }
 0x468   : > { %v6137_v27 = vpop.f32.mrb[47].mxu1 }
 0x469   : > { %6303 = vrot.lane.b32.xlu1 %v6137_v27, %s19360_s16 }
 0x46b   : > { %6305 = vrot.lane.b32.xlu0 %v14032_v1, %s19360_s16 }
 0x46d   : > { %6307 = vrot.lane.b32.xlu1 %v14033_v55, %s19360_s16  ;;  %v14036_v17 = vpop.f32.mrb[48].mxu1 }
 0x46e   : > { %v6150_v18 = vpop.f32.mrb[49].mxu1 }
 0x46f   : > { %6309 = vrot.lane.b32.xlu0 %v6150_v18, %s19360_s16  ;;  %v14037_v16 = vpop.f32.mrb[50].mxu1 }
 0x470   : > { %v6153_v50 = vpop.f32.mrb[51].mxu1 }
 0x471   : > { %6311 = vrot.lane.b32.xlu1 %v6153_v50, %s19360_s16 }
 0x473   : > { %6313 = vrot.lane.b32.xlu0 %v14036_v17, %s19360_s16 }
 0x475   : > { %6315 = vrot.lane.b32.xlu1 %v14037_v16, %s19360_s16  ;;  %v14040_v29 = vpop.f32.mrb[52].mxu1 }
 0x476   : > { %v6166_v59 = vpop.f32.mrb[53].mxu1 }
 0x477   : > { %6317 = vrot.lane.b32.xlu0 %v6166_v59, %s19360_s16  ;;  %v14041_v45 = vpop.f32.mrb[54].mxu1 }
 0x478   : > { %v6169_v6 = vpop.f32.mrb[55].mxu1 }
 0x479   : > { %6319 = vrot.lane.b32.xlu1 %v6169_v6, %s19360_s16 }
 0x47b   : > { %6321 = vrot.lane.b32.xlu0 %v14040_v29, %s19360_s16 }
 0x47d   : > { %6323 = vrot.lane.b32.xlu1 %v14041_v45, %s19360_s16  ;;  %v14044_v52 = vpop.f32.mrb[56].mxu1 }
 0x47e   : > { %v6182_v51 = vpop.f32.mrb[57].mxu1 }
 0x47f   : > { %6325 = vrot.lane.b32.xlu0 %v6182_v51, %s19360_s16  ;;  %v14045_v39 = vpop.f32.mrb[58].mxu1 }
 0x480   : > { %v6185_v10 = vpop.f32.mrb[59].mxu1 }
 0x481   : > { %6327 = vrot.lane.b32.xlu1 %v6185_v10, %s19360_s16 }
 0x483   : > { %6329 = vrot.lane.b32.xlu0 %v14044_v52, %s19360_s16 }
 0x485   : > { %6331 = vrot.lane.b32.xlu1 %v14045_v39, %s19360_s16  ;;  %v14048_v46 = vpop.f32.mrb[60].mxu1 }
 0x486   : > { %v6198_v24 = vpop.f32.mrb[61].mxu1 }
 0x487   : > { %6333 = vrot.lane.b32.xlu0 %v6198_v24, %s19360_s16  ;;  %v14049_v48 = vpop.f32.mrb[62].mxu1 }
 0x488   : > { %v6201_v4 = vpop.f32.mrb[63].mxu1 }
 0x489   : > { %6335 = vrot.lane.b32.xlu1 %v6201_v4, %s19360_s16 }
 0x48b   : > { %6337 = vrot.lane.b32.xlu0 %v14048_v46, %s19360_s16 }
 0x48d   : > { %6339 = vrot.lane.b32.xlu1 %v14049_v48, %s19360_s16  ;;  %s15118_s16 = scalar_lea.vmem %s19208_s15, 4096 }
 0x48e   : > { %p15119_p11 = scmp.ne.s32.totalorder %s19208_s15, %s15118_s16 }
 0x490   : > { %p15120_p12 = pnand %p15119_p11, %p15295_p5 }
 0x492   : > { %p15121_p13 = pneg %p15120_p12 }
 0x4c0   : > { %v6282_v20 = vpop.permute.xlu1 %6281 }
 0x4c1   : > { %6376 = vst.msk [vmem:[#allocation2 + $0x10] sm:$0xff] %vm6373_vm2, %v6282_v20  ;;  %v6278_v58 = vpop.permute.xlu0 %6277 }
 0x4c2   : > { %6374 = vst.msk [vmem:[#allocation2] sm:$0xff] %vm6373_vm2, %v6278_v58 }
 0x4c4   : > { %v6284_v9 = vpop.permute.xlu1 %6283 }
 0x4c5   : > { %6377 = vst.msk [vmem:[#allocation2 + $0x18] sm:$0xff] %vm6373_vm2, %v6284_v9  ;;  %v6280_v30 = vpop.permute.xlu0 %6279 }
 0x4c6   : > { %6375 = vst.msk [vmem:[#allocation2 + $0x8] sm:$0xff] %vm6373_vm2, %v6280_v30 }
 0x4c8   : > { %v6408_v2 = vld [vmem:[#allocation2 + $0x10] sm:$0xff] }
 0x4c9   : > { %v6286_v36 = vpop.permute.xlu0 %6285  ;;  %v6406_v28 = vld [vmem:[#allocation2] sm:$0xff]  ;;  %v6447_v21 = vmul.f32 %v17127_v37, %v6408_v2 }
 0x4ca   : > { %6378 = vst.msk [vmem:[#allocation2 + $0x20] sm:$0xff] %vm6373_vm2, %v6286_v36  ;;  %v6445_v25 = vmul.f32 %v17127_v37, %v6406_v28 }
 0x4cb   : > { %v6288_v22 = vpop.permute.xlu1 %6287  ;;  %v6486_v5 = vadd.f32 %v17134_v47, %v6447_v21 }
 0x4cc   : > { %6379 = vst.msk [vmem:[#allocation2 + $0x28] sm:$0xff] %vm6373_vm2, %v6288_v22  ;;  %v6409_v41 = vld [vmem:[#allocation2 + $0x18] sm:$0xff]  ;;  %v6484_v60 = vadd.f32 %v17134_v47, %v6445_v25 }
 0x4cd   : > { %v6290_v57 = vpop.permute.xlu0 %6289  ;;  %v6407_v62 = vld [vmem:[#allocation2 + $0x8] sm:$0xff]  ;;  %v6448_v35 = vmul.f32 %v17127_v37, %v6409_v41  ;;  %v6518_v38 = vmax.f32 %v6486_v5, 0.0 }
 0x4ce   : > { %6380 = vst.msk [vmem:[#allocation2 + $0x30] sm:$0xff] %vm6373_vm2, %v6290_v57  ;;  %v6446_v3 = vmul.f32 %v17127_v37, %v6407_v62  ;;  %v6516_v23 = vmax.f32 %v6484_v60, 0.0 }
 0x4cf   : > { %v6292_v19 = vpop.permute.xlu1 %6291  ;;  %v6487_v8 = vadd.f32 %v17134_v47, %v6448_v35 }
 0x4d0   : > { %6381 = vst.msk [vmem:[#allocation2 + $0x38] sm:$0xff] %vm6373_vm2, %v6292_v19  ;;  %v6485_v0 = vadd.f32 %v17134_v47, %v6446_v3 }
 0x4d1   : > { %v6294_v34 = vpop.permute.xlu0 %6293  ;;  %v6519_v56 = vmax.f32 %v6487_v8, 0.0  ;;  %v6410_v14 = vld [vmem:[#allocation2 + $0x20] sm:$0xff] }
 0x4d2   : > { %6382 = vst.msk [vmem:[#allocation2 + $0x40] sm:$0xff] %vm6373_vm2, %v6294_v34  ;;  %v6517_v44 = vmax.f32 %v6485_v0, 0.0  ;;  %v6449_v49 = vmul.f32 %v17127_v37, %v6410_v14 }
 0x4d3   : > { %v6296_v15 = vpop.permute.xlu1 %6295  ;;  %v6411_v33 = vld [vmem:[#allocation2 + $0x28] sm:$0xff]  ;;  %v6549_v11 = vpack.c.bf16 %v6519_v56, %v6518_v38 }
 0x4d4   : > { %6383 = vst.msk [vmem:[#allocation2 + $0x48] sm:$0xff] %vm6373_vm2, %v6296_v15  ;;  %v6548_v40 = vpack.c.bf16 %v6517_v44, %v6516_v23  ;;  %v6450_v26 = vmul.f32 %v17127_v37, %v6411_v33  ;;  %v6488_v63 = vadd.f32 %v17134_v47, %v6449_v49 }
 0x4d5   : > { %v6298_v32 = vpop.permute.xlu0 %6297  ;;  %v6412_v31 = vld [vmem:[#allocation2 + $0x30] sm:$0xff] }
 0x4d6   : > { %6384 = vst.msk [vmem:[#allocation2 + $0x50] sm:$0xff] %vm6373_vm2, %v6298_v32  ;;  %14052 = vmatprep.mubr.msk.bf16.mxu0 %vm6572_vm3, %v6548_v40  ;;  %v6489_v54 = vadd.f32 %v17134_v47, %v6450_v26  ;;  %v6451_v7 = vmul.f32 %v17127_v37, %v6412_v31  ;;  %v6520_v1 = vmax.f32 %v6488_v63, 0.0 }
 0x4d7   : > { %14053 = vmatmul.mubr.msk.bf16.vlgmr.msra.gmra.mrb[0].mxu0 %vm6572_vm3, %v6549_v11  ;;  %v6300_v43 = vpop.permute.xlu1 %6299  ;;  %v6413_v53 = vld [vmem:[#allocation2 + $0x38] sm:$0xff] }
 0x4d8   : > { %6385 = vst.msk [vmem:[#allocation2 + $0x58] sm:$0xff] %vm6373_vm2, %v6300_v43  ;;  %v6521_v61 = vmax.f32 %v6489_v54, 0.0  ;;  %v6452_v55 = vmul.f32 %v17127_v37, %v6413_v53  ;;  %v6490_v27 = vadd.f32 %v17134_v47, %v6451_v7  ;;  %14085 = vmatpush3.bf16.msra.mxu0 %v17117_v42 }
 0x4d9   : > { %v6302_v17 = vpop.permute.xlu0 %6301  ;;  %v6414_v18 = vld [vmem:[#allocation2 + $0x40] sm:$0xff] }
 0x4da   : > { %6386 = vst.msk [vmem:[#allocation2 + $0x60] sm:$0xff] %vm6373_vm2, %v6302_v17  ;;  %v6550_v16 = vpack.c.bf16 %v6521_v61, %v6520_v1  ;;  %v6491_v50 = vadd.f32 %v17134_v47, %v6452_v55  ;;  %v6453_v29 = vmul.f32 %v17127_v37, %v6414_v18  ;;  %v6522_v6 = vmax.f32 %v6490_v27, 0.0 }
 0x4db   : > { %v6304_v59 = vpop.permute.xlu1 %6303  ;;  %v6415_v45 = vld [vmem:[#allocation2 + $0x48] sm:$0xff] }
 0x4dc   : > { %6387 = vst.msk [vmem:[#allocation2 + $0x68] sm:$0xff] %vm6373_vm2, %v6304_v59  ;;  %14056 = vmatprep.mubr.msk.bf16.mxu0 %vm6572_vm3, %v6550_v16  ;;  %v6523_v52 = vmax.f32 %v6491_v50, 0.0  ;;  %v6454_v51 = vmul.f32 %v17127_v37, %v6415_v45  ;;  %v6492_v39 = vadd.f32 %v17134_v47, %v6453_v29 }
 0x4dd   : > { %v6306_v10 = vpop.permute.xlu0 %6305  ;;  %v6416_v46 = vld [vmem:[#allocation2 + $0x50] sm:$0xff] }
 0x4de   : > { %6388 = vst.msk [vmem:[#allocation2 + $0x70] sm:$0xff] %vm6373_vm2, %v6306_v10  ;;  %v6551_v24 = vpack.c.bf16 %v6523_v52, %v6522_v6  ;;  %v6493_v48 = vadd.f32 %v17134_v47, %v6454_v51  ;;  %v6455_v4 = vmul.f32 %v17127_v37, %v6416_v46  ;;  %v6524_v58 = vmax.f32 %v6492_v39, 0.0 }
 0x4df   : > { %v6308_v42 = vpop.permute.xlu1 %6307  ;;  %v6417_v20 = vld [vmem:[#allocation2 + $0x58] sm:$0xff] }
 0x4e0   : > { %6389 = vst.msk [vmem:[#allocation2 + $0x78] sm:$0xff] %vm6373_vm2, %v6308_v42  ;;  %14057 = vmatmul.mubr.msk.bf16.gmra.mrb[4].mxu0 %vm6572_vm3, %v6551_v24  ;;  %v6525_v9 = vmax.f32 %v6493_v48, 0.0  ;;  %v6456_v30 = vmul.f32 %v17127_v37, %v6417_v20  ;;  %v6494_v2 = vadd.f32 %v17134_v47, %v6455_v4 }
 0x4e1   : > { %v6310_v36 = vpop.permute.xlu0 %6309  ;;  %v6418_v28 = vld [vmem:[#allocation2 + $0x60] sm:$0xff] }
 0x4e2   : > { %6390 = vst.msk [vmem:[#allocation2 + $0x80] sm:$0xff] %vm6373_vm2, %v6310_v36  ;;  %v6552_v25 = vpack.c.bf16 %v6525_v9, %v6524_v58  ;;  %v6495_v22 = vadd.f32 %v17134_v47, %v6456_v30  ;;  %v6457_v21 = vmul.f32 %v17127_v37, %v6418_v28  ;;  %v6526_v62 = vmax.f32 %v6494_v2, 0.0 }
 0x4e3   : > { %v6312_v41 = vpop.permute.xlu1 %6311  ;;  %v6419_v57 = vld [vmem:[#allocation2 + $0x68] sm:$0xff] }
 0x4e4   : > { %6391 = vst.msk [vmem:[#allocation2 + $0x88] sm:$0xff] %vm6373_vm2, %v6312_v41  ;;  %14060 = vmatprep.mubr.msk.bf16.mxu0 %vm6572_vm3, %v6552_v25  ;;  %v6527_v35 = vmax.f32 %v6495_v22, 0.0  ;;  %v6458_v3 = vmul.f32 %v17127_v37, %v6419_v57  ;;  %v6496_v60 = vadd.f32 %v17134_v47, %v6457_v21 }
 0x4e5   : > { %v6314_v19 = vpop.permute.xlu0 %6313  ;;  %v6420_v5 = vld [vmem:[#allocation2 + $0x70] sm:$0xff] }
 0x4e6   : > { %6392 = vst.msk [vmem:[#allocation2 + $0x90] sm:$0xff] %vm6373_vm2, %v6314_v19  ;;  %v6553_v8 = vpack.c.bf16 %v6527_v35, %v6526_v62  ;;  %v6497_v0 = vadd.f32 %v17134_v47, %v6458_v3  ;;  %v6459_v34 = vmul.f32 %v17127_v37, %v6420_v5  ;;  %v6528_v23 = vmax.f32 %v6496_v60, 0.0 }
 0x4e7   : > { %v6316_v56 = vpop.permute.xlu1 %6315  ;;  %v6421_v14 = vld [vmem:[#allocation2 + $0x78] sm:$0xff] }
 0x4e8   : > { %6393 = vst.msk [vmem:[#allocation2 + $0x98] sm:$0xff] %vm6373_vm2, %v6316_v56  ;;  %14061 = vmatmul.mubr.msk.bf16.gmra.mrb[8].mxu0 %vm6572_vm3, %v6553_v8  ;;  %v6529_v44 = vmax.f32 %v6497_v0, 0.0  ;;  %v6460_v49 = vmul.f32 %v17127_v37, %v6421_v14  ;;  %v6498_v15 = vadd.f32 %v17134_v47, %v6459_v34 }
 0x4e9   : > { %v6318_v38 = vpop.permute.xlu0 %6317  ;;  %v6422_v33 = vld [vmem:[#allocation2 + $0x80] sm:$0xff] }
 0x4ea   : > { %6394 = vst.msk [vmem:[#allocation2 + $0xa0] sm:$0xff] %vm6373_vm2, %v6318_v38  ;;  %v6554_v40 = vpack.c.bf16 %v6529_v44, %v6528_v23  ;;  %v6499_v26 = vadd.f32 %v17134_v47, %v6460_v49  ;;  %v6461_v63 = vmul.f32 %v17127_v37, %v6422_v33  ;;  %v6530_v31 = vmax.f32 %v6498_v15, 0.0 }
 0x4eb   : > { %v6320_v32 = vpop.permute.xlu1 %6319  ;;  %v6423_v11 = vld [vmem:[#allocation2 + $0x88] sm:$0xff] }
 0x4ec   : > { %6395 = vst.msk [vmem:[#allocation2 + $0xa8] sm:$0xff] %vm6373_vm2, %v6320_v32  ;;  %14064 = vmatprep.mubr.msk.bf16.mxu0 %vm6572_vm3, %v6554_v40  ;;  %v6531_v54 = vmax.f32 %v6499_v26, 0.0  ;;  %v6462_v7 = vmul.f32 %v17127_v37, %v6423_v11  ;;  %v6500_v43 = vadd.f32 %v17134_v47, %v6461_v63 }
 0x4ed   : > { %v6322_v53 = vpop.permute.xlu0 %6321  ;;  %v6424_v1 = vld [vmem:[#allocation2 + $0x90] sm:$0xff] }
 0x4ee   : > { %6396 = vst.msk [vmem:[#allocation2 + $0xb0] sm:$0xff] %vm6373_vm2, %v6322_v53  ;;  %v6555_v61 = vpack.c.bf16 %v6531_v54, %v6530_v31  ;;  %v6501_v55 = vadd.f32 %v17134_v47, %v6462_v7  ;;  %v6463_v27 = vmul.f32 %v17127_v37, %v6424_v1  ;;  %v6532_v16 = vmax.f32 %v6500_v43, 0.0 }
 0x4ef   : > { %v6324_v17 = vpop.permute.xlu1 %6323  ;;  %v6425_v18 = vld [vmem:[#allocation2 + $0x98] sm:$0xff] }
 0x4f0   : > { %6397 = vst.msk [vmem:[#allocation2 + $0xb8] sm:$0xff] %vm6373_vm2, %v6324_v17  ;;  %14065 = vmatmul.mubr.msk.bf16.gmra.mrb[12].mxu0 %vm6572_vm3, %v6555_v61  ;;  %v6533_v50 = vmax.f32 %v6501_v55, 0.0  ;;  %v6464_v29 = vmul.f32 %v17127_v37, %v6425_v18  ;;  %v6502_v59 = vadd.f32 %v17134_v47, %v6463_v27 }
 0x4f1   : > { %v6326_v45 = vpop.permute.xlu0 %6325  ;;  %v6426_v6 = vld [vmem:[#allocation2 + $0xa0] sm:$0xff] }
 0x4f2   : > { %6398 = vst.msk [vmem:[#allocation2 + $0xc0] sm:$0xff] %vm6373_vm2, %v6326_v45  ;;  %v6556_v52 = vpack.c.bf16 %v6533_v50, %v6532_v16  ;;  %v6503_v51 = vadd.f32 %v17134_v47, %v6464_v29  ;;  %v6465_v39 = vmul.f32 %v17127_v37, %v6426_v6  ;;  %v6534_v24 = vmax.f32 %v6502_v59, 0.0 }
 0x4f3   : > { %v6328_v10 = vpop.permute.xlu1 %6327  ;;  %v6427_v46 = vld [vmem:[#allocation2 + $0xa8] sm:$0xff] }
 0x4f4   : > { %6399 = vst.msk [vmem:[#allocation2 + $0xc8] sm:$0xff] %vm6373_vm2, %v6328_v10  ;;  %14068 = vmatprep.mubr.msk.bf16.mxu0 %vm6572_vm3, %v6556_v52  ;;  %v6535_v48 = vmax.f32 %v6503_v51, 0.0  ;;  %v6466_v4 = vmul.f32 %v17127_v37, %v6427_v46  ;;  %v6504_v42 = vadd.f32 %v17134_v47, %v6465_v39 }
 0x4f5   : > { %v6330_v20 = vpop.permute.xlu0 %6329  ;;  %v6428_v58 = vld [vmem:[#allocation2 + $0xb0] sm:$0xff] }
 0x4f6   : > { %6400 = vst.msk [vmem:[#allocation2 + $0xd0] sm:$0xff] %vm6373_vm2, %v6330_v20  ;;  %v6557_v9 = vpack.c.bf16 %v6535_v48, %v6534_v24  ;;  %v6505_v30 = vadd.f32 %v17134_v47, %v6466_v4  ;;  %v6467_v2 = vmul.f32 %v17127_v37, %v6428_v58  ;;  %v6536_v25 = vmax.f32 %v6504_v42, 0.0  ;;  %v15025_v24 = vld [vmem:[%s19268_s12 + $0x18] sm:$0xff]   ;;  %v7420_v48 = vld [vmem:[#allocation3] sm:$0xf] }
 0x4f7   : > { %v6332_v36 = vpop.permute.xlu1 %6331  ;;  %v6429_v28 = vld [vmem:[#allocation2 + $0xb8] sm:$0xff]  ;;  %14086 = vmatprep.subr.bf16.mxu0 %v15025_v24  ;;  %v7456_v4 = vld [vmem:[#allocation3 + $0x8] sm:$0x1]  ;;  %v7473_v42 = vshrl.u32 %v7420_v48, 16  ;;  %v7476_v20 = vshll.u32 %v7420_v48, 16 }
 0x4f8   : > { %6401 = vst.msk [vmem:[#allocation2 + $0xd8] sm:$0xff] %vm6373_vm2, %v6332_v36  ;;  %14069 = vmatmul.mubr.msk.bf16.gmra.mrb[16].mxu0 %vm6572_vm3, %v6557_v9  ;;  %v6537_v22 = vmax.f32 %v6505_v30, 0.0  ;;  %v6468_v21 = vmul.f32 %v17127_v37, %v6429_v28  ;;  %v6506_v41 = vadd.f32 %v17134_v47, %v6467_v2  ;;  %v17249_v9 = vld [vmem:[%s19268_s12] sm:$0xff]   ;;  %v7492_v30 = vshll.u32 %v7456_v4, 16  ;;  %v7315_v4 = vld [vmem:[#allocation3 + $0x18] sm:$0xf] }
 0x4f9   : > { %v6334_v57 = vpop.permute.xlu0 %6333  ;;  %v6430_v62 = vld [vmem:[#allocation2 + $0xc0] sm:$0xff]  ;;  %14087 = vmatpush3.bf16.msra.mxu0 %v15025_v24  ;;  %v7475_v2 = vrot.slane %v7473_v42, 4  ;;  %v7478_v36 = vrot.slane %v7476_v20, 5 }
 0x4fa   : > { %6402 = vst.msk [vmem:[#allocation2 + $0xe0] sm:$0xff] %vm6373_vm2, %v6334_v57  ;;  %v6558_v35 = vpack.c.bf16 %v6537_v22, %v6536_v25  ;;  %v6507_v3 = vadd.f32 %v17134_v47, %v6468_v21  ;;  %v6469_v60 = vmul.f32 %v17127_v37, %v6430_v62  ;;  %v6538_v8 = vmax.f32 %v6506_v41, 0.0  ;;  %14120 = vmatprep.subr.bf16.mxu0 %v17249_v9 }
 0x4fb   : > { %v6336_v19 = vpop.permute.xlu1 %6335  ;;  %v6431_v5 = vld [vmem:[#allocation2 + $0xc8] sm:$0xff]  ;;  %v7479_v22 = vor.u32 %v7478_v36, %v7475_v2  ;;  %v7494_v41 = vrot.slane %v7492_v30, 5 }
 0x4fc   : > { %6403 = vst.msk [vmem:[#allocation2 + $0xe8] sm:$0xff] %vm6373_vm2, %v6336_v19  ;;  %14072 = vmatprep.mubr.msk.bf16.mxu0 %vm6572_vm3, %v6558_v35  ;;  %v6539_v0 = vmax.f32 %v6507_v3, 0.0  ;;  %v6470_v34 = vmul.f32 %v17127_v37, %v6431_v5  ;;  %v6508_v56 = vadd.f32 %v17134_v47, %v6469_v60  ;;  %v17260_v19 = vld [vmem:[%s19266_s10] ss:$0 sm:$0xff]  ;;  %v7308_v36 = vld [vmem:[#allocation3 + $0xc] sm:$0xf] }
 0x4fd   : > { %v6338_v14 = vpop.permute.xlu0 %6337  ;;  %v6432_v23 = vld [vmem:[#allocation2 + $0xd0] sm:$0xff]  ;;  %v7480_v57 = vrot.slane %v7479_v22, 4 }
 0x4fe   : > { %6404 = vst.msk [vmem:[#allocation2 + $0xf0] sm:$0xff] %vm6373_vm2, %v6338_v14  ;;  %v6559_v44 = vpack.c.bf16 %v6539_v0, %v6538_v8  ;;  %v6509_v49 = vadd.f32 %v17134_v47, %v6470_v34  ;;  %v6471_v15 = vmul.f32 %v17127_v37, %v6432_v23  ;;  %v6540_v40 = vmax.f32 %v6508_v56, 0.0  ;;  %v17265_v8 = vld [vmem:[%s19267_s11] ss:$0 sm:$0xff] }
 0x4ff   : > { %v6340_v38 = vpop.permute.xlu1 %6339  ;;  %v6433_v33 = vld [vmem:[#allocation2 + $0xd8] sm:$0xff] }
 0x500   : > { %6405 = vst.msk [vmem:[#allocation2 + $0xf8] sm:$0xff] %vm6373_vm2, %v6340_v38  ;;  %14073 = vmatmul.mubr.msk.bf16.gmra.mrb[20].mxu0 %vm6572_vm3, %v6559_v44  ;;  %v6541_v26 = vmax.f32 %v6509_v49, 0.0  ;;  %v6472_v63 = vmul.f32 %v17127_v37, %v6433_v33  ;;  %v6510_v32 = vadd.f32 %v17134_v47, %v6471_v15 }
 0x501   : > { %v6434_v11 = vld [vmem:[#allocation2 + $0xe0] sm:$0xff] }
 0x502   : > { %v6560_v31 = vpack.c.bf16 %v6541_v26, %v6540_v40  ;;  %v6511_v54 = vadd.f32 %v17134_v47, %v6472_v63  ;;  %v6473_v7 = vmul.f32 %v17127_v37, %v6434_v11  ;;  %v6542_v53 = vmax.f32 %v6510_v32, 0.0 }
 0x503   : > { %v6435_v43 = vld [vmem:[#allocation2 + $0xe8] sm:$0xff] }
 0x504   : > { %14076 = vmatprep.mubr.msk.bf16.mxu0 %vm6572_vm3, %v6560_v31  ;;  %v6543_v1 = vmax.f32 %v6511_v54, 0.0  ;;  %v6474_v61 = vmul.f32 %v17127_v37, %v6435_v43  ;;  %v6512_v55 = vadd.f32 %v17134_v47, %v6473_v7 }
 0x505   : > { %v6436_v27 = vld [vmem:[#allocation2 + $0xf0] sm:$0xff] }
 0x506   : > { %v6561_v17 = vpack.c.bf16 %v6543_v1, %v6542_v53  ;;  %v6513_v18 = vadd.f32 %v17134_v47, %v6474_v61  ;;  %v6475_v16 = vmul.f32 %v17127_v37, %v6436_v27  ;;  %v6544_v29 = vmax.f32 %v6512_v55, 0.0 }
 0x507   : > { %v6437_v50 = vld [vmem:[#allocation2 + $0xf8] sm:$0xff] }
 0x508   : > { %14077 = vmatmul.mubr.msk.bf16.gmra.mrb[24].mxu0 %vm6572_vm3, %v6561_v17  ;;  %v6545_v59 = vmax.f32 %v6513_v18, 0.0  ;;  %v6476_v45 = vmul.f32 %v17127_v37, %v6437_v50  ;;  %v6514_v6 = vadd.f32 %v17134_v47, %v6475_v16  ;;  %v7421_v37 = vld [vmem:[#allocation3 + $0x4] sm:$0xf] }
 0x509   : > { %v7482_v58 = vshll.u32 %v7421_v37, 16 }
 0x50a   : > { %v6562_v52 = vpack.c.bf16 %v6545_v59, %v6544_v29  ;;  %v6515_v51 = vadd.f32 %v17134_v47, %v6476_v45  ;;  %v6546_v39 = vmax.f32 %v6514_v6, 0.0  ;;  %v7486_v47 = vshrl.u32 %v7421_v37, 16 }
 0x50b   : > { %v7484_v28 = vrot.slane %v7482_v58, 5 }
 0x50c   : > { %14080 = vmatprep.mubr.msk.bf16.mxu0 %vm6572_vm3, %v6562_v52  ;;  %v6547_v10 = vmax.f32 %v6515_v51, 0.0  ;;  %v7488_v25 = vrot.slane %v7486_v47, 4 }
 0x50d   : > { %v7485_v35 = vsel %vm15590_vm6, %v7480_v57, %v7484_v28 }
 0x50e   : > { %v6563_v46 = vpack.c.bf16 %v6547_v10, %v6546_v39  ;;  %v7489_v21 = vor.u32 %v7488_v25, %v7484_v28 }
 0x510   : > { %14081 = vmatmul.mubr.msk.bf16.gmra.mrb[28].mxu0 %vm6572_vm3, %v6563_v46  ;;  %v7490_v62 = vrot.slane %v7489_v21, 4 }
 0x512   : > { %v7495_v3 = vsel %vm15590_vm6, %v7490_v62, %v7494_v41  ;;  %v7319_v41 = vld [vmem:[#allocation3 + $0x20] sm:$0x1] }
 0x513   : > { %v12881_v60 = vcombine.low %v7485_v35, %v7495_v3 }
 0x515   : > { %14088 = vmatprep.mubr.msk.bf16.mxu0 %vm2084_vm7, %v12881_v60 }
 0x5aa   : > { %v14054_v5 = vpop.f32.mrb[0].mxu0 }
 0x5ab   : > { %v6791_v0 = vmul.f32 %v14054_v5, %v17260_v19  ;;  %v6655_v34 = vpop.f32.mrb[1].mxu0 }
 0x5ac   : > { %v6789_v56 = vmul.f32 %v17260_v19, %v6655_v34  ;;  %v14055_v14 = vpop.f32.mrb[2].mxu0  ;;  %v7312_v34 = vld [vmem:[#allocation3 + $0x14] sm:$0x1] }
 0x5ad   : > { %v6830_v23 = vadd.f32 %v17265_v8, %v6791_v0  ;;  %v6792_v44 = vmul.f32 %v14055_v14, %v17260_v19  ;;  %v6658_v49 = vpop.f32.mrb[3].mxu0 }
 0x5ae   : > { %v6828_v15 = vadd.f32 %v17265_v8, %v6789_v56  ;;  %v6790_v38 = vmul.f32 %v17260_v19, %v6658_v49 }
 0x5af   : > { %v6862_v33 = vmax.f32 %v6830_v23, 0.0  ;;  %v6831_v40 = vadd.f32 %v17265_v8, %v6792_v44 }
 0x5b0   : > { %v6860_v26 = vmax.f32 %v6828_v15, 0.0  ;;  %v6829_v63 = vadd.f32 %v17265_v8, %v6790_v38 }
 0x5b1   : > { %v13303_v32 = vpack.c.bf16 %v6862_v33, %v6862_v33  ;;  %v6863_v11 = vmax.f32 %v6831_v40, 0.0 }
 0x5b2   : > { %v13301_v31 = vpack.c.bf16 %v6860_v26, %v6860_v26  ;;  %v6861_v54 = vmax.f32 %v6829_v63, 0.0 }
 0x5b3   : > { %v7006_v7 = vshrl.u32 %v13303_v32, 16  ;;  %v7009_v43 = vshll.u32 %v13303_v32, 16  ;;  %v13304_v53 = vpack.c.bf16 %v6863_v11, %v6863_v11  ;;  %v14058_v1 = vpop.f32.mrb[4].mxu0 }
 0x5b4   : > { %v6989_v61 = vshrl.u32 %v13301_v31, 16  ;;  %v6992_v55 = vshll.u32 %v13301_v31, 16  ;;  %v13302_v27 = vpack.c.bf16 %v6861_v54, %v6861_v54  ;;  %v6795_v17 = vmul.f32 %v14058_v1, %v17260_v19  ;;  %v6671_v18 = vpop.f32.mrb[5].mxu0 }
 0x5b5   : > { %v7008_v16 = vrot.slane %v7006_v7, 7  ;;  %v7014_v50 = vshrl.u32 %v13304_v53, 16  ;;  %v7017_v29 = vshll.u32 %v13304_v53, 16  ;;  %v6793_v59 = vmul.f32 %v17260_v19, %v6671_v18  ;;  %v14059_v45 = vpop.f32.mrb[6].mxu0 }
 0x5b6   : > { %v6991_v6 = vrot.slane %v6989_v61, 7  ;;  %v6997_v52 = vshrl.u32 %v13302_v27, 16  ;;  %v7000_v51 = vshll.u32 %v13302_v27, 16  ;;  %v6834_v39 = vadd.f32 %v17265_v8, %v6795_v17  ;;  %v6674_v10 = vpop.f32.mrb[7].mxu0 }
 0x5b7   : > { %v7011_v46 = vor.u32 %v7009_v43, %v7008_v16  ;;  %v7012_v24 = vrot.slane %v7008_v16, 4  ;;  %v7016_v48 = vrot.slane %v7014_v50, 7  ;;  %v6832_v37 = vadd.f32 %v17265_v8, %v6793_v59 }
 0x5b8   : > { %v6994_v42 = vor.u32 %v6992_v55, %v6991_v6  ;;  %v6995_v20 = vrot.slane %v6991_v6, 4  ;;  %v6999_v58 = vrot.slane %v6997_v52, 7  ;;  %v6866_v47 = vmax.f32 %v6834_v39, 0.0  ;;  %v7322_v39 = vld [vmem:[#allocation3 + $0x24] sm:$0xf] }
 0x5b9   : > { %v7316_v2 = vsel %vm15628_vm11, %v7011_v46, %v7315_v4  ;;  %v7019_v28 = vor.u32 %v7017_v29, %v7016_v48  ;;  %v7021_v25 = vrot.slane %v7016_v48, 4  ;;  %v6864_v22 = vmax.f32 %v6832_v37, 0.0  ;;  %v7329_v29 = vld [vmem:[#allocation3 + $0x30] sm:$0xf] }
 0x5ba   : > { %7317 = vst [vmem:[#allocation3 + $0x18] sm:$0xf] %v7316_v2  ;;  %v7309_v21 = vsel %vm15628_vm11, %v6994_v42, %v7308_v36  ;;  %v7002_v57 = vor.u32 %v7000_v51, %v6999_v58  ;;  %v7004_v62 = vrot.slane %v6999_v58, 4  ;;  %v13307_v35 = vpack.c.bf16 %v6866_v47, %v6866_v47 }
 0x5bb   : > { %7310 = vst [vmem:[#allocation3 + $0xc] sm:$0xf] %v7309_v21  ;;  %v7020_v60 = vsel %vm15635_vm12, %v7012_v24, %v7019_v28  ;;  %v7320_v0 = vsel %vm15641_vm13, %v7021_v25, %v7319_v41  ;;  %v13305_v56 = vpack.c.bf16 %v6864_v22, %v6864_v22  ;;  %v6796_v14 = vmul.f32 %v14059_v45, %v17260_v19  ;;  %v14062_v23 = vpop.f32.mrb[8].mxu0 }
 0x5bc   : > { %7318 = vst.msk [vmem:[#allocation3 + $0x1c] sm:$0xf] %vm440_vm1, %v7020_v60  ;;  %7321 = vst [vmem:[#allocation3 + $0x20] sm:$0x1] %v7320_v0  ;;  %v7003_v44 = vsel %vm15635_vm12, %v6995_v20, %v7002_v57  ;;  %v7313_v49 = vsel %vm15641_vm13, %v7004_v62, %v7312_v34  ;;  %v7040_v15 = vshrl.u32 %v13307_v35, 16  ;;  %v7043_v38 = vshll.u32 %v13307_v35, 16 }
 0x5bd   : > { %v6687_v33 = vpop.f32.mrb[9].mxu0  ;;  %7311 = vst.msk [vmem:[#allocation3 + $0x10] sm:$0xf] %vm440_vm1, %v7003_v44  ;;  %7314 = vst [vmem:[#allocation3 + $0x14] sm:$0x1] %v7313_v49  ;;  %v7023_v40 = vshrl.u32 %v13305_v56, 16  ;;  %v6835_v63 = vadd.f32 %v17265_v8, %v6796_v14  ;;  %v6794_v32 = vmul.f32 %v17260_v19, %v6674_v10  ;;  %v6799_v54 = vmul.f32 %v14062_v23, %v17260_v19 }
 0x5be   : > { %v7026_v26 = vshll.u32 %v13305_v56, 16  ;;  %v14063_v11 = vpop.f32.mrb[10].mxu0  ;;  %v7042_v31 = vrot.slane %v7040_v15, 7  ;;  %v6797_v7 = vmul.f32 %v17260_v19, %v6687_v33  ;;  %v7333_v62 = vld [vmem:[#allocation3 + $0x38] sm:$0x1] }
 0x5bf   : > { %v6800_v43 = vmul.f32 %v14063_v11, %v17260_v19  ;;  %v6690_v53 = vpop.f32.mrb[11].mxu0  ;;  %v17299_v1 = vrot.slane %v7023_v40, 7  ;;  %v6867_v61 = vmax.f32 %v6835_v63, 0.0  ;;  %v6833_v55 = vadd.f32 %v17265_v8, %v6794_v32 }
 0x5c0   : > { %v6798_v27 = vmul.f32 %v17260_v19, %v6690_v53  ;;  %v7045_v17 = vor.u32 %v7043_v38, %v7042_v31  ;;  %v7046_v18 = vrot.slane %v7042_v31, 4  ;;  %v6838_v16 = vadd.f32 %v17265_v8, %v6799_v54  ;;  %v7326_v31 = vld [vmem:[#allocation3 + $0x2c] sm:$0x1] }
 0x5c1   : > { %v6836_v50 = vadd.f32 %v17265_v8, %v6797_v7  ;;  %v7028_v59 = vor.u32 %v7026_v26, %v17299_v1  ;;  %v7029_v45 = vrot.slane %v17299_v1, 4  ;;  %v13308_v6 = vpack.c.bf16 %v6867_v61, %v6867_v61 }
 0x5c2   : > { %v6865_v52 = vmax.f32 %v6833_v55, 0.0  ;;  %v7330_v51 = vsel %vm15628_vm11, %v7045_v17, %v7329_v29  ;;  %v6870_v10 = vmax.f32 %v6838_v16, 0.0  ;;  %v6839_v24 = vadd.f32 %v17265_v8, %v6800_v43  ;;  %v7343_v43 = vld [vmem:[#allocation3 + $0x48] sm:$0xf] }
 0x5c3   : > { %v6868_v46 = vmax.f32 %v6836_v50, 0.0  ;;  %7331 = vst [vmem:[#allocation3 + $0x30] sm:$0xf] %v7330_v51  ;;  %v7323_v48 = vsel %vm15628_vm11, %v7028_v59, %v7322_v39  ;;  %v7048_v37 = vshrl.u32 %v13308_v6, 16  ;;  %v7051_v4 = vshll.u32 %v13308_v6, 16  ;;  %v14066_v20 = vpop.f32.mrb[12].mxu0 }
 0x5c4   : > { %v13306_v42 = vpack.c.bf16 %v6865_v52, %v6865_v52  ;;  %7324 = vst [vmem:[#allocation3 + $0x24] sm:$0xf] %v7323_v48  ;;  %v13311_v58 = vpack.c.bf16 %v6870_v10, %v6870_v10  ;;  %v6871_v2 = vmax.f32 %v6839_v24, 0.0  ;;  %v6837_v36 = vadd.f32 %v17265_v8, %v6798_v27  ;;  %v6703_v28 = vpop.f32.mrb[13].mxu0  ;;  %v7336_v27 = vld [vmem:[#allocation3 + $0x3c] sm:$0xf] }
 0x5c5   : > { %v13309_v47 = vpack.c.bf16 %v6868_v46, %v6868_v46  ;;  %v7050_v25 = vrot.slane %v7048_v37, 7  ;;  %v6803_v41 = vmul.f32 %v14066_v20, %v17260_v19  ;;  %v14067_v57 = vpop.f32.mrb[14].mxu0  ;;  %v6801_v51 = vmul.f32 %v17260_v19, %v6703_v28 }
 0x5c6   : > { %v7031_v22 = vshrl.u32 %v13306_v42, 16  ;;  %v7034_v21 = vshll.u32 %v13306_v42, 16  ;;  %v7074_v35 = vshrl.u32 %v13311_v58, 16  ;;  %v7077_v60 = vshll.u32 %v13311_v58, 16  ;;  %v6706_v56 = vpop.f32.mrb[15].mxu0 }
 0x5c7   : > { %v7057_v0 = vshrl.u32 %v13309_v47, 16  ;;  %v7060_v34 = vshll.u32 %v13309_v47, 16  ;;  %v7053_v14 = vor.u32 %v7051_v4, %v7050_v25  ;;  %v7055_v23 = vrot.slane %v7050_v25, 4 }
 0x5c8   : > { %v7033_v44 = vrot.slane %v7031_v22, 7  ;;  %v13312_v49 = vpack.c.bf16 %v6871_v2, %v6871_v2  ;;  %v7076_v15 = vrot.slane %v7074_v35, 7  ;;  %v6869_v33 = vmax.f32 %v6837_v36, 0.0  ;;  %v7347_v36 = vld [vmem:[#allocation3 + $0x50] sm:$0x1] }
 0x5c9   : > { %v17314_v38 = vrot.slane %v7057_v0, 7  ;;  %v6842_v40 = vadd.f32 %v17265_v8, %v6803_v41  ;;  %v7054_v26 = vsel %vm15635_vm12, %v7046_v18, %v7053_v14  ;;  %v7334_v63 = vsel %vm15641_vm13, %v7055_v23, %v7333_v62  ;;  %v7340_v14 = vld [vmem:[#allocation3 + $0x44] sm:$0x1] }
 0x5ca   : > { %v7036_v32 = vor.u32 %v7034_v21, %v7033_v44  ;;  %v7038_v11 = vrot.slane %v7033_v44, 4  ;;  %7332 = vst.msk [vmem:[#allocation3 + $0x34] sm:$0xf] %vm440_vm1, %v7054_v26  ;;  %7335 = vst [vmem:[#allocation3 + $0x38] sm:$0x1] %v7334_v63  ;;  %v7079_v54 = vor.u32 %v7077_v60, %v7076_v15  ;;  %v7080_v7 = vrot.slane %v7076_v15, 4 }
 0x5cb   : > { %v7062_v53 = vor.u32 %v7060_v34, %v17314_v38  ;;  %v7063_v1 = vrot.slane %v17314_v38, 4  ;;  %v7082_v17 = vshrl.u32 %v13312_v49, 16  ;;  %v7085_v18 = vshll.u32 %v13312_v49, 16  ;;  %v14070_v16 = vpop.f32.mrb[16].mxu0 }
 0x5cc   : > { %v7037_v61 = vsel %vm15635_vm12, %v7029_v45, %v7036_v32  ;;  %v7327_v55 = vsel %vm15641_vm13, %v7038_v11, %v7326_v31  ;;  %v7344_v50 = vsel %vm15628_vm11, %v7079_v54, %v7343_v43  ;;  %v13310_v59 = vpack.c.bf16 %v6869_v33, %v6869_v33  ;;  %v6719_v52 = vpop.f32.mrb[17].mxu0  ;;  %v7357_v32 = vld [vmem:[#allocation3 + $0x60] sm:$0xf] }
 0x5cd   : > { %7325 = vst.msk [vmem:[#allocation3 + $0x28] sm:$0xf] %vm440_vm1, %v7037_v61  ;;  %7328 = vst [vmem:[#allocation3 + $0x2c] sm:$0x1] %v7327_v55  ;;  %v7337_v29 = vsel %vm15628_vm11, %v7062_v53, %v7336_v27  ;;  %v6874_v6 = vmax.f32 %v6842_v40, 0.0  ;;  %v7084_v45 = vrot.slane %v7082_v17, 7  ;;  %v6804_v39 = vmul.f32 %v14067_v57, %v17260_v19 }
 0x5ce   : > { %7345 = vst [vmem:[#allocation3 + $0x48] sm:$0xf] %v7344_v50  ;;  %7338 = vst [vmem:[#allocation3 + $0x3c] sm:$0xf] %v7337_v29  ;;  %v6802_v10 = vmul.f32 %v17260_v19, %v6706_v56  ;;  %v14071_v46 = vpop.f32.mrb[18].mxu0  ;;  %v7065_v24 = vshrl.u32 %v13310_v59, 16  ;;  %v6807_v4 = vmul.f32 %v14070_v16, %v17260_v19  ;;  %v6840_v47 = vadd.f32 %v17265_v8, %v6801_v51 }
 0x5cf   : > { %v7068_v48 = vshll.u32 %v13310_v59, 16  ;;  %v13315_v37 = vpack.c.bf16 %v6874_v6, %v6874_v6  ;;  %v6722_v42 = vpop.f32.mrb[19].mxu0  ;;  %v7087_v20 = vor.u32 %v7085_v18, %v7084_v45  ;;  %v7089_v58 = vrot.slane %v7084_v45, 4  ;;  %v7350_v59 = vld [vmem:[#allocation3 + $0x54] sm:$0xf] }
 0x5d0   : > { %v6843_v2 = vadd.f32 %v17265_v8, %v6804_v39  ;;  %v7067_v25 = vrot.slane %v7065_v24, 7  ;;  %v6841_v21 = vadd.f32 %v17265_v8, %v6802_v10  ;;  %v6872_v62 = vmax.f32 %v6840_v47, 0.0 }
 0x5d1   : > { %v7108_v28 = vshrl.u32 %v13315_v37, 16  ;;  %v7111_v22 = vshll.u32 %v13315_v37, 16  ;;  %v7088_v41 = vsel %vm15635_vm12, %v7080_v7, %v7087_v20  ;;  %v7348_v57 = vsel %vm15641_vm13, %v7089_v58, %v7347_v36  ;;  %v7361_v37 = vld [vmem:[#allocation3 + $0x68] sm:$0x1] }
 0x5d2   : > { %v6875_v35 = vmax.f32 %v6843_v2, 0.0  ;;  %7346 = vst.msk [vmem:[#allocation3 + $0x4c] sm:$0xf] %vm440_vm1, %v7088_v41  ;;  %7349 = vst [vmem:[#allocation3 + $0x50] sm:$0x1] %v7348_v57  ;;  %v7070_v60 = vor.u32 %v7068_v48, %v7067_v25  ;;  %v7072_v0 = vrot.slane %v7067_v25, 4  ;;  %v13313_v23 = vpack.c.bf16 %v6872_v62, %v6872_v62 }
 0x5d3   : > { %v7110_v34 = vrot.slane %v7108_v28, 7  ;;  %v6873_v56 = vmax.f32 %v6841_v21, 0.0  ;;  %v6846_v49 = vadd.f32 %v17265_v8, %v6807_v4  ;;  %v6805_v15 = vmul.f32 %v17260_v19, %v6719_v52  ;;  %v17347_v38 = vpop.f32.mrb[20].mxu0  ;;  %v7422_v4 = vld [vmem:[#allocation3 + $0xc] sm:$0xf] }
 0x5d4   : > { %v13316_v44 = vpack.c.bf16 %v6875_v35, %v6875_v35  ;;  %v7071_v33 = vsel %vm15635_vm12, %v7063_v1, %v7070_v60  ;;  %v7341_v40 = vsel %vm15641_vm13, %v7072_v0, %v7340_v14  ;;  %v17353_v11 = vpop.f32.mrb[21].mxu0  ;;  %v7091_v31 = vshrl.u32 %v13313_v23, 16  ;;  %v7354_v41 = vld [vmem:[#allocation3 + $0x5c] sm:$0x1]  ;;  %v7371_v60 = vld [vmem:[#allocation3 + $0x78] sm:$0xf] }
 0x5d5   : > { %v7113_v26 = vor.u32 %v7111_v22, %v7110_v34  ;;  %v7114_v63 = vrot.slane %v7110_v34, 4  ;;  %7339 = vst.msk [vmem:[#allocation3 + $0x40] sm:$0xf] %vm440_vm1, %v7071_v33  ;;  %7342 = vst [vmem:[#allocation3 + $0x44] sm:$0x1] %v7341_v40  ;;  %v7094_v54 = vshll.u32 %v13313_v23, 16  ;;  %v13314_v61 = vpack.c.bf16 %v6873_v56, %v6873_v56 }
 0x5d6   : > { %v7116_v7 = vshrl.u32 %v13316_v44, 16  ;;  %v7119_v43 = vshll.u32 %v13316_v44, 16  ;;  %v17356_v53 = vpop.f32.mrb[22].mxu0  ;;  %v6878_v55 = vmax.f32 %v6846_v49, 0.0  ;;  %v6844_v27 = vadd.f32 %v17265_v8, %v6805_v15  ;;  %v7423_v14 = vld [vmem:[#allocation3 + $0x10] sm:$0xf] }
 0x5d7   : > { %v7358_v1 = vsel %vm15628_vm11, %v7113_v26, %v7357_v32  ;;  %v17361_v17 = vpop.f32.mrb[23].mxu0  ;;  %v7093_v18 = vrot.slane %v7091_v31, 7  ;;  %v6808_v50 = vmul.f32 %v14071_v46, %v17260_v19  ;;  %v6806_v29 = vmul.f32 %v17260_v19, %v6722_v42  ;;  %v7457_v26 = vld [vmem:[#allocation3 + $0x14] sm:$0x1] }
 0x5d8   : > { %7359 = vst [vmem:[#allocation3 + $0x60] sm:$0xf] %v7358_v1  ;;  %v7118_v16 = vrot.slane %v7116_v7, 7  ;;  %v7099_v6 = vshrl.u32 %v13314_v61, 16  ;;  %v7102_v52 = vshll.u32 %v13314_v61, 16  ;;  %v13319_v45 = vpack.c.bf16 %v6878_v55, %v6878_v55 }
 0x5d9   : > { %v6876_v51 = vmax.f32 %v6844_v27, 0.0  ;;  %v7096_v39 = vor.u32 %v7094_v54, %v7093_v18  ;;  %v7097_v10 = vrot.slane %v7093_v18, 4  ;;  %v6847_v25 = vadd.f32 %v17265_v8, %v6808_v50  ;;  %v7364_v61 = vld [vmem:[#allocation3 + $0x6c] sm:$0xf] }
 0x5da   : > { %v7121_v24 = vor.u32 %v7119_v43, %v7118_v16  ;;  %v7123_v48 = vrot.slane %v7118_v16, 4  ;;  %v7101_v20 = vrot.slane %v7099_v6, 7  ;;  %v7142_v58 = vshrl.u32 %v13319_v45, 16 }
 0x5db   : > { %v7145_v47 = vshll.u32 %v13319_v45, 16  ;;  %v13317_v2 = vpack.c.bf16 %v6876_v51, %v6876_v51  ;;  %v7351_v46 = vsel %vm15628_vm11, %v7096_v39, %v7350_v59  ;;  %v17372_v28 = vpop.f32.mrb[24].mxu0  ;;  %v6879_v34 = vmax.f32 %v6847_v25, 0.0  ;;  %v7375_v25 = vld [vmem:[#allocation3 + $0x80] sm:$0x1] }
 0x5dc   : > { %v7122_v42 = vsel %vm15635_vm12, %v7114_v63, %v7121_v24  ;;  %v7362_v36 = vsel %vm15641_vm13, %v7123_v48, %v7361_v37  ;;  %7352 = vst [vmem:[#allocation3 + $0x54] sm:$0xf] %v7351_v46  ;;  %v7104_v22 = vor.u32 %v7102_v52, %v7101_v20  ;;  %v7106_v21 = vrot.slane %v7101_v20, 4  ;;  %v17375_v35 = vpop.f32.mrb[25].mxu0  ;;  %v7424_v63 = vld [vmem:[#allocation3 + $0x18] sm:$0xf] }
 0x5dd   : > { %7360 = vst.msk [vmem:[#allocation3 + $0x64] sm:$0xf] %vm440_vm1, %v7122_v42  ;;  %7363 = vst [vmem:[#allocation3 + $0x68] sm:$0x1] %v7362_v36  ;;  %v7144_v57 = vrot.slane %v7142_v58, 7  ;;  %v7125_v62 = vshrl.u32 %v13317_v2, 16  ;;  %v6845_v56 = vadd.f32 %v17265_v8, %v6806_v29  ;;  %v13320_v54 = vpack.c.bf16 %v6879_v34, %v6879_v34 }
 0x5de   : > { %v7128_v0 = vshll.u32 %v13317_v2, 16  ;;  %v7497_v23 = vshrl.u32 %v7422_v4, 16  ;;  %v17378_v44 = vpop.f32.mrb[26].mxu0  ;;  %v7105_v49 = vsel %vm15635_vm12, %v7097_v10, %v7104_v22  ;;  %v7355_v15 = vsel %vm15641_vm13, %v7106_v21, %v7354_v41  ;;  %v7425_v2 = vld [vmem:[#allocation3 + $0x1c] sm:$0xf] }
 0x5df   : > { %v7147_v33 = vor.u32 %v7145_v47, %v7144_v57  ;;  %v7148_v40 = vrot.slane %v7144_v57, 4  ;;  %v17384_v32 = vpop.f32.mrb[27].mxu0  ;;  %7353 = vst.msk [vmem:[#allocation3 + $0x58] sm:$0xf] %vm440_vm1, %v7105_v49  ;;  %7356 = vst [vmem:[#allocation3 + $0x5c] sm:$0x1] %v7355_v15 }
 0x5e0   : > { %v7127_v31 = vrot.slane %v7125_v62, 7  ;;  %v6877_v7 = vmax.f32 %v6845_v56, 0.0  ;;  %v7499_v43 = vrot.slane %v7497_v23, 4  ;;  %v7500_v55 = vshll.u32 %v7422_v4, 16  ;;  %v7368_v23 = vld [vmem:[#allocation3 + $0x74] sm:$0x1] }
 0x5e1   : > { %v7372_v1 = vsel %vm15628_vm11, %v7147_v33, %v7371_v60  ;;  %v7506_v27 = vshll.u32 %v7423_v14, 16  ;;  %v7510_v18 = vshrl.u32 %v7423_v14, 16  ;;  %v7150_v29 = vshrl.u32 %v13320_v54, 16  ;;  %v7458_v49 = vld [vmem:[#allocation3 + $0x20] sm:$0x1] }
 0x5e2   : > { %7373 = vst [vmem:[#allocation3 + $0x78] sm:$0xf] %v7372_v1  ;;  %v7130_v16 = vor.u32 %v7128_v0, %v7127_v31  ;;  %v7131_v50 = vrot.slane %v7127_v31, 4  ;;  %v7153_v59 = vshll.u32 %v13320_v54, 16  ;;  %v13318_v6 = vpack.c.bf16 %v6877_v7, %v6877_v7  ;;  %v7426_v7 = vld [vmem:[#allocation3 + $0x24] sm:$0xf] }
 0x5e3   : > { %v7502_v52 = vrot.slane %v7500_v55, 5  ;;  %v7508_v45 = vrot.slane %v7506_v27, 5  ;;  %v7512_v51 = vrot.slane %v7510_v18, 4  ;;  %v7152_v10 = vrot.slane %v7150_v29, 7  ;;  %v17391_v37 = vpop.f32.mrb[28].mxu0  ;;  %v15027_v55 = vld [vmem:[%s19268_s12 + $0x8] sm:$0xff]  }
 0x5e4   : > { %v7365_v39 = vsel %vm15628_vm11, %v7130_v16, %v7364_v61  ;;  %v7516_v24 = vshll.u32 %v7457_v26, 16  ;;  %v7521_v48 = vshrl.u32 %v7424_v63, 16  ;;  %v7133_v4 = vshrl.u32 %v13318_v6, 16  ;;  %v17393_v46 = vpop.f32.mrb[29].mxu0 }
 0x5e5   : > { %7366 = vst [vmem:[#allocation3 + $0x6c] sm:$0xf] %v7365_v39  ;;  %v7136_v20 = vshll.u32 %v13318_v6, 16  ;;  %v7503_v58 = vor.u32 %v7502_v52, %v7499_v43  ;;  %v7513_v47 = vor.u32 %v7512_v51, %v7508_v45  ;;  %v7155_v42 = vor.u32 %v7153_v59, %v7152_v10  ;;  %v17395_v41 = vpop.f32.mrb[30].mxu0 }
 0x5e6   : > { %v7157_v36 = vrot.slane %v7152_v10, 4  ;;  %v7518_v22 = vrot.slane %v7516_v24, 5  ;;  %v7523_v21 = vrot.slane %v7521_v48, 4  ;;  %v7135_v57 = vrot.slane %v7133_v4, 7  ;;  %v17397_v34 = vpop.f32.mrb[31].mxu0 }
 0x5e7   : > { %v7504_v62 = vrot.slane %v7503_v58, 4  ;;  %v7514_v60 = vrot.slane %v7513_v47, 4  ;;  %v7524_v0 = vshll.u32 %v7424_v63, 16  ;;  %v7156_v56 = vsel %vm15635_vm12, %v7148_v40, %v7155_v42  ;;  %v17432_v10 = vld [vmem:[#allocation3 + $0x28] sm:$0xf] }
 0x5e8   : > { %v7376_v14 = vsel %vm15641_vm13, %v7157_v36, %v7375_v25  ;;  %v7530_v15 = vshll.u32 %v7425_v2, 16  ;;  %v7534_v33 = vshrl.u32 %v7425_v2, 16  ;;  %7374 = vst.msk [vmem:[#allocation3 + $0x7c] sm:$0xf] %vm440_vm1, %v7156_v56  ;;  %v7138_v26 = vor.u32 %v7136_v20, %v7135_v57 }
 0x5e9   : > { %7377 = vst [vmem:[#allocation3 + $0x80] sm:$0x1] %v7376_v14  ;;  %v7140_v31 = vrot.slane %v7135_v57, 4  ;;  %v7509_v63 = vsel %vm15590_vm6, %v7504_v62, %v7508_v45  ;;  %v7519_v54 = vsel %vm15590_vm6, %v7514_v60, %v7518_v22  ;;  %v7526_v43 = vrot.slane %v7524_v0, 5  ;;  %v17426_v45 = vld [vmem:[%s19268_s12 + $0x20] sm:$0xff]  }
 0x5ea   : > { %v12882_v40 = vcombine.low %v7509_v63, %v7519_v54  ;;  %v7532_v1 = vrot.slane %v7530_v15, 5  ;;  %v7536_v61 = vrot.slane %v7534_v33, 4  ;;  %v7139_v27 = vsel %vm15635_vm12, %v7131_v50, %v7138_v26  ;;  %v7459_v15 = vld [vmem:[#allocation3 + $0x2c] sm:$0x1] }
 0x5eb   : > { %v7369_v18 = vsel %vm15641_vm13, %v7140_v31, %v7368_v23  ;;  %v7540_v16 = vshll.u32 %v7458_v49, 16  ;;  %v6811_v29 = vmul.f32 %v17347_v38, %v17260_v19  ;;  %7367 = vst.msk [vmem:[#allocation3 + $0x70] sm:$0xf] %vm440_vm1, %v7139_v27  ;;  %v7527_v59 = vor.u32 %v7526_v43, %v7523_v21 }
 0x5ec   : > { %7370 = vst [vmem:[#allocation3 + $0x74] sm:$0x1] %v7369_v18  ;;  %14089 = vmatmul.mubr.msk.bf16.vlgmr.msra.gmra.mrb[32].mxu0 %vm2084_vm7, %v12882_v40  ;;  %v7537_v6 = vor.u32 %v7536_v61, %v7532_v1  ;;  %v6809_v52 = vmul.f32 %v17260_v19, %v17353_v11  ;;  %v6812_v50 = vmul.f32 %v17356_v53, %v17260_v19  ;;  %v7545_v24 = vshrl.u32 %v7426_v7, 16 }
 0x5ed   : > { %v7542_v51 = vrot.slane %v7540_v16, 5  ;;  %14121 = vmatpush3.bf16.msra.mxu0 %v17249_v9  ;;  %v6850_v38 = vadd.f32 %v17265_v8, %v6811_v29  ;;  %v6810_v39 = vmul.f32 %v17260_v19, %v17361_v17  ;;  %v7528_v11 = vrot.slane %v7527_v59, 4  ;;  %v7385_v59 = vld [vmem:[#allocation3 + $0x90] sm:$0xf] }
 0x5ee   : > { %v7538_v48 = vrot.slane %v7537_v6, 4  ;;  %v6848_v53 = vadd.f32 %v17265_v8, %v6809_v52  ;;  %v6851_v4 = vadd.f32 %v17265_v8, %v6812_v50  ;;  %14122 = vmatprep.subr.bf16.mxu0 %v15027_v55  ;;  %v7547_v47 = vrot.slane %v7545_v24, 4 }
 0x5ef   : > { %v6882_v20 = vmax.f32 %v6850_v38, 0.0  ;;  %v6849_v58 = vadd.f32 %v17265_v8, %v6810_v39  ;;  %v7548_v9 = vshll.u32 %v7426_v7, 16  ;;  %v7533_v2 = vsel %vm15590_vm6, %v7528_v11, %v7532_v1  ;;  %v7378_v38 = vld [vmem:[#allocation3 + $0x84] sm:$0xf]  ;;  %v17445_v11 = vld [vmem:[#allocation3 + $0x30] sm:$0xf] }
 0x5f0   : > { %v7543_v17 = vsel %vm15590_vm6, %v7538_v48, %v7542_v51  ;;  %v6880_v42 = vmax.f32 %v6848_v53, 0.0  ;;  %v6883_v36 = vmax.f32 %v6851_v4, 0.0  ;;  %v7554_v0 = vshll.u32 %v17432_v10, 16  ;;  %v7389_v53 = vld [vmem:[#allocation3 + $0x98] sm:$0x1] }
 0x5f1   : > { %v12883_v25 = vcombine.low %v7533_v2, %v7543_v17  ;;  %v13323_v22 = vpack.c.bf16 %v6882_v20, %v6882_v20  ;;  %v6881_v21 = vmax.f32 %v6849_v58, 0.0  ;;  %v7550_v57 = vrot.slane %v7548_v9, 5  ;;  %14123 = vmatpush3.bf16.msra.mxu0 %v15027_v55 }
 0x5f2   : > { %v13321_v62 = vpack.c.bf16 %v6880_v42, %v6880_v42  ;;  %v13324_v60 = vpack.c.bf16 %v6883_v36, %v6883_v36  ;;  %v7558_v56 = vshrl.u32 %v17432_v10, 16  ;;  %14156 = vmatprep.subr.bf16.mxu0 %v17426_v45  ;;  %v7556_v27 = vrot.slane %v7554_v0, 5  ;;  %v7382_v42 = vld [vmem:[#allocation3 + $0x8c] sm:$0x1] }
 0x5f3   : > { %14092 = vmatprep.mubr.msk.bf16.mxu0 %vm2084_vm7, %v12883_v25  ;;  %v7176_v14 = vshrl.u32 %v13323_v22, 16  ;;  %v7179_v23 = vshll.u32 %v13323_v22, 16  ;;  %v13322_v49 = vpack.c.bf16 %v6881_v21, %v6881_v21  ;;  %v7551_v33 = vor.u32 %v7550_v57, %v7547_v47  ;;  %v17451_v47 = vld [vmem:[#allocation3 + $0x34] sm:$0xf]  ;;  %v7460_v25 = vld [vmem:[#allocation3 + $0x38] sm:$0x1] }
 0x5f4   : > { %v7159_v26 = vshrl.u32 %v13321_v62, 16  ;;  %v7162_v31 = vshll.u32 %v13321_v62, 16  ;;  %v7184_v63 = vshrl.u32 %v13324_v60, 16  ;;  %v7187_v54 = vshll.u32 %v13324_v60, 16 }
 0x5f5   : > { %v7178_v7 = vrot.slane %v7176_v14, 7  ;;  %v7167_v40 = vshrl.u32 %v13322_v49, 16  ;;  %v7170_v43 = vshll.u32 %v13322_v49, 16  ;;  %v7552_v1 = vrot.slane %v7551_v33, 4 }
 0x5f6   : > { %v7161_v61 = vrot.slane %v7159_v26, 7  ;;  %v7186_v55 = vrot.slane %v7184_v63, 7  ;;  %v7560_v18 = vrot.slane %v7558_v56, 4  ;;  %v7564_v52 = vshll.u32 %v7459_v15, 16 }
 0x5f7   : > { %v7181_v16 = vor.u32 %v7179_v23, %v7178_v7  ;;  %v7182_v29 = vrot.slane %v7178_v7, 4  ;;  %v7169_v6 = vrot.slane %v7167_v40, 7  ;;  %v7557_v58 = vsel %vm15590_vm6, %v7552_v1, %v7556_v27  ;;  %v17475_v7 = vld [vmem:[#allocation3 + $0x3c] sm:$0xf] }
 0x5f8   : > { %v7164_v50 = vor.u32 %v7162_v31, %v7161_v61  ;;  %v7165_v51 = vrot.slane %v7161_v61, 4  ;;  %v7189_v39 = vor.u32 %v7187_v54, %v7186_v55  ;;  %v7191_v24 = vrot.slane %v7186_v55, 4 }
 0x5f9   : > { %v7386_v48 = vsel %vm15628_vm11, %v7181_v16, %v7385_v59  ;;  %v7172_v4 = vor.u32 %v7170_v43, %v7169_v6  ;;  %v7174_v20 = vrot.slane %v7169_v6, 4  ;;  %v7561_v36 = vor.u32 %v7560_v18, %v7556_v27 }
 0x5fa   : > { %7387 = vst [vmem:[#allocation3 + $0x90] sm:$0xf] %v7386_v48  ;;  %v7379_v9 = vsel %vm15628_vm11, %v7164_v50, %v7378_v38  ;;  %v7190_v2 = vsel %vm15635_vm12, %v7182_v29, %v7189_v39  ;;  %v7390_v17 = vsel %vm15641_vm13, %v7191_v24, %v7389_v53  ;;  %v7566_v57 = vrot.slane %v7564_v52, 5 }
 0x5fb   : > { %7380 = vst [vmem:[#allocation3 + $0x84] sm:$0xf] %v7379_v9  ;;  %7388 = vst.msk [vmem:[#allocation3 + $0x94] sm:$0xf] %vm440_vm1, %v7190_v2  ;;  %v7173_v22 = vsel %vm15635_vm12, %v7165_v51, %v7172_v4  ;;  %v7383_v21 = vsel %vm15641_vm13, %v7174_v20, %v7382_v42  ;;  %v7569_v62 = vshrl.u32 %v17445_v11, 16  ;;  %v7562_v60 = vrot.slane %v7561_v36, 4 }
 0x5fc   : > { %7391 = vst [vmem:[#allocation3 + $0x98] sm:$0x1] %v7390_v17  ;;  %7381 = vst.msk [vmem:[#allocation3 + $0x88] sm:$0xf] %vm440_vm1, %v7173_v22  ;;  %v7572_v0 = vshll.u32 %v17445_v11, 16  ;;  %v7578_v56 = vshll.u32 %v17451_v47, 16  ;;  %v6815_v15 = vmul.f32 %v17372_v28, %v17260_v19  ;;  %v6813_v33 = vmul.f32 %v17260_v19, %v17375_v35 }
 0x5fd   : > { %7384 = vst [vmem:[#allocation3 + $0x8c] sm:$0x1] %v7383_v21  ;;  %v7582_v14 = vshrl.u32 %v17451_v47, 16  ;;  %v7571_v23 = vrot.slane %v7569_v62, 4  ;;  %v7588_v49 = vshll.u32 %v7460_v25, 16  ;;  %v7567_v26 = vsel %vm15590_vm6, %v7562_v60, %v7566_v57 }
 0x5fe   : > { %v7574_v31 = vrot.slane %v7572_v0, 5  ;;  %v7580_v63 = vrot.slane %v7578_v56, 5  ;;  %v12884_v40 = vcombine.low %v7557_v58, %v7567_v26  ;;  %v6854_v1 = vadd.f32 %v17265_v8, %v6815_v15  ;;  %v17492_v4 = vld [vmem:[#allocation3 + $0x40] sm:$0xf]  ;;  %v17494_v36 = vld [vmem:[#allocation3 + $0x44] sm:$0x1] }
 0x5ff   : > { %v7584_v54 = vrot.slane %v7582_v14, 4  ;;  %v7590_v43 = vrot.slane %v7588_v49, 5  ;;  %v6852_v61 = vadd.f32 %v17265_v8, %v6813_v33  ;;  %v6816_v28 = vmul.f32 %v17378_v44, %v17260_v19  ;;  %v7399_v60 = vld [vmem:[#allocation3 + $0xa8] sm:$0xf]  ;;  %v7392_v0 = vld [vmem:[#allocation3 + $0x9c] sm:$0xf] }
 0x600   : > { %v7575_v55 = vor.u32 %v7574_v31, %v7571_v23  ;;  %v6814_v35 = vmul.f32 %v17260_v19, %v17384_v32  ;;  %14093 = vmatmul.mubr.msk.bf16.gmra.mrb[36].mxu0 %vm2084_vm7, %v12884_v40  ;;  %v6886_v18 = vmax.f32 %v6854_v1, 0.0  ;;  %v7593_v29 = vshrl.u32 %v17475_v7, 16  ;;  %v17499_v1 = vld [vmem:[#allocation3 + $0x48] sm:$0xf] }
 0x601   : > { %v7585_v27 = vor.u32 %v7584_v54, %v7580_v63  ;;  %v6884_v16 = vmax.f32 %v6852_v61, 0.0  ;;  %v7596_v59 = vshll.u32 %v17475_v7, 16  ;;  %v6855_v50 = vadd.f32 %v17265_v8, %v6816_v28 }
 0x602   : > { %v7576_v6 = vrot.slane %v7575_v55, 4  ;;  %v6853_v51 = vadd.f32 %v17265_v8, %v6814_v35  ;;  %v13327_v38 = vpack.c.bf16 %v6886_v18, %v6886_v18  ;;  %v7595_v44 = vrot.slane %v7593_v29, 4 }
 0x603   : > { %v7586_v52 = vrot.slane %v7585_v27, 4  ;;  %v13325_v39 = vpack.c.bf16 %v6884_v16, %v6884_v16  ;;  %v7598_v24 = vrot.slane %v7596_v59, 5  ;;  %v6887_v48 = vmax.f32 %v6855_v50, 0.0  ;;  %v7403_v16 = vld [vmem:[#allocation3 + $0xb0] sm:$0x1] }
 0x604   : > { %v7581_v19 = vsel %vm15590_vm6, %v7576_v6, %v7580_v63  ;;  %v6885_v53 = vmax.f32 %v6853_v51, 0.0  ;;  %v7210_v58 = vshrl.u32 %v13327_v38, 16  ;;  %v7213_v9 = vshll.u32 %v13327_v38, 16  ;;  %v17506_v6 = vld [vmem:[#allocation3 + $0x4c] sm:$0xf] }
 0x605   : > { %v7591_v32 = vsel %vm15590_vm6, %v7586_v52, %v7590_v43  ;;  %v7193_v2 = vshrl.u32 %v13325_v39, 16  ;;  %v7196_v17 = vshll.u32 %v13325_v39, 16  ;;  %v13328_v8 = vpack.c.bf16 %v6887_v48, %v6887_v48  ;;  %v7396_v52 = vld [vmem:[#allocation3 + $0xa4] sm:$0x1]  ;;  %v17510_v39 = vld [vmem:[#allocation3 + $0x50] sm:$0x1] }
 0x606   : > { %v12885_v20 = vcombine.low %v7581_v19, %v7591_v32  ;;  %v13326_v42 = vpack.c.bf16 %v6885_v53, %v6885_v53  ;;  %v7599_v25 = vor.u32 %v7598_v24, %v7595_v44  ;;  %v7212_v22 = vrot.slane %v7210_v58, 7 }
 0x607   : > { %v7195_v21 = vrot.slane %v7193_v2, 7  ;;  %v7602_v57 = vshll.u32 %v17492_v4, 16  ;;  %v7606_v62 = vshrl.u32 %v17492_v4, 16  ;;  %v7218_v56 = vshrl.u32 %v13328_v8, 16 }
 0x608   : > { %14096 = vmatprep.mubr.msk.bf16.mxu0 %vm2084_vm7, %v12885_v20  ;;  %v7221_v14 = vshll.u32 %v13328_v8, 16  ;;  %v7201_v23 = vshrl.u32 %v13326_v42, 16  ;;  %v7204_v49 = vshll.u32 %v13326_v42, 16  ;;  %v7215_v15 = vor.u32 %v7213_v9, %v7212_v22  ;;  %v15096_v8 = vld [vmem:[%s19266_s10] ss:$0 sm:$0xff] }
 0x609   : > { %v7216_v33 = vrot.slane %v7212_v22, 4  ;;  %v7198_v26 = vor.u32 %v7196_v17, %v7195_v21  ;;  %v7199_v31 = vrot.slane %v7195_v21, 4  ;;  %v7220_v63 = vrot.slane %v7218_v56, 7 }
 0x60a   : > { %v7203_v54 = vrot.slane %v7201_v23, 7  ;;  %v7600_v40 = vrot.slane %v7599_v25, 4  ;;  %v7604_v43 = vrot.slane %v7602_v57, 5  ;;  %v7400_v61 = vsel %vm15628_vm11, %v7215_v15, %v7399_v60  ;;  %v17535_v60 = vld [vmem:[#allocation3 + $0x54] sm:$0xf] }
 0x60b   : > { %v7393_v55 = vsel %vm15628_vm11, %v7198_v26, %v7392_v0  ;;  %v7608_v27 = vrot.slane %v7606_v62, 4  ;;  %v7612_v28 = vshll.u32 %v17494_v36, 16  ;;  %7401 = vst [vmem:[#allocation3 + $0xa8] sm:$0xf] %v7400_v61  ;;  %v7223_v35 = vor.u32 %v7221_v14, %v7220_v63  ;;  %v15097_v23 = vld [vmem:[%s19267_s11] ss:$0 sm:$0xff] }
 0x60c   : > { %7394 = vst [vmem:[#allocation3 + $0x9c] sm:$0xf] %v7393_v55  ;;  %v7225_v18 = vrot.slane %v7220_v63, 4  ;;  %v7206_v29 = vor.u32 %v7204_v49, %v7203_v54  ;;  %v7208_v59 = vrot.slane %v7203_v54, 4  ;;  %v7605_v50 = vsel %vm15590_vm6, %v7600_v40, %v7604_v43 }
 0x60d   : > { %v7609_v51 = vor.u32 %v7608_v27, %v7604_v43  ;;  %v7614_v38 = vrot.slane %v7612_v28, 5  ;;  %v7617_v44 = vshrl.u32 %v17499_v1, 16  ;;  %v7224_v24 = vsel %vm15635_vm12, %v7216_v33, %v7223_v35 }
 0x60e   : > { %v7404_v19 = vsel %vm15641_vm13, %v7225_v18, %v7403_v16  ;;  %v7207_v32 = vsel %vm15635_vm12, %v7199_v31, %v7206_v29  ;;  %v7397_v48 = vsel %vm15641_vm13, %v7208_v59, %v7396_v52  ;;  %7402 = vst.msk [vmem:[#allocation3 + $0xac] sm:$0xf] %vm440_vm1, %v7224_v24  ;;  %v7620_v58 = vshll.u32 %v17499_v1, 16 }
 0x60f   : > { %7405 = vst [vmem:[#allocation3 + $0xb0] sm:$0x1] %v7404_v19  ;;  %7395 = vst.msk [vmem:[#allocation3 + $0xa0] sm:$0xf] %vm440_vm1, %v7207_v32  ;;  %v7610_v53 = vrot.slane %v7609_v51, 4  ;;  %v7619_v20 = vrot.slane %v7617_v44, 4  ;;  %v6819_v42 = vmul.f32 %v15096_v8, %v17391_v37  ;;  %v6817_v25 = vmul.f32 %v15096_v8, %v17393_v46 }
 0x610   : > { %7398 = vst [vmem:[#allocation3 + $0xa4] sm:$0x1] %v7397_v48  ;;  %v7626_v9 = vshll.u32 %v17506_v6, 16  ;;  %v7630_v2 = vshrl.u32 %v17506_v6, 16  ;;  %v7636_v17 = vshll.u32 %v17510_v39, 16  ;;  %v7622_v21 = vrot.slane %v7620_v58, 5 }
 0x611   : > { %v7615_v22 = vsel %vm15590_vm6, %v7610_v53, %v7614_v38  ;;  %v6820_v62 = vmul.f32 %v15096_v8, %v17395_v41  ;;  %v6858_v49 = vadd.f32 %v15097_v23, %v6819_v42  ;;  %v6856_v15 = vadd.f32 %v15097_v23, %v6817_v25  ;;  %v17548_v51 = vld [vmem:[#allocation3 + $0x58] sm:$0xf] }
 0x612   : > { %v7628_v57 = vrot.slane %v7626_v9, 5  ;;  %v12886_v0 = vcombine.low %v7605_v50, %v7615_v22  ;;  %v7632_v56 = vrot.slane %v7630_v2, 4  ;;  %v7638_v14 = vrot.slane %v7636_v17, 5  ;;  %v7413_v9 = vld [vmem:[#allocation3 + $0xc0] sm:$0xf] }
 0x613   : > { %v7623_v37 = vor.u32 %v7622_v21, %v7619_v20  ;;  %v6859_v46 = vadd.f32 %v15097_v23, %v6820_v62  ;;  %v6818_v33 = vmul.f32 %v15096_v8, %v17397_v34  ;;  %v6890_v31 = vmax.f32 %v6858_v49, 0.0  ;;  %v7406_v21 = vld [vmem:[#allocation3 + $0xb4] sm:$0xf] }
 0x614   : > { %14097 = vmatmul.mubr.msk.bf16.gmra.mrb[40].mxu0 %vm2084_vm7, %v12886_v0  ;;  %v7633_v26 = vor.u32 %v7632_v56, %v7628_v57  ;;  %v7641_v41 = vshrl.u32 %v17535_v60, 16  ;;  %v7644_v63 = vshll.u32 %v17535_v60, 16  ;;  %v6888_v40 = vmax.f32 %v6856_v15, 0.0  ;;  %v17553_v56 = vld [vmem:[#allocation3 + $0x5c] sm:$0x1] }
 0x615   : > { %v7624_v54 = vrot.slane %v7623_v37, 4  ;;  %v6891_v43 = vmax.f32 %v6859_v46, 0.0  ;;  %v6857_v61 = vadd.f32 %v15097_v23, %v6818_v33  ;;  %v13331_v27 = vpack.c.bf16 %v6890_v31, %v6890_v31  ;;  %v17557_v23 = vld [vmem:[#allocation3 + $0x64] sm:$0xf] }
 0x616   : > { %v7634_v55 = vrot.slane %v7633_v26, 4  ;;  %v7643_v28 = vrot.slane %v7641_v41, 4  ;;  %v7646_v35 = vrot.slane %v7644_v63, 5  ;;  %v13329_v34 = vpack.c.bf16 %v6888_v40, %v6888_v40 }
 0x617   : > { %v7629_v18 = vsel %vm15590_vm6, %v7624_v54, %v7628_v57  ;;  %v13332_v16 = vpack.c.bf16 %v6891_v43, %v6891_v43  ;;  %v6889_v29 = vmax.f32 %v6857_v61, 0.0  ;;  %v7244_v52 = vshrl.u32 %v13331_v27, 16  ;;  %v7417_v57 = vld [vmem:[#allocation3 + $0xc8] sm:$0x1] }
 0x618   : > { %v7639_v59 = vsel %vm15590_vm6, %v7634_v55, %v7638_v14  ;;  %v7247_v50 = vshll.u32 %v13331_v27, 16  ;;  %v7647_v38 = vor.u32 %v7646_v35, %v7643_v28  ;;  %v7227_v24 = vshrl.u32 %v13329_v34, 16  ;;  %v17555_v14 = vld [vmem:[#allocation3 + $0x60] sm:$0xf]  ;;  %v7410_v27 = vld [vmem:[#allocation3 + $0xbc] sm:$0x1] }
 0x619   : > { %v12887_v44 = vcombine.low %v7629_v18, %v7639_v59  ;;  %v7230_v19 = vshll.u32 %v13329_v34, 16  ;;  %v7252_v32 = vshrl.u32 %v13332_v16, 16  ;;  %v7246_v48 = vrot.slane %v7244_v52, 7  ;;  %v17571_v35 = vld [vmem:[#allocation3 + $0x68] sm:$0x1] }
 0x61a   : > { %v7255_v53 = vshll.u32 %v13332_v16, 16  ;;  %v13330_v20 = vpack.c.bf16 %v6889_v29, %v6889_v29  ;;  %v7648_v58 = vrot.slane %v7647_v38, 4  ;;  %v7229_v2 = vrot.slane %v7227_v24, 7  ;;  %v17576_v59 = vld [vmem:[#allocation3 + $0x6c] sm:$0xf] }
 0x61b   : > { %14100 = vmatprep.mubr.msk.bf16.mxu0 %vm2084_vm7, %v12887_v44  ;;  %v7254_v17 = vrot.slane %v7252_v32, 7  ;;  %v7650_v8 = vshll.u32 %v17548_v51, 16  ;;  %v7654_v42 = vshrl.u32 %v17548_v51, 16  ;;  %v7249_v25 = vor.u32 %v7247_v50, %v7246_v48  ;;  %v17583_v24 = vld [vmem:[#allocation3 + $0x70] sm:$0xf] }
 0x61c   : > { %v7250_v22 = vrot.slane %v7246_v48, 4  ;;  %v7235_v62 = vshrl.u32 %v13330_v20, 16  ;;  %v7238_v0 = vshll.u32 %v13330_v20, 16  ;;  %v7232_v49 = vor.u32 %v7230_v19, %v7229_v2  ;;  %v17587_v20 = vld [vmem:[#allocation3 + $0x78] sm:$0xf] }
 0x61d   : > { %v7233_v37 = vrot.slane %v7229_v2, 4  ;;  %v7257_v15 = vor.u32 %v7255_v53, %v7254_v17  ;;  %v7259_v46 = vrot.slane %v7254_v17, 4  ;;  %v7414_v33 = vsel %vm15628_vm11, %v7249_v25, %v7413_v9 }
 0x61e   : > { %v7237_v26 = vrot.slane %v7235_v62, 7  ;;  %v7652_v31 = vrot.slane %v7650_v8, 5  ;;  %v7656_v41 = vrot.slane %v7654_v42, 4  ;;  %7415 = vst [vmem:[#allocation3 + $0xc0] sm:$0xf] %v7414_v33  ;;  %v7407_v63 = vsel %vm15628_vm11, %v7232_v49, %v7406_v21 }
 0x61f   : > { %v7258_v54 = vsel %vm15635_vm12, %v7250_v22, %v7257_v15  ;;  %v7418_v40 = vsel %vm15641_vm13, %v7259_v46, %v7417_v57  ;;  %v7660_v43 = vshll.u32 %v17553_v56, 16  ;;  %7408 = vst [vmem:[#allocation3 + $0xb4] sm:$0xf] %v7407_v63  ;;  %v7665_v34 = vshrl.u32 %v17555_v14, 16  ;;  %v17596_v22 = vld [vmem:[#allocation3 + $0x7c] sm:$0xf] }
 0x620   : > { %7416 = vst.msk [vmem:[#allocation3 + $0xc4] sm:$0xf] %vm440_vm1, %v7258_v54  ;;  %7419 = vst [vmem:[#allocation3 + $0xc8] sm:$0x1] %v7418_v40  ;;  %v7240_v61 = vor.u32 %v7238_v0, %v7237_v26  ;;  %v7242_v55 = vrot.slane %v7237_v26, 4  ;;  %v7653_v28 = vsel %vm15590_vm6, %v7648_v58, %v7652_v31  ;;  %v7657_v30 = vor.u32 %v7656_v41, %v7652_v31 }
 0x621   : > { %v7662_v18 = vrot.slane %v7660_v43, 5  ;;  %v7668_v16 = vshll.u32 %v17555_v14, 16  ;;  %v7674_v29 = vshll.u32 %v17557_v23, 16  ;;  %v7678_v44 = vshrl.u32 %v17557_v23, 16  ;;  %v17591_v58 = vld [vmem:[#allocation3 + $0x74] sm:$0x1] }
 0x622   : > { %v7241_v52 = vsel %vm15635_vm12, %v7233_v37, %v7240_v61  ;;  %v7411_v50 = vsel %vm15641_vm13, %v7242_v55, %v7410_v27  ;;  %v7658_v38 = vrot.slane %v7657_v30, 4  ;;  %v7667_v19 = vrot.slane %v7665_v34, 4  ;;  %v17599_v49 = vld [vmem:[#allocation3 + $0x80] sm:$0x1]  ;;  %v17604_v26 = vld [vmem:[#allocation3 + $0x84] sm:$0xf] }
 0x623   : > { %7409 = vst.msk [vmem:[#allocation3 + $0xb8] sm:$0xf] %vm440_vm1, %v7241_v52  ;;  %7412 = vst [vmem:[#allocation3 + $0xbc] sm:$0x1] %v7411_v50  ;;  %v7670_v32 = vrot.slane %v7668_v16, 5  ;;  %v7676_v48 = vrot.slane %v7674_v29, 5 }
 0x624   : > { %v7684_v53 = vshll.u32 %v17571_v35, 16  ;;  %v7663_v3 = vsel %vm15590_vm6, %v7658_v38, %v7662_v18  ;;  %v7680_v5 = vrot.slane %v7678_v44, 4  ;;  %v7689_v9 = vshrl.u32 %v17576_v59, 16  ;;  %v17612_v34 = vld [vmem:[#allocation3 + $0x88] sm:$0xf] }
 0x625   : > { %v7692_v2 = vshll.u32 %v17576_v59, 16  ;;  %v12888_v17 = vcombine.low %v7653_v28, %v7663_v3  ;;  %v7671_v8 = vor.u32 %v7670_v32, %v7667_v19  ;;  %v7698_v25 = vshll.u32 %v17583_v24, 16  ;;  %v17616_v38 = vld [vmem:[#allocation3 + $0x90] sm:$0xf]  ;;  %v17623_v3 = vld [vmem:[#allocation3 + $0x94] sm:$0xf] }
 0x626   : > { %v7686_v42 = vrot.slane %v7684_v53, 5  ;;  %v7681_v21 = vor.u32 %v7680_v5, %v7676_v48  ;;  %v7691_v57 = vrot.slane %v7689_v9, 4  ;;  %v7702_v0 = vshrl.u32 %v17583_v24, 16 }
 0x627   : > { %v7694_v62 = vrot.slane %v7692_v2, 5  ;;  %14101 = vmatmul.mubr.msk.bf16.gmra.mrb[44].mxu0 %vm2084_vm7, %v12888_v17  ;;  %v7672_v37 = vrot.slane %v7671_v8, 4  ;;  %v7700_v15 = vrot.slane %v7698_v25, 5  ;;  %v7708_v46 = vshll.u32 %v17591_v58, 16 }
 0x628   : > { %v7713_v33 = vshrl.u32 %v17587_v20, 16  ;;  %v7682_v31 = vrot.slane %v7681_v21, 4  ;;  %v7704_v63 = vrot.slane %v7702_v0, 4  ;;  %v7716_v54 = vshll.u32 %v17587_v20, 16 }
 0x629   : > { %v7695_v41 = vor.u32 %v7694_v62, %v7691_v57  ;;  %v7677_v40 = vsel %vm15590_vm6, %v7672_v37, %v7676_v48  ;;  %v7710_v43 = vrot.slane %v7708_v46, 5  ;;  %v7722_v55 = vshll.u32 %v17596_v22, 16  ;;  %v17620_v48 = vld [vmem:[#allocation3 + $0x8c] sm:$0x1] }
 0x62a   : > { %v7715_v61 = vrot.slane %v7713_v33, 4  ;;  %v7687_v27 = vsel %vm15590_vm6, %v7682_v31, %v7686_v42  ;;  %v7705_v30 = vor.u32 %v7704_v63, %v7700_v15  ;;  %v7718_v18 = vrot.slane %v7716_v54, 5  ;;  %v17636_v54 = vld [vmem:[#allocation3 + $0x98] sm:$0x1] }
 0x62b   : > { %v7696_v28 = vrot.slane %v7695_v41, 4  ;;  %v12889_v16 = vcombine.low %v7677_v40, %v7687_v27  ;;  %v7724_v29 = vrot.slane %v7722_v55, 5  ;;  %v7726_v52 = vshrl.u32 %v17596_v22, 16 }
 0x62c   : > { %v7732_v50 = vshll.u32 %v17599_v49, 16  ;;  %v7706_v19 = vrot.slane %v7705_v30, 4  ;;  %v7719_v32 = vor.u32 %v7718_v18, %v7715_v61  ;;  %v7737_v53 = vshrl.u32 %v17604_v26, 16  ;;  %v17641_v30 = vld [vmem:[#allocation3 + $0x9c] sm:$0xf] }
 0x62d   : > { %v7701_v44 = vsel %vm15590_vm6, %v7696_v28, %v7700_v15  ;;  %14104 = vmatprep.mubr.msk.bf16.mxu0 %vm2084_vm7, %v12889_v16  ;;  %v7728_v5 = vrot.slane %v7726_v52, 4  ;;  %v7740_v2 = vshll.u32 %v17604_v26, 16  ;;  %v7746_v17 = vshll.u32 %v17612_v34, 16 }
 0x62e   : > { %v7734_v9 = vrot.slane %v7732_v50, 5  ;;  %v7711_v8 = vsel %vm15590_vm6, %v7706_v19, %v7710_v43  ;;  %v7720_v42 = vrot.slane %v7719_v32, 4  ;;  %v7739_v25 = vrot.slane %v7737_v53, 4  ;;  %v17645_v50 = vld [vmem:[#allocation3 + $0xa0] sm:$0xf] }
 0x62f   : > { %v7750_v21 = vshrl.u32 %v17612_v34, 16  ;;  %v12890_v57 = vcombine.low %v7701_v44, %v7711_v8  ;;  %v7729_v62 = vor.u32 %v7728_v5, %v7724_v29  ;;  %v7742_v0 = vrot.slane %v7740_v2, 5 }
 0x630   : > { %v7748_v37 = vrot.slane %v7746_v17, 5  ;;  %v7725_v15 = vsel %vm15590_vm6, %v7720_v42, %v7724_v29  ;;  %v7756_v33 = vshll.u32 %v17620_v48, 16  ;;  %v7761_v31 = vshrl.u32 %v17616_v38, 16  ;;  %v17650_v17 = vld [vmem:[#allocation3 + $0xa4] sm:$0x1] }
 0x631   : > { %v7752_v46 = vrot.slane %v7750_v21, 4  ;;  %14105 = vmatmul.mubr.msk.bf16.gmra.mrb[48].mxu0 %vm2084_vm7, %v12890_v57  ;;  %v7730_v41 = vrot.slane %v7729_v62, 4  ;;  %v7743_v63 = vor.u32 %v7742_v0, %v7739_v25  ;;  %v7764_v40 = vshll.u32 %v17616_v38, 16  ;;  %v17658_v62 = vld [vmem:[#allocation3 + $0xa8] sm:$0xf] }
 0x632   : > { %v7770_v43 = vshll.u32 %v17623_v3, 16  ;;  %v7758_v55 = vrot.slane %v7756_v33, 5  ;;  %v7763_v27 = vrot.slane %v7761_v31, 4  ;;  %v7774_v28 = vshrl.u32 %v17623_v3, 16  ;;  %v17660_v33 = vld [vmem:[#allocation3 + $0xac] sm:$0xf] }
 0x633   : > { %v7753_v61 = vor.u32 %v7752_v46, %v7748_v37  ;;  %v7735_v18 = vsel %vm15590_vm6, %v7730_v41, %v7734_v9  ;;  %v7744_v16 = vrot.slane %v7743_v63, 4  ;;  %v7766_v29 = vrot.slane %v7764_v40, 5 }
 0x634   : > { %v7772_v52 = vrot.slane %v7770_v43, 5  ;;  %v12891_v44 = vcombine.low %v7725_v15, %v7735_v18  ;;  %v7776_v32 = vrot.slane %v7774_v28, 4  ;;  %v7780_v53 = vshll.u32 %v17636_v54, 16 }
 0x635   : > { %v7754_v19 = vrot.slane %v7753_v61, 4  ;;  %v7749_v5 = vsel %vm15590_vm6, %v7744_v16, %v7748_v37  ;;  %v7767_v2 = vor.u32 %v7766_v29, %v7763_v27  ;;  %v7785_v8 = vshrl.u32 %v17641_v30, 16  ;;  %v17671_v16 = vld [vmem:[#allocation3 + $0xb0] sm:$0x1] }
 0x636   : > { %v7788_v9 = vshll.u32 %v17641_v30, 16  ;;  %14108 = vmatprep.mubr.msk.bf16.mxu0 %vm2084_vm7, %v12891_v44  ;;  %v7777_v25 = vor.u32 %v7776_v32, %v7772_v52  ;;  %v7782_v21 = vrot.slane %v7780_v53, 5  ;;  %v7794_v57 = vshll.u32 %v17645_v50, 16  ;;  %v17674_v44 = vld [vmem:[#allocation3 + $0xb4] sm:$0xf] }
 0x637   : > { %v7759_v42 = vsel %vm15590_vm6, %v7754_v19, %v7758_v55  ;;  %v7768_v37 = vrot.slane %v7767_v2, 4  ;;  %v7787_v15 = vrot.slane %v7785_v8, 4  ;;  %v7798_v63 = vshrl.u32 %v17645_v50, 16  ;;  %v17676_v2 = vld [vmem:[#allocation3 + $0xb8] sm:$0xf] }
 0x638   : > { %v12892_v0 = vcombine.low %v7749_v5, %v7759_v42  ;;  %v7790_v46 = vrot.slane %v7788_v9, 5  ;;  %v7778_v31 = vrot.slane %v7777_v25, 4  ;;  %v7796_v41 = vrot.slane %v7794_v57, 5  ;;  %v17681_v57 = vld [vmem:[#allocation3 + $0xbc] sm:$0x1] }
 0x639   : > { %v7804_v40 = vshll.u32 %v17650_v17, 16  ;;  %v7809_v61 = vshrl.u32 %v17658_v62, 16  ;;  %v7812_v55 = vshll.u32 %v17658_v62, 16  ;;  %v7773_v27 = vsel %vm15590_vm6, %v7768_v37, %v7772_v52 }
 0x63a   : > { %14109 = vmatmul.mubr.msk.bf16.gmra.mrb[52].mxu0 %vm2084_vm7, %v12892_v0  ;;  %v7791_v43 = vor.u32 %v7790_v46, %v7787_v15  ;;  %v7783_v28 = vsel %vm15590_vm6, %v7778_v31, %v7782_v21  ;;  %v7800_v18 = vrot.slane %v7798_v63, 4  ;;  %v7818_v29 = vshll.u32 %v17660_v33, 16 }
 0x63b   : > { %v12893_v19 = vcombine.low %v7773_v27, %v7783_v28  ;;  %v7811_v53 = vrot.slane %v7809_v61, 4  ;;  %v7814_v5 = vrot.slane %v7812_v55, 5  ;;  %v7806_v9 = vrot.slane %v7804_v40, 5 }
 0x63c   : > { %v7792_v32 = vrot.slane %v7791_v43, 4  ;;  %v7801_v8 = vor.u32 %v7800_v18, %v7796_v41  ;;  %v7820_v42 = vrot.slane %v7818_v29, 5  ;;  %v7822_v52 = vshrl.u32 %v17660_v33, 16 }
 0x63d   : > { %14112 = vmatprep.mubr.msk.bf16.mxu0 %vm2084_vm7, %v12893_v19  ;;  %v7815_v25 = vor.u32 %v7814_v5, %v7811_v53  ;;  %v7828_v21 = vshll.u32 %v17671_v16, 16  ;;  %v7833_v0 = vshrl.u32 %v17674_v44, 16  ;;  %v7836_v37 = vshll.u32 %v17674_v44, 16 }
 0x63e   : > { %v7797_v15 = vsel %vm15590_vm6, %v7792_v32, %v7796_v41  ;;  %v7802_v46 = vrot.slane %v7801_v8, 4  ;;  %v7824_v31 = vrot.slane %v7822_v52, 4  ;;  %v7842_v63 = vshll.u32 %v17676_v2, 16 }
 0x63f   : > { %v7816_v40 = vrot.slane %v7815_v25, 4  ;;  %v7835_v43 = vrot.slane %v7833_v0, 4  ;;  %v7838_v61 = vrot.slane %v7836_v37, 5  ;;  %v7846_v55 = vshrl.u32 %v17676_v2, 16 }
 0x640   : > { %v7807_v27 = vsel %vm15590_vm6, %v7802_v46, %v7806_v9  ;;  %v7825_v28 = vor.u32 %v7824_v31, %v7820_v42  ;;  %v7844_v18 = vrot.slane %v7842_v63, 5  ;;  %v7852_v29 = vshll.u32 %v17681_v57, 16 }
 0x641   : > { %v12894_v19 = vcombine.low %v7797_v15, %v7807_v27  ;;  %v7839_v53 = vor.u32 %v7838_v61, %v7835_v43  ;;  %v7848_v5 = vrot.slane %v7846_v55, 4  ;;  %v7830_v32 = vrot.slane %v7828_v21, 5 }
 0x642   : > { %v7826_v41 = vrot.slane %v7825_v28, 4  ;;  %v7821_v25 = vsel %vm15590_vm6, %v7816_v40, %v7820_v42  ;;  %v7854_v9 = vrot.slane %v7852_v29, 5  ;;  %v12922_v31 = vcombine.low %v17535_v60, %v17548_v51  ;;  %v17718_v29 = vld [vmem:[#allocation3 + $0x4] sm:$0xf]  ;;  %v8443_v42 = vld [vmem:[#allocation3 + $0x90] sm:$0xe] }
 0x643   : > { %14113 = vmatmul.mubr.msk.bf16.gmra.mrb[56].mxu0 %vm2084_vm7, %v12894_v19  ;;  %v7840_v8 = vrot.slane %v7839_v53, 4  ;;  %v7849_v52 = vor.u32 %v7848_v5, %v7844_v18  ;;  %v15100_v5 = vld [vmem:[#allocation3 + $0xc] sm:$0xf]  ;;  %v8540_v53 = vrot.slane %v17571_v35, 5  ;;  %v8554_v55 = vrot.slane %v17599_v49, 5 }
 0x644   : > { %v7831_v0 = vsel %vm15590_vm6, %v7826_v41, %v7830_v32  ;;  %v17725_v41 = vld [vmem:[#allocation3 + $0x10] sm:$0xf]  ;;  %v8558_v40 = vrot.slane %v17612_v34, 5  ;;  %v8586_v63 = vrot.slane %v17676_v2, 5  ;;  %v19401_v60 = vcombine.low %v17604_v26, %v17612_v34 }
 0x645   : > { %v12895_v37 = vcombine.low %v7821_v25, %v7831_v0  ;;  %v7845_v46 = vsel %vm15590_vm6, %v7840_v8, %v7844_v18  ;;  %v7850_v15 = vrot.slane %v7849_v52, 4  ;;  %v15098_v18 = vld [vmem:[#allocation3] sm:$0xf]  ;;  %v12916_v32 = vcombine.low %v15100_v5, %v17725_v41  ;;  %v15031_v8 = vld [vmem:[%s19268_s12 + $0x28] sm:$0xff]   ;;  %v8438_v52 = vld [vmem:[#allocation3 + $0x54] sm:$0xe] }
 0x646   : > { %v12915_v19 = vcombine.low %v15098_v18, %v17718_v29  ;;  %v15102_v25 = vld [vmem:[#allocation3 + $0x18] sm:$0xf]  ;;  %v17731_v0 = vld [vmem:[#allocation3 + $0x1c] sm:$0xf]  ;;  %v8440_v18 = vld [vmem:[#allocation3 + $0x6c] sm:$0xe]  ;;  %v12920_v5 = vcombine.low %v17475_v7, %v17492_v4 }
 0x647   : > { %14116 = vmatprep.mubr.msk.bf16.mxu0 %vm2084_vm7, %v12895_v37  ;;  %v7855_v43 = vsel %vm15590_vm6, %v7850_v15, %v7854_v9  ;;  %v12917_v9 = vcombine.low %v15102_v25, %v17731_v0  ;;  %v8530_v37 = vrot.slane %v17548_v51, 5  ;;  %v15104_v15 = vld [vmem:[#allocation3 + $0x24] sm:$0xf]  ;;  %v8533_v25 = vrot.slane %v17553_v56, 5 }
 0x648   : > { %v12896_v28 = vcombine.low %v7845_v46, %v7855_v43  ;;  %v8439_v46 = vld [vmem:[#allocation3 + $0x60] sm:$0xe]  ;;  %v12918_v43 = vcombine.low %v15104_v15, %v17432_v10  ;;  %v12921_v10 = vcombine.low %v17499_v1, %v17506_v6  ;;  %v12958_v27 = vrot.slane %v8440_v18, 9 }
 0x649   : > { %v8544_v56 = vrot.slane %v17583_v24, 5  ;;  %v19398_v1 = vcombine.low %v17555_v14, %v17557_v23  ;;  %v19402_v51 = vcombine.low %v17616_v38, %v17623_v3  ;;  %v8481_v14 = vrot.slane %v17718_v29, 5 }
 0x64a   : > { %v8488_v38 = vrot.slane %v17725_v41, 5  ;;  %vm12205_vm1 = vcmask 195712  }
 0x64b   : > { %14117 = vmatmul.mubr.msk.bf16.gmra.mrb[60].mxu0 %vm2084_vm7, %v12896_v28  ;;  %v12956_v28 = vrot.slane %v8438_v52, 9  ;;  %v17773_v35 = vsel %vm16157_vm0, %v12958_v27, %v8544_v56 }
 0x64c   : > { %14124 = vmatprep.mubr.msk.bf16.mxu0 %vm2084_vm7, %v12915_v19  ;;  %v12919_v19 = vcombine.low %v17445_v11, %v17451_v47  ;;  %v12957_v11 = vrot.slane %v8439_v46, 9  ;;  %v8537_v47 = vrot.slane %v17557_v23, 5  ;;  %v8551_v46 = vrot.slane %v17596_v22, 5  ;;  %v8431_v23 = vld [vmem:[#allocation3] sm:$0xe] }
 0x64d   : > { %v17753_v52 = vsel %vm16157_vm0, %v12956_v28, %v8530_v37  ;;  %v8442_v28 = vld [vmem:[#allocation3 + $0x84] sm:$0xe] }
 0x64e   : > { %v8539_v61 = vrot.slane %v8537_v47, 4 }
 0x653   : > { %14125 = vmatmul.mubr.msk.bf16.vlgmr.msra.gmra.mrb[32].mxu0 %vm2084_vm7, %v12916_v32  ;;  %v17746_v32 = vld [vmem:[%s19268_s12 + $0x30] sm:$0xff]  }
 0x654   : > { %14157 = vmatpush3.bf16.msra.mxu0 %v17426_v45  ;;  %14128 = vmatprep.mubr.msk.bf16.mxu0 %vm2084_vm7, %v12917_v9  ;;  %v8532_v45 = vrot.slane %v8530_v37, 4  ;;  %v8441_v9 = vld [vmem:[#allocation3 + $0x78] sm:$0xe]  ;;  %v8547_v37 = vrot.slane %v17591_v58, 5  ;;  %v8553_v58 = vrot.slane %v8551_v46, 4 }
 0x655   : > { %14158 = vmatprep.subr.bf16.mxu0 %v15031_v8  ;;  %v12959_v18 = vrot.slane %v8441_v9, 9  ;;  %v8560_v9 = vrot.slane %v8558_v40, 4 }
 0x656   : > { %v17758_v15 = vsel %vm16157_vm0, %v8532_v45, %v8533_v25  ;;  %v17769_v45 = vsel %vm16157_vm0, %v12957_v11, %v8537_v47  ;;  %v17777_v25 = vsel %vm16157_vm0, %v8539_v61, %v8540_v53  ;;  %v12960_v61 = vrot.slane %v8442_v28, 9  ;;  %v8444_v53 = vld [vmem:[#allocation3 + $0x9c] sm:$0xe] }
 0x657   : > { %v17790_v47 = vsel %vm16157_vm0, %v12959_v18, %v8551_v46  ;;  %v12961_v28 = vrot.slane %v8443_v42, 9  ;;  %v8579_v42 = vrot.slane %v17660_v33, 5 }
 0x658   : > { %14159 = vmatpush3.bf16.msra.mxu0 %v15031_v8  ;;  %v8546_v8 = vrot.slane %v8544_v56, 4  ;;  %v8561_v56 = vrot.slane %v17620_v48, 5  ;;  %v17804_v46 = vsel %vm16157_vm0, %v12960_v61, %v8558_v40  ;;  %v8572_v48 = vrot.slane %v17645_v50, 5  ;;  %v8446_v61 = vld [vmem:[#allocation3 + $0xb4] sm:$0xe] }
 0x659   : > { %14192 = vmatprep.subr.bf16.mxu0 %v17746_v32  ;;  %v8575_v40 = vrot.slane %v17650_v17, 5  ;;  %v8582_v17 = vrot.slane %v17671_v16, 5 }
 0x65a   : > { %v17786_v27 = vsel %vm16157_vm0, %v8546_v8, %v8547_v37  ;;  %v8445_v8 = vld [vmem:[#allocation3 + $0xa8] sm:$0xe]  ;;  %v17809_v18 = vsel %vm16157_vm0, %v8560_v9, %v8561_v56  ;;  %v8581_v37 = vrot.slane %v8579_v42, 4 }
 0x65b   : > { %14129 = vmatmul.mubr.msk.bf16.gmra.mrb[36].mxu0 %vm2084_vm7, %v12918_v43  ;;  %v17797_v43 = vsel %vm16157_vm0, %v8553_v58, %v8554_v55  ;;  %v8568_v55 = vrot.slane %v17636_v54, 5  ;;  %v12962_v58 = vrot.slane %v8444_v53, 9  ;;  %v8574_v54 = vrot.slane %v8572_v48, 4 }
 0x65c   : > { %14132 = vmatprep.mubr.msk.bf16.mxu0 %vm2084_vm7, %v12919_v19  ;;  %v8565_v19 = vrot.slane %v17623_v3, 5  ;;  %v12963_v53 = vrot.slane %v8445_v8, 9  ;;  %v12964_v8 = vrot.slane %v8446_v61, 9  ;;  %v8495_v3 = vrot.slane %v17731_v0, 5  ;;  %v8433_v61 = vld [vmem:[#allocation3 + $0x18] sm:$0xe] }
 0x65d   : > { %v17823_v9 = vsel %vm16157_vm0, %v12962_v58, %v8572_v48  ;;  %v8589_v58 = vrot.slane %v17681_v57, 5  ;;  %v19399_v57 = vcombine.low %v17576_v59, %v17583_v24  ;;  %v12949_v59 = vrot.slane %v8431_v23, 9  ;;  %v15108_v0 = vld [vmem:[#allocation3 + $0x28] sm:$0xf]  ;;  %v8434_v23 = vld [vmem:[#allocation3 + $0x24] sm:$0xe] }
 0x65e   : > { %v8567_v49 = vrot.slane %v8565_v19, 4  ;;  %v17819_v11 = vsel %vm16157_vm0, %v12961_v28, %v8565_v19  ;;  %v17835_v28 = vsel %vm16157_vm0, %v8574_v54, %v8575_v40  ;;  %v17839_v19 = vsel %vm16157_vm0, %v12963_v53, %v8579_v42  ;;  %v15107_v54 = vld [vmem:[#allocation3 + $0x20] sm:$0x1] }
 0x65f   : > { %v8483_v24 = vrot.slane %v8481_v14, 4  ;;  %v8482_v26 = vsel %vm16157_vm0, %v12949_v59, %v8481_v14  ;;  %v8490_v40 = vrot.slane %v8488_v38, 4  ;;  %v8498_v53 = vrot.slane %v15107_v54, 5  ;;  %v8437_v54 = vld [vmem:[#allocation3 + $0x48] sm:$0xe] }
 0x660   : > { %v17827_v56 = vsel %vm16157_vm0, %v8567_v49, %v8568_v55  ;;  %v17849_v49 = vsel %vm16157_vm0, %v8581_v37, %v8582_v17  ;;  %v8588_v55 = vrot.slane %v8586_v63, 4  ;;  %v18088_v37 = vld [vmem:[#allocation3 + $0xa0] sm:$0xf] }
 0x661   : > { %v10155_v21 = vrot.slane %v18088_v37, 5 }
 0x662   : > { %v17864_v48 = vsel %vm16157_vm0, %v8588_v55, %v8589_v58  ;;  %v12951_v55 = vrot.slane %v8433_v61, 9 }
 0x663   : > { %14133 = vmatmul.mubr.msk.bf16.gmra.mrb[40].mxu0 %vm2084_vm7, %v12920_v5  ;;  %v17860_v5 = vsel %vm16157_vm0, %v12964_v8, %v8586_v63  ;;  %v19400_v63 = vcombine.low %v17587_v20, %v17596_v22  ;;  %v19403_v20 = vcombine.low %v17641_v30, %v17645_v50  ;;  %v19404_v22 = vcombine.low %v17658_v62, %v17660_v33  ;;  %v8432_v50 = vld [vmem:[#allocation3 + $0xc] sm:$0xe]  ;;  %v15106_v33 = vld [vmem:[#allocation3 + $0x14] sm:$0x1] }
 0x664   : > { %14136 = vmatprep.mubr.msk.bf16.mxu0 %vm2084_vm7, %v12921_v10  ;;  %v19405_v30 = vcombine.low %v17674_v44, %v17676_v2  ;;  %v8497_v62 = vrot.slane %v8495_v3, 4  ;;  %v8491_v42 = vrot.slane %v15106_v33, 5  ;;  %v12950_v17 = vrot.slane %v8432_v50, 9  ;;  %v15109_v2 = vld [vmem:[#allocation3 + $0x34] sm:$0xf] }
 0x665   : > { %v8502_v8 = vrot.slane %v15108_v0, 5  ;;  %v8509_v58 = vrot.slane %v15109_v2, 5  ;;  %v12955_v0 = vrot.slane %v8437_v54, 9 }
 0x666   : > { %v8492_v41 = vsel %vm16157_vm0, %v8490_v40, %v8491_v42  ;;  %v8499_v44 = vsel %vm16157_vm0, %v8497_v62, %v8498_v53  ;;  %v8523_v40 = vrot.slane %v17506_v6, 5  ;;  %v8519_v6 = vrot.slane %v17494_v36, 5  ;;  %v17956_v36 = vld [vmem:[#allocation3 + $0x28] sm:$0xf] }
 0x667   : > { %v8504_v14 = vrot.slane %v8502_v8, 4  ;;  %v8511_v59 = vrot.slane %v8509_v58, 4  ;;  %v8526_v53 = vrot.slane %v17510_v39, 5  ;;  %v10007_v39 = vld [vmem:[#allocation3 + $0x24] sm:$0xe] }
 0x668   : > { %v8525_v61 = vrot.slane %v8523_v40, 4  ;;  %v8524_v2 = vsel %vm16157_vm0, %v12955_v0, %v8523_v40  ;;  %v18009_v0 = vld [vmem:[#allocation3 + $0x5c] sm:$0x1] }
 0x66b   : > { %14137 = vmatmul.mubr.msk.bf16.gmra.mrb[44].mxu0 %vm2084_vm7, %v12922_v31  ;;  %v15105_v31 = vld [vmem:[#allocation3 + $0x8] sm:$0x1] }
 0x66c   : > { %14140 = vmatprep.mubr.msk.bf16.mxu0 %vm2084_vm7, %v19398_v1  ;;  %v8484_v10 = vrot.slane %v15105_v31, 5  ;;  %v8489_v1 = vsel %vm16157_vm0, %v12950_v17, %v8488_v38 }
 0x66e   : > { %v8485_v34 = vsel %vm16157_vm0, %v8483_v24, %v8484_v10  ;;  %v15110_v24 = vld [vmem:[#allocation3 + $0x2c] sm:$0x1]  ;;  %v8435_v10 = vld [vmem:[#allocation3 + $0x30] sm:$0xe] }
 0x66f   : > { %v12969_v29 = vcombine.low %v8482_v26, %v8485_v34  ;;  %v8505_v31 = vrot.slane %v15110_v24, 5  ;;  %v17929_v26 = vld [vmem:[%s19268_s12 + $0x40] sm:$0xff]   ;;  %v12952_v34 = vrot.slane %v8434_v23, 9  ;;  %v13081_v23 = vrot.slane %v10007_v39, 9  ;;  %v10009_v24 = vld [vmem:[#allocation3 + $0x3c] sm:$0xe] }
 0x670   : > { %v18020_v39 = vld [vmem:[#allocation3 + $0x70] sm:$0xf] }
 0x671   : > { %v8506_v38 = vsel %vm16157_vm0, %v8504_v14, %v8505_v31  ;;  %v17968_v14 = vld [vmem:[#allocation3 + $0x40] sm:$0xf]  ;;  %v19407_v31 = vcombine.low %v17769_v45, %v17777_v25  ;;  %v17987_v45 = vld [vmem:[#allocation3 + $0x58] sm:$0xf] }
 0x673   : > { %14141 = vmatmul.mubr.msk.bf16.gmra.mrb[48].mxu0 %vm2084_vm7, %v19399_v57  ;;  %v12970_v57 = vcombine.low %v8489_v1, %v8492_v41  ;;  %v17958_v1 = vld [vmem:[#allocation3 + $0x34] sm:$0xf] }
 0x674   : > { %14144 = vmatprep.mubr.msk.bf16.mxu0 %vm2084_vm7, %v19400_v63  ;;  %v8496_v63 = vsel %vm16157_vm0, %v12951_v55, %v8495_v3  ;;  %v8516_v3 = vrot.slane %v17492_v4, 5  ;;  %v8436_v4 = vld [vmem:[#allocation3 + $0x3c] sm:$0xe] }
 0x675   : > { %v12954_v17 = vrot.slane %v8436_v4, 9  ;;  %v10011_v4 = vld [vmem:[#allocation3 + $0x54] sm:$0xe] }
 0x676   : > { %v8518_v42 = vrot.slane %v8516_v3, 4 }
 0x677   : > { %v8517_v55 = vsel %vm16157_vm0, %v12954_v17, %v8516_v3 }
 0x678   : > { %v8520_v41 = vsel %vm16157_vm0, %v8518_v42, %v8519_v6  ;;  %v18086_v6 = vld [vmem:[#allocation3 + $0x98] sm:$0x1] }
 0x67b   : > { %14145 = vmatmul.mubr.msk.bf16.gmra.mrb[52].mxu0 %vm2084_vm7, %v19401_v60  ;;  %v15040_v60 = vld [vmem:[%s19268_s12 + $0x38] sm:$0xff]  }
 0x67c   : > { %14148 = vmatprep.mubr.msk.bf16.mxu0 %vm2084_vm7, %v19402_v51  ;;  %v12971_v51 = vcombine.low %v8496_v63, %v8499_v44  ;;  %v12974_v44 = vcombine.low %v8517_v55, %v8520_v41  ;;  %v17960_v63 = vld [vmem:[#allocation3 + $0x2c] sm:$0x1]  ;;  %v10012_v41 = vld [vmem:[#allocation3 + $0x60] sm:$0xe]  ;;  %v10016_v55 = vld [vmem:[#allocation3 + $0x90] sm:$0xe] }
 0x67d   : > { %v10088_v3 = vrot.slane %v17960_v63, 5 }
 0x683   : > { %14149 = vmatmul.mubr.msk.bf16.gmra.mrb[56].mxu0 %vm2084_vm7, %v19403_v20  ;;  %v15111_v20 = vld [vmem:[#allocation3 + $0x38] sm:$0x1] }
 0x684   : > { %14152 = vmatprep.mubr.msk.bf16.mxu0 %vm2084_vm7, %v19404_v22  ;;  %v8512_v22 = vrot.slane %v15111_v20, 5  ;;  %v17977_v20 = vld [vmem:[#allocation3 + $0x4c] sm:$0xf] }
 0x685   : > { %v10106_v42 = vrot.slane %v17977_v20, 5 }
 0x68b   : > { %14153 = vmatmul.mubr.msk.bf16.gmra.mrb[60].mxu0 %vm2084_vm7, %v19405_v30  ;;  %v8503_v30 = vsel %vm16157_vm0, %v12952_v34, %v8502_v8  ;;  %v8527_v8 = vsel %vm16157_vm0, %v8525_v61, %v8526_v53  ;;  %v18001_v61 = vld [vmem:[#allocation3 + $0x64] sm:$0xf] }
 0x68c   : > { %14160 = vmatprep.mubr.msk.bf16.mxu0 %vm2084_vm7, %v12969_v29  ;;  %v8513_v29 = vsel %vm16157_vm0, %v8511_v59, %v8512_v22  ;;  %v12972_v50 = vcombine.low %v8503_v30, %v8506_v38  ;;  %v10085_v59 = vrot.slane %v17956_v36, 5  ;;  %v10099_v30 = vrot.slane %v17968_v14, 5 }
 0x68e   : > { %v17984_v34 = vsel %vm16157_vm0, %v13081_v23, %v10085_v59  ;;  %v10087_v38 = vrot.slane %v10085_v59, 4  ;;  %v10101_v53 = vrot.slane %v10099_v30, 4  ;;  %v13085_v23 = vrot.slane %v10011_v4, 9 }
 0x68f   : > { %19408 = vst [vmem:[#allocation12_spill] sm:$0xff] %v17984_v34  ;;  %v10113_v59 = vrot.slane %v17987_v45, 5 }
 0x693   : > { %14161 = vmatmul.mubr.msk.bf16.vlgmr.msra.gmra.mrb[32].mxu0 %vm2084_vm7, %v12970_v57  ;;  %v10008_v57 = vld [vmem:[#allocation3 + $0x30] sm:$0xe] }
 0x694   : > { %14193 = vmatpush3.bf16.msra.mxu0 %v17746_v32  ;;  %14164 = vmatprep.mubr.msk.bf16.mxu0 %vm2084_vm7, %v12971_v51  ;;  %v12953_v32 = vrot.slane %v8435_v10, 9  ;;  %v19406_v51 = vcombine.low %v17753_v52, %v17758_v15  ;;  %v17975_v10 = vld [vmem:[#allocation3 + $0x44] sm:$0x1]  ;;  %v13082_v22 = vrot.slane %v10008_v57, 9  ;;  %v10092_v52 = vrot.slane %v17958_v1, 5 }
 0x695   : > { %14194 = vmatprep.subr.bf16.mxu0 %v15040_v60  ;;  %v17980_v15 = vld [vmem:[#allocation3 + $0x50] sm:$0x1] }
 0x696   : > { %v8510_v62 = vsel %vm16157_vm0, %v12953_v32, %v8509_v58  ;;  %v12975_v58 = vcombine.low %v8524_v2, %v8527_v8  ;;  %v10010_v32 = vld [vmem:[#allocation3 + $0x48] sm:$0xe]  ;;  %v17991_v25 = vsel %vm16157_vm0, %v13082_v22, %v10092_v52  ;;  %v18011_v8 = vld [vmem:[#allocation3 + $0x68] sm:$0x1]  ;;  %v10108_v2 = vrot.slane %v10106_v42, 4 }
 0x697   : > { %v12973_v33 = vcombine.low %v8510_v62, %v8513_v29  ;;  %19409 = vst [vmem:[#allocation13_spill] sm:$0xff] %v17991_v25  ;;  %v10094_v29 = vrot.slane %v10092_v52, 4  ;;  %v13083_v62 = vrot.slane %v10009_v24, 9  ;;  %v13084_v17 = vrot.slane %v10010_v32, 9  ;;  %v10013_v24 = vld [vmem:[#allocation3 + $0x6c] sm:$0xe] }
 0x698   : > { %14195 = vmatpush3.bf16.msra.mxu0 %v15040_v60  ;;  %v17962_v60 = vld [vmem:[#allocation3 + $0x38] sm:$0x1]  ;;  %v18035_v22 = vld [vmem:[#allocation3 + $0x74] sm:$0x1]  ;;  %v18037_v52 = vld [vmem:[#allocation3 + $0x7c] sm:$0xf] }
 0x699   : > { %14228 = vmatprep.subr.bf16.mxu0 %v17929_v26  ;;  %v10095_v40 = vrot.slane %v17962_v60, 5  ;;  %v13086_v32 = vrot.slane %v10012_v41, 9 }
 0x69b   : > { %14165 = vmatmul.mubr.msk.bf16.gmra.mrb[36].mxu0 %vm2084_vm7, %v12972_v50  ;;  %v17997_v50 = vsel %vm16157_vm0, %v10087_v38, %v10088_v3  ;;  %v18007_v54 = vsel %vm16157_vm0, %v10094_v29, %v10095_v40  ;;  %v10120_v29 = vrot.slane %v18001_v61, 5  ;;  %v19417_v40 = vcombine.low %v17790_v47, %v17797_v43  ;;  %v18081_v38 = vld [vmem:[#allocation3 + $0x8c] sm:$0x1] }
 0x69c   : > { %14168 = vmatprep.mubr.msk.bf16.mxu0 %vm2084_vm7, %v12973_v33  ;;  %19410 = vst [vmem:[#allocation14_spill] sm:$0xff] %v17997_v50  ;;  %v10102_v33 = vrot.slane %v17975_v10, 5  ;;  %19411 = vst [vmem:[#allocation15_spill] sm:$0xff] %v18007_v54  ;;  %v10123_v43 = vrot.slane %v18011_v8, 5 }
 0x69d   : > { %v18061_v4 = vsel %vm16157_vm0, %v13086_v32, %v10120_v29  ;;  %v10122_v47 = vrot.slane %v10120_v29, 4 }
 0x69e   : > { %v18024_v57 = vsel %vm16157_vm0, %v10101_v53, %v10102_v33  ;;  %v10014_v33 = vld [vmem:[#allocation3 + $0x78] sm:$0xe]  ;;  %19419 = vst [vmem:[#allocation16_spill] sm:$0xff] %v18061_v4  ;;  %v10127_v53 = vrot.slane %v18020_v39, 5  ;;  %v10019_v4 = vld [vmem:[#allocation3 + $0xb4] sm:$0xe] }
 0x69f   : > { %19413 = vst [vmem:[#allocation11_spill] sm:$0xff] %v18024_v57  ;;  %v18079_v32 = vsel %vm16157_vm0, %v10122_v47, %v10123_v43 }
 0x6a0   : > { %19421 = vst [vmem:[#allocation18_spill] sm:$0xff] %v18079_v32  ;;  %v10129_v29 = vrot.slane %v10127_v53, 4 }
 0x6a3   : > { %14169 = vmatmul.mubr.msk.bf16.gmra.mrb[40].mxu0 %vm2084_vm7, %v12974_v44  ;;  %v18017_v44 = vsel %vm16157_vm0, %v13083_v62, %v10099_v30  ;;  %v10115_v30 = vrot.slane %v10113_v59, 4  ;;  %v10116_v62 = vrot.slane %v18009_v0, 5 }
 0x6a4   : > { %14172 = vmatprep.mubr.msk.bf16.mxu0 %vm2084_vm7, %v12975_v58  ;;  %19412 = vst [vmem:[#allocation10_spill] sm:$0xff] %v18017_v44  ;;  %v10109_v58 = vrot.slane %v17980_v15, 5 }
 0x6a5   : > { %v18069_v41 = vsel %vm16157_vm0, %v10115_v30, %v10116_v62 }
 0x6a6   : > { %v18043_v3 = vsel %vm16157_vm0, %v10108_v2, %v10109_v58  ;;  %19420 = vst [vmem:[#allocation17_spill] sm:$0xff] %v18069_v41  ;;  %v13087_v2 = vrot.slane %v10013_v24, 9  ;;  %v10130_v58 = vrot.slane %v18035_v22, 5  ;;  %v9314_v41 = vld [vmem:[#allocation3 + $0xc8] sm:$0x1] }
 0x6a7   : > { %19416 = vst [vmem:[#allocation8_spill] sm:$0xff] %v18043_v3 }
 0x6a8   : > { %v18092_v47 = vsel %vm16157_vm0, %v13087_v2, %v10127_v53 }
 0x6a9   : > { %19422 = vst [vmem:[#allocation19_spill] sm:$0xff] %v18092_v47 }
 0x6ab   : > { %14173 = vmatmul.mubr.msk.bf16.gmra.mrb[44].mxu0 %vm2084_vm7, %v19406_v51  ;;  %v18028_v51 = vsel %vm16157_vm0, %v13084_v17, %v10106_v42  ;;  %v18057_v42 = vld [vmem:[#allocation3 + $0x80] sm:$0x1]  ;;  %v18065_v17 = vld [vmem:[#allocation3 + $0x88] sm:$0xf] }
 0x6ac   : > { %14176 = vmatprep.mubr.msk.bf16.mxu0 %vm2084_vm7, %v19407_v31  ;;  %19414 = vst [vmem:[#allocation7_spill] sm:$0xff] %v18028_v51  ;;  %v19415_v31 = vcombine.low %v17773_v35, %v17786_v27  ;;  %v18054_v27 = vsel %vm16157_vm0, %v13085_v23, %v10113_v59  ;;  %v10134_v23 = vrot.slane %v18037_v52, 5  ;;  %v18073_v59 = vld [vmem:[#allocation3 + $0x94] sm:$0xf]  ;;  %v10015_v35 = vld [vmem:[#allocation3 + $0x84] sm:$0xe] }
 0x6ad   : > { %19418 = vst [vmem:[#allocation9_spill] sm:$0xff] %v18054_v27  ;;  %v10137_v62 = vrot.slane %v18057_v42, 5  ;;  %v10141_v24 = vrot.slane %v18065_v17, 5  ;;  %v13089_v53 = vrot.slane %v10015_v35, 9  ;;  %v10148_v2 = vrot.slane %v18073_v59, 5 }
 0x6ae   : > { %v10136_v30 = vrot.slane %v10134_v23, 4  ;;  %v19427_v35 = vcombine.low %v17819_v11, %v17827_v56 }
 0x6af   : > { %v10143_v7 = vrot.slane %v10141_v24, 4 }
 0x6b0   : > { %v18109_v16 = vsel %vm16157_vm0, %v10136_v30, %v10137_v62  ;;  %v13090_v30 = vrot.slane %v10016_v55, 9  ;;  %v18125_v62 = vld [vmem:[#allocation3 + $0xb0] sm:$0x1] }
 0x6b1   : > { %19425 = vst [vmem:[#allocation22_spill] sm:$0xff] %v18109_v16  ;;  %v18133_v16 = vld [vmem:[#allocation3 + $0xb8] sm:$0xf]  ;;  %v10165_v32 = vrot.slane %v18125_v62, 5 }
 0x6b2   : > { %v18141_v11 = vsel %vm16157_vm0, %v13090_v30, %v10148_v2 }
 0x6b3   : > { %14177 = vmatmul.mubr.msk.bf16.gmra.mrb[48].mxu0 %vm2084_vm7, %v19415_v31  ;;  %v18103_v31 = vld [vmem:[#allocation3 + $0xac] sm:$0xf]  ;;  %19430 = vst [vmem:[#allocation25_spill] sm:$0xff] %v18141_v11 }
 0x6b4   : > { %14180 = vmatprep.mubr.msk.bf16.mxu0 %vm2084_vm7, %v19417_v40  ;;  %v13088_v40 = vrot.slane %v10014_v33, 9  ;;  %v18096_v33 = vsel %vm16157_vm0, %v10129_v29, %v10130_v58  ;;  %v10017_v58 = vld [vmem:[#allocation3 + $0x9c] sm:$0xe]  ;;  %v10018_v29 = vld [vmem:[#allocation3 + $0xa8] sm:$0xe] }
 0x6b5   : > { %19423 = vst [vmem:[#allocation20_spill] sm:$0xff] %v18096_v33  ;;  %v10144_v33 = vrot.slane %v18081_v38, 5  ;;  %v13091_v56 = vrot.slane %v10017_v58, 9  ;;  %v13092_v58 = vrot.slane %v10018_v29, 9 }
 0x6b6   : > { %v18100_v43 = vsel %vm16157_vm0, %v13088_v40, %v10134_v23  ;;  %v19426_v23 = vcombine.low %v17804_v46, %v17809_v18  ;;  %v18116_v40 = vld [vmem:[#allocation3 + $0xa4] sm:$0x1]  ;;  %v18129_v46 = vsel %vm16157_vm0, %v13089_v53, %v10141_v24  ;;  %v10150_v18 = vrot.slane %v10148_v2, 4  ;;  %v18144_v24 = vld [vmem:[#allocation3 + $0xbc] sm:$0x1] }
 0x6b7   : > { %19424 = vst [vmem:[#allocation21_spill] sm:$0xff] %v18100_v43  ;;  %19428 = vst [vmem:[#allocation23_spill] sm:$0xff] %v18129_v46  ;;  %v18137_v55 = vsel %vm16157_vm0, %v10143_v7, %v10144_v33  ;;  %v18146_v53 = vld [vmem:[#allocation3 + $0xc4] sm:$0xf]  ;;  %v10157_v7 = vrot.slane %v10155_v21, 4  ;;  %v10158_v33 = vrot.slane %v18116_v40, 5  ;;  %v18160_v27 = vsel %vm16157_vm0, %v13091_v56, %v10155_v21 }
 0x6b8   : > { %19429 = vst [vmem:[#allocation24_spill] sm:$0xff] %v18137_v55  ;;  %19432 = vst [vmem:[#allocation27_spill] sm:$0xff] %v18160_v27  ;;  %v10020_v43 = vld [vmem:[#allocation3 + $0xc0] sm:$0xe]  ;;  %v10176_v21 = vrot.slane %v18146_v53, 5  ;;  %v10172_v11 = vrot.slane %v18144_v24, 5  ;;  %v19436_v2 = vcombine.low %v17823_v9, %v17835_v28 }
 0x6b9   : > { %v18234_v9 = vld [vmem:[#allocation3 + $0x14] sm:$0x1] }
 0x6ba   : > { %19444 = vst [vmem:[#allocation36_spill] sm:$0xff] %v18234_v9  ;;  %v15048_v27 = vld [vmem:[#allocation3 + $0x54] sm:$0xff]  }
 0x6bb   : > { %14181 = vmatmul.mubr.msk.bf16.gmra.mrb[52].mxu0 %vm2084_vm7, %v19426_v23  ;;  %v10151_v23 = vrot.slane %v18086_v6, 5 }
 0x6bc   : > { %14184 = vmatprep.mubr.msk.bf16.mxu0 %vm2084_vm7, %v19427_v35  ;;  %v10162_v35 = vrot.slane %v18103_v31, 5 }
 0x6bd   : > { %v18152_v47 = vsel %vm16157_vm0, %v10150_v18, %v10151_v23  ;;  %v18164_v18 = vsel %vm16157_vm0, %v10157_v7, %v10158_v33  ;;  %v10169_v23 = vrot.slane %v18133_v16, 5  ;;  %v13093_v7 = vrot.slane %v10019_v4, 9 }
 0x6be   : > { %19431 = vst [vmem:[#allocation26_spill] sm:$0xff] %v18152_v47  ;;  %v10164_v30 = vrot.slane %v10162_v35, 4  ;;  %19433 = vst [vmem:[#allocation28_spill] sm:$0xff] %v18164_v18  ;;  %v18171_v29 = vsel %vm16157_vm0, %v13092_v58, %v10162_v35  ;;  %v13094_v35 = vrot.slane %v10020_v43, 9  ;;  %v10178_v58 = vrot.slane %v10176_v21, 4 }
 0x6bf   : > { %19434 = vst [vmem:[#allocation29_spill] sm:$0xff] %v18171_v29  ;;  %v10171_v33 = vrot.slane %v10169_v23, 4  ;;  %v10179_v18 = vrot.slane %v9314_v41, 5  ;;  %v15041_v41 = vld [vmem:[#allocation3 + $0xc] sm:$0xff]   ;;  %v19442_v43 = vcombine.low %v17860_v5, %v17864_v48 }
 0x6c0   : > { %v18175_v47 = vsel %vm16157_vm0, %v10164_v30, %v10165_v32  ;;  %v19437_v32 = vcombine.low %v17839_v19, %v17849_v49  ;;  %v18191_v30 = vsel %vm16157_vm0, %v13093_v7, %v10169_v23  ;;  %v18201_v28 = vsel %vm16157_vm0, %v13094_v35, %v10176_v21  ;;  %v15044_v23 = vld [vmem:[#allocation3 + $0x24] sm:$0xff]   ;;  %v18223_v5 = vld [vmem:[%s19268_s12 + $0x50] sm:$0xff]   ;;  %v15046_v35 = vld [vmem:[#allocation3 + $0x3c] sm:$0xff]  }
 0x6c1   : > { %19435 = vst [vmem:[#allocation30_spill] sm:$0xff] %v18175_v47  ;;  %19438 = vst [vmem:[#allocation31_spill] sm:$0xff] %v18191_v30  ;;  %v18195_v4 = vsel %vm16157_vm0, %v10171_v33, %v10172_v11  ;;  %v18205_v19 = vsel %vm16157_vm0, %v10178_v58, %v10179_v18  ;;  %v15043_v11 = vld [vmem:[#allocation3 + $0x18] sm:$0xff]   ;;  %v18225_v48 = vld [vmem:[#allocation3 + $0x10] sm:$0xf] }
 0x6c2   : > { %19439 = vst [vmem:[#allocation32_spill] sm:$0xff] %v18195_v4  ;;  %19440 = vst [vmem:[#allocation33_spill] sm:$0xff] %v18201_v28  ;;  %v9267_v18 = vld [vmem:[#allocation3 + $0xc] sm:$0xf]  ;;  %v15045_v21 = vld [vmem:[#allocation3 + $0x30] sm:$0xff]   ;;  %v9325_v7 = vshll.u32 %v18225_v48, 16 }
 0x6c3   : > { %14185 = vmatmul.mubr.msk.bf16.gmra.mrb[56].mxu0 %vm2084_vm7, %v19436_v2  ;;  %19441 = vst [vmem:[#allocation34_spill] sm:$0xff] %v18205_v19  ;;  %v15051_v2 = vld [vmem:[%s19268_s12 + $0x48] sm:$0xff]   ;;  %v9329_v33 = vshrl.u32 %v18225_v48, 16  ;;  %v9316_v58 = vshrl.u32 %v9267_v18, 16  ;;  %v9273_v49 = vld [vmem:[#allocation3 + $0x24] sm:$0xf] }
 0x6c4   : > { %14188 = vmatprep.mubr.msk.bf16.mxu0 %vm2084_vm7, %v19437_v32  ;;  %v9319_v32 = vshll.u32 %v9267_v18, 16  ;;  %v15047_v30 = vld [vmem:[#allocation3 + $0x48] sm:$0xff]   ;;  %v9367_v29 = vshll.u32 %v9273_v49, 16 }
 0x6c5   : > { %v9318_v56 = vrot.slane %v9316_v58, 4 }
 0x6c6   : > { %v9321_v19 = vrot.slane %v9319_v32, 5  ;;  %v9369_v3 = vrot.slane %v9367_v29, 5  ;;  %v9383_v29 = vshll.u32 %v17960_v63, 16  ;;  %v9421_v63 = vshll.u32 %v17968_v14, 16 }
 0x6c8   : > { %v9322_v58 = vor.u32 %v9321_v19, %v9318_v56 }
 0x6ca   : > { %v9323_v54 = vrot.slane %v9322_v58, 4 }
 0x6cb   : > { %14189 = vmatmul.mubr.msk.bf16.gmra.mrb[60].mxu0 %vm2084_vm7, %v19442_v43 }
 0x6cc   : > { %14196 = vmatprep.mubr.msk.bf16.mxu0 %vm2084_vm7, %v15041_v41  ;;  %v18232_v41 = vld [vmem:[#allocation3 + $0x1c] sm:$0xf] }
 0x6cd   : > { %19443 = vst [vmem:[#allocation35_spill] sm:$0xff] %v18232_v41  ;;  %v9349_v28 = vshll.u32 %v18232_v41, 16  ;;  %v9353_v4 = vshrl.u32 %v18232_v41, 16  ;;  %v15058_v41 = vld [vmem:[#allocation3 + $0xc0] sm:$0xff]  }
 0x6cf   : > { %v9351_v32 = vrot.slane %v9349_v28, 5  ;;  %v9355_v55 = vrot.slane %v9353_v4, 4  ;;  %v15049_v4 = vld [vmem:[#allocation3 + $0x60] sm:$0xff]  }
 0x6d3   : > { %14197 = vmatmul.mubr.msk.bf16.vlgmr.msra.gmra.mrb[32].mxu0 %vm2084_vm7, %v15043_v11  ;;  %v9327_v11 = vrot.slane %v9325_v7, 5  ;;  %v9335_v7 = vshll.u32 %v18234_v9, 16  ;;  %v18404_v9 = vld [vmem:[#allocation3 + $0x5c] sm:$0x1] }
 0x6d4   : > { %14229 = vmatpush3.bf16.msra.mxu0 %v17929_v26  ;;  %14200 = vmatprep.mubr.msk.bf16.mxu0 %vm2084_vm7, %v15044_v23  ;;  %v9270_v26 = vld [vmem:[#allocation3 + $0x18] sm:$0xf]  ;;  %19458 = vst [vmem:[#allocation50_spill] sm:$0xff] %v18404_v9 }
 0x6d5   : > { %14230 = vmatprep.subr.bf16.mxu0 %v15051_v2  ;;  %v9340_v43 = vshrl.u32 %v9270_v26, 16  ;;  %v9343_v23 = vshll.u32 %v9270_v26, 16  ;;  %v9377_v26 = vshrl.u32 %v17956_v36, 16  ;;  %v9337_v51 = vrot.slane %v9335_v7, 5 }
 0x6d7   : > { %v9345_v47 = vrot.slane %v9343_v23, 5  ;;  %v9379_v44 = vrot.slane %v9377_v26, 4 }
 0x6d8   : > { %14231 = vmatpush3.bf16.msra.mxu0 %v15051_v2  ;;  %v9331_v2 = vrot.slane %v9329_v33, 4  ;;  %v9373_v33 = vshll.u32 %v17956_v36, 16  ;;  %v9356_v36 = vor.u32 %v9355_v55, %v9351_v32  ;;  %v9328_v55 = vsel %vm15590_vm6, %v9323_v54, %v9327_v11 }
 0x6d9   : > { %14264 = vmatprep.subr.bf16.mxu0 %v18223_v5  ;;  %v9445_v54 = vshll.u32 %v17977_v20, 16 }
 0x6da   : > { %v9332_v18 = vor.u32 %v9331_v2, %v9327_v11  ;;  %v18243_v2 = vld [vmem:[#allocation3 + $0x20] sm:$0x1]  ;;  %v18245_v57 = vrot.slane %v9373_v33, 5  ;;  %v9357_v7 = vrot.slane %v9356_v36, 4 }
 0x6db   : > { %14201 = vmatmul.mubr.msk.bf16.gmra.mrb[36].mxu0 %vm2084_vm7, %v15045_v21  ;;  %v9342_v21 = vrot.slane %v9340_v43, 4  ;;  %v9276_v43 = vld [vmem:[#allocation3 + $0x30] sm:$0xf]  ;;  %19445 = vst [vmem:[#allocation37_spill] sm:$0xff] %v18243_v2  ;;  %v9359_v56 = vshll.u32 %v18243_v2, 16  ;;  %v18272_v50 = vrot.slane %v9445_v54, 5 }
 0x6dc   : > { %14204 = vmatprep.mubr.msk.bf16.mxu0 %vm2084_vm7, %v15046_v35  ;;  %v9364_v35 = vshrl.u32 %v9273_v49, 16  ;;  %v9333_v46 = vrot.slane %v9332_v18, 4  ;;  %v9388_v25 = vshrl.u32 %v9276_v43, 16  ;;  %v15050_v18 = vld [vmem:[#allocation3 + $0x6c] sm:$0xff]  }
 0x6dd   : > { %v9346_v23 = vor.u32 %v9345_v47, %v9342_v21  ;;  %v9380_v47 = vor.u32 %v9379_v44, %v18245_v57  ;;  %v9397_v21 = vshll.u32 %v17958_v1, 16  ;;  %v9279_v44 = vld [vmem:[#allocation3 + $0x3c] sm:$0xf] }
 0x6de   : > { %v9366_v49 = vrot.slane %v9364_v35, 4  ;;  %v9401_v35 = vshrl.u32 %v17958_v1, 16  ;;  %v9390_v33 = vrot.slane %v9388_v25, 4  ;;  %v9449_v25 = vshrl.u32 %v17977_v20, 16 }
 0x6df   : > { %v9347_v28 = vrot.slane %v9346_v23, 4  ;;  %v9381_v11 = vrot.slane %v9380_v47, 4  ;;  %v9385_v23 = vrot.slane %v9383_v29, 5 }
 0x6e0   : > { %v9370_v19 = vor.u32 %v9369_v3, %v9366_v49  ;;  %v9361_v3 = vrot.slane %v9359_v56, 5  ;;  %v18266_v49 = vrot.slane %v9397_v21, 5  ;;  %v9403_v36 = vrot.slane %v9401_v35, 4  ;;  %v15053_v21 = vld [vmem:[#allocation3 + $0x84] sm:$0xff]  }
 0x6e1   : > { %v9352_v1 = vsel %vm15590_vm6, %v9347_v28, %v9351_v32  ;;  %v9451_v20 = vrot.slane %v9449_v25, 4 }
 0x6e2   : > { %v9371_v58 = vrot.slane %v9370_v19, 4  ;;  %v9362_v56 = vsel %vm15590_vm6, %v9357_v7, %v9361_v3  ;;  %v9386_v7 = vsel %vm15590_vm6, %v9381_v11, %v9385_v23  ;;  %v9469_v11 = vshll.u32 %v17987_v45, 16 }
 0x6e3   : > { %14205 = vmatmul.mubr.msk.bf16.gmra.mrb[40].mxu0 %vm2084_vm7, %v15047_v30  ;;  %v9391_v30 = vshll.u32 %v9276_v43, 16  ;;  %v9282_v43 = vld [vmem:[#allocation3 + $0x48] sm:$0xf]  ;;  %v18274_v35 = vcombine.low %v9352_v1, %v9362_v56  ;;  %v9452_v23 = vor.u32 %v9451_v20, %v18272_v50 }
 0x6e4   : > { %14208 = vmatprep.mubr.msk.bf16.mxu0 %vm2084_vm7, %v15048_v27  ;;  %v9338_v27 = vsel %vm15590_vm6, %v9333_v46, %v9337_v51  ;;  %v9425_v46 = vshrl.u32 %v17968_v14, 16  ;;  %v9412_v14 = vshrl.u32 %v9279_v44, 16  ;;  %v9436_v28 = vshrl.u32 %v9282_v43, 16 }
 0x6e5   : > { %v9393_v26 = vrot.slane %v9391_v30, 5  ;;  %v18258_v51 = vcombine.low %v9328_v55, %v9338_v27  ;;  %v9285_v30 = vld [vmem:[#allocation3 + $0x54] sm:$0xf]  ;;  %v9415_v27 = vshll.u32 %v9279_v44, 16  ;;  %v9439_v19 = vshll.u32 %v9282_v43, 16  ;;  %v15052_v55 = vld [vmem:[#allocation3 + $0x78] sm:$0xff]  }
 0x6e6   : > { %v9427_v32 = vrot.slane %v9425_v46, 4  ;;  %v9460_v47 = vshrl.u32 %v9285_v30, 16  ;;  %v9463_v29 = vshll.u32 %v9285_v30, 16  ;;  %v9414_v44 = vrot.slane %v9412_v14, 4  ;;  %v9288_v43 = vld [vmem:[#allocation3 + $0x60] sm:$0xf] }
 0x6e7   : > { %v9431_v46 = vshll.u32 %v17975_v10, 16  ;;  %v9438_v54 = vrot.slane %v9436_v28, 4  ;;  %v9441_v25 = vrot.slane %v9439_v19, 5  ;;  %v9473_v30 = vshrl.u32 %v17987_v45, 16 }
 0x6e8   : > { %v9376_v56 = vsel %vm15590_vm6, %v9371_v58, %v18245_v57  ;;  %v9487_v14 = vshll.u32 %v9288_v43, 16  ;;  %v9455_v19 = vshll.u32 %v17980_v15, 16  ;;  %v9453_v34 = vrot.slane %v9452_v23, 4 }
 0x6e9   : > { %v9442_v45 = vor.u32 %v9441_v25, %v9438_v54  ;;  %v18296_v58 = vrot.slane %v9469_v11, 5  ;;  %v9497_v15 = vshrl.u32 %v18001_v61, 16  ;;  %v9479_v11 = vshll.u32 %v18009_v0, 16 }
 0x6eb   : > { %14209 = vmatmul.mubr.msk.bf16.gmra.mrb[44].mxu0 %vm2084_vm7, %v15049_v4  ;;  %v9394_v4 = vor.u32 %v9393_v26, %v9390_v33  ;;  %v9404_v33 = vor.u32 %v9403_v36, %v18266_v49  ;;  %v9407_v26 = vshll.u32 %v17962_v60, 16  ;;  %v9462_v36 = vrot.slane %v9460_v47, 4 }
 0x6ec   : > { %14212 = vmatprep.mubr.msk.bf16.mxu0 %vm2084_vm7, %v15050_v18  ;;  %v18270_v18 = vrot.slane %v9421_v63, 5  ;;  %v9417_v63 = vrot.slane %v9415_v27, 5  ;;  %v9465_v60 = vrot.slane %v9463_v29, 5  ;;  %v18290_v27 = vcombine.low %v9376_v56, %v9386_v7  ;;  %v9291_v29 = vld [vmem:[#allocation3 + $0x6c] sm:$0xf]  ;;  %v15055_v7 = vld [vmem:[#allocation3 + $0x9c] sm:$0xff]  }
 0x6ed   : > { %v9395_v3 = vrot.slane %v9394_v4, 4  ;;  %v9409_v10 = vrot.slane %v9407_v26, 5  ;;  %v9484_v4 = vshrl.u32 %v9288_v43, 16  ;;  %v9433_v47 = vrot.slane %v9431_v46, 5 }
 0x6ee   : > { %v9428_v1 = vor.u32 %v9427_v32, %v18270_v18  ;;  %v9405_v32 = vrot.slane %v9404_v33, 4  ;;  %v9418_v28 = vor.u32 %v9417_v63, %v9414_v44  ;;  %v9466_v57 = vor.u32 %v9465_v60, %v9462_v36 }
 0x6ef   : > { %v9475_v26 = vrot.slane %v9473_v30, 4  ;;  %v9486_v43 = vrot.slane %v9484_v4, 4  ;;  %v9489_v33 = vrot.slane %v9487_v14, 5  ;;  %v9493_v44 = vshll.u32 %v18001_v61, 16 }
 0x6f0   : > { %v9429_v20 = vrot.slane %v9428_v1, 4  ;;  %v9508_v63 = vshrl.u32 %v9291_v29, 16  ;;  %v9511_v46 = vshll.u32 %v9291_v29, 16  ;;  %v9410_v1 = vsel %vm15590_vm6, %v9405_v32, %v9409_v10  ;;  %v15056_v29 = vld [vmem:[#allocation3 + $0xa8] sm:$0xff]  }
 0x6f1   : > { %v9443_v25 = vrot.slane %v9442_v45, 4  ;;  %v18309_v23 = vrot.slane %v9466_v57, 4  ;;  %v9517_v36 = vshll.u32 %v18020_v39, 16  ;;  %v9521_v60 = vshrl.u32 %v18020_v39, 16  ;;  %v18329_v39 = vld [vmem:[#allocation3 + $0x20] sm:$0x1] }
 0x6f2   : > { %v9434_v54 = vsel %vm15590_vm6, %v9429_v20, %v9433_v47  ;;  %v9476_v30 = vor.u32 %v9475_v26, %v18296_v58  ;;  %v9490_v56 = vor.u32 %v9489_v33, %v9486_v43  ;;  %v18314_v4 = vrot.slane %v9493_v44, 5  ;;  %19447 = vst [vmem:[#allocation39_spill] sm:$0xff] %v18329_v39  ;;  %v18339_v45 = vld [vmem:[#allocation3 + $0x28] sm:$0xf]  ;;  %v18353_v43 = vld [vmem:[#allocation3 + $0x2c] sm:$0x1] }
 0x6f3   : > { %14213 = vmatmul.mubr.msk.bf16.gmra.mrb[48].mxu0 %vm2084_vm7, %v15052_v55  ;;  %v9400_v55 = vsel %vm15590_vm6, %v9395_v3, %v18266_v49  ;;  %v9419_v49 = vrot.slane %v9418_v28, 4  ;;  %v9457_v3 = vrot.slane %v9455_v19, 5  ;;  %v18316_v10 = vrot.slane %v9497_v15, 4  ;;  %v18327_v28 = vld [vmem:[#allocation3 + $0x1c] sm:$0xf]  ;;  %19448 = vst [vmem:[#allocation40_spill] sm:$0xff] %v18339_v45 }
 0x6f4   : > { %14216 = vmatprep.mubr.msk.bf16.mxu0 %vm2084_vm7, %v15053_v21  ;;  %v15054_v21 = vld [vmem:[#allocation3 + $0x90] sm:$0xff]   ;;  %v18318_v14 = vcombine.low %v9400_v55, %v9410_v1  ;;  %v18325_v32 = vrot.slane %v9511_v46, 5  ;;  %19446 = vst [vmem:[#allocation38_spill] sm:$0xff] %v18327_v28  ;;  %v9448_v20 = vsel %vm15590_vm6, %v9443_v25, %v18272_v50  ;;  %v18336_v55 = vrot.slane %v9479_v11, 5  ;;  %v18351_v50 = vld [vmem:[#allocation3 + $0x78] sm:$0xf] }
 0x6f5   : > { %v9458_v61 = vsel %vm15590_vm6, %v9453_v34, %v9457_v3  ;;  %v9424_v0 = vsel %vm15590_vm6, %v9419_v49, %v18270_v18  ;;  %v18323_v34 = vrot.slane %v9508_v63, 4  ;;  %v11595_v18 = vld [vmem:[#allocation3 + $0x18] sm:$0xe]  ;;  %v18347_v26 = vrot.slane %v9517_v36, 5  ;;  %19449 = vst [vmem:[#allocation41_spill] sm:$0xff] %v18353_v43 }
 0x6f6   : > { %v18331_v19 = vcombine.low %v9424_v0, %v9434_v54  ;;  %v18355_v33 = vld [vmem:[#allocation3 + $0x34] sm:$0xf]  ;;  %v18357_v15 = vrot.slane %v9476_v30, 4  ;;  %v18359_v49 = vrot.slane %v9490_v56, 4  ;;  %v11661_v63 = vrot.slane %v18327_v28, 5 }
 0x6f7   : > { %19450 = vst [vmem:[#allocation42_spill] sm:$0xff] %v18355_v33  ;;  %v15057_v44 = vld [vmem:[#allocation3 + $0xb4] sm:$0xff]   ;;  %v11596_v46 = vld [vmem:[#allocation3 + $0x24] sm:$0xe]  ;;  %v9541_v54 = vshll.u32 %v18037_v52, 16  ;;  %v9545_v25 = vshrl.u32 %v18037_v52, 16 }
 0x6f8   : > { %v18369_v11 = vld [vmem:[#allocation3 + $0x38] sm:$0x1]  ;;  %v11663_v30 = vrot.slane %v11661_v63, 4  ;;  %v11664_v56 = vrot.slane %v18329_v39, 5  ;;  %v11668_v0 = vrot.slane %v18339_v45, 5  ;;  %v13210_v57 = vrot.slane %v11596_v46, 9 }
 0x6f9   : > { %19451 = vst [vmem:[#allocation43_spill] sm:$0xff] %v18369_v11  ;;  %v18380_v47 = vld [vmem:[#allocation3 + $0x44] sm:$0x1]  ;;  %v18388_v1 = vld [vmem:[#allocation3 + $0x50] sm:$0x1]  ;;  %v11671_v52 = vrot.slane %v18353_v43, 5 }
 0x6fa   : > { %19452 = vst [vmem:[#allocation44_spill] sm:$0xff] %v18380_v47  ;;  %19455 = vst [vmem:[#allocation47_spill] sm:$0xff] %v18388_v1  ;;  %v18390_v3 = vld [vmem:[#allocation3 + $0x58] sm:$0xf]  ;;  %v18394_v36 = vsel %vm16157_vm0, %v11663_v30, %v11664_v56  ;;  %v11675_v39 = vrot.slane %v18355_v33, 5  ;;  %v18398_v28 = vrot.slane %v9541_v54, 5  ;;  %v18408_v30 = vsel %vm16157_vm0, %v13210_v57, %v11668_v0 }
 0x6fb   : > { %14217 = vmatmul.mubr.msk.bf16.gmra.mrb[52].mxu0 %vm2084_vm7, %v15054_v21  ;;  %v18341_v21 = vcombine.low %v9448_v20, %v9458_v61  ;;  %v13209_v61 = vrot.slane %v11595_v18, 9  ;;  %v11597_v20 = vld [vmem:[#allocation3 + $0x30] sm:$0xe]  ;;  %v18382_v18 = vld [vmem:[#allocation3 + $0x4c] sm:$0xf]  ;;  %19456 = vst [vmem:[#allocation48_spill] sm:$0xff] %v18390_v3 }
 0x6fc   : > { %14220 = vmatprep.mubr.msk.bf16.mxu0 %vm2084_vm7, %v15055_v7  ;;  %v18349_v7 = vrot.slane %v9521_v60, 4  ;;  %v18373_v60 = vld [vmem:[#allocation3 + $0x40] sm:$0xf]  ;;  %19453 = vst [vmem:[#allocation45_spill] sm:$0xff] %v18382_v18  ;;  %19457 = vst [vmem:[#allocation49_spill] sm:$0xff] %v18394_v36  ;;  %v18400_v2 = vrot.slane %v9545_v25, 4 }
 0x6fd   : > { %v11598_v45 = vld [vmem:[#allocation3 + $0x3c] sm:$0xe]  ;;  %v13211_v46 = vrot.slane %v11597_v20, 9  ;;  %19459 = vst [vmem:[#allocation51_spill] sm:$0xff] %v18408_v30  ;;  %v11677_v54 = vrot.slane %v11675_v39, 4  ;;  %v11678_v25 = vrot.slane %v18369_v11, 5 }
 0x6fe   : > { %v18415_v33 = vld [vmem:[#allocation3 + $0x64] sm:$0xf]  ;;  %v13212_v36 = vrot.slane %v11598_v45, 9  ;;  %v11682_v57 = vrot.slane %v18373_v60, 5  ;;  %v11689_v43 = vrot.slane %v18382_v18, 5 }
 0x6ff   : > { %19461 = vst [vmem:[#allocation53_spill] sm:$0xff] %v18415_v33  ;;  %v18433_v20 = vld [vmem:[#allocation3 + $0x70] sm:$0xf]  ;;  %v11601_v30 = vld [vmem:[#allocation3 + $0x60] sm:$0xe] }
 0x700   : > { %v11684_v45 = vrot.slane %v11682_v57, 4  ;;  %v18459_v18 = vld [vmem:[#allocation3 + $0x80] sm:$0x1] }
 0x701   : > { %19469 = vst [vmem:[#allocation61_spill] sm:$0xff] %v18459_v18 }
 0x703   : > { %14221 = vmatmul.mubr.msk.bf16.gmra.mrb[56].mxu0 %vm2084_vm7, %v15056_v29  ;;  %v11670_v29 = vrot.slane %v11668_v0, 4  ;;  %v11600_v0 = vld [vmem:[#allocation3 + $0x54] sm:$0xe] }
 0x704   : > { %14224 = vmatprep.mubr.msk.bf16.mxu0 %vm2084_vm7, %v15057_v44  ;;  %v18386_v44 = vsel %vm16157_vm0, %v13209_v61, %v11661_v63  ;;  %v11599_v61 = vld [vmem:[#allocation3 + $0x48] sm:$0xe]  ;;  %v18421_v63 = vsel %vm16157_vm0, %v13211_v46, %v11675_v39  ;;  %v11692_v46 = vrot.slane %v18388_v1, 5  ;;  %v11691_v39 = vrot.slane %v11689_v43, 4 }
 0x705   : > { %19454 = vst [vmem:[#allocation46_spill] sm:$0xff] %v18386_v44  ;;  %v18412_v56 = vsel %vm16157_vm0, %v11670_v29, %v11671_v52  ;;  %19462 = vst [vmem:[#allocation54_spill] sm:$0xff] %v18421_v63  ;;  %v18424_v44 = vld [vmem:[#allocation3 + $0x68] sm:$0x1]  ;;  %v18428_v29 = vsel %vm16157_vm0, %v11677_v54, %v11678_v25  ;;  %v11685_v52 = vrot.slane %v18380_v47, 5  ;;  %v13213_v11 = vrot.slane %v11599_v61, 9 }
 0x706   : > { %19460 = vst [vmem:[#allocation52_spill] sm:$0xff] %v18412_v56  ;;  %19463 = vst [vmem:[#allocation55_spill] sm:$0xff] %v18424_v44  ;;  %v11696_v56 = vrot.slane %v18390_v3, 5  ;;  %v18441_v54 = vld [vmem:[#allocation3 + $0x74] sm:$0x1]  ;;  %v11703_v47 = vrot.slane %v18415_v33, 5 }
 0x707   : > { %19464 = vst [vmem:[#allocation56_spill] sm:$0xff] %v18428_v29  ;;  %19465 = vst [vmem:[#allocation57_spill] sm:$0xff] %v18441_v54  ;;  %v18443_v61 = vld [vmem:[#allocation3 + $0x7c] sm:$0xf]  ;;  %v18451_v25 = vsel %vm16157_vm0, %v13213_v11, %v11689_v43  ;;  %v13214_v29 = vrot.slane %v11600_v0, 9  ;;  %v18455_v63 = vsel %vm16157_vm0, %v11684_v45, %v11685_v52  ;;  %v18465_v11 = vsel %vm16157_vm0, %v11691_v39, %v11692_v46 }
 0x708   : > { %19467 = vst [vmem:[#allocation59_spill] sm:$0xff] %v18451_v25  ;;  %19468 = vst [vmem:[#allocation60_spill] sm:$0xff] %v18455_v63  ;;  %v11698_v1 = vrot.slane %v11696_v56, 4  ;;  %v11602_v3 = vld [vmem:[#allocation3 + $0x6c] sm:$0xe]  ;;  %v11706_v39 = vrot.slane %v18424_v44, 5 }
 0x709   : > { %19470 = vst [vmem:[#allocation62_spill] sm:$0xff] %v18465_v11  ;;  %v18469_v43 = vsel %vm16157_vm0, %v13214_v29, %v11696_v56  ;;  %v11603_v0 = vld [vmem:[#allocation3 + $0x78] sm:$0xe]  ;;  %v18471_v52 = vld [vmem:[#allocation3 + $0x88] sm:$0xf]  ;;  %v13216_v29 = vrot.slane %v11602_v3, 9 }
 0x70a   : > { %19471 = vst [vmem:[#allocation63_spill] sm:$0xff] %v18469_v43  ;;  %19472 = vst [vmem:[#allocation64_spill] sm:$0xff] %v18471_v52  ;;  %v10886_v45 = vld [vmem:[#allocation3 + $0x8c] sm:$0x1]  ;;  %v18480_v46 = vld [vmem:[#allocation3 + $0x94] sm:$0xf] }
 0x70b   : > { %14225 = vmatmul.mubr.msk.bf16.gmra.mrb[60].mxu0 %vm2084_vm7, %v15058_v41  ;;  %v18447_v41 = vsel %vm16157_vm0, %v13212_v36, %v11682_v57  ;;  %v13215_v57 = vrot.slane %v11601_v30, 9  ;;  %v11705_v36 = vrot.slane %v11703_v47, 4  ;;  %19474 = vst [vmem:[#allocation66_spill] sm:$0xff] %v18480_v46  ;;  %v11710_v63 = vrot.slane %v18433_v20, 5  ;;  %v18506_v44 = vld [vmem:[#allocation3 + $0xa0] sm:$0xf] }
 0x70c   : > { %14232 = vmatprep.mubr.msk.bf16.mxu0 %vm2084_vm7, %v18258_v51  ;;  %19466 = vst [vmem:[#allocation58_spill] sm:$0xff] %v18447_v41  ;;  %v11699_v51 = vrot.slane %v18404_v9, 5  ;;  %v11604_v9 = vld [vmem:[#allocation3 + $0x84] sm:$0xe]  ;;  %v11713_v56 = vrot.slane %v18441_v54, 5  ;;  %v11720_v43 = vrot.slane %v18459_v18, 5 }
 0x70d   : > { %v18486_v30 = vsel %vm16157_vm0, %v13215_v57, %v11703_v47  ;;  %v18496_v11 = vsel %vm16157_vm0, %v11705_v36, %v11706_v39  ;;  %v11717_v47 = vrot.slane %v18443_v61, 5  ;;  %v11712_v57 = vrot.slane %v11710_v63, 4  ;;  %v11605_v41 = vld [vmem:[#allocation3 + $0x90] sm:$0xe]  ;;  %v10892_v36 = vld [vmem:[#allocation3 + $0xa4] sm:$0x1] }
 0x70e   : > { %v18477_v33 = vsel %vm16157_vm0, %v11698_v1, %v11699_v51  ;;  %19475 = vst [vmem:[#allocation67_spill] sm:$0xff] %v18486_v30  ;;  %v15060_v1 = vld [vmem:[%s19268_s12 + $0x58] sm:$0xff]   ;;  %19476 = vst [vmem:[#allocation68_spill] sm:$0xff] %v18496_v11  ;;  %v11724_v25 = vrot.slane %v18471_v52, 5  ;;  %v13218_v11 = vrot.slane %v11604_v9, 9  ;;  %v11727_v18 = vrot.slane %v10886_v45, 5 }
 0x70f   : > { %19473 = vst [vmem:[#allocation65_spill] sm:$0xff] %v18477_v33  ;;  %v18492_v51 = vld [vmem:[#allocation3 + $0x98] sm:$0x1]  ;;  %v13217_v33 = vrot.slane %v11603_v0, 9  ;;  %v18510_v0 = vsel %vm16157_vm0, %v13216_v29, %v11710_v63  ;;  %v11719_v3 = vrot.slane %v11717_v47, 4  ;;  %v11731_v63 = vrot.slane %v18480_v46, 5 }
 0x710   : > { %19477 = vst [vmem:[#allocation69_spill] sm:$0xff] %v18510_v0  ;;  %v11726_v30 = vrot.slane %v11724_v25, 4  ;;  %v11606_v29 = vld [vmem:[#allocation3 + $0x9c] sm:$0xe]  ;;  %v18529_v9 = vld [vmem:[#allocation3 + $0xac] sm:$0xf]  ;;  %v18539_v45 = vsel %vm16157_vm0, %v13218_v11, %v11724_v25 }
 0x711   : > { %v18514_v39 = vsel %vm16157_vm0, %v13217_v33, %v11717_v47  ;;  %v18527_v33 = vld [vmem:[%s19268_s12 + $0x60] sm:$0xff]   ;;  %19481 = vst [vmem:[#allocation73_spill] sm:$0xff] %v18539_v45  ;;  %v11607_v47 = vld [vmem:[#allocation3 + $0xa8] sm:$0xe]  ;;  %v18541_v46 = vld [vmem:[#allocation3 + $0xb8] sm:$0xf] }
 0x712   : > { %19478 = vst [vmem:[#allocation70_spill] sm:$0xff] %v18514_v39  ;;  %v18547_v54 = vsel %vm16157_vm0, %v11726_v30, %v11727_v18  ;;  %v13220_v11 = vrot.slane %v11606_v29, 9  ;;  %v11608_v0 = vld [vmem:[#allocation3 + $0xb4] sm:$0xe]  ;;  %v18557_v52 = vld [vmem:[#allocation3 + $0xc4] sm:$0xf] }
 0x713   : > { %14233 = vmatmul.mubr.msk.bf16.vlgmr.msra.gmra.mrb[32].mxu0 %vm2084_vm7, %v18274_v35  ;;  %v18521_v35 = vsel %vm16157_vm0, %v11712_v57, %v11713_v56  ;;  %v13219_v56 = vrot.slane %v11605_v41, 9  ;;  %v10895_v57 = vld [vmem:[#allocation3 + $0xb0] sm:$0x1]  ;;  %19482 = vst [vmem:[#allocation74_spill] sm:$0xff] %v18547_v54  ;;  %v11741_v30 = vrot.slane %v10892_v36, 5  ;;  %v11745_v39 = vrot.slane %v18529_v9, 5 }
 0x714   : > { %14265 = vmatpush3.bf16.msra.mxu0 %v18223_v5  ;;  %14236 = vmatprep.mubr.msk.bf16.mxu0 %vm2084_vm7, %v18290_v27  ;;  %19479 = vst [vmem:[#allocation71_spill] sm:$0xff] %v18521_v35  ;;  %v18535_v27 = vsel %vm16157_vm0, %v11719_v3, %v11720_v43  ;;  %v11733_v5 = vrot.slane %v11731_v63, 4  ;;  %v11734_v43 = vrot.slane %v18492_v51, 5  ;;  %v10898_v3 = vld [vmem:[#allocation3 + $0xbc] sm:$0x1]  ;;  %v11738_v35 = vrot.slane %v18506_v44, 5 }
 0x715   : > { %14266 = vmatprep.subr.bf16.mxu0 %v15060_v1  ;;  %19480 = vst [vmem:[#allocation72_spill] sm:$0xff] %v18535_v27  ;;  %v18554_v41 = vsel %vm16157_vm0, %v13219_v56, %v11731_v63  ;;  %v13221_v27 = vrot.slane %v11607_v47, 9  ;;  %v11748_v56 = vrot.slane %v10895_v57, 5  ;;  %v11752_v25 = vrot.slane %v18541_v46, 5  ;;  %v10901_v54 = vld [vmem:[#allocation3 + $0xc8] sm:$0x1] }
 0x716   : > { %v18561_v18 = vsel %vm16157_vm0, %v11733_v5, %v11734_v43  ;;  %v11740_v29 = vrot.slane %v11738_v35, 4  ;;  %v18570_v45 = vsel %vm16157_vm0, %v13220_v11, %v11738_v35  ;;  %v11747_v5 = vrot.slane %v11745_v39, 4  ;;  %v19562_v12 = vld [vmem:[#allocation58_spill] sm:$0xff] }
 0x717   : > { %19483 = vst [vmem:[#allocation75_spill] sm:$0xff] %v18561_v18  ;;  %v18574_v36 = vsel %vm16157_vm0, %v13221_v27, %v11745_v39  ;;  %v13222_v47 = vrot.slane %v11608_v0, 9  ;;  %v11754_v43 = vrot.slane %v11752_v25, 4  ;;  %v11755_v63 = vrot.slane %v10898_v3, 5  ;;  %v9297_v27 = vld [vmem:[#allocation3 + $0x84] sm:$0xf] }
 0x718   : > { %14267 = vmatpush3.bf16.msra.mxu0 %v15060_v1  ;;  %v11609_v1 = vld [vmem:[#allocation3 + $0xc0] sm:$0xe]  ;;  %v18580_v57 = vsel %vm16157_vm0, %v11740_v29, %v11741_v30  ;;  %v11759_v18 = vrot.slane %v18557_v52, 5  ;;  %v18589_v0 = vsel %vm16157_vm0, %v11747_v5, %v11748_v56  ;;  %v11762_v30 = vrot.slane %v10901_v54, 5 }
 0x719   : > { %14300 = vmatprep.subr.bf16.mxu0 %v18527_v33  ;;  %v13240_v35 = vcombine.low %v18570_v45, %v18580_v57  ;;  %v13223_v39 = vrot.slane %v11609_v1, 9  ;;  %v18599_v11 = vsel %vm16157_vm0, %v11754_v43, %v11755_v63  ;;  %v9482_v29 = vsel %vm15590_vm6, %v18357_v15, %v18336_v55 }
 0x71a   : > { %v9527_v56 = vshll.u32 %v18035_v22, 16  ;;  %v9569_v63 = vshrl.u32 %v18065_v17, 16  ;;  %v19485_v22 = vshll.u32 %v18351_v50, 16  ;;  %v9556_v15 = vshrl.u32 %v9297_v27, 16 }
 0x71b   : > { %14237 = vmatmul.mubr.msk.bf16.gmra.mrb[36].mxu0 %vm2084_vm7, %v18318_v14  ;;  %v18593_v14 = vsel %vm16157_vm0, %v13222_v47, %v11752_v25  ;;  %v19484_v25 = vshrl.u32 %v18351_v50, 16  ;;  %v9565_v47 = vshll.u32 %v18065_v17, 16  ;;  %v18614_v54 = vsel %vm16157_vm0, %v13223_v39, %v11759_v18 }
 0x71c   : > { %14240 = vmatprep.mubr.msk.bf16.mxu0 %vm2084_vm7, %v18331_v19  ;;  %v11761_v19 = vrot.slane %v11759_v18, 4  ;;  %v9537_v55 = vrot.slane %v19485_v22, 5  ;;  %v19486_v3 = vor.u32 %v18316_v10, %v18314_v4  ;;  %v19487_v18 = vor.u32 %v18325_v32, %v18323_v34 }
 0x71d   : > { %v9534_v1 = vrot.slane %v19484_v25, 4  ;;  %v9559_v25 = vshll.u32 %v9297_v27, 16  ;;  %v9548_v50 = vor.u32 %v18400_v2, %v18398_v28  ;;  %v19489_v27 = vsel %vm15590_vm6, %v18309_v23, %v18296_v58 }
 0x71e   : > { %v18618_v43 = vsel %vm16157_vm0, %v11761_v19, %v11762_v30  ;;  %v9501_v17 = vrot.slane %v19486_v3, 4  ;;  %v9515_v39 = vrot.slane %v19487_v18, 4  ;;  %v19488_v19 = vor.u32 %v18349_v7, %v18347_v26 }
 0x71f   : > { %v13051_v22 = vcombine.low %v19489_v27, %v9482_v29  ;;  %v19490_v10 = vshll.u32 %v18011_v8, 16  ;;  %v9529_v34 = vrot.slane %v9527_v56, 5  ;;  %v9551_v32 = vshll.u32 %v18057_v42, 16 }
 0x720   : > { %v9525_v30 = vrot.slane %v19488_v19, 4  ;;  %v18645_v7 = vrot.slane %v9565_v47, 5  ;;  %v9571_v18 = vrot.slane %v9569_v63, 4  ;;  %v9300_v19 = vld [vmem:[#allocation3 + $0x90] sm:$0xf]  ;;  %v9496_v2 = vsel %vm15590_vm6, %v18359_v49, %v18314_v4 }
 0x721   : > { %v9505_v3 = vrot.slane %v19490_v10, 5  ;;  %v9538_v58 = vor.u32 %v9537_v55, %v9534_v1  ;;  %v9558_v8 = vrot.slane %v9556_v15, 4  ;;  %v9561_v23 = vrot.slane %v9559_v25, 5  ;;  %v9303_v49 = vld [vmem:[#allocation3 + $0x9c] sm:$0xf] }
 0x722   : > { %v9520_v42 = vsel %vm15590_vm6, %v9515_v39, %v18347_v26  ;;  %v9530_v29 = vsel %vm15590_vm6, %v9525_v30, %v9529_v34  ;;  %v9549_v56 = vrot.slane %v9548_v50, 4  ;;  %v9580_v47 = vshrl.u32 %v9300_v19, 16 }
 0x723   : > { %14241 = vmatmul.mubr.msk.bf16.gmra.mrb[40].mxu0 %vm2084_vm7, %v18341_v21  ;;  %v9506_v21 = vsel %vm15590_vm6, %v9501_v17, %v9505_v3  ;;  %v9583_v63 = vshll.u32 %v9300_v19, 16  ;;  %v9589_v27 = vshll.u32 %v18073_v59, 16  ;;  %v9593_v4 = vshrl.u32 %v18073_v59, 16 }
 0x724   : > { %14244 = vmatprep.mubr.msk.bf16.mxu0 %vm2084_vm7, %v13051_v22  ;;  %v9553_v1 = vrot.slane %v9551_v32, 5  ;;  %v9572_v55 = vor.u32 %v9571_v18, %v18645_v7  ;;  %v9613_v15 = vshll.u32 %v18088_v37, 16  ;;  %v9617_v25 = vshrl.u32 %v18088_v37, 16 }
 0x725   : > { %v13052_v17 = vcombine.low %v9496_v2, %v9506_v21  ;;  %v13053_v26 = vcombine.low %v9520_v42, %v9530_v29  ;;  %v9539_v39 = vrot.slane %v9538_v58, 4  ;;  %v9562_v22 = vor.u32 %v9561_v23, %v9558_v8  ;;  %v9306_v42 = vld [vmem:[#allocation3 + $0xa8] sm:$0xf] }
 0x726   : > { %v9554_v30 = vsel %vm15590_vm6, %v9549_v56, %v9553_v1  ;;  %v9575_v50 = vshll.u32 %v18081_v38, 16  ;;  %v9604_v10 = vshrl.u32 %v9303_v49, 16  ;;  %v9607_v3 = vshll.u32 %v9303_v49, 16 }
 0x727   : > { %v9582_v59 = vrot.slane %v9580_v47, 4  ;;  %v9585_v34 = vrot.slane %v9583_v63, 5  ;;  %v9591_v32 = vrot.slane %v9589_v27, 5  ;;  %v9595_v19 = vrot.slane %v9593_v4, 4  ;;  %v9309_v27 = vld [vmem:[#allocation3 + $0xb4] sm:$0xf] }
 0x728   : > { %v9573_v18 = vrot.slane %v9572_v55, 4  ;;  %v9615_v5 = vrot.slane %v9613_v15, 5  ;;  %v9619_v37 = vrot.slane %v9617_v25, 4  ;;  %v9544_v2 = vsel %vm15590_vm6, %v9539_v39, %v18398_v28 }
 0x729   : > { %v9563_v58 = vrot.slane %v9562_v22, 4  ;;  %v13054_v8 = vcombine.low %v9544_v2, %v9554_v30  ;;  %v9577_v38 = vrot.slane %v9575_v50, 5  ;;  %v9606_v23 = vrot.slane %v9604_v10, 4 }
 0x72a   : > { %v9609_v21 = vrot.slane %v9607_v3, 5  ;;  %v9586_v29 = vor.u32 %v9585_v34, %v9582_v59  ;;  %v9596_v56 = vor.u32 %v9595_v19, %v9591_v32  ;;  %v9637_v47 = vshll.u32 %v18103_v31, 16 }
 0x72b   : > { %14245 = vmatmul.mubr.msk.bf16.gmra.mrb[44].mxu0 %vm2084_vm7, %v13052_v17  ;;  %v9641_v63 = vshrl.u32 %v18103_v31, 16  ;;  %v9578_v4 = vsel %vm15590_vm6, %v9573_v18, %v9577_v38  ;;  %v9620_v49 = vor.u32 %v9619_v37, %v9615_v5  ;;  %v9661_v1 = vshll.u32 %v18133_v16, 16  ;;  %v9312_v38 = vld [vmem:[#allocation3 + $0xc0] sm:$0xf] }
 0x72c   : > { %14248 = vmatprep.mubr.msk.bf16.mxu0 %vm2084_vm7, %v13053_v26  ;;  %v9665_v28 = vshrl.u32 %v18133_v16, 16  ;;  %v9568_v55 = vsel %vm15590_vm6, %v9563_v58, %v18645_v7  ;;  %v9599_v15 = vshll.u32 %v18086_v6, 16  ;;  %v9628_v25 = vshrl.u32 %v9306_v42, 16 }
 0x72d   : > { %v9631_v17 = vshll.u32 %v9306_v42, 16  ;;  %v9610_v26 = vor.u32 %v9609_v21, %v9606_v23  ;;  %v9623_v31 = vshll.u32 %v18116_v40, 16  ;;  %v9652_v39 = vshrl.u32 %v9309_v27, 16 }
 0x72e   : > { %v9655_v22 = vshll.u32 %v9309_v27, 16  ;;  %v13055_v30 = vcombine.low %v9568_v55, %v9578_v4  ;;  %v9597_v50 = vrot.slane %v9596_v56, 4  ;;  %v9639_v10 = vrot.slane %v9637_v47, 5 }
 0x72f   : > { %v9643_v3 = vrot.slane %v9641_v63, 4  ;;  %v9587_v16 = vrot.slane %v9586_v29, 4  ;;  %v9621_v59 = vrot.slane %v9620_v49, 4  ;;  %v9663_v34 = vrot.slane %v9661_v1, 5 }
 0x730   : > { %v9667_v19 = vrot.slane %v9665_v28, 4  ;;  %v9601_v6 = vrot.slane %v9599_v15, 5  ;;  %v9630_v7 = vrot.slane %v9628_v25, 4  ;;  %v9633_v18 = vrot.slane %v9631_v17, 5 }
 0x731   : > { %v9611_v37 = vrot.slane %v9610_v26, 4  ;;  %v9625_v2 = vrot.slane %v9623_v31, 5  ;;  %v9654_v40 = vrot.slane %v9652_v39, 4  ;;  %v9657_v58 = vrot.slane %v9655_v22, 5 }
 0x732   : > { %v9602_v23 = vsel %vm15590_vm6, %v9597_v50, %v9601_v6  ;;  %v9644_v21 = vor.u32 %v9643_v3, %v9639_v10  ;;  %v9689_v42 = vshrl.u32 %v18146_v53, 16  ;;  %v9592_v29 = vsel %vm15590_vm6, %v9587_v16, %v9591_v32  ;;  %v15112_v6 = vld [vmem:[#allocation3 + $0xc8] sm:$0x1] }
 0x733   : > { %14249 = vmatmul.mubr.msk.bf16.gmra.mrb[48].mxu0 %vm2084_vm7, %v13054_v8  ;;  %v9685_v8 = vshll.u32 %v18146_v53, 16  ;;  %v9626_v56 = vsel %vm15590_vm6, %v9621_v59, %v9625_v2  ;;  %v9668_v47 = vor.u32 %v9667_v19, %v9663_v34  ;;  %v9634_v63 = vor.u32 %v9633_v18, %v9630_v7 }
 0x734   : > { %14252 = vmatprep.mubr.msk.bf16.mxu0 %vm2084_vm7, %v13055_v30  ;;  %v9647_v27 = vshll.u32 %v18125_v62, 16  ;;  %v9676_v4 = vshrl.u32 %v9312_v38, 16  ;;  %v9679_v49 = vshll.u32 %v9312_v38, 16  ;;  %v13056_v1 = vcombine.low %v9592_v29, %v9602_v23 }
 0x735   : > { %v9616_v28 = vsel %vm15590_vm6, %v9611_v37, %v9615_v5  ;;  %v9658_v55 = vor.u32 %v9657_v58, %v9654_v40  ;;  %v9671_v15 = vshll.u32 %v18144_v24, 16  ;;  %v9645_v25 = vrot.slane %v9644_v21, 4  ;;  %v19491_v21 = vld [vmem:[#allocation36_spill] sm:$0xff] }
 0x736   : > { %v13057_v53 = vcombine.low %v9616_v28, %v9626_v56  ;;  %v9687_v17 = vrot.slane %v9685_v8, 5  ;;  %v9691_v32 = vrot.slane %v9689_v42, 4  ;;  %v9669_v26 = vrot.slane %v9668_v47, 4  ;;  %v19492_v42 = vld [vmem:[#allocation35_spill] sm:$0xff]  ;;  %v19493_v28 = vld [vmem:[#allocation37_spill] sm:$0xff] }
 0x737   : > { %v9635_v31 = vrot.slane %v9634_v63, 4  ;;  %v9649_v62 = vrot.slane %v9647_v27, 5  ;;  %v9678_v39 = vrot.slane %v9676_v4, 4  ;;  %v9681_v22 = vrot.slane %v9679_v49, 5 }
 0x738   : > { %v9659_v30 = vrot.slane %v9658_v55, 4  ;;  %v9673_v50 = vrot.slane %v9671_v15, 5  ;;  %v9692_v3 = vor.u32 %v9691_v32, %v9687_v17  ;;  %v10071_v16 = vrot.slane %v18225_v48, 5  ;;  %v10005_v48 = vld [vmem:[#allocation3 + $0xc] sm:$0xe] }
 0x739   : > { %v9650_v5 = vsel %vm15590_vm6, %v9645_v25, %v9649_v62  ;;  %v9640_v59 = vsel %vm15590_vm6, %v9635_v31, %v9639_v10  ;;  %v9682_v19 = vor.u32 %v9681_v22, %v9678_v39  ;;  %v9695_v7 = vshll.u32 %v15112_v6, 16  ;;  %v15062_v32 = vld [vmem:[%s19268_s12 + $0x68] sm:$0xff]   ;;  %v19495_v31 = vld [vmem:[#allocation14_spill] sm:$0xff] }
 0x73a   : > { %v9674_v24 = vsel %vm15590_vm6, %v9669_v26, %v9673_v50  ;;  %v13058_v18 = vcombine.low %v9640_v59, %v9650_v5  ;;  %v9664_v37 = vsel %vm15590_vm6, %v9659_v30, %v9663_v34  ;;  %v9693_v40 = vrot.slane %v9692_v3, 4  ;;  %v19494_v26 = vld [vmem:[#allocation12_spill] sm:$0xff]  ;;  %v15064_v39 = vld [vmem:[%s19268_s12 + $0x70] sm:$0xff]   ;;  %v19497_v22 = vld [vmem:[#allocation13_spill] sm:$0xff] }
 0x73b   : > { %14253 = vmatmul.mubr.msk.bf16.gmra.mrb[52].mxu0 %vm2084_vm7, %v13056_v1  ;;  %v13059_v2 = vcombine.low %v9664_v37, %v9674_v24  ;;  %v10073_v58 = vrot.slane %v10071_v16, 4  ;;  %v9683_v38 = vrot.slane %v9682_v19, 4  ;;  %v9697_v23 = vrot.slane %v9695_v7, 5  ;;  %v10006_v1 = vld [vmem:[#allocation3 + $0x18] sm:$0xe]  ;;  %v19500_v5 = vld [vmem:[#allocation10_spill] sm:$0xff] }
 0x73c   : > { %14256 = vmatprep.mubr.msk.bf16.mxu0 %vm2084_vm7, %v13057_v53  ;;  %v10074_v8 = vrot.slane %v19491_v21, 5  ;;  %v10078_v29 = vrot.slane %v19492_v42, 5  ;;  %v13079_v56 = vrot.slane %v10005_v48, 9  ;;  %v10081_v55 = vrot.slane %v19493_v28, 5  ;;  %v19498_v30 = vld [vmem:[#allocation15_spill] sm:$0xff]  ;;  %v19506_v19 = vld [vmem:[#allocation9_spill] sm:$0xff] }
 0x73d   : > { %v9698_v10 = vsel %vm15590_vm6, %v9693_v40, %v9697_v23  ;;  %v9688_v47 = vsel %vm15590_vm6, %v9683_v38, %v9687_v17  ;;  %v13080_v15 = vrot.slane %v10006_v1, 9  ;;  %v19496_v62 = vcombine.low %v19494_v26, %v19495_v31  ;;  %v19501_v3 = vld [vmem:[#allocation11_spill] sm:$0xff]  ;;  %v19507_v6 = vld [vmem:[#allocation17_spill] sm:$0xff]  ;;  %v19510_v37 = vld [vmem:[#allocation18_spill] sm:$0xff] }
 0x73e   : > { %v10075_v34 = vsel %vm16157_vm0, %v10073_v58, %v10074_v8  ;;  %v13060_v63 = vcombine.low %v9688_v47, %v9698_v10  ;;  %v10072_v27 = vsel %vm16157_vm0, %v13079_v56, %v10071_v16  ;;  %v10080_v49 = vrot.slane %v10078_v29, 4  ;;  %v19503_v24 = vld [vmem:[#allocation7_spill] sm:$0xff]  ;;  %v19504_v16 = vld [vmem:[#allocation8_spill] sm:$0xff]  ;;  %v19515_v23 = vld [vmem:[#allocation21_spill] sm:$0xff] }
 0x73f   : > { %v13099_v4 = vcombine.low %v10072_v27, %v10075_v34  ;;  %v10079_v25 = vsel %vm16157_vm0, %v13080_v15, %v10078_v29  ;;  %v19499_v50 = vcombine.low %v19497_v22, %v19498_v30  ;;  %v19505_v59 = vcombine.low %v19503_v24, %v19504_v16  ;;  %v19512_v40 = vld [vmem:[#allocation19_spill] sm:$0xff]  ;;  %v19513_v58 = vld [vmem:[#allocation20_spill] sm:$0xff]  ;;  %v19516_v48 = vld [vmem:[#allocation22_spill] sm:$0xff] }
 0x740   : > { %v10082_v53 = vsel %vm16157_vm0, %v10080_v49, %v10081_v55  ;;  %v19508_v7 = vcombine.low %v19506_v19, %v19507_v6  ;;  %v19514_v38 = vcombine.low %v19512_v40, %v19513_v58  ;;  %v19517_v21 = vcombine.low %v19515_v23, %v19516_v48  ;;  %v19518_v8 = vld [vmem:[#allocation23_spill] sm:$0xff]  ;;  %v19519_v10 = vld [vmem:[#allocation24_spill] sm:$0xff]  ;;  %v19521_v29 = vld [vmem:[#allocation25_spill] sm:$0xff] }
 0x741   : > { %v13100_v17 = vcombine.low %v10079_v25, %v10082_v53  ;;  %v19520_v42 = vcombine.low %v19518_v8, %v19519_v10  ;;  %v19522_v56 = vld [vmem:[#allocation26_spill] sm:$0xff]  ;;  %v19524_v47 = vld [vmem:[#allocation27_spill] sm:$0xff]  ;;  %v19531_v55 = vld [vmem:[#allocation32_spill] sm:$0xff] }
 0x742   : > { %v19523_v34 = vcombine.low %v19521_v29, %v19522_v56  ;;  %v19528_v49 = vld [vmem:[#allocation30_spill] sm:$0xff]  ;;  %v19530_v28 = vld [vmem:[#allocation31_spill] sm:$0xff]  ;;  %v19533_v25 = vld [vmem:[#allocation33_spill] sm:$0xff] }
 0x743   : > { %14257 = vmatmul.mubr.msk.bf16.gmra.mrb[56].mxu0 %vm2084_vm7, %v13058_v18  ;;  %v19509_v18 = vld [vmem:[#allocation16_spill] sm:$0xff]  ;;  %v19532_v15 = vcombine.low %v19530_v28, %v19531_v55  ;;  %v15063_v53 = vld [vmem:[#allocation3 + $0x18] sm:$0xff]   ;;  %v19536_v19 = vld [vmem:[#allocation38_spill] sm:$0xff] }
 0x744   : > { %14260 = vmatprep.mubr.msk.bf16.mxu0 %vm2084_vm7, %v13059_v2  ;;  %v19511_v2 = vcombine.low %v19509_v18, %v19510_v37  ;;  %v15065_v26 = vld [vmem:[#allocation3 + $0x24] sm:$0xff]   ;;  %v15073_v31 = vld [vmem:[%s19268_s12 + $0x78] sm:$0xff]   ;;  %v10915_v6 = vshll.u32 %v19536_v19, 16  ;;  %v15075_v37 = vld [vmem:[#allocation3 + $0x90] sm:$0xff]  }
 0x745   : > { %v18800_v22 = vld [vmem:[%s19268_s12 + $0x80] sm:$0xff]   ;;  %v10857_v24 = vld [vmem:[#allocation3 + $0x18] sm:$0xf] }
 0x746   : > { %v15067_v30 = vld [vmem:[#allocation3 + $0x3c] sm:$0xff]   ;;  %v10906_v16 = vshrl.u32 %v10857_v24, 16  ;;  %v15074_v18 = vld [vmem:[#allocation3 + $0x84] sm:$0xff]  }
 0x747   : > { %v19537_v8 = vld [vmem:[#allocation40_spill] sm:$0xff] }
 0x748   : > { %v10908_v40 = vrot.slane %v10906_v16, 4  ;;  %v10939_v10 = vshll.u32 %v19537_v8, 16 }
 0x74a   : > { %v18816_v28 = vrot.slane %v10939_v10, 5 }
 0x74b   : > { %14261 = vmatmul.mubr.msk.bf16.gmra.mrb[60].mxu0 %vm2084_vm7, %v13060_v63  ;;  %v19525_v63 = vld [vmem:[#allocation28_spill] sm:$0xff] }
 0x74c   : > { %14268 = vmatprep.mubr.msk.bf16.mxu0 %vm2084_vm7, %v13099_v4  ;;  %v19526_v27 = vcombine.low %v19524_v47, %v19525_v63  ;;  %v19527_v4 = vld [vmem:[#allocation29_spill] sm:$0xff]  ;;  %v15076_v47 = vld [vmem:[#allocation3 + $0x9c] sm:$0xff]  }
 0x74d   : > { %v19529_v1 = vcombine.low %v19527_v4, %v19528_v49  ;;  %v19538_v63 = vld [vmem:[#allocation39_spill] sm:$0xff]  ;;  %v15077_v4 = vld [vmem:[#allocation3 + $0xa8] sm:$0xff]  }
 0x753   : > { %14269 = vmatmul.mubr.msk.bf16.vlgmr.msra.gmra.mrb[32].mxu0 %vm2084_vm7, %v13100_v17  ;;  %v19534_v17 = vld [vmem:[#allocation34_spill] sm:$0xff] }
 0x754   : > { %14301 = vmatpush3.bf16.msra.mxu0 %v18527_v33  ;;  %14272 = vmatprep.mubr.msk.bf16.mxu0 %vm2084_vm7, %v19496_v62  ;;  %v19502_v33 = vcombine.low %v19500_v5, %v19501_v3  ;;  %v15066_v62 = vld [vmem:[#allocation3 + $0x30] sm:$0xff]   ;;  %v15070_v3 = vld [vmem:[#allocation3 + $0x60] sm:$0xff]  }
 0x755   : > { %14302 = vmatprep.subr.bf16.mxu0 %v15062_v32  ;;  %v15069_v5 = vld [vmem:[#allocation3 + $0x54] sm:$0xff]  }
 0x758   : > { %14303 = vmatpush3.bf16.msra.mxu0 %v15062_v32  ;;  %v19535_v32 = vcombine.low %v19533_v25, %v19534_v17 }
 0x759   : > { %14336 = vmatprep.subr.bf16.mxu0 %v15064_v39 }
 0x75b   : > { %14273 = vmatmul.mubr.msk.bf16.gmra.mrb[36].mxu0 %vm2084_vm7, %v19499_v50  ;;  %v15068_v50 = vld [vmem:[#allocation3 + $0x48] sm:$0xff]  }
 0x75c   : > { %14276 = vmatprep.mubr.msk.bf16.mxu0 %vm2084_vm7, %v19502_v33  ;;  %v15072_v33 = vld [vmem:[#allocation3 + $0x78] sm:$0xff]  }
 0x763   : > { %14277 = vmatmul.mubr.msk.bf16.gmra.mrb[40].mxu0 %vm2084_vm7, %v19505_v59  ;;  %v10909_v59 = vshll.u32 %v10857_v24, 16 }
 0x764   : > { %14280 = vmatprep.mubr.msk.bf16.mxu0 %vm2084_vm7, %v19508_v7  ;;  %v10919_v7 = vshrl.u32 %v19536_v19, 16 }
 0x765   : > { %v10911_v58 = vrot.slane %v10909_v59, 5  ;;  %v10869_v59 = vld [vmem:[#allocation3 + $0x48] sm:$0xf] }
 0x766   : > { %v10921_v23 = vrot.slane %v10919_v7, 4 }
 0x767   : > { %v10912_v29 = vor.u32 %v10911_v58, %v10908_v40 }
 0x76b   : > { %14281 = vmatmul.mubr.msk.bf16.gmra.mrb[44].mxu0 %vm2084_vm7, %v19511_v2  ;;  %v10860_v2 = vld [vmem:[#allocation3 + $0x24] sm:$0xf] }
 0x76c   : > { %14284 = vmatprep.mubr.msk.bf16.mxu0 %vm2084_vm7, %v19514_v38  ;;  %v10917_v38 = vrot.slane %v10915_v6, 5  ;;  %v10930_v48 = vshrl.u32 %v10860_v2, 16 }
 0x76e   : > { %v10922_v56 = vor.u32 %v10921_v23, %v10917_v38  ;;  %v10932_v49 = vrot.slane %v10930_v48, 4  ;;  %v10987_v48 = vshll.u32 %v18373_v60, 16 }
 0x773   : > { %14285 = vmatmul.mubr.msk.bf16.gmra.mrb[48].mxu0 %vm2084_vm7, %v19517_v21  ;;  %v10933_v21 = vshll.u32 %v10860_v2, 16  ;;  %v19541_v2 = vld [vmem:[#allocation43_spill] sm:$0xff] }
 0x774   : > { %14288 = vmatprep.mubr.msk.bf16.mxu0 %vm2084_vm7, %v19520_v42  ;;  %v10943_v42 = vshrl.u32 %v19537_v8, 16  ;;  %v10973_v40 = vshll.u32 %v19541_v2, 16 }
 0x776   : > { %v10945_v55 = vrot.slane %v10943_v42, 4  ;;  %v10991_v42 = vshrl.u32 %v18373_v60, 16 }
 0x77b   : > { %14289 = vmatmul.mubr.msk.bf16.gmra.mrb[52].mxu0 %vm2084_vm7, %v19523_v34  ;;  %v10863_v34 = vld [vmem:[#allocation3 + $0x30] sm:$0xf] }
 0x77c   : > { %14292 = vmatprep.mubr.msk.bf16.mxu0 %vm2084_vm7, %v19526_v27  ;;  %v10925_v27 = vshll.u32 %v19538_v63, 16  ;;  %v10954_v25 = vshrl.u32 %v10863_v34, 16  ;;  %v10957_v17 = vshll.u32 %v10863_v34, 16  ;;  %v11005_v34 = vshll.u32 %v10869_v59, 16 }
 0x77e   : > { %v10956_v24 = vrot.slane %v10954_v25, 4  ;;  %v10959_v16 = vrot.slane %v10957_v17, 5  ;;  %v18846_v17 = vrot.slane %v10987_v48, 5  ;;  %v10875_v48 = vld [vmem:[#allocation3 + $0x60] sm:$0xf] }
 0x783   : > { %14293 = vmatmul.mubr.msk.bf16.gmra.mrb[56].mxu0 %vm2084_vm7, %v19529_v1  ;;  %v10935_v1 = vrot.slane %v10933_v21, 5  ;;  %v15079_v21 = vld [vmem:[#allocation3 + $0xc0] sm:$0xff]  }
 0x784   : > { %14296 = vmatprep.mubr.msk.bf16.mxu0 %vm2084_vm7, %v19532_v15  ;;  %v19539_v15 = vld [vmem:[#allocation41_spill] sm:$0xff] }
 0x78b   : > { %14297 = vmatmul.mubr.msk.bf16.gmra.mrb[60].mxu0 %vm2084_vm7, %v19535_v32  ;;  %v10913_v32 = vrot.slane %v10912_v29, 4  ;;  %v11002_v29 = vshrl.u32 %v10869_v59, 16 }
 0x78c   : > { %14304 = vmatprep.mubr.msk.bf16.mxu0 %vm2084_vm7, %v15063_v53  ;;  %v10949_v53 = vshll.u32 %v19539_v15, 16 }
 0x78d   : > { %v10918_v19 = vsel %vm15590_vm6, %v10913_v32, %v10917_v38  ;;  %v10872_v32 = vld [vmem:[#allocation3 + $0x54] sm:$0xf] }
 0x793   : > { %14305 = vmatmul.mubr.msk.bf16.vlgmr.msra.gmra.mrb[32].mxu0 %vm2084_vm7, %v15065_v26  ;;  %v10923_v26 = vrot.slane %v10922_v56, 4  ;;  %v10960_v56 = vor.u32 %v10959_v16, %v10956_v24  ;;  %v11007_v24 = vrot.slane %v11005_v34, 5 }
 0x794   : > { %14337 = vmatpush3.bf16.msra.mxu0 %v15064_v39  ;;  %14308 = vmatprep.mubr.msk.bf16.mxu0 %vm2084_vm7, %v15066_v62  ;;  %v15071_v39 = vld [vmem:[#allocation3 + $0x6c] sm:$0xff]  }
 0x795   : > { %14338 = vmatprep.subr.bf16.mxu0 %v15073_v31 }
 0x798   : > { %14339 = vmatpush3.bf16.msra.mxu0 %v15073_v31  ;;  %v19540_v31 = vld [vmem:[#allocation42_spill] sm:$0xff] }
 0x799   : > { %14372 = vmatprep.subr.bf16.mxu0 %v18800_v22  ;;  %v10963_v62 = vshll.u32 %v19540_v31, 16 }
 0x79b   : > { %14309 = vmatmul.mubr.msk.bf16.gmra.mrb[36].mxu0 %vm2084_vm7, %v15067_v30  ;;  %v10967_v30 = vshrl.u32 %v19540_v31, 16  ;;  %v18830_v7 = vrot.slane %v10963_v62, 5  ;;  %v10993_v31 = vrot.slane %v10991_v42, 4  ;;  %v19543_v62 = vld [vmem:[#allocation48_spill] sm:$0xff]  ;;  %v10961_v42 = vrot.slane %v10960_v56, 4 }
 0x79c   : > { %14312 = vmatprep.mubr.msk.bf16.mxu0 %vm2084_vm7, %v15068_v50  ;;  %v10927_v50 = vrot.slane %v10925_v27, 5  ;;  %v18837_v27 = vld [vmem:[#allocation3 + $0xd0] sm:$0xf] }
 0x79d   : > { %v11766_v60 = vrot.slane %v18837_v27, 5 }
 0x79e   : > { %v10928_v6 = vsel %vm15590_vm6, %v10923_v26, %v10927_v50  ;;  %v11039_v50 = vshrl.u32 %v19543_v62, 16 }
 0x79f   : > { %v13175_v38 = vcombine.low %v10918_v19, %v10928_v6  ;;  %v11026_v6 = vshrl.u32 %v10872_v32, 16 }
 0x7a0   : > { %v11041_v13 = vrot.slane %v11039_v50, 4 }
 0x7a3   : > { %14313 = vmatmul.mubr.msk.bf16.gmra.mrb[40].mxu0 %vm2084_vm7, %v15069_v5  ;;  %v10936_v5 = vor.u32 %v10935_v1, %v10932_v49 }
 0x7a4   : > { %14316 = vmatprep.mubr.msk.bf16.mxu0 %vm2084_vm7, %v15070_v3  ;;  %v10946_v3 = vor.u32 %v10945_v55, %v18816_v28  ;;  %v11610_v55 = vld [vmem:[#allocation3 + $0xcc] sm:$0xe] }
 0x7a5   : > { %v10937_v8 = vrot.slane %v10936_v5, 4  ;;  %v13224_v26 = vrot.slane %v11610_v55, 9  ;;  %v11768_v5 = vrot.slane %v11766_v60, 4  ;;  %v11050_v55 = vshrl.u32 %v10875_v48, 16 }
 0x7a6   : > { %v10947_v10 = vrot.slane %v10946_v3, 4  ;;  %v15080_v3 = vld [vmem:[#allocation3 + $0xcc] sm:$0xff]  }
 0x7a7   : > { %v18854_v59 = vsel %vm16157_vm0, %v13224_v26, %v11766_v60  ;;  %v10942_v2 = vsel %vm15590_vm6, %v10937_v8, %v18816_v28  ;;  %v19544_v28 = vld [vmem:[#allocation44_spill] sm:$0xff]  ;;  %v19545_v60 = vld [vmem:[#allocation53_spill] sm:$0xff]  ;;  %v19546_v26 = vld [vmem:[#allocation47_spill] sm:$0xff] }
 0x7a8   : > { %v10997_v8 = vshll.u32 %v19544_v28, 16 }
 0x7ab   : > { %14317 = vmatmul.mubr.msk.bf16.gmra.mrb[44].mxu0 %vm2084_vm7, %v15071_v39  ;;  %v10866_v39 = vld [vmem:[#allocation3 + $0x3c] sm:$0xf] }
 0x7ac   : > { %14320 = vmatprep.mubr.msk.bf16.mxu0 %vm2084_vm7, %v15072_v33  ;;  %v18824_v33 = vrot.slane %v10949_v53, 5  ;;  %v10978_v58 = vshrl.u32 %v10866_v39, 16  ;;  %v10981_v23 = vshll.u32 %v10866_v39, 16  ;;  %v11004_v39 = vrot.slane %v11002_v29, 4 }
 0x7ae   : > { %v10980_v53 = vrot.slane %v10978_v58, 4  ;;  %v10983_v25 = vrot.slane %v10981_v23, 5  ;;  %v10952_v58 = vsel %vm15590_vm6, %v10947_v10, %v18824_v33  ;;  %v10975_v23 = vrot.slane %v10973_v40, 5 }
 0x7af   : > { %v11028_v40 = vrot.slane %v11026_v6, 4  ;;  %v13176_v56 = vcombine.low %v10942_v2, %v10952_v58 }
 0x7b3   : > { %14321 = vmatmul.mubr.msk.bf16.gmra.mrb[48].mxu0 %vm2084_vm7, %v15074_v18  ;;  %v10969_v18 = vrot.slane %v10967_v30, 4  ;;  %v11035_v30 = vshll.u32 %v19543_v62, 16  ;;  %v10878_v62 = vld [vmem:[#allocation3 + $0x6c] sm:$0xf] }
 0x7b4   : > { %14324 = vmatprep.mubr.msk.bf16.mxu0 %vm2084_vm7, %v15075_v37  ;;  %v15078_v37 = vld [vmem:[#allocation3 + $0xb4] sm:$0xff]  }
 0x7b5   : > { %v10970_v49 = vor.u32 %v10969_v18, %v18830_v7  ;;  %v11029_v18 = vshll.u32 %v10872_v32, 16  ;;  %v18868_v34 = vrot.slane %v11035_v30, 5  ;;  %v11063_v32 = vshrl.u32 %v19545_v60, 16 }
 0x7b7   : > { %v10971_v29 = vrot.slane %v10970_v49, 4  ;;  %v11031_v10 = vrot.slane %v11029_v18, 5  ;;  %v11053_v49 = vshll.u32 %v10875_v48, 16  ;;  %v11052_v18 = vrot.slane %v11050_v55, 4 }
 0x7b8   : > { %v11074_v48 = vshrl.u32 %v10878_v62, 16 }
 0x7b9   : > { %v11055_v2 = vrot.slane %v11053_v49, 5 }
 0x7bb   : > { %14325 = vmatmul.mubr.msk.bf16.gmra.mrb[52].mxu0 %vm2084_vm7, %v15076_v47  ;;  %v19542_v47 = vld [vmem:[#allocation45_spill] sm:$0xff] }
 0x7bc   : > { %14328 = vmatprep.mubr.msk.bf16.mxu0 %vm2084_vm7, %v15077_v4  ;;  %v11011_v63 = vshll.u32 %v19542_v47, 16  ;;  %v18839_v4 = vld [vmem:[#allocation3 + $0xd4] sm:$0x1]  ;;  %v11015_v1 = vshrl.u32 %v19542_v47, 16  ;;  %v10984_v47 = vor.u32 %v10983_v25, %v10980_v53  ;;  %v10966_v53 = vsel %vm15590_vm6, %v10961_v42, %v18830_v7 }
 0x7bd   : > { %v11769_v15 = vrot.slane %v18839_v4, 5  ;;  %v10976_v25 = vsel %vm15590_vm6, %v10971_v29, %v10975_v23  ;;  %v11065_v7 = vrot.slane %v11063_v32, 4  ;;  %v15082_v23 = vld [vmem:[%s19268_s12 + $0x88] sm:$0xff]  }
 0x7be   : > { %v18850_v16 = vrot.slane %v11011_v63, 5  ;;  %v11017_v19 = vrot.slane %v11015_v1, 4  ;;  %v10994_v63 = vor.u32 %v10993_v31, %v18846_v17  ;;  %v11008_v1 = vor.u32 %v11007_v24, %v11004_v39 }
 0x7bf   : > { %v11042_v31 = vor.u32 %v11041_v13, %v18868_v34  ;;  %v10985_v30 = vrot.slane %v10984_v47, 4  ;;  %v11032_v24 = vor.u32 %v11031_v10, %v11028_v40  ;;  %v13177_v42 = vcombine.low %v10966_v53, %v10976_v25 }
 0x7c0   : > { %v11018_v33 = vor.u32 %v11017_v19, %v18850_v16  ;;  %v10995_v50 = vrot.slane %v10994_v63, 4  ;;  %v19547_v19 = vld [vmem:[#allocation50_spill] sm:$0xff]  ;;  %v11077_v47 = vshll.u32 %v10878_v62, 16 }
 0x7c1   : > { %v11045_v6 = vshll.u32 %v19547_v19, 16  ;;  %v11043_v13 = vrot.slane %v11042_v31, 4  ;;  %v10990_v63 = vsel %vm15590_vm6, %v10985_v30, %v18846_v17  ;;  %v11033_v17 = vrot.slane %v11032_v24, 4  ;;  %v10884_v19 = vld [vmem:[#allocation3 + $0x84] sm:$0xf] }
 0x7c2   : > { %v11019_v39 = vrot.slane %v11018_v33, 4  ;;  %v10881_v33 = vld [vmem:[#allocation3 + $0x78] sm:$0xf]  ;;  %v11079_v32 = vrot.slane %v11077_v47, 5  ;;  %v11111_v31 = vshrl.u32 %v18443_v61, 16  ;;  %v19550_v47 = vld [vmem:[#allocation64_spill] sm:$0xff] }
 0x7c3   : > { %14329 = vmatmul.mubr.msk.bf16.gmra.mrb[56].mxu0 %vm2084_vm7, %v15078_v37  ;;  %v18858_v37 = vsel %vm16157_vm0, %v11768_v5, %v11769_v15  ;;  %v11059_v15 = vshll.u32 %v19545_v60, 16  ;;  %v10999_v5 = vrot.slane %v10997_v8, 5  ;;  %v11083_v8 = vshll.u32 %v18433_v20, 16  ;;  %v19548_v60 = vld [vmem:[#allocation55_spill] sm:$0xff] }
 0x7c4   : > { %14332 = vmatprep.mubr.msk.bf16.mxu0 %vm2084_vm7, %v15079_v21  ;;  %v13244_v21 = vcombine.low %v18854_v59, %v18858_v37  ;;  %v11047_v55 = vrot.slane %v11045_v6, 5  ;;  %v11098_v53 = vshrl.u32 %v10881_v33, 16  ;;  %v11101_v25 = vshll.u32 %v10881_v33, 16  ;;  %v19551_v33 = vld [vmem:[#allocation66_spill] sm:$0xff] }
 0x7c5   : > { %v18885_v58 = vrot.slane %v11059_v15, 5  ;;  %v11000_v28 = vsel %vm15590_vm6, %v10995_v50, %v10999_v5  ;;  %v11069_v15 = vshll.u32 %v19548_v60, 16  ;;  %v11038_v50 = vsel %vm15590_vm6, %v11033_v17, %v18868_v34 }
 0x7c6   : > { %v13178_v62 = vcombine.low %v10990_v63, %v11000_v28  ;;  %v11122_v34 = vshrl.u32 %v10884_v19, 16  ;;  %v11131_v63 = vshll.u32 %v19550_v47, 16  ;;  %v11135_v28 = vshrl.u32 %v19550_v47, 16 }
 0x7c7   : > { %v11066_v49 = vor.u32 %v11065_v7, %v18885_v58  ;;  %v11103_v7 = vrot.slane %v11101_v25, 5  ;;  %v11179_v47 = vshll.u32 %v18506_v44, 16 }
 0x7cb   : > { %14333 = vmatmul.mubr.msk.bf16.gmra.mrb[60].mxu0 %vm2084_vm7, %v15080_v3  ;;  %v11009_v3 = vrot.slane %v11008_v1, 4  ;;  %v11087_v1 = vshrl.u32 %v18433_v20, 16  ;;  %v11076_v20 = vrot.slane %v11074_v48, 4  ;;  %v10887_v48 = vld [vmem:[#allocation3 + $0x90] sm:$0xf] }
 0x7cc   : > { %14340 = vmatprep.mubr.msk.bf16.mxu0 %vm2084_vm7, %v13175_v38  ;;  %v11021_v38 = vshll.u32 %v19546_v26, 16  ;;  %v18909_v26 = vrot.slane %v11083_v8, 5  ;;  %v11146_v8 = vshrl.u32 %v10887_v48, 16 }
 0x7cd   : > { %v11014_v40 = vsel %vm15590_vm6, %v11009_v3, %v18850_v16  ;;  %v11089_v16 = vrot.slane %v11087_v1, 4  ;;  %v11071_v3 = vrot.slane %v11069_v15, 5  ;;  %v11149_v1 = vshll.u32 %v10887_v48, 16 }
 0x7ce   : > { %v11023_v29 = vrot.slane %v11021_v38, 5  ;;  %v11107_v38 = vshll.u32 %v18443_v61, 16  ;;  %v11080_v61 = vor.u32 %v11079_v32, %v11076_v20 }
 0x7d0   : > { %v11024_v10 = vsel %vm15590_vm6, %v11019_v39, %v11023_v29  ;;  %v19549_v39 = vld [vmem:[#allocation57_spill] sm:$0xff]  ;;  %v11113_v29 = vrot.slane %v11111_v31, 4  ;;  %v11081_v60 = vrot.slane %v11080_v61, 4  ;;  %v11148_v31 = vrot.slane %v11146_v8, 4 }
 0x7d1   : > { %v13179_v30 = vcombine.low %v11014_v40, %v11024_v10  ;;  %v11093_v24 = vshll.u32 %v19549_v39, 16  ;;  %v11155_v40 = vshll.u32 %v19551_v33, 16  ;;  %v11159_v10 = vshrl.u32 %v19551_v33, 16 }
 0x7d2   : > { %v11086_v39 = vsel %vm15590_vm6, %v11081_v60, %v18909_v26  ;;  %v11203_v33 = vshll.u32 %v18529_v9, 16 }
 0x7d3   : > { %14341 = vmatmul.mubr.msk.bf16.vlgmr.msra.gmra.mrb[32].mxu0 %vm2084_vm7, %v13176_v56  ;;  %v11056_v56 = vor.u32 %v11055_v2, %v11052_v18  ;;  %v11067_v18 = vrot.slane %v11066_v49, 4  ;;  %v11100_v2 = vrot.slane %v11098_v53, 4  ;;  %v11124_v53 = vrot.slane %v11122_v34, 4 }
 0x7d4   : > { %14373 = vmatpush3.bf16.msra.mxu0 %v18800_v22  ;;  %14344 = vmatprep.mubr.msk.bf16.mxu0 %vm2084_vm7, %v13177_v42  ;;  %v11048_v22 = vsel %vm15590_vm6, %v11043_v13, %v11047_v55  ;;  %v11090_v42 = vor.u32 %v11089_v16, %v18909_v26  ;;  %v11125_v13 = vshll.u32 %v10884_v19, 16  ;;  %v18930_v16 = vrot.slane %v11131_v63, 5 }
 0x7d5   : > { %14374 = vmatprep.subr.bf16.mxu0 %v15082_v23  ;;  %v11057_v5 = vrot.slane %v11056_v56, 4  ;;  %v13180_v6 = vcombine.low %v11038_v50, %v11048_v22  ;;  %v11072_v55 = vsel %vm15590_vm6, %v11067_v18, %v11071_v3  ;;  %v11095_v56 = vrot.slane %v11093_v24, 5  ;;  %v19552_v22 = vld [vmem:[#allocation61_spill] sm:$0xff]  ;;  %v10890_v50 = vld [vmem:[#allocation3 + $0x9c] sm:$0xf] }
 0x7d6   : > { %v11104_v49 = vor.u32 %v11103_v7, %v11100_v2  ;;  %v11091_v15 = vrot.slane %v11090_v42, 4  ;;  %v11117_v32 = vshll.u32 %v19552_v22, 16  ;;  %v11127_v25 = vrot.slane %v11125_v13, 5  ;;  %v15113_v42 = vld [vmem:[#allocation3 + $0x8c] sm:$0x1] }
 0x7d7   : > { %v11062_v17 = vsel %vm15590_vm6, %v11057_v5, %v18885_v58  ;;  %v11161_v58 = vrot.slane %v11159_v10, 4  ;;  %v11170_v7 = vshrl.u32 %v10890_v50, 16  ;;  %v11173_v48 = vshll.u32 %v10890_v50, 16 }
 0x7d8   : > { %14375 = vmatpush3.bf16.msra.mxu0 %v15082_v23  ;;  %v11109_v23 = vrot.slane %v11107_v38, 5  ;;  %v11137_v38 = vrot.slane %v11135_v28, 4  ;;  %v13181_v5 = vcombine.low %v11062_v17, %v11072_v55  ;;  %v11105_v3 = vrot.slane %v11104_v49, 4  ;;  %v10893_v28 = vld [vmem:[#allocation3 + $0xa8] sm:$0xf] }
 0x7d9   : > { %v11096_v24 = vsel %vm15590_vm6, %v11091_v15, %v11095_v56  ;;  %v11128_v18 = vor.u32 %v11127_v25, %v11124_v53  ;;  %v11119_v61 = vrot.slane %v11117_v32, 5  ;;  %v11183_v63 = vshrl.u32 %v18506_v44, 16 }
 0x7da   : > { %v11114_v20 = vor.u32 %v11113_v29, %v11109_v23  ;;  %v11138_v2 = vor.u32 %v11137_v38, %v18930_v16  ;;  %v11141_v29 = vshll.u32 %v15113_v42, 16  ;;  %v13182_v13 = vcombine.low %v11086_v39, %v11096_v24 }
 0x7db   : > { %14345 = vmatmul.mubr.msk.bf16.gmra.mrb[36].mxu0 %vm2084_vm7, %v13178_v62  ;;  %v11151_v62 = vrot.slane %v11149_v1, 5  ;;  %v11110_v26 = vsel %vm15590_vm6, %v11105_v3, %v11109_v23  ;;  %v11165_v1 = vshll.u32 %v18492_v51, 16  ;;  %v11129_v10 = vrot.slane %v11128_v18, 4 }
 0x7dc   : > { %14348 = vmatprep.mubr.msk.bf16.mxu0 %vm2084_vm7, %v13179_v30  ;;  %v18932_v30 = vrot.slane %v11155_v40, 5  ;;  %v11115_v19 = vrot.slane %v11114_v20, 4  ;;  %v11207_v40 = vshrl.u32 %v18529_v9, 16  ;;  %v11139_v17 = vrot.slane %v11138_v2, 4  ;;  %v10896_v9 = vld [vmem:[#allocation3 + $0xb4] sm:$0xf] }
 0x7dd   : > { %v11152_v34 = vor.u32 %v11151_v62, %v11148_v31  ;;  %v11172_v55 = vrot.slane %v11170_v7, 4  ;;  %v11175_v56 = vrot.slane %v11173_v48, 5  ;;  %v11194_v60 = vshrl.u32 %v10893_v28, 16  ;;  %v10899_v7 = vld [vmem:[#allocation3 + $0xc0] sm:$0xf] }
 0x7de   : > { %v11120_v8 = vsel %vm15590_vm6, %v11115_v19, %v11119_v61  ;;  %v11197_v15 = vshll.u32 %v10893_v28, 16  ;;  %v11143_v44 = vrot.slane %v11141_v29, 5  ;;  %v18952_v22 = vrot.slane %v11179_v47, 5  ;;  %v15115_v47 = vld [vmem:[#allocation3 + $0xb0] sm:$0x1] }
 0x7df   : > { %v11153_v49 = vrot.slane %v11152_v34, 4  ;;  %v13183_v20 = vcombine.low %v11110_v26, %v11120_v8  ;;  %v11185_v32 = vrot.slane %v11183_v63, 4  ;;  %v11167_v51 = vrot.slane %v11165_v1, 5  ;;  %v10902_v1 = vld [vmem:[#allocation3 + $0xcc] sm:$0xf] }
 0x7e0   : > { %v18955_v53 = vrot.slane %v11203_v33, 5  ;;  %v11209_v25 = vrot.slane %v11207_v40, 4  ;;  %v11134_v38 = vsel %vm15590_vm6, %v11129_v10, %v18930_v16  ;;  %v11144_v31 = vsel %vm15590_vm6, %v11139_v17, %v11143_v44 }
 0x7e1   : > { %v11176_v62 = vor.u32 %v11175_v56, %v11172_v55  ;;  %v11196_v39 = vrot.slane %v11194_v60, 4  ;;  %v11199_v24 = vrot.slane %v11197_v15, 5  ;;  %v11186_v19 = vor.u32 %v11185_v32, %v18952_v22 }
 0x7e2   : > { %v11218_v18 = vshrl.u32 %v10896_v9, 16  ;;  %v11227_v16 = vshll.u32 %v18541_v46, 16  ;;  %v11231_v2 = vshrl.u32 %v18541_v46, 16  ;;  %v11210_v48 = vor.u32 %v11209_v25, %v18955_v53 }
 0x7e3   : > { %14349 = vmatmul.mubr.msk.bf16.gmra.mrb[40].mxu0 %vm2084_vm7, %v13180_v6  ;;  %v11162_v6 = vor.u32 %v11161_v58, %v18932_v30  ;;  %v15114_v58 = vld [vmem:[#allocation3 + $0xa4] sm:$0x1]  ;;  %v11221_v61 = vshll.u32 %v10896_v9, 16  ;;  %v11251_v42 = vshll.u32 %v18557_v52, 16  ;;  %v13184_v29 = vcombine.low %v11134_v38, %v11144_v31 }
 0x7e4   : > { %14352 = vmatprep.mubr.msk.bf16.mxu0 %vm2084_vm7, %v13181_v5  ;;  %v11189_v50 = vshll.u32 %v15114_v58, 16  ;;  %v11158_v5 = vsel %vm15590_vm6, %v11153_v49, %v18932_v30  ;;  %v11255_v30 = vshrl.u32 %v18557_v52, 16  ;;  %v11200_v26 = vor.u32 %v11199_v24, %v11196_v39  ;;  %v15116_v58 = vld [vmem:[#allocation3 + $0xbc] sm:$0x1] }
 0x7e5   : > { %v11163_v23 = vrot.slane %v11162_v6, 4  ;;  %v11177_v6 = vrot.slane %v11176_v62, 4  ;;  %v11213_v63 = vshll.u32 %v15115_v47, 16  ;;  %v11242_v28 = vshrl.u32 %v10899_v7, 16 }
 0x7e6   : > { %v11245_v8 = vshll.u32 %v10899_v7, 16  ;;  %v11187_v33 = vrot.slane %v11186_v19, 4  ;;  %v11220_v46 = vrot.slane %v11218_v18, 4  ;;  %v11229_v40 = vrot.slane %v11227_v16, 5  ;;  %v15117_v16 = vld [vmem:[#allocation3 + $0xc8] sm:$0x1] }
 0x7e7   : > { %v11168_v3 = vsel %vm15590_vm6, %v11163_v23, %v11167_v51  ;;  %v11233_v10 = vrot.slane %v11231_v2, 4  ;;  %v11211_v17 = vrot.slane %v11210_v48, 4  ;;  %v11223_v55 = vrot.slane %v11221_v61, 5 }
 0x7e8   : > { %v13185_v34 = vcombine.low %v11158_v5, %v11168_v3  ;;  %v11253_v56 = vrot.slane %v11251_v42, 5  ;;  %v11257_v52 = vrot.slane %v11255_v30, 4  ;;  %v11266_v49 = vshrl.u32 %v10902_v1, 16 }
 0x7e9   : > { %v11269_v23 = vshll.u32 %v10902_v1, 16  ;;  %v11275_v60 = vshll.u32 %v18837_v27, 16  ;;  %v11279_v15 = vshrl.u32 %v18837_v27, 16  ;;  %v11215_v44 = vrot.slane %v11213_v63, 5 }
 0x7ea   : > { %v11244_v32 = vrot.slane %v11242_v28, 4  ;;  %v11247_v51 = vrot.slane %v11245_v8, 5  ;;  %v11182_v25 = vsel %vm15590_vm6, %v11177_v6, %v18952_v22  ;;  %v11234_v38 = vor.u32 %v11233_v10, %v11229_v40 }
 0x7eb   : > { %14353 = vmatmul.mubr.msk.bf16.gmra.mrb[44].mxu0 %vm2084_vm7, %v13182_v13  ;;  %v11191_v13 = vrot.slane %v11189_v50, 5  ;;  %v11216_v31 = vsel %vm15590_vm6, %v11211_v17, %v11215_v44  ;;  %v11224_v62 = vor.u32 %v11223_v55, %v11220_v46  ;;  %v11237_v50 = vshll.u32 %v15116_v58, 16 }
 0x7ec   : > { %14356 = vmatprep.mubr.msk.bf16.mxu0 %vm2084_vm7, %v13183_v20  ;;  %v11201_v20 = vrot.slane %v11200_v26, 4  ;;  %v11258_v5 = vor.u32 %v11257_v52, %v11253_v56  ;;  %v11268_v27 = vrot.slane %v11266_v49, 4  ;;  %v11271_v3 = vrot.slane %v11269_v23, 5  ;;  %v19554_v52 = vld [vmem:[#allocation49_spill] sm:$0xff]  ;;  %v19557_v23 = vld [vmem:[#allocation52_spill] sm:$0xff] }
 0x7ed   : > { %v11192_v9 = vsel %vm15590_vm6, %v11187_v33, %v11191_v13  ;;  %v11277_v39 = vrot.slane %v11275_v60, 5  ;;  %v11281_v24 = vrot.slane %v11279_v15, 4  ;;  %v11248_v18 = vor.u32 %v11247_v51, %v11244_v32  ;;  %v19559_v15 = vld [vmem:[#allocation54_spill] sm:$0xff]  ;;  %v19563_v32 = vld [vmem:[#allocation60_spill] sm:$0xff] }
 0x7ee   : > { %v13186_v19 = vcombine.low %v11182_v25, %v11192_v9  ;;  %v11206_v22 = vsel %vm15590_vm6, %v11201_v20, %v18955_v53  ;;  %v11261_v2 = vshll.u32 %v15117_v16, 16  ;;  %v11235_v48 = vrot.slane %v11234_v38, 4  ;;  %v19560_v20 = vld [vmem:[#allocation56_spill] sm:$0xff]  ;;  %v19565_v25 = vld [vmem:[#allocation59_spill] sm:$0xff]  ;;  %v19566_v9 = vld [vmem:[#allocation62_spill] sm:$0xff] }
 0x7ef   : > { %v13187_v7 = vcombine.low %v11206_v22, %v11216_v31  ;;  %v11239_v61 = vrot.slane %v11237_v50, 5  ;;  %v11259_v42 = vrot.slane %v11258_v5, 4  ;;  %v11225_v30 = vrot.slane %v11224_v62, 4  ;;  %v19568_v31 = vld [vmem:[#allocation63_spill] sm:$0xff]  ;;  %v19569_v62 = vld [vmem:[#allocation65_spill] sm:$0xff]  ;;  %v19572_v5 = vld [vmem:[#allocation68_spill] sm:$0xff] }
 0x7f0   : > { %v11285_v6 = vshll.u32 %v18839_v4, 16  ;;  %v11249_v13 = vrot.slane %v11248_v18, 4  ;;  %v11263_v26 = vrot.slane %v11261_v2, 5  ;;  %v19561_v44 = vcombine.low %v19559_v15, %v19560_v20  ;;  %v19571_v50 = vld [vmem:[#allocation67_spill] sm:$0xff]  ;;  %v19578_v22 = vld [vmem:[#allocation72_spill] sm:$0xff]  ;;  %v19580_v16 = vld [vmem:[#allocation73_spill] sm:$0xff] }
 0x7f1   : > { %v11240_v53 = vsel %vm15590_vm6, %v11235_v48, %v11239_v61  ;;  %v11230_v63 = vsel %vm15590_vm6, %v11225_v30, %v11229_v40  ;;  %v19553_v40 = vld [vmem:[#allocation46_spill] sm:$0xff]  ;;  %v19564_v51 = vcombine.low %v19562_v12, %v19563_v32  ;;  %v19567_v38 = vcombine.low %v19565_v25, %v19566_v9  ;;  %v19583_v48 = vld [vmem:[#allocation75_spill] sm:$0xff] }
 0x7f2   : > { %v11264_v47 = vsel %vm15590_vm6, %v11259_v42, %v11263_v26  ;;  %v11287_v1 = vrot.slane %v11285_v6, 5  ;;  %v13188_v33 = vcombine.low %v11230_v63, %v11240_v53  ;;  %v11254_v46 = vsel %vm15590_vm6, %v11249_v13, %v11253_v56  ;;  %v19556_v56 = vld [vmem:[#allocation51_spill] sm:$0xff]  ;;  %v19581_v2 = vld [vmem:[#allocation74_spill] sm:$0xff] }
 0x7f3   : > { %14357 = vmatmul.mubr.msk.bf16.gmra.mrb[48].mxu0 %vm2084_vm7, %v13184_v29  ;;  %v11272_v29 = vor.u32 %v11271_v3, %v11268_v27  ;;  %v13189_v10 = vcombine.low %v11254_v46, %v11264_v47  ;;  %v19555_v49 = vcombine.low %v19553_v40, %v19554_v52  ;;  %v19558_v60 = vcombine.low %v19556_v56, %v19557_v23  ;;  %v19574_v3 = vld [vmem:[#allocation69_spill] sm:$0xff] }
 0x7f4   : > { %14360 = vmatprep.mubr.msk.bf16.mxu0 %vm2084_vm7, %v13185_v34  ;;  %v11282_v34 = vor.u32 %v11281_v24, %v11277_v39  ;;  %v19570_v58 = vcombine.low %v19568_v31, %v19569_v62  ;;  %v19573_v27 = vcombine.low %v19571_v50, %v19572_v5  ;;  %v19584_v61 = vcombine.low %v18554_v41, %v19583_v48 }
 0x7f5   : > { %v11273_v28 = vrot.slane %v11272_v29, 4  ;;  %v19585_v42 = vcombine.low %v18574_v36, %v18589_v0  ;;  %v19586_v30 = vcombine.low %v18593_v14, %v18599_v11  ;;  %v19587_v41 = vcombine.low %v18614_v54, %v18618_v43 }
 0x7f6   : > { %v11283_v8 = vrot.slane %v11282_v34, 4 }
 0x7f7   : > { %v11278_v4 = vsel %vm15590_vm6, %v11273_v28, %v11277_v39  ;;  %v19575_v39 = vld [vmem:[#allocation71_spill] sm:$0xff] }
 0x7f8   : > { %v11288_v17 = vsel %vm15590_vm6, %v11283_v8, %v11287_v1  ;;  %v19576_v24 = vcombine.low %v19574_v3, %v19575_v39 }
 0x7f9   : > { %v13190_v55 = vcombine.low %v11278_v4, %v11288_v17 }
 0x7fb   : > { %14361 = vmatmul.mubr.msk.bf16.gmra.mrb[52].mxu0 %vm2084_vm7, %v13186_v19  ;;  %v19577_v19 = vld [vmem:[#allocation70_spill] sm:$0xff] }
 0x7fc   : > { %14364 = vmatprep.mubr.msk.bf16.mxu0 %vm2084_vm7, %v13187_v7  ;;  %v19579_v18 = vcombine.low %v19577_v19, %v19578_v22  ;;  %v19582_v7 = vcombine.low %v19580_v16, %v19581_v2 }
 0x803   : > { %14365 = vmatmul.mubr.msk.bf16.gmra.mrb[56].mxu0 %vm2084_vm7, %v13188_v33 }
 0x804   : > { %14368 = vmatprep.mubr.msk.bf16.mxu0 %vm2084_vm7, %v13189_v10 }
 0x80b   : > { %14369 = vmatmul.mubr.msk.bf16.gmra.mrb[60].mxu0 %vm2084_vm7, %v13190_v55 }
 0x80c   : > { %14376 = vmatprep.mubr.msk.bf16.mxu0 %vm2084_vm7, %v19555_v49 }
 0x813   : > { %14377 = vmatmul.mubr.msk.bf16.vlgmr.msra.gmra.mrb[32].mxu0 %vm2084_vm7, %v19558_v60 }
 0x814   : > { %14380 = vmatprep.mubr.msk.bf16.mxu0 %vm2084_vm7, %v19561_v44 }
 0x81b   : > { %14381 = vmatmul.mubr.msk.bf16.gmra.mrb[36].mxu0 %vm2084_vm7, %v19564_v51 }
 0x81c   : > { %14384 = vmatprep.mubr.msk.bf16.mxu0 %vm2084_vm7, %v19567_v38 }
 0x823   : > { %14385 = vmatmul.mubr.msk.bf16.gmra.mrb[40].mxu0 %vm2084_vm7, %v19570_v58 }
 0x824   : > { %14388 = vmatprep.mubr.msk.bf16.mxu0 %vm2084_vm7, %v19573_v27 }
 0x82b   : > { %14389 = vmatmul.mubr.msk.bf16.gmra.mrb[44].mxu0 %vm2084_vm7, %v19576_v24 }
 0x82c   : > { %14392 = vmatprep.mubr.msk.bf16.mxu0 %vm2084_vm7, %v19579_v18 }
 0x833   : > { %14393 = vmatmul.mubr.msk.bf16.gmra.mrb[48].mxu0 %vm2084_vm7, %v19582_v7 }
 0x834   : > { %14396 = vmatprep.mubr.msk.bf16.mxu0 %vm2084_vm7, %v19584_v61 }
 0x83b   : > { %14397 = vmatmul.mubr.msk.bf16.gmra.mrb[52].mxu0 %vm2084_vm7, %v13240_v35 }
 0x83c   : > { %14400 = vmatprep.mubr.msk.bf16.mxu0 %vm2084_vm7, %v19585_v42 }
 0x843   : > { %14401 = vmatmul.mubr.msk.bf16.gmra.mrb[56].mxu0 %vm2084_vm7, %v19586_v30 }
 0x844   : > { %14404 = vmatprep.mubr.msk.bf16.mxu0 %vm2084_vm7, %v19587_v41 }
 0x84b   : > { %14405 = vmatmul.mubr.msk.bf16.gmra.mrb[60].mxu0 %vm2084_vm7, %v13244_v21 }
 0x8e6   : > { %v14378_v45 = vpop.f32.mrb[32].mxu0 }
 0x8e7   : > { %12113 = vrot.lane.b32.xlu0 %v14378_v45, %s15184_s21  ;;  %v11918_v36 = vpop.f32.mrb[33].mxu0 }
 0x8e8   : > { %v14379_v57 = vpop.f32.mrb[34].mxu0 }
 0x8e9   : > { %12115 = vrot.lane.b32.xlu1 %v14379_v57, %s15184_s21  ;;  %v11921_v35 = vpop.f32.mrb[35].mxu0 }
 0x8eb   : > { %12109 = vrot.lane.b32.xlu0 %v11918_v36, %s15184_s21 }
 0x8ed   : > { %12111 = vrot.lane.b32.xlu1 %v11921_v35, %s15184_s21 }
 0x8ee   : > { %v14382_v0 = vpop.f32.mrb[36].mxu0 }
 0x8ef   : > { %12121 = vrot.lane.b32.xlu0 %v14382_v0, %s15184_s21  ;;  %v11934_v14 = vpop.f32.mrb[37].mxu0 }
 0x8f0   : > { %v14383_v11 = vpop.f32.mrb[38].mxu0 }
 0x8f1   : > { %12123 = vrot.lane.b32.xlu1 %v14383_v11, %s15184_s21  ;;  %v11937_v54 = vpop.f32.mrb[39].mxu0 }
 0x8f3   : > { %12117 = vrot.lane.b32.xlu0 %v11934_v14, %s15184_s21 }
 0x8f5   : > { %12119 = vrot.lane.b32.xlu1 %v11937_v54, %s15184_s21 }
 0x8f6   : > { %v14386_v43 = vpop.f32.mrb[40].mxu0 }
 0x8f7   : > { %12129 = vrot.lane.b32.xlu0 %v14386_v43, %s15184_s21  ;;  %v11950_v59 = vpop.f32.mrb[41].mxu0 }
 0x8f8   : > { %v14387_v37 = vpop.f32.mrb[42].mxu0 }
 0x8f9   : > { %12131 = vrot.lane.b32.xlu1 %v14387_v37, %s15184_s21  ;;  %v11953_v21 = vpop.f32.mrb[43].mxu0 }
 0x8fb   : > { %12125 = vrot.lane.b32.xlu0 %v11950_v59, %s15184_s21 }
 0x8fd   : > { %12127 = vrot.lane.b32.xlu1 %v11953_v21, %s15184_s21 }
 0x8fe   : > { %v14390_v29 = vpop.f32.mrb[44].mxu0 }
 0x8ff   : > { %12137 = vrot.lane.b32.xlu0 %v14390_v29, %s15184_s21  ;;  %v11966_v34 = vpop.f32.mrb[45].mxu0 }
 0x900   : > { %v14391_v6 = vpop.f32.mrb[46].mxu0 }
 0x901   : > { %12139 = vrot.lane.b32.xlu1 %v14391_v6, %s15184_s21  ;;  %v11969_v13 = vpop.f32.mrb[47].mxu0 }
 0x903   : > { %12133 = vrot.lane.b32.xlu0 %v11966_v34, %s15184_s21 }
 0x905   : > { %12135 = vrot.lane.b32.xlu1 %v11969_v13, %s15184_s21 }
 0x906   : > { %v14394_v26 = vpop.f32.mrb[48].mxu0 }
 0x907   : > { %12145 = vrot.lane.b32.xlu0 %v14394_v26, %s15184_s21  ;;  %v11982_v53 = vpop.f32.mrb[49].mxu0 }
 0x908   : > { %v14395_v47 = vpop.f32.mrb[50].mxu0 }
 0x909   : > { %12147 = vrot.lane.b32.xlu1 %v14395_v47, %s15184_s21  ;;  %v11985_v63 = vpop.f32.mrb[51].mxu0 }
 0x90b   : > { %12141 = vrot.lane.b32.xlu0 %v11982_v53, %s15184_s21 }
 0x90d   : > { %12143 = vrot.lane.b32.xlu1 %v11985_v63, %s15184_s21 }
 0x90e   : > { %v14398_v28 = vpop.f32.mrb[52].mxu0 }
 0x90f   : > { %12153 = vrot.lane.b32.xlu0 %v14398_v28, %s15184_s21  ;;  %v11998_v8 = vpop.f32.mrb[53].mxu0 }
 0x910   : > { %v14399_v1 = vpop.f32.mrb[54].mxu0 }
 0x911   : > { %12155 = vrot.lane.b32.xlu1 %v14399_v1, %s15184_s21  ;;  %v12001_v33 = vpop.f32.mrb[55].mxu0 }
 0x913   : > { %12149 = vrot.lane.b32.xlu0 %v11998_v8, %s15184_s21 }
 0x915   : > { %12151 = vrot.lane.b32.xlu1 %v12001_v33, %s15184_s21 }
 0x916   : > { %v14402_v46 = vpop.f32.mrb[56].mxu0 }
 0x917   : > { %12161 = vrot.lane.b32.xlu0 %v14402_v46, %s15184_s21  ;;  %v12014_v10 = vpop.f32.mrb[57].mxu0 }
 0x918   : > { %v14403_v4 = vpop.f32.mrb[58].mxu0 }
 0x919   : > { %12163 = vrot.lane.b32.xlu1 %v14403_v4, %s15184_s21  ;;  %v12017_v17 = vpop.f32.mrb[59].mxu0 }
 0x91b   : > { %12157 = vrot.lane.b32.xlu0 %v12014_v10, %s15184_s21 }
 0x91d   : > { %12159 = vrot.lane.b32.xlu1 %v12017_v17, %s15184_s21 }
 0x91e   : > { %v14406_v55 = vpop.f32.mrb[60].mxu0 }
 0x91f   : > { %v12030_v40 = vpop.f32.mrb[61].mxu0 }
 0x920   : > { %12165 = vrot.lane.b32.xlu0 %v12030_v40, %s15184_s21  ;;  %v14407_v52 = vpop.f32.mrb[62].mxu0 }
 0x921   : > { %v12033_v49 = vpop.f32.mrb[63].mxu0 }
 0x922   : > { %12167 = vrot.lane.b32.xlu1 %v12033_v49, %s15184_s21 }
 0x924   : > { %12169 = vrot.lane.b32.xlu0 %v14406_v55, %s15184_s21 }
 0x926   : > { %12171 = vrot.lane.b32.xlu1 %v14407_v52, %s15184_s21  ;;  %s15124_s21 = scalar_lea.vmem %s15123_s20, 8192 }
 0x927   : > { %p15126_p1 = scmp.lt.s32.totalorder %s15124_s21, %s15118_s16 }
 0x929   : > { %p15127_p2 = por %p15126_p1, %p15125_p0 }
 0x92b   : > { %p15128_p3 = pnand %p15127_p2, %p15121_p13 }
 0x959   : > { %v12114_v56 = vpop.permute.xlu0 %12113 }
 0x95a   : > { %12208 = vst.msk [vmem:[#allocation2 + $0x10] sm:$0xff] %vm12205_vm1, %v12114_v56 }
 0x95b   : > { %v12116_v23 = vpop.permute.xlu1 %12115 }
 0x95c   : > { %12209 = vst.msk [vmem:[#allocation2 + $0x18] sm:$0xff] %vm12205_vm1, %v12116_v23 }
 0x95d   : > { %v12110_v60 = vpop.permute.xlu0 %12109 }
 0x95e   : > { %12206 = vst.msk [vmem:[#allocation2] sm:$0xff] %vm12205_vm1, %v12110_v60 }
 0x95f   : > { %v12112_v15 = vpop.permute.xlu1 %12111 }
 0x960   : > { %12207 = vst.msk [vmem:[#allocation2 + $0x8] sm:$0xff] %vm12205_vm1, %v12112_v15 }
 0x961   : > { %v12240_v20 = vld [vmem:[#allocation2 + $0x10] sm:$0xff]  ;;  %v12122_v44 = vpop.permute.xlu0 %12121 }
 0x962   : > { %12273 = vst.msk [vmem:[%s19109_s24 + $0x10] sm:$0xff] %vm12270_vm4, %v12240_v20 }
 0x963   : > { %12212 = vst.msk [vmem:[#allocation2 + $0x30] sm:$0xff] %vm12205_vm1, %v12122_v44  ;;  %v12241_v12 = vld [vmem:[#allocation2 + $0x18] sm:$0xff]  ;;  %v12124_v32 = vpop.permute.xlu1 %12123 }
 0x964   : > { %12274 = vst.msk [vmem:[%s19109_s24 + $0x18] sm:$0xff] %vm12270_vm4, %v12241_v12 }
 0x965   : > { %12213 = vst.msk [vmem:[#allocation2 + $0x38] sm:$0xff] %vm12205_vm1, %v12124_v32  ;;  %v12238_v51 = vld [vmem:[#allocation2] sm:$0xff]  ;;  %v12118_v25 = vpop.permute.xlu0 %12117 }
 0x966   : > { %12271 = vst.msk [vmem:[%s19109_s24] sm:$0xff] %vm12270_vm4, %v12238_v51 }
 0x967   : > { %12210 = vst.msk [vmem:[#allocation2 + $0x20] sm:$0xff] %vm12205_vm1, %v12118_v25  ;;  %v12239_v9 = vld [vmem:[#allocation2 + $0x8] sm:$0xff]  ;;  %v12120_v38 = vpop.permute.xlu1 %12119 }
 0x968   : > { %12272 = vst.msk [vmem:[%s19109_s24 + $0x8] sm:$0xff] %vm12270_vm4, %v12239_v9 }
 0x969   : > { %12211 = vst.msk [vmem:[#allocation2 + $0x28] sm:$0xff] %vm12205_vm1, %v12120_v38  ;;  %v12130_v62 = vpop.permute.xlu0 %12129 }
 0x96a   : > { %v12244_v31 = vld [vmem:[#allocation2 + $0x30] sm:$0xff]  ;;  %12216 = vst.msk [vmem:[#allocation2 + $0x50] sm:$0xff] %vm12205_vm1, %v12130_v62 }
 0x96b   : > { %12277 = vst.msk [vmem:[%s19109_s24 + $0x30] sm:$0xff] %vm12270_vm4, %v12244_v31  ;;  %v12132_v50 = vpop.permute.xlu1 %12131 }
 0x96c   : > { %v12245_v58 = vld [vmem:[#allocation2 + $0x38] sm:$0xff]  ;;  %12217 = vst.msk [vmem:[#allocation2 + $0x58] sm:$0xff] %vm12205_vm1, %v12132_v50 }
 0x96d   : > { %12278 = vst.msk [vmem:[%s19109_s24 + $0x38] sm:$0xff] %vm12270_vm4, %v12245_v58  ;;  %v12126_v27 = vpop.permute.xlu0 %12125 }
 0x96e   : > { %v12242_v5 = vld [vmem:[#allocation2 + $0x20] sm:$0xff]  ;;  %12214 = vst.msk [vmem:[#allocation2 + $0x40] sm:$0xff] %vm12205_vm1, %v12126_v27 }
 0x96f   : > { %12275 = vst.msk [vmem:[%s19109_s24 + $0x20] sm:$0xff] %vm12270_vm4, %v12242_v5  ;;  %v12128_v39 = vpop.permute.xlu1 %12127 }
 0x970   : > { %v12243_v3 = vld [vmem:[#allocation2 + $0x28] sm:$0xff]  ;;  %12215 = vst.msk [vmem:[#allocation2 + $0x48] sm:$0xff] %vm12205_vm1, %v12128_v39 }
 0x971   : > { %12276 = vst.msk [vmem:[%s19109_s24 + $0x28] sm:$0xff] %vm12270_vm4, %v12243_v3  ;;  %v12248_v24 = vld [vmem:[#allocation2 + $0x50] sm:$0xff]  ;;  %v12138_v19 = vpop.permute.xlu0 %12137 }
 0x972   : > { %12281 = vst.msk [vmem:[%s19109_s24 + $0x50] sm:$0xff] %vm12270_vm4, %v12248_v24 }
 0x973   : > { %12220 = vst.msk [vmem:[#allocation2 + $0x70] sm:$0xff] %vm12205_vm1, %v12138_v19  ;;  %v12249_v22 = vld [vmem:[#allocation2 + $0x58] sm:$0xff]  ;;  %v12140_v18 = vpop.permute.xlu1 %12139 }
 0x974   : > { %12282 = vst.msk [vmem:[%s19109_s24 + $0x58] sm:$0xff] %vm12270_vm4, %v12249_v22 }
 0x975   : > { %12221 = vst.msk [vmem:[#allocation2 + $0x78] sm:$0xff] %vm12205_vm1, %v12140_v18  ;;  %v12246_v16 = vld [vmem:[#allocation2 + $0x40] sm:$0xff]  ;;  %v12134_v2 = vpop.permute.xlu0 %12133 }
 0x976   : > { %12279 = vst.msk [vmem:[%s19109_s24 + $0x40] sm:$0xff] %vm12270_vm4, %v12246_v16 }
 0x977   : > { %12218 = vst.msk [vmem:[#allocation2 + $0x60] sm:$0xff] %vm12205_vm1, %v12134_v2  ;;  %v12247_v7 = vld [vmem:[#allocation2 + $0x48] sm:$0xff]  ;;  %v12136_v48 = vpop.permute.xlu1 %12135 }
 0x978   : > { %12280 = vst.msk [vmem:[%s19109_s24 + $0x48] sm:$0xff] %vm12270_vm4, %v12247_v7 }
 0x979   : > { %12219 = vst.msk [vmem:[#allocation2 + $0x68] sm:$0xff] %vm12205_vm1, %v12136_v48  ;;  %v12146_v42 = vpop.permute.xlu0 %12145 }
 0x97a   : > { %v12252_v61 = vld [vmem:[#allocation2 + $0x70] sm:$0xff]  ;;  %12224 = vst.msk [vmem:[#allocation2 + $0x90] sm:$0xff] %vm12205_vm1, %v12146_v42 }
 0x97b   : > { %12285 = vst.msk [vmem:[%s19109_s24 + $0x70] sm:$0xff] %vm12270_vm4, %v12252_v61  ;;  %v12148_v41 = vpop.permute.xlu1 %12147 }
 0x97c   : > { %v12253_v30 = vld [vmem:[#allocation2 + $0x78] sm:$0xff]  ;;  %12225 = vst.msk [vmem:[#allocation2 + $0x98] sm:$0xff] %vm12205_vm1, %v12148_v41 }
 0x97d   : > { %12286 = vst.msk [vmem:[%s19109_s24 + $0x78] sm:$0xff] %vm12270_vm4, %v12253_v30  ;;  %v12142_v36 = vpop.permute.xlu0 %12141 }
 0x97e   : > { %v12250_v45 = vld [vmem:[#allocation2 + $0x60] sm:$0xff]  ;;  %12222 = vst.msk [vmem:[#allocation2 + $0x80] sm:$0xff] %vm12205_vm1, %v12142_v36 }
 0x97f   : > { %12283 = vst.msk [vmem:[%s19109_s24 + $0x60] sm:$0xff] %vm12270_vm4, %v12250_v45  ;;  %v12144_v35 = vpop.permute.xlu1 %12143 }
 0x980   : > { %v12251_v57 = vld [vmem:[#allocation2 + $0x68] sm:$0xff]  ;;  %12223 = vst.msk [vmem:[#allocation2 + $0x88] sm:$0xff] %vm12205_vm1, %v12144_v35 }
 0x981   : > { %12284 = vst.msk [vmem:[%s19109_s24 + $0x68] sm:$0xff] %vm12270_vm4, %v12251_v57  ;;  %v12256_v0 = vld [vmem:[#allocation2 + $0x90] sm:$0xff]  ;;  %v12154_v14 = vpop.permute.xlu0 %12153 }
 0x982   : > { %12289 = vst.msk [vmem:[%s19109_s24 + $0x90] sm:$0xff] %vm12270_vm4, %v12256_v0 }
 0x983   : > { %12228 = vst.msk [vmem:[#allocation2 + $0xb0] sm:$0xff] %vm12205_vm1, %v12154_v14  ;;  %v12257_v11 = vld [vmem:[#allocation2 + $0x98] sm:$0xff]  ;;  %v12156_v54 = vpop.permute.xlu1 %12155 }
 0x984   : > { %12290 = vst.msk [vmem:[%s19109_s24 + $0x98] sm:$0xff] %vm12270_vm4, %v12257_v11 }
 0x985   : > { %12229 = vst.msk [vmem:[#allocation2 + $0xb8] sm:$0xff] %vm12205_vm1, %v12156_v54  ;;  %v12254_v43 = vld [vmem:[#allocation2 + $0x80] sm:$0xff]  ;;  %v12150_v59 = vpop.permute.xlu0 %12149 }
 0x986   : > { %12287 = vst.msk [vmem:[%s19109_s24 + $0x80] sm:$0xff] %vm12270_vm4, %v12254_v43 }
 0x987   : > { %12226 = vst.msk [vmem:[#allocation2 + $0xa0] sm:$0xff] %vm12205_vm1, %v12150_v59  ;;  %v12255_v37 = vld [vmem:[#allocation2 + $0x88] sm:$0xff]  ;;  %v12152_v21 = vpop.permute.xlu1 %12151 }
 0x988   : > { %12288 = vst.msk [vmem:[%s19109_s24 + $0x88] sm:$0xff] %vm12270_vm4, %v12255_v37 }
 0x989   : > { %12227 = vst.msk [vmem:[#allocation2 + $0xa8] sm:$0xff] %vm12205_vm1, %v12152_v21  ;;  %v12162_v34 = vpop.permute.xlu0 %12161 }
 0x98a   : > { %v12260_v29 = vld [vmem:[#allocation2 + $0xb0] sm:$0xff]  ;;  %12232 = vst.msk [vmem:[#allocation2 + $0xd0] sm:$0xff] %vm12205_vm1, %v12162_v34 }
 0x98b   : > { %12293 = vst.msk [vmem:[%s19109_s24 + $0xb0] sm:$0xff] %vm12270_vm4, %v12260_v29  ;;  %v12164_v13 = vpop.permute.xlu1 %12163 }
 0x98c   : > { %v12261_v6 = vld [vmem:[#allocation2 + $0xb8] sm:$0xff]  ;;  %12233 = vst.msk [vmem:[#allocation2 + $0xd8] sm:$0xff] %vm12205_vm1, %v12164_v13 }
 0x98d   : > { %12294 = vst.msk [vmem:[%s19109_s24 + $0xb8] sm:$0xff] %vm12270_vm4, %v12261_v6  ;;  %v12158_v53 = vpop.permute.xlu0 %12157 }
 0x98e   : > { %v12258_v26 = vld [vmem:[#allocation2 + $0xa0] sm:$0xff]  ;;  %12230 = vst.msk [vmem:[#allocation2 + $0xc0] sm:$0xff] %vm12205_vm1, %v12158_v53 }
 0x98f   : > { %12291 = vst.msk [vmem:[%s19109_s24 + $0xa0] sm:$0xff] %vm12270_vm4, %v12258_v26  ;;  %v12160_v63 = vpop.permute.xlu1 %12159 }
 0x990   : > { %v12259_v47 = vld [vmem:[#allocation2 + $0xa8] sm:$0xff]  ;;  %12231 = vst.msk [vmem:[#allocation2 + $0xc8] sm:$0xff] %vm12205_vm1, %v12160_v63 }
 0x991   : > { %12292 = vst.msk [vmem:[%s19109_s24 + $0xa8] sm:$0xff] %vm12270_vm4, %v12259_v47  ;;  %v12264_v28 = vld [vmem:[#allocation2 + $0xd0] sm:$0xff] }
 0x992   : > { %12297 = vst.msk [vmem:[%s19109_s24 + $0xd0] sm:$0xff] %vm12270_vm4, %v12264_v28  ;;  %v12166_v8 = vpop.permute.xlu0 %12165 }
 0x993   : > { %v12265_v1 = vld [vmem:[#allocation2 + $0xd8] sm:$0xff]  ;;  %12234 = vst.msk [vmem:[#allocation2 + $0xe0] sm:$0xff] %vm12205_vm1, %v12166_v8 }
 0x994   : > { %12298 = vst.msk [vmem:[%s19109_s24 + $0xd8] sm:$0xff] %vm12270_vm4, %v12265_v1  ;;  %v12168_v33 = vpop.permute.xlu1 %12167 }
 0x995   : > { %v12262_v46 = vld [vmem:[#allocation2 + $0xc0] sm:$0xff]  ;;  %12235 = vst.msk [vmem:[#allocation2 + $0xe8] sm:$0xff] %vm12205_vm1, %v12168_v33 }
 0x996   : > { %12295 = vst.msk [vmem:[%s19109_s24 + $0xc0] sm:$0xff] %vm12270_vm4, %v12262_v46  ;;  %v12170_v10 = vpop.permute.xlu0 %12169 }
 0x997   : > { %v12263_v4 = vld [vmem:[#allocation2 + $0xc8] sm:$0xff]  ;;  %12236 = vst.msk [vmem:[#allocation2 + $0xf0] sm:$0xff] %vm12205_vm1, %v12170_v10 }
 0x998   : > { %12296 = vst.msk [vmem:[%s19109_s24 + $0xc8] sm:$0xff] %vm12270_vm4, %v12263_v4  ;;  %v12172_v17 = vpop.permute.xlu1 %12171 }
 0x999   : > { %12237 = vst.msk [vmem:[#allocation2 + $0xf8] sm:$0xff] %vm12205_vm1, %v12172_v17 }
 0x99a   : > { %v12266_v55 = vld [vmem:[#allocation2 + $0xe0] sm:$0xff] }
 0x99b   : > { %12299 = vst.msk [vmem:[%s19109_s24 + $0xe0] sm:$0xff] %vm12270_vm4, %v12266_v55 }
 0x99c   : > { %v12267_v40 = vld [vmem:[#allocation2 + $0xe8] sm:$0xff] }
 0x99d   : > { %12300 = vst.msk [vmem:[%s19109_s24 + $0xe8] sm:$0xff] %vm12270_vm4, %v12267_v40 }
 0x99e   : > { %v12268_v52 = vld [vmem:[#allocation2 + $0xf0] sm:$0xff] }
 0x99f   : > { %12301 = vst.msk [vmem:[%s19109_s24 + $0xf0] sm:$0xff] %vm12270_vm4, %v12268_v52 }
 0x9a0   : > { %v12269_v49 = vld [vmem:[#allocation2 + $0xf8] sm:$0xff] }
 0x9a1   : > { %12302 = vst.msk [vmem:[%s19109_s24 + $0xf8] sm:$0xff] %vm12270_vm4, %v12269_v49 }
 0x9a2   : > { %15131 = shalt.err (!%p15128_p3)
}
 0x9a3   : > { %s15132_s22 = scalar_lea.hbm %s19204_s23, 4096  ;;  %s15136_s30 = scalar_lea.hbm %s19269_s13, 8192 }
 0x9a4   : > { %p15133_p4 = scmp.ne.s32.totalorder %s19204_s23, %s15132_s22  ;;  %p15137_p9 = scmp.lt.u32.totalorder %s19204_s23, %s19269_s13 }
 0x9a5   : > { %p15138_p10 = scmp.lt.u32.totalorder %s15136_s30, %s15132_s22  ;;  %p15140_p12 = scmp.lt.u32.totalorder %s15132_s22, %s19204_s23 }
 0x9a6   : > { %p15134_p7 = pnand %p15133_p4, %p15295_p5 }
 0x9a7   : > { %p15139_p11 = por %p15138_p10, %p15137_p9 }
 0x9a8   : > { %p15135_p8 = pneg %p15134_p7 }
 0x9a9   : > { %p15141_p13 = por %p15140_p12, %p15139_p11 }
 0x9ab   : > { %p15142_p0 = pnand %p15141_p13, %p15135_p8 }
 0x9ad   : > { %15145 = shalt.err (!%p15142_p0)
}
 0x9ae   : > { %s15186_s16 = smov 128   ;;  %s19588_s21 = smov 8  }
 0x9af   : > { %14921 = dma.vmem_to_hbm [thread:$0]  (%p15295_p5), %s19208_s15, 4096, %s19204_s23, %s19214_s29, %s15186_s16, %s15186_s16, %s19588_s21  }
 0x9b0 PF: > { %p14927_p1 = scmp.ge.s32.totalorder %s15180_s28, 2  ;;  %s12332_s0 = sand.u32 1, %s15168_s25  }
 0x9b1   : > { %s12333_s1 = scalar_lea.sflag [#allocation5], %s12332_s0 }
 0x9b2   : > { %p14924_p2 = pnand %p14927_p1, %p15299_p6 }
 0x9b4   : > { %15163 = dma.done.wait (!%p14924_p2), %s12333_s1, 4096  }
 0x9b5   : > { %15165 = vsyncadd (!%p14924_p2), %s12333_s1, 4294963200  ;;  %p23_p3 = scmp.ge.s32.totalorder %s15282_s14, 4   ;;  %s19589_s25 = smov %s15172_s26 }
 0x9b6   : > { %s19590_s26 = smov %s15176_s27  ;;  %s19591_s27 = smov %s15293_s17 }
 0x9b7   : > { %s19592_s28 = smov %s15282_s14  ;;  %25 = sbr.rel (!%p23_p3) target bundleno = 6 (0x6), region = 125 }
 0x9be   :  { %12338 = vsyncpa [#allocation5], 1 }
 0x9bf   :  { %12340 = vsyncpa [#allocation5 + $0x1], 1 }

</bundles_post_ra>
